<compile_context>
chip_gen: v7x
topology: tpu7x:2x2x1
jax: 0.10.0
libtpu: 0.0.40
codegen_flags: <defaults>
</compile_context>

<pallas_src>
import numpy as np
import jax
import jax.numpy as jnp
from jax import lax
from jax.experimental import pallas as pl
from jax.experimental.pallas import tpu as pltpu

BN_EPS = 1e-5


# ----------------------------- helpers -------------------------------------

def _round_up(v, m):
    return (v + m - 1) // m * m


def _fold_bn_bias(bn, bias):
    # (conv + b) * scale + shift  ==  conv * scale + (shift + b * scale)
    gamma, beta, mean, var = bn
    scale = gamma / jnp.sqrt(var + BN_EPS)
    shift = beta - mean * scale + bias * scale
    return scale.reshape(1, -1), shift.reshape(1, -1)


# ----------------------------- fused Pallas kernel -------------------------

def _make_kernel(H, W, Ch, Cin, Cout, G):
    """Fused: ConvTranspose2d(k2,s2) + concat + (conv3x3+BN+ReLU) x2."""
    Hc, Wc = 2 * H, 2 * W
    HW, Mc = H * W, Hc * Wc
    rows = Mc + 2 * G
    cdt = jnp.bfloat16                         # staging dtype (MXU-native)
    wc_pow2 = (Wc & (Wc - 1)) == 0

    def kernel(x_ref, r_ref, wt_ref, bt_ref,
               w1_ref, s1_ref, t1_ref, w2_ref, s2_ref, t2_ref,
               o_ref, fcat_ref, fh1_ref, col1_ref, col2_ref):
        f32 = jnp.float32

        # ---- zero ONLY the guard rows (interior is fully rewritten) --------
        fcat_ref[0:G, :] = jnp.zeros((G, Cin), cdt)
        fcat_ref[G + Mc:rows, :] = jnp.zeros((G, Cin), cdt)
        fh1_ref[0:G, :] = jnp.zeros((G, Cout), cdt)
        fh1_ref[G + Mc:rows, :] = jnp.zeros((G, Cout), cdt)

        # ---- hoisted width-edge masks (multiplicative 0/1, built once) -----
        m_col = lax.broadcasted_iota(jnp.int32, (Mc, 1), 0)
        b_idx = (m_col & (Wc - 1)) if wc_pow2 else (m_col % Wc)
        nl = b_idx != 0                         # has a left neighbour
        nr = b_idx != (Wc - 1)                  # has a right neighbour
        ml_in = jnp.broadcast_to(nl, (Mc, Cin)).astype(cdt)
        mr_in = jnp.broadcast_to(nr, (Mc, Cin)).astype(cdt)
        if Cout == Cin:
            ml_out, mr_out = ml_in, mr_in
        else:
            ml_out = jnp.broadcast_to(nl, (Mc, Cout)).astype(cdt)
            mr_out = jnp.broadcast_to(nr, (Mc, Cout)).astype(cdt)

        # ---- ConvTranspose2d(k=2, s=2): one low-res dot, linear scatter ----
        xt = x_ref[0].T                                        # (HW, Cin)
        u = jnp.dot(xt, wt_ref[...],
                    preferred_element_type=f32) + bt_ref[...]  # (HW, 4*Ch)

        # Per output row pair: stretch width x2 with a tiny constant 0/1
        # matmul, pick the kx phase by column parity, store contiguously.
        qi = lax.broadcasted_iota(jnp.int32, (Wc, W), 0)
        xi = lax.broadcasted_iota(jnp.int32, (Wc, W), 1)
        rep = jnp.where((qi >> 1) == xi, 1.0, 0.0)             # (Wc, W)
        q_odd = (lax.broadcasted_iota(jnp.int32, (Wc, 1), 0) & 1) == 1
        for y in range(H):
            st = jnp.dot(rep, u[y * W:(y + 1) * W, :],
                         preferred_element_type=f32)           # (Wc, 4*Ch)
            for ky in range(2):
                lo = 2 * ky * Ch
                row = jnp.where(q_odd,
                                st[:, lo + Ch:lo + 2 * Ch],    # kx = 1
                                st[:, lo:lo + Ch])             # kx = 0
                base = G + (2 * y + ky) * Wc
                fcat_ref[base:base + Wc, 0:Ch] = row.astype(cdt)

        # ---- concat skip connection on the channel lanes -------------------
        fcat_ref[G:G + Mc, Ch:Cin] = r_ref[0].T.astype(cdt)    # (Mc, Ch)

        # ---- 3x3 conv: in-VMEM im2col (K = 9*C) + ONE MXU dot --------------
        def conv3x3(src_ref, col_ref, w_ref, c, mask_l, mask_r):
            t = 0
            for ky in range(3):
                for kx in range(3):
                    start = G + (ky - 1) * Wc + (kx - 1)
                    tap = src_ref[start:start + Mc, :]          # (Mc, c) bf16
                    if kx == 0:
                        tap = tap * mask_l
                    elif kx == 2:
                        tap = tap * mask_r
                    col_ref[:, t * c:(t + 1) * c] = tap
                    t += 1
            return jnp.dot(col_ref[...], w_ref[...],
                           preferred_element_type=f32)          # (Mc, Cout)

        # conv1 + (BN1 w/ folded bias) + ReLU
        h1 = conv3x3(fcat_ref, col1_ref, w1_ref, Cin, ml_in, mr_in)
        h1 = jnp.maximum(h1 * s1_ref[...] + t1_ref[...], 0.0)
        fh1_ref[G:G + Mc, :] = h1.astype(cdt)

        # conv2 + (BN2 w/ folded bias) + ReLU
        h2 = conv3x3(fh1_ref, col2_ref, w2_ref, Cout, ml_out, mr_out)
        h2 = jnp.maximum(h2 * s2_ref[...] + t2_ref[...], 0.0)

        # channels-major store: (Cout, Mc) with Mc (=256) on lanes.
        o_ref[0] = h2.T.astype(o_ref.dtype)

    return kernel


# ----------------------------- wrapper --------------------------------------

def upsampling_forward(x_nchw, r_nchw, params):
    N, Cin, H, W = x_nchw.shape
    Ch = Cin // 2
    Nr, Chr, Hc, Wc = r_nchw.shape
    assert Nr == N and Chr == Ch and Hc == 2 * H and Wc == 2 * W
    Cout = params["w1"].shape[0]
    HW, Mc = H * W, Hc * Wc
    G = _round_up(Wc + 1, 8)                   # aligned guard rows (>= Wc+1)
    rows = Mc + 2 * G

    # FREE reshapes only; channel-major NCHW goes straight into the kernel.
    x3 = x_nchw.reshape(N, Cin, HW)
    r3 = r_nchw.reshape(N, Ch, Mc)

    # Parameter folding (tiny, done once).
    wt = jnp.transpose(params["wt"], (0, 2, 3, 1)).reshape(Cin, 4 * Ch)
    bt4 = jnp.tile(params["bt"].reshape(1, Ch), (1, 4))
    w1 = jnp.transpose(params["w1"], (2, 3, 1, 0)).reshape(9 * Cin, Cout)
    w2 = jnp.transpose(params["w2"], (2, 3, 1, 0)).reshape(9 * Cout, Cout)
    w1 = w1.astype(jnp.bfloat16)
    w2 = w2.astype(jnp.bfloat16)
    s1, t1 = _fold_bn_bias(params["bn1"], params["b1"])
    s2, t2 = _fold_bn_bias(params["bn2"], params["b2"])

    kernel = _make_kernel(H, W, Ch, Cin, Cout, G)

    def resident(shape):                        # constant index_map -> resident
        nd = len(shape)
        return pl.BlockSpec(shape, lambda n, _nd=nd: (0,) * _nd)

    out3 = pl.pallas_call(
        kernel,
        out_shape=jax.ShapeDtypeStruct((N, Cout, Mc), jnp.float32),
        grid=(N,),
        in_specs=[
            pl.BlockSpec((1, Cin, HW), lambda n: (n, 0, 0)),   # x (one image)
            pl.BlockSpec((1, Ch, Mc), lambda n: (n, 0, 0)),    # r (one image)
            resident((Cin, 4 * Ch)),                           # transposed-conv W
            resident((1, 4 * Ch)),                             # transposed-conv b x4
            resident((9 * Cin, Cout)),                         # conv1 W (im2col)
            resident((1, Cout)), resident((1, Cout)),          # BN1 scale/shift'
            resident((9 * Cout, Cout)),                        # conv2 W (im2col)
            resident((1, Cout)), resident((1, Cout)),          # BN2 scale/shift'
        ],
        out_specs=pl.BlockSpec((1, Cout, Mc), lambda n: (n, 0, 0)),
        scratch_shapes=[
            pltpu.VMEM((rows, Cin), jnp.bfloat16),             # padded cat image
            pltpu.VMEM((rows, Cout), jnp.bfloat16),            # padded conv1 out
            pltpu.VMEM((Mc, 9 * Cin), jnp.bfloat16),           # im2col slab 1
            pltpu.VMEM((Mc, 9 * Cout), jnp.bfloat16),          # im2col slab 2
        ],
        compiler_params=pltpu.CompilerParams(
            dimension_semantics=("parallel",)),
    )(x3, r3, wt, bt4, w1, s1, t1, w2, s2, t2)

    return out3.reshape(N, Cout, Hc, Wc)                       # free reshape


# ----------------------------- reference & params ---------------------------

def reference_forward(x_nchw, r_nchw, params):
    N, Cin, H, W = x_nchw.shape
    Ch = Cin // 2
    # ConvTranspose2d(Cin, Cin//2, kernel_size=2, stride=2)
    up = jnp.einsum('ncij,cokl->noikjl', x_nchw, params["wt"],
                    precision=lax.Precision.HIGHEST)
    up = up.reshape(N, Ch, 2 * H, 2 * W) + params["bt"][None, :, None, None]
    cat = jnp.concatenate([up, r_nchw], axis=1)

    def conv(h, w, b, pad):
        y = lax.conv_general_dilated(
            h, w, window_strides=(1, 1), padding=[(pad, pad), (pad, pad)],
            dimension_numbers=("NCHW", "OIHW", "NCHW"),
            precision=lax.Precision.HIGHEST)
        return y + b[None, :, None, None]

    def bn(h, bn_p):
        g, bta, mu, var = bn_p
        scale = g / jnp.sqrt(var + BN_EPS)
        shift = bta - mu * scale
        return h * scale[None, :, None, None] + shift[None, :, None, None]

    h = jnp.maximum(bn(conv(cat, params["w1"], params["b1"], 1), params["bn1"]), 0.0)
    h = jnp.maximum(bn(conv(h, params["w2"], params["b2"], 1), params["bn2"]), 0.0)
    return h


def init_params(key, cin, cout):
    ch = cin // 2
    ks = jax.random.split(key, 14)

    def nrm(k, shape, scale=0.1):
        return scale * jax.random.normal(k, shape, jnp.float32)

    return {
        "wt": nrm(ks[0], (cin, ch, 2, 2)),     # ConvTranspose2d weight (I,O,kh,kw)
        "bt": nrm(ks[1], (ch,)),
        "w1": nrm(ks[2], (cout, cin, 3, 3)),
        "b1": nrm(ks[3], (cout,)),
        "bn1": (1.0 + nrm(ks[4], (cout,)), nrm(ks[5], (cout,)),
                nrm(ks[6], (cout,)), 1.0 + jnp.abs(nrm(ks[7], (cout,)))),
        "w2": nrm(ks[8], (cout, cout, 3, 3)),
        "b2": nrm(ks[9], (cout,)),
        "bn2": (1.0 + nrm(ks[10], (cout,)), nrm(ks[11], (cout,)),
                nrm(ks[12], (cout,)), 1.0 + jnp.abs(nrm(ks[13], (cout,)))),
    }


if __name__ == "__main__":
    key = jax.random.PRNGKey(0)
    k_x, k_r, k_p = jax.random.split(key, 3)

    N, CIN, COUT, H, W = 2, 16, 16, 8, 8
    x = jax.random.normal(k_x, (N, CIN, H, W), jnp.float32)
    r = jax.random.normal(k_r, (N, CIN // 2, 2 * H, 2 * W), jnp.float32)
    params = init_params(k_p, CIN, COUT)

    out = jax.block_until_ready(upsampling_forward(x, r, params))
    assert out.shape == (N, COUT, 2 * H, 2 * W), out.shape

    ref = jax.block_until_ready(reference_forward(x, r, params))
    out_np, ref_np = np.asarray(out), np.asarray(ref)
    assert np.all(np.isfinite(out_np))
    # Kernel runs the MXU in default (bf16, f32-accumulate) precision with
    # bf16 staging, compared against an f32 HIGHEST-precision reference:
    # use a bf16-appropriate tolerance, plus a tight mean-error check that
    # still catches structural bugs (wrong taps / scatter / masks).
    err = np.abs(out_np - ref_np)
    assert float(err.mean()) < 1.5e-2, float(err.mean())
    assert np.allclose(out_np, ref_np, rtol=5e-2, atol=5e-2), float(err.max())

    print("KERNEL_OK")
</pallas_src>

<mosaic_0001>
module attributes {stable_mosaic.version = 11 : i64} {
  func.func @kernel(%arg0: i32, %arg1: memref<1x16x64xf32, #tpu.memory_space<vmem>>, %arg2: memref<1x8x256xf32, #tpu.memory_space<vmem>>, %arg3: memref<16x32xf32, #tpu.memory_space<vmem>>, %arg4: memref<1x32xf32, #tpu.memory_space<vmem>>, %arg5: memref<144x16xbf16, #tpu.memory_space<vmem>>, %arg6: memref<1x16xf32, #tpu.memory_space<vmem>>, %arg7: memref<1x16xf32, #tpu.memory_space<vmem>>, %arg8: memref<144x16xbf16, #tpu.memory_space<vmem>>, %arg9: memref<1x16xf32, #tpu.memory_space<vmem>>, %arg10: memref<1x16xf32, #tpu.memory_space<vmem>>, %arg11: memref<1x16x256xf32, #tpu.memory_space<vmem>>, %arg12: memref<304x16xbf16, #tpu.memory_space<vmem>>, %arg13: memref<304x16xbf16, #tpu.memory_space<vmem>>, %arg14: memref<256x144xbf16, #tpu.memory_space<vmem>>, %arg15: memref<256x144xbf16, #tpu.memory_space<vmem>>) attributes {dimension_semantics = [#tpu.dimension_semantics<parallel>], iteration_bounds = array<i64: 2>, scalar_prefetch = 0 : i64, scratch_operands = 4 : i64, tpu.core_type = #tpu.core_type<tc>, window_params = [{transform_indices = @transform_0, window_bounds = array<i64: 1, 16, 64>}, {transform_indices = @transform_1, window_bounds = array<i64: 1, 8, 256>}, {pipeline_mode = #tpu.pipeline_mode<synchronous>, transform_indices = @transform_2, window_bounds = array<i64: 16, 32>}, {pipeline_mode = #tpu.pipeline_mode<synchronous>, transform_indices = @transform_3, window_bounds = array<i64: 1, 32>}, {pipeline_mode = #tpu.pipeline_mode<synchronous>, transform_indices = @transform_4, window_bounds = array<i64: 144, 16>}, {pipeline_mode = #tpu.pipeline_mode<synchronous>, transform_indices = @transform_5, window_bounds = array<i64: 1, 16>}, {pipeline_mode = #tpu.pipeline_mode<synchronous>, transform_indices = @transform_6, window_bounds = array<i64: 1, 16>}, {pipeline_mode = #tpu.pipeline_mode<synchronous>, transform_indices = @transform_7, window_bounds = array<i64: 144, 16>}, {pipeline_mode = #tpu.pipeline_mode<synchronous>, transform_indices = @transform_8, window_bounds = array<i64: 1, 16>}, {pipeline_mode = #tpu.pipeline_mode<synchronous>, transform_indices = @transform_9, window_bounds = array<i64: 1, 16>}, {transform_indices = @transform_10, window_bounds = array<i64: 1, 16, 256>}]} {
    %cst = arith.constant 0.000000e+00 : bf16
    %0 = vector.broadcast %cst : bf16 to vector<24x16xbf16>
    %c0 = arith.constant 0 : index
    %c0_0 = arith.constant 0 : index
    %1 = vector.load %arg12[%c0, %c0_0] : memref<304x16xbf16, #tpu.memory_space<vmem>>, vector<24x16xbf16>
    tpu.vector_store %arg12[%c0, %c0_0], %0 {strides = array<i32>} : memref<304x16xbf16, #tpu.memory_space<vmem>>, vector<24x16xbf16>,
    %cst_1 = arith.constant 0.000000e+00 : bf16
    %2 = vector.broadcast %cst_1 : bf16 to vector<24x16xbf16>
    %c280 = arith.constant 280 : index
    %c0_2 = arith.constant 0 : index
    %3 = vector.load %arg12[%c280, %c0_2] : memref<304x16xbf16, #tpu.memory_space<vmem>>, vector<24x16xbf16>
    tpu.vector_store %arg12[%c280, %c0_2], %2 {strides = array<i32>} : memref<304x16xbf16, #tpu.memory_space<vmem>>, vector<24x16xbf16>,
    %cst_3 = arith.constant 0.000000e+00 : bf16
    %4 = vector.broadcast %cst_3 : bf16 to vector<24x16xbf16>
    %c0_4 = arith.constant 0 : index
    %c0_5 = arith.constant 0 : index
    %5 = vector.load %arg13[%c0_4, %c0_5] : memref<304x16xbf16, #tpu.memory_space<vmem>>, vector<24x16xbf16>
    tpu.vector_store %arg13[%c0_4, %c0_5], %4 {strides = array<i32>} : memref<304x16xbf16, #tpu.memory_space<vmem>>, vector<24x16xbf16>,
    %cst_6 = arith.constant 0.000000e+00 : bf16
    %6 = vector.broadcast %cst_6 : bf16 to vector<24x16xbf16>
    %c280_7 = arith.constant 280 : index
    %c0_8 = arith.constant 0 : index
    %7 = vector.load %arg13[%c280_7, %c0_8] : memref<304x16xbf16, #tpu.memory_space<vmem>>, vector<24x16xbf16>
    tpu.vector_store %arg13[%c280_7, %c0_8], %6 {strides = array<i32>} : memref<304x16xbf16, #tpu.memory_space<vmem>>, vector<24x16xbf16>,
    %8 = tpu.iota {dimensions = array<i32: 0>} : vector<256x1xi32>
    %c15_i32 = arith.constant 15 : i32
    %9 = vector.broadcast %c15_i32 : i32 to vector<256x1xi32>
    %10 = arith.andi %8, %9 : vector<256x1xi32>
    %c0_i32 = arith.constant 0 : i32
    %11 = vector.broadcast %c0_i32 : i32 to vector<256x1xi32>
    %12 = arith.cmpi ne, %10, %11 : vector<256x1xi32>
    %c15_i32_9 = arith.constant 15 : i32
    %13 = vector.broadcast %c15_i32_9 : i32 to vector<256x1xi32>
    %14 = arith.cmpi ne, %10, %13 : vector<256x1xi32>
    %15 = vector.shape_cast %12 : vector<256x1xi1> to vector<256x1xi1>
    %16 = vector.broadcast %15 : vector<256x1xi1> to vector<256x16xi1>
    %17 = arith.extui %16 : vector<256x16xi1> to vector<256x16xi32>
    %18 = arith.sitofp %17 : vector<256x16xi32> to vector<256x16xf32>
    %19 = arith.truncf %18 : vector<256x16xf32> to vector<256x16xbf16>
    %20 = vector.shape_cast %14 : vector<256x1xi1> to vector<256x1xi1>
    %21 = vector.broadcast %20 : vector<256x1xi1> to vector<256x16xi1>
    %22 = arith.extui %21 : vector<256x16xi1> to vector<256x16xi32>
    %23 = arith.sitofp %22 : vector<256x16xi32> to vector<256x16xf32>
    %24 = arith.truncf %23 : vector<256x16xf32> to vector<256x16xbf16>
    %c0_10 = arith.constant 0 : index
    %c0_11 = arith.constant 0 : index
    %c0_12 = arith.constant 0 : index
    %25 = vector.load %arg1[%c0_10, %c0_11, %c0_12] : memref<1x16x64xf32, #tpu.memory_space<vmem>>, vector<1x16x64xf32>
    %26 = vector.shape_cast %25 : vector<1x16x64xf32> to vector<16x64xf32>
    %27 = tpu.transpose %26, [1, 0] : vector<16x64xf32> -> vector<64x16xf32>
    %c0_13 = arith.constant 0 : index
    %c0_14 = arith.constant 0 : index
    %28 = vector.load %arg3[%c0_13, %c0_14] : memref<16x32xf32, #tpu.memory_space<vmem>>, vector<16x32xf32>
    %cst_15 = arith.constant dense<0.000000e+00> : vector<64x32xf32>
    %29 = tpu.matmul %27, %28, %cst_15 {dimension_numbers = #tpu.dot_dimension_numbers<[1], [0], [0], [1], [0, 0, 1, 1], [], []>} : vector<64x16xf32>, vector<16x32xf32>, vector<64x32xf32> -> vector<64x32xf32>
    %c0_16 = arith.constant 0 : index
    %c0_17 = arith.constant 0 : index
    %30 = vector.load %arg4[%c0_16, %c0_17] : memref<1x32xf32, #tpu.memory_space<vmem>>, vector<1x32xf32>
    %31 = vector.broadcast %30 : vector<1x32xf32> to vector<64x32xf32>
    %32 = arith.addf %29, %31 : vector<64x32xf32>
    %33 = tpu.iota {dimensions = array<i32: 0>} : vector<16x8xi32>
    %34 = tpu.iota {dimensions = array<i32: 1>} : vector<16x8xi32>
    %c1_i32 = arith.constant 1 : i32
    %35 = vector.broadcast %c1_i32 : i32 to vector<16x8xi32>
    %36 = arith.shrsi %33, %35 : vector<16x8xi32>
    %37 = arith.cmpi eq, %36, %34 : vector<16x8xi32>
    %cst_18 = arith.constant 1.000000e+00 : f32
    %cst_19 = arith.constant 0.000000e+00 : f32
    %38 = vector.broadcast %cst_18 : f32 to vector<16x8xf32>
    %39 = vector.broadcast %cst_19 : f32 to vector<16x8xf32>
    %40 = arith.select %37, %38, %39 : vector<16x8xi1>, vector<16x8xf32>
    %41 = tpu.iota {dimensions = array<i32: 0>} : vector<16x1xi32>
    %c1_i32_20 = arith.constant 1 : i32
    %42 = vector.broadcast %c1_i32_20 : i32 to vector<16x1xi32>
    %43 = arith.andi %41, %42 : vector<16x1xi32>
    %c1_i32_21 = arith.constant 1 : i32
    %44 = vector.broadcast %c1_i32_21 : i32 to vector<16x1xi32>
    %45 = arith.cmpi eq, %43, %44 : vector<16x1xi32>
    %46 = vector.extract_strided_slice %32 {offsets = [0, 0], sizes = [8, 32], strides = [1, 1]} : vector<64x32xf32> to vector<8x32xf32>
    %cst_22 = arith.constant dense<0.000000e+00> : vector<16x32xf32>
    %47 = tpu.matmul %40, %46, %cst_22 {dimension_numbers = #tpu.dot_dimension_numbers<[1], [0], [0], [1], [0, 0, 1, 1], [], []>} : vector<16x8xf32>, vector<8x32xf32>, vector<16x32xf32> -> vector<16x32xf32>
    %48 = vector.extract_strided_slice %47 {offsets = [0, 8], sizes = [16, 8], strides = [1, 1]} : vector<16x32xf32> to vector<16x8xf32>
    %49 = vector.extract_strided_slice %47 {offsets = [0, 0], sizes = [16, 8], strides = [1, 1]} : vector<16x32xf32> to vector<16x8xf32>
    %50 = vector.shape_cast %45 : vector<16x1xi1> to vector<16x1xi1>
    %51 = vector.broadcast %50 : vector<16x1xi1> to vector<16x8xi1>
    %52 = arith.select %51, %48, %49 : vector<16x8xi1>, vector<16x8xf32>
    %53 = arith.truncf %52 : vector<16x8xf32> to vector<16x8xbf16>
    %c24 = arith.constant 24 : index
    %c0_23 = arith.constant 0 : index
    %54 = vector.load %arg12[%c24, %c0_23] : memref<304x16xbf16, #tpu.memory_space<vmem>>, vector<16x8xbf16>
    tpu.vector_store %arg12[%c24, %c0_23], %53 {strides = array<i32>} : memref<304x16xbf16, #tpu.memory_space<vmem>>, vector<16x8xbf16>,
    %55 = vector.extract_strided_slice %47 {offsets = [0, 24], sizes = [16, 8], strides = [1, 1]} : vector<16x32xf32> to vector<16x8xf32>
    %56 = vector.extract_strided_slice %47 {offsets = [0, 16], sizes = [16, 8], strides = [1, 1]} : vector<16x32xf32> to vector<16x8xf32>
    %57 = vector.shape_cast %45 : vector<16x1xi1> to vector<16x1xi1>
    %58 = vector.broadcast %57 : vector<16x1xi1> to vector<16x8xi1>
    %59 = arith.select %58, %55, %56 : vector<16x8xi1>, vector<16x8xf32>
    %60 = arith.truncf %59 : vector<16x8xf32> to vector<16x8xbf16>
    %c40 = arith.constant 40 : index
    %c0_24 = arith.constant 0 : index
    %61 = vector.load %arg12[%c40, %c0_24] : memref<304x16xbf16, #tpu.memory_space<vmem>>, vector<16x8xbf16>
    tpu.vector_store %arg12[%c40, %c0_24], %60 {strides = array<i32>} : memref<304x16xbf16, #tpu.memory_space<vmem>>, vector<16x8xbf16>,
    %62 = vector.extract_strided_slice %32 {offsets = [8, 0], sizes = [8, 32], strides = [1, 1]} : vector<64x32xf32> to vector<8x32xf32>
    %cst_25 = arith.constant dense<0.000000e+00> : vector<16x32xf32>
    %63 = tpu.matmul %40, %62, %cst_25 {dimension_numbers = #tpu.dot_dimension_numbers<[1], [0], [0], [1], [0, 0, 1, 1], [], []>} : vector<16x8xf32>, vector<8x32xf32>, vector<16x32xf32> -> vector<16x32xf32>
    %64 = vector.extract_strided_slice %63 {offsets = [0, 8], sizes = [16, 8], strides = [1, 1]} : vector<16x32xf32> to vector<16x8xf32>
    %65 = vector.extract_strided_slice %63 {offsets = [0, 0], sizes = [16, 8], strides = [1, 1]} : vector<16x32xf32> to vector<16x8xf32>
    %66 = vector.shape_cast %45 : vector<16x1xi1> to vector<16x1xi1>
    %67 = vector.broadcast %66 : vector<16x1xi1> to vector<16x8xi1>
    %68 = arith.select %67, %64, %65 : vector<16x8xi1>, vector<16x8xf32>
    %69 = arith.truncf %68 : vector<16x8xf32> to vector<16x8xbf16>
    %c56 = arith.constant 56 : index
    %c0_26 = arith.constant 0 : index
    %70 = vector.load %arg12[%c56, %c0_26] : memref<304x16xbf16, #tpu.memory_space<vmem>>, vector<16x8xbf16>
    tpu.vector_store %arg12[%c56, %c0_26], %69 {strides = array<i32>} : memref<304x16xbf16, #tpu.memory_space<vmem>>, vector<16x8xbf16>,
    %71 = vector.extract_strided_slice %63 {offsets = [0, 24], sizes = [16, 8], strides = [1, 1]} : vector<16x32xf32> to vector<16x8xf32>
    %72 = vector.extract_strided_slice %63 {offsets = [0, 16], sizes = [16, 8], strides = [1, 1]} : vector<16x32xf32> to vector<16x8xf32>
    %73 = vector.shape_cast %45 : vector<16x1xi1> to vector<16x1xi1>
    %74 = vector.broadcast %73 : vector<16x1xi1> to vector<16x8xi1>
    %75 = arith.select %74, %71, %72 : vector<16x8xi1>, vector<16x8xf32>
    %76 = arith.truncf %75 : vector<16x8xf32> to vector<16x8xbf16>
    %c72 = arith.constant 72 : index
    %c0_27 = arith.constant 0 : index
    %77 = vector.load %arg12[%c72, %c0_27] : memref<304x16xbf16, #tpu.memory_space<vmem>>, vector<16x8xbf16>
    tpu.vector_store %arg12[%c72, %c0_27], %76 {strides = array<i32>} : memref<304x16xbf16, #tpu.memory_space<vmem>>, vector<16x8xbf16>,
    %78 = vector.extract_strided_slice %32 {offsets = [16, 0], sizes = [8, 32], strides = [1, 1]} : vector<64x32xf32> to vector<8x32xf32>
    %cst_28 = arith.constant dense<0.000000e+00> : vector<16x32xf32>
    %79 = tpu.matmul %40, %78, %cst_28 {dimension_numbers = #tpu.dot_dimension_numbers<[1], [0], [0], [1], [0, 0, 1, 1], [], []>} : vector<16x8xf32>, vector<8x32xf32>, vector<16x32xf32> -> vector<16x32xf32>
    %80 = vector.extract_strided_slice %79 {offsets = [0, 8], sizes = [16, 8], strides = [1, 1]} : vector<16x32xf32> to vector<16x8xf32>
    %81 = vector.extract_strided_slice %79 {offsets = [0, 0], sizes = [16, 8], strides = [1, 1]} : vector<16x32xf32> to vector<16x8xf32>
    %82 = vector.shape_cast %45 : vector<16x1xi1> to vector<16x1xi1>
    %83 = vector.broadcast %82 : vector<16x1xi1> to vector<16x8xi1>
    %84 = arith.select %83, %80, %81 : vector<16x8xi1>, vector<16x8xf32>
    %85 = arith.truncf %84 : vector<16x8xf32> to vector<16x8xbf16>
    %c88 = arith.constant 88 : index
    %c0_29 = arith.constant 0 : index
    %86 = vector.load %arg12[%c88, %c0_29] : memref<304x16xbf16, #tpu.memory_space<vmem>>, vector<16x8xbf16>
    tpu.vector_store %arg12[%c88, %c0_29], %85 {strides = array<i32>} : memref<304x16xbf16, #tpu.memory_space<vmem>>, vector<16x8xbf16>,
    %87 = vector.extract_strided_slice %79 {offsets = [0, 24], sizes = [16, 8], strides = [1, 1]} : vector<16x32xf32> to vector<16x8xf32>
    %88 = vector.extract_strided_slice %79 {offsets = [0, 16], sizes = [16, 8], strides = [1, 1]} : vector<16x32xf32> to vector<16x8xf32>
    %89 = vector.shape_cast %45 : vector<16x1xi1> to vector<16x1xi1>
    %90 = vector.broadcast %89 : vector<16x1xi1> to vector<16x8xi1>
    %91 = arith.select %90, %87, %88 : vector<16x8xi1>, vector<16x8xf32>
    %92 = arith.truncf %91 : vector<16x8xf32> to vector<16x8xbf16>
    %c104 = arith.constant 104 : index
    %c0_30 = arith.constant 0 : index
    %93 = vector.load %arg12[%c104, %c0_30] : memref<304x16xbf16, #tpu.memory_space<vmem>>, vector<16x8xbf16>
    tpu.vector_store %arg12[%c104, %c0_30], %92 {strides = array<i32>} : memref<304x16xbf16, #tpu.memory_space<vmem>>, vector<16x8xbf16>,
    %94 = vector.extract_strided_slice %32 {offsets = [24, 0], sizes = [8, 32], strides = [1, 1]} : vector<64x32xf32> to vector<8x32xf32>
    %cst_31 = arith.constant dense<0.000000e+00> : vector<16x32xf32>
    %95 = tpu.matmul %40, %94, %cst_31 {dimension_numbers = #tpu.dot_dimension_numbers<[1], [0], [0], [1], [0, 0, 1, 1], [], []>} : vector<16x8xf32>, vector<8x32xf32>, vector<16x32xf32> -> vector<16x32xf32>
    %96 = vector.extract_strided_slice %95 {offsets = [0, 8], sizes = [16, 8], strides = [1, 1]} : vector<16x32xf32> to vector<16x8xf32>
    %97 = vector.extract_strided_slice %95 {offsets = [0, 0], sizes = [16, 8], strides = [1, 1]} : vector<16x32xf32> to vector<16x8xf32>
    %98 = vector.shape_cast %45 : vector<16x1xi1> to vector<16x1xi1>
    %99 = vector.broadcast %98 : vector<16x1xi1> to vector<16x8xi1>
    %100 = arith.select %99, %96, %97 : vector<16x8xi1>, vector<16x8xf32>
    %101 = arith.truncf %100 : vector<16x8xf32> to vector<16x8xbf16>
    %c120 = arith.constant 120 : index
    %c0_32 = arith.constant 0 : index
    %102 = vector.load %arg12[%c120, %c0_32] : memref<304x16xbf16, #tpu.memory_space<vmem>>, vector<16x8xbf16>
    tpu.vector_store %arg12[%c120, %c0_32], %101 {strides = array<i32>} : memref<304x16xbf16, #tpu.memory_space<vmem>>, vector<16x8xbf16>,
    %103 = vector.extract_strided_slice %95 {offsets = [0, 24], sizes = [16, 8], strides = [1, 1]} : vector<16x32xf32> to vector<16x8xf32>
    %104 = vector.extract_strided_slice %95 {offsets = [0, 16], sizes = [16, 8], strides = [1, 1]} : vector<16x32xf32> to vector<16x8xf32>
    %105 = vector.shape_cast %45 : vector<16x1xi1> to vector<16x1xi1>
    %106 = vector.broadcast %105 : vector<16x1xi1> to vector<16x8xi1>
    %107 = arith.select %106, %103, %104 : vector<16x8xi1>, vector<16x8xf32>
    %108 = arith.truncf %107 : vector<16x8xf32> to vector<16x8xbf16>
    %c136 = arith.constant 136 : index
    %c0_33 = arith.constant 0 : index
    %109 = vector.load %arg12[%c136, %c0_33] : memref<304x16xbf16, #tpu.memory_space<vmem>>, vector<16x8xbf16>
    tpu.vector_store %arg12[%c136, %c0_33], %108 {strides = array<i32>} : memref<304x16xbf16, #tpu.memory_space<vmem>>, vector<16x8xbf16>,
    %110 = vector.extract_strided_slice %32 {offsets = [32, 0], sizes = [8, 32], strides = [1, 1]} : vector<64x32xf32> to vector<8x32xf32>
    %cst_34 = arith.constant dense<0.000000e+00> : vector<16x32xf32>
    %111 = tpu.matmul %40, %110, %cst_34 {dimension_numbers = #tpu.dot_dimension_numbers<[1], [0], [0], [1], [0, 0, 1, 1], [], []>} : vector<16x8xf32>, vector<8x32xf32>, vector<16x32xf32> -> vector<16x32xf32>
    %112 = vector.extract_strided_slice %111 {offsets = [0, 8], sizes = [16, 8], strides = [1, 1]} : vector<16x32xf32> to vector<16x8xf32>
    %113 = vector.extract_strided_slice %111 {offsets = [0, 0], sizes = [16, 8], strides = [1, 1]} : vector<16x32xf32> to vector<16x8xf32>
    %114 = vector.shape_cast %45 : vector<16x1xi1> to vector<16x1xi1>
    %115 = vector.broadcast %114 : vector<16x1xi1> to vector<16x8xi1>
    %116 = arith.select %115, %112, %113 : vector<16x8xi1>, vector<16x8xf32>
    %117 = arith.truncf %116 : vector<16x8xf32> to vector<16x8xbf16>
    %c152 = arith.constant 152 : index
    %c0_35 = arith.constant 0 : index
    %118 = vector.load %arg12[%c152, %c0_35] : memref<304x16xbf16, #tpu.memory_space<vmem>>, vector<16x8xbf16>
    tpu.vector_store %arg12[%c152, %c0_35], %117 {strides = array<i32>} : memref<304x16xbf16, #tpu.memory_space<vmem>>, vector<16x8xbf16>,
    %119 = vector.extract_strided_slice %111 {offsets = [0, 24], sizes = [16, 8], strides = [1, 1]} : vector<16x32xf32> to vector<16x8xf32>
    %120 = vector.extract_strided_slice %111 {offsets = [0, 16], sizes = [16, 8], strides = [1, 1]} : vector<16x32xf32> to vector<16x8xf32>
    %121 = vector.shape_cast %45 : vector<16x1xi1> to vector<16x1xi1>
    %122 = vector.broadcast %121 : vector<16x1xi1> to vector<16x8xi1>
    %123 = arith.select %122, %119, %120 : vector<16x8xi1>, vector<16x8xf32>
    %124 = arith.truncf %123 : vector<16x8xf32> to vector<16x8xbf16>
    %c168 = arith.constant 168 : index
    %c0_36 = arith.constant 0 : index
    %125 = vector.load %arg12[%c168, %c0_36] : memref<304x16xbf16, #tpu.memory_space<vmem>>, vector<16x8xbf16>
    tpu.vector_store %arg12[%c168, %c0_36], %124 {strides = array<i32>} : memref<304x16xbf16, #tpu.memory_space<vmem>>, vector<16x8xbf16>,
    %126 = vector.extract_strided_slice %32 {offsets = [40, 0], sizes = [8, 32], strides = [1, 1]} : vector<64x32xf32> to vector<8x32xf32>
    %cst_37 = arith.constant dense<0.000000e+00> : vector<16x32xf32>
    %127 = tpu.matmul %40, %126, %cst_37 {dimension_numbers = #tpu.dot_dimension_numbers<[1], [0], [0], [1], [0, 0, 1, 1], [], []>} : vector<16x8xf32>, vector<8x32xf32>, vector<16x32xf32> -> vector<16x32xf32>
    %128 = vector.extract_strided_slice %127 {offsets = [0, 8], sizes = [16, 8], strides = [1, 1]} : vector<16x32xf32> to vector<16x8xf32>
    %129 = vector.extract_strided_slice %127 {offsets = [0, 0], sizes = [16, 8], strides = [1, 1]} : vector<16x32xf32> to vector<16x8xf32>
    %130 = vector.shape_cast %45 : vector<16x1xi1> to vector<16x1xi1>
    %131 = vector.broadcast %130 : vector<16x1xi1> to vector<16x8xi1>
    %132 = arith.select %131, %128, %129 : vector<16x8xi1>, vector<16x8xf32>
    %133 = arith.truncf %132 : vector<16x8xf32> to vector<16x8xbf16>
    %c184 = arith.constant 184 : index
    %c0_38 = arith.constant 0 : index
    %134 = vector.load %arg12[%c184, %c0_38] : memref<304x16xbf16, #tpu.memory_space<vmem>>, vector<16x8xbf16>
    tpu.vector_store %arg12[%c184, %c0_38], %133 {strides = array<i32>} : memref<304x16xbf16, #tpu.memory_space<vmem>>, vector<16x8xbf16>,
    %135 = vector.extract_strided_slice %127 {offsets = [0, 24], sizes = [16, 8], strides = [1, 1]} : vector<16x32xf32> to vector<16x8xf32>
    %136 = vector.extract_strided_slice %127 {offsets = [0, 16], sizes = [16, 8], strides = [1, 1]} : vector<16x32xf32> to vector<16x8xf32>
    %137 = vector.shape_cast %45 : vector<16x1xi1> to vector<16x1xi1>
    %138 = vector.broadcast %137 : vector<16x1xi1> to vector<16x8xi1>
    %139 = arith.select %138, %135, %136 : vector<16x8xi1>, vector<16x8xf32>
    %140 = arith.truncf %139 : vector<16x8xf32> to vector<16x8xbf16>
    %c200 = arith.constant 200 : index
    %c0_39 = arith.constant 0 : index
    %141 = vector.load %arg12[%c200, %c0_39] : memref<304x16xbf16, #tpu.memory_space<vmem>>, vector<16x8xbf16>
    tpu.vector_store %arg12[%c200, %c0_39], %140 {strides = array<i32>} : memref<304x16xbf16, #tpu.memory_space<vmem>>, vector<16x8xbf16>,
    %142 = vector.extract_strided_slice %32 {offsets = [48, 0], sizes = [8, 32], strides = [1, 1]} : vector<64x32xf32> to vector<8x32xf32>
    %cst_40 = arith.constant dense<0.000000e+00> : vector<16x32xf32>
    %143 = tpu.matmul %40, %142, %cst_40 {dimension_numbers = #tpu.dot_dimension_numbers<[1], [0], [0], [1], [0, 0, 1, 1], [], []>} : vector<16x8xf32>, vector<8x32xf32>, vector<16x32xf32> -> vector<16x32xf32>
    %144 = vector.extract_strided_slice %143 {offsets = [0, 8], sizes = [16, 8], strides = [1, 1]} : vector<16x32xf32> to vector<16x8xf32>
    %145 = vector.extract_strided_slice %143 {offsets = [0, 0], sizes = [16, 8], strides = [1, 1]} : vector<16x32xf32> to vector<16x8xf32>
    %146 = vector.shape_cast %45 : vector<16x1xi1> to vector<16x1xi1>
    %147 = vector.broadcast %146 : vector<16x1xi1> to vector<16x8xi1>
    %148 = arith.select %147, %144, %145 : vector<16x8xi1>, vector<16x8xf32>
    %149 = arith.truncf %148 : vector<16x8xf32> to vector<16x8xbf16>
    %c216 = arith.constant 216 : index
    %c0_41 = arith.constant 0 : index
    %150 = vector.load %arg12[%c216, %c0_41] : memref<304x16xbf16, #tpu.memory_space<vmem>>, vector<16x8xbf16>
    tpu.vector_store %arg12[%c216, %c0_41], %149 {strides = array<i32>} : memref<304x16xbf16, #tpu.memory_space<vmem>>, vector<16x8xbf16>,
    %151 = vector.extract_strided_slice %143 {offsets = [0, 24], sizes = [16, 8], strides = [1, 1]} : vector<16x32xf32> to vector<16x8xf32>
    %152 = vector.extract_strided_slice %143 {offsets = [0, 16], sizes = [16, 8], strides = [1, 1]} : vector<16x32xf32> to vector<16x8xf32>
    %153 = vector.shape_cast %45 : vector<16x1xi1> to vector<16x1xi1>
    %154 = vector.broadcast %153 : vector<16x1xi1> to vector<16x8xi1>
    %155 = arith.select %154, %151, %152 : vector<16x8xi1>, vector<16x8xf32>
    %156 = arith.truncf %155 : vector<16x8xf32> to vector<16x8xbf16>
    %c232 = arith.constant 232 : index
    %c0_42 = arith.constant 0 : index
    %157 = vector.load %arg12[%c232, %c0_42] : memref<304x16xbf16, #tpu.memory_space<vmem>>, vector<16x8xbf16>
    tpu.vector_store %arg12[%c232, %c0_42], %156 {strides = array<i32>} : memref<304x16xbf16, #tpu.memory_space<vmem>>, vector<16x8xbf16>,
    %158 = vector.extract_strided_slice %32 {offsets = [56, 0], sizes = [8, 32], strides = [1, 1]} : vector<64x32xf32> to vector<8x32xf32>
    %cst_43 = arith.constant dense<0.000000e+00> : vector<16x32xf32>
    %159 = tpu.matmul %40, %158, %cst_43 {dimension_numbers = #tpu.dot_dimension_numbers<[1], [0], [0], [1], [0, 0, 1, 1], [], []>} : vector<16x8xf32>, vector<8x32xf32>, vector<16x32xf32> -> vector<16x32xf32>
    %160 = vector.extract_strided_slice %159 {offsets = [0, 8], sizes = [16, 8], strides = [1, 1]} : vector<16x32xf32> to vector<16x8xf32>
    %161 = vector.extract_strided_slice %159 {offsets = [0, 0], sizes = [16, 8], strides = [1, 1]} : vector<16x32xf32> to vector<16x8xf32>
    %162 = vector.shape_cast %45 : vector<16x1xi1> to vector<16x1xi1>
    %163 = vector.broadcast %162 : vector<16x1xi1> to vector<16x8xi1>
    %164 = arith.select %163, %160, %161 : vector<16x8xi1>, vector<16x8xf32>
    %165 = arith.truncf %164 : vector<16x8xf32> to vector<16x8xbf16>
    %c248 = arith.constant 248 : index
    %c0_44 = arith.constant 0 : index
    %166 = vector.load %arg12[%c248, %c0_44] : memref<304x16xbf16, #tpu.memory_space<vmem>>, vector<16x8xbf16>
    tpu.vector_store %arg12[%c248, %c0_44], %165 {strides = array<i32>} : memref<304x16xbf16, #tpu.memory_space<vmem>>, vector<16x8xbf16>,
    %167 = vector.extract_strided_slice %159 {offsets = [0, 24], sizes = [16, 8], strides = [1, 1]} : vector<16x32xf32> to vector<16x8xf32>
    %168 = vector.extract_strided_slice %159 {offsets = [0, 16], sizes = [16, 8], strides = [1, 1]} : vector<16x32xf32> to vector<16x8xf32>
    %169 = vector.shape_cast %45 : vector<16x1xi1> to vector<16x1xi1>
    %170 = vector.broadcast %169 : vector<16x1xi1> to vector<16x8xi1>
    %171 = arith.select %170, %167, %168 : vector<16x8xi1>, vector<16x8xf32>
    %172 = arith.truncf %171 : vector<16x8xf32> to vector<16x8xbf16>
    %c264 = arith.constant 264 : index
    %c0_45 = arith.constant 0 : index
    %173 = vector.load %arg12[%c264, %c0_45] : memref<304x16xbf16, #tpu.memory_space<vmem>>, vector<16x8xbf16>
    tpu.vector_store %arg12[%c264, %c0_45], %172 {strides = array<i32>} : memref<304x16xbf16, #tpu.memory_space<vmem>>, vector<16x8xbf16>,
    %c0_46 = arith.constant 0 : index
    %c0_47 = arith.constant 0 : index
    %c0_48 = arith.constant 0 : index
    %174 = vector.load %arg2[%c0_46, %c0_47, %c0_48] : memref<1x8x256xf32, #tpu.memory_space<vmem>>, vector<1x8x256xf32>
    %175 = vector.shape_cast %174 : vector<1x8x256xf32> to vector<8x256xf32>
    %176 = tpu.transpose %175, [1, 0] : vector<8x256xf32> -> vector<256x8xf32>
    %177 = arith.truncf %176 : vector<256x8xf32> to vector<256x8xbf16>
    %c24_49 = arith.constant 24 : index
    %c8 = arith.constant 8 : index
    %178 = vector.load %arg12[%c24_49, %c8] : memref<304x16xbf16, #tpu.memory_space<vmem>>, vector<256x8xbf16>
    tpu.vector_store %arg12[%c24_49, %c8], %177 {strides = array<i32>} : memref<304x16xbf16, #tpu.memory_space<vmem>>, vector<256x8xbf16>,
    %c7 = arith.constant 7 : index
    %c0_50 = arith.constant 0 : index
    %179 = vector.load %arg12[%c7, %c0_50] : memref<304x16xbf16, #tpu.memory_space<vmem>>, vector<256x16xbf16>
    %180 = arith.mulf %179, %19 : vector<256x16xbf16>
    %c0_51 = arith.constant 0 : index
    %c0_52 = arith.constant 0 : index
    %181 = vector.load %arg14[%c0_51, %c0_52] : memref<256x144xbf16, #tpu.memory_space<vmem>>, vector<256x16xbf16>
    tpu.vector_store %arg14[%c0_51, %c0_52], %180 {strides = array<i32>} : memref<256x144xbf16, #tpu.memory_space<vmem>>, vector<256x16xbf16>,
    %c8_53 = arith.constant 8 : index
    %c0_54 = arith.constant 0 : index
    %182 = vector.load %arg12[%c8_53, %c0_54] : memref<304x16xbf16, #tpu.memory_space<vmem>>, vector<256x16xbf16>
    %c0_55 = arith.constant 0 : index
    %c16 = arith.constant 16 : index
    %183 = vector.load %arg14[%c0_55, %c16] : memref<256x144xbf16, #tpu.memory_space<vmem>>, vector<256x16xbf16>
    tpu.vector_store %arg14[%c0_55, %c16], %182 {strides = array<i32>} : memref<256x144xbf16, #tpu.memory_space<vmem>>, vector<256x16xbf16>,
    %c9 = arith.constant 9 : index
    %c0_56 = arith.constant 0 : index
    %184 = vector.load %arg12[%c9, %c0_56] : memref<304x16xbf16, #tpu.memory_space<vmem>>, vector<256x16xbf16>
    %185 = arith.mulf %184, %24 : vector<256x16xbf16>
    %c0_57 = arith.constant 0 : index
    %c32 = arith.constant 32 : index
    %186 = vector.load %arg14[%c0_57, %c32] : memref<256x144xbf16, #tpu.memory_space<vmem>>, vector<256x16xbf16>
    tpu.vector_store %arg14[%c0_57, %c32], %185 {strides = array<i32>} : memref<256x144xbf16, #tpu.memory_space<vmem>>, vector<256x16xbf16>,
    %c23 = arith.constant 23 : index
    %c0_58 = arith.constant 0 : index
    %187 = vector.load %arg12[%c23, %c0_58] : memref<304x16xbf16, #tpu.memory_space<vmem>>, vector<256x16xbf16>
    %188 = arith.mulf %187, %19 : vector<256x16xbf16>
    %c0_59 = arith.constant 0 : index
    %c48 = arith.constant 48 : index
    %189 = vector.load %arg14[%c0_59, %c48] : memref<256x144xbf16, #tpu.memory_space<vmem>>, vector<256x16xbf16>
    tpu.vector_store %arg14[%c0_59, %c48], %188 {strides = array<i32>} : memref<256x144xbf16, #tpu.memory_space<vmem>>, vector<256x16xbf16>,
    %c24_60 = arith.constant 24 : index
    %c0_61 = arith.constant 0 : index
    %190 = vector.load %arg12[%c24_60, %c0_61] : memref<304x16xbf16, #tpu.memory_space<vmem>>, vector<256x16xbf16>
    %c0_62 = arith.constant 0 : index
    %c64 = arith.constant 64 : index
    %191 = vector.load %arg14[%c0_62, %c64] : memref<256x144xbf16, #tpu.memory_space<vmem>>, vector<256x16xbf16>
    tpu.vector_store %arg14[%c0_62, %c64], %190 {strides = array<i32>} : memref<256x144xbf16, #tpu.memory_space<vmem>>, vector<256x16xbf16>,
    %c25 = arith.constant 25 : index
    %c0_63 = arith.constant 0 : index
    %192 = vector.load %arg12[%c25, %c0_63] : memref<304x16xbf16, #tpu.memory_space<vmem>>, vector<256x16xbf16>
    %193 = arith.mulf %192, %24 : vector<256x16xbf16>
    %c0_64 = arith.constant 0 : index
    %c80 = arith.constant 80 : index
    %194 = vector.load %arg14[%c0_64, %c80] : memref<256x144xbf16, #tpu.memory_space<vmem>>, vector<256x16xbf16>
    tpu.vector_store %arg14[%c0_64, %c80], %193 {strides = array<i32>} : memref<256x144xbf16, #tpu.memory_space<vmem>>, vector<256x16xbf16>,
    %c39 = arith.constant 39 : index
    %c0_65 = arith.constant 0 : index
    %195 = vector.load %arg12[%c39, %c0_65] : memref<304x16xbf16, #tpu.memory_space<vmem>>, vector<256x16xbf16>
    %196 = arith.mulf %195, %19 : vector<256x16xbf16>
    %c0_66 = arith.constant 0 : index
    %c96 = arith.constant 96 : index
    %197 = vector.load %arg14[%c0_66, %c96] : memref<256x144xbf16, #tpu.memory_space<vmem>>, vector<256x16xbf16>
    tpu.vector_store %arg14[%c0_66, %c96], %196 {strides = array<i32>} : memref<256x144xbf16, #tpu.memory_space<vmem>>, vector<256x16xbf16>,
    %c40_67 = arith.constant 40 : index
    %c0_68 = arith.constant 0 : index
    %198 = vector.load %arg12[%c40_67, %c0_68] : memref<304x16xbf16, #tpu.memory_space<vmem>>, vector<256x16xbf16>
    %c0_69 = arith.constant 0 : index
    %c112 = arith.constant 112 : index
    %199 = vector.load %arg14[%c0_69, %c112] : memref<256x144xbf16, #tpu.memory_space<vmem>>, vector<256x16xbf16>
    tpu.vector_store %arg14[%c0_69, %c112], %198 {strides = array<i32>} : memref<256x144xbf16, #tpu.memory_space<vmem>>, vector<256x16xbf16>,
    %c41 = arith.constant 41 : index
    %c0_70 = arith.constant 0 : index
    %200 = vector.load %arg12[%c41, %c0_70] : memref<304x16xbf16, #tpu.memory_space<vmem>>, vector<256x16xbf16>
    %201 = arith.mulf %200, %24 : vector<256x16xbf16>
    %c0_71 = arith.constant 0 : index
    %c128 = arith.constant 128 : index
    %202 = vector.load %arg14[%c0_71, %c128] : memref<256x144xbf16, #tpu.memory_space<vmem>>, vector<256x16xbf16>
    tpu.vector_store %arg14[%c0_71, %c128], %201 {strides = array<i32>} : memref<256x144xbf16, #tpu.memory_space<vmem>>, vector<256x16xbf16>,
    %c0_72 = arith.constant 0 : index
    %c0_73 = arith.constant 0 : index
    %203 = vector.load %arg14[%c0_72, %c0_73] : memref<256x144xbf16, #tpu.memory_space<vmem>>, vector<256x144xbf16>
    %c0_74 = arith.constant 0 : index
    %c0_75 = arith.constant 0 : index
    %204 = vector.load %arg5[%c0_74, %c0_75] : memref<144x16xbf16, #tpu.memory_space<vmem>>, vector<144x16xbf16>
    %cst_76 = arith.constant dense<0.000000e+00> : vector<256x16xf32>
    %205 = tpu.matmul %203, %204, %cst_76 {dimension_numbers = #tpu.dot_dimension_numbers<[1], [0], [0], [1], [0, 0, 1, 1], [], []>} : vector<256x144xbf16>, vector<144x16xbf16>, vector<256x16xf32> -> vector<256x16xf32>
    %c0_77 = arith.constant 0 : index
    %c0_78 = arith.constant 0 : index
    %206 = vector.load %arg6[%c0_77, %c0_78] : memref<1x16xf32, #tpu.memory_space<vmem>>, vector<1x16xf32>
    %207 = vector.broadcast %206 : vector<1x16xf32> to vector<256x16xf32>
    %208 = arith.mulf %205, %207 : vector<256x16xf32>
    %c0_79 = arith.constant 0 : index
    %c0_80 = arith.constant 0 : index
    %209 = vector.load %arg7[%c0_79, %c0_80] : memref<1x16xf32, #tpu.memory_space<vmem>>, vector<1x16xf32>
    %210 = vector.broadcast %209 : vector<1x16xf32> to vector<256x16xf32>
    %211 = arith.addf %208, %210 : vector<256x16xf32>
    %cst_81 = arith.constant 0.000000e+00 : f32
    %212 = vector.broadcast %cst_81 : f32 to vector<256x16xf32>
    %213 = arith.maximumf %211, %212 : vector<256x16xf32>
    %214 = arith.truncf %213 : vector<256x16xf32> to vector<256x16xbf16>
    %c24_82 = arith.constant 24 : index
    %c0_83 = arith.constant 0 : index
    %215 = vector.load %arg13[%c24_82, %c0_83] : memref<304x16xbf16, #tpu.memory_space<vmem>>, vector<256x16xbf16>
    tpu.vector_store %arg13[%c24_82, %c0_83], %214 {strides = array<i32>} : memref<304x16xbf16, #tpu.memory_space<vmem>>, vector<256x16xbf16>,
    %c7_84 = arith.constant 7 : index
    %c0_85 = arith.constant 0 : index
    %216 = vector.load %arg13[%c7_84, %c0_85] : memref<304x16xbf16, #tpu.memory_space<vmem>>, vector<256x16xbf16>
    %217 = arith.mulf %216, %19 : vector<256x16xbf16>
    %c0_86 = arith.constant 0 : index
    %c0_87 = arith.constant 0 : index
    %218 = vector.load %arg15[%c0_86, %c0_87] : memref<256x144xbf16, #tpu.memory_space<vmem>>, vector<256x16xbf16>
    tpu.vector_store %arg15[%c0_86, %c0_87], %217 {strides = array<i32>} : memref<256x144xbf16, #tpu.memory_space<vmem>>, vector<256x16xbf16>,
    %c8_88 = arith.constant 8 : index
    %c0_89 = arith.constant 0 : index
    %219 = vector.load %arg13[%c8_88, %c0_89] : memref<304x16xbf16, #tpu.memory_space<vmem>>, vector<256x16xbf16>
    %c0_90 = arith.constant 0 : index
    %c16_91 = arith.constant 16 : index
    %220 = vector.load %arg15[%c0_90, %c16_91] : memref<256x144xbf16, #tpu.memory_space<vmem>>, vector<256x16xbf16>
    tpu.vector_store %arg15[%c0_90, %c16_91], %219 {strides = array<i32>} : memref<256x144xbf16, #tpu.memory_space<vmem>>, vector<256x16xbf16>,
    %c9_92 = arith.constant 9 : index
    %c0_93 = arith.constant 0 : index
    %221 = vector.load %arg13[%c9_92, %c0_93] : memref<304x16xbf16, #tpu.memory_space<vmem>>, vector<256x16xbf16>
    %222 = arith.mulf %221, %24 : vector<256x16xbf16>
    %c0_94 = arith.constant 0 : index
    %c32_95 = arith.constant 32 : index
    %223 = vector.load %arg15[%c0_94, %c32_95] : memref<256x144xbf16, #tpu.memory_space<vmem>>, vector<256x16xbf16>
    tpu.vector_store %arg15[%c0_94, %c32_95], %222 {strides = array<i32>} : memref<256x144xbf16, #tpu.memory_space<vmem>>, vector<256x16xbf16>,
    %c23_96 = arith.constant 23 : index
    %c0_97 = arith.constant 0 : index
    %224 = vector.load %arg13[%c23_96, %c0_97] : memref<304x16xbf16, #tpu.memory_space<vmem>>, vector<256x16xbf16>
    %225 = arith.mulf %224, %19 : vector<256x16xbf16>
    %c0_98 = arith.constant 0 : index
    %c48_99 = arith.constant 48 : index
    %226 = vector.load %arg15[%c0_98, %c48_99] : memref<256x144xbf16, #tpu.memory_space<vmem>>, vector<256x16xbf16>
    tpu.vector_store %arg15[%c0_98, %c48_99], %225 {strides = array<i32>} : memref<256x144xbf16, #tpu.memory_space<vmem>>, vector<256x16xbf16>,
    %c24_100 = arith.constant 24 : index
    %c0_101 = arith.constant 0 : index
    %227 = vector.load %arg13[%c24_100, %c0_101] : memref<304x16xbf16, #tpu.memory_space<vmem>>, vector<256x16xbf16>
    %c0_102 = arith.constant 0 : index
    %c64_103 = arith.constant 64 : index
    %228 = vector.load %arg15[%c0_102, %c64_103] : memref<256x144xbf16, #tpu.memory_space<vmem>>, vector<256x16xbf16>
    tpu.vector_store %arg15[%c0_102, %c64_103], %227 {strides = array<i32>} : memref<256x144xbf16, #tpu.memory_space<vmem>>, vector<256x16xbf16>,
    %c25_104 = arith.constant 25 : index
    %c0_105 = arith.constant 0 : index
    %229 = vector.load %arg13[%c25_104, %c0_105] : memref<304x16xbf16, #tpu.memory_space<vmem>>, vector<256x16xbf16>
    %230 = arith.mulf %229, %24 : vector<256x16xbf16>
    %c0_106 = arith.constant 0 : index
    %c80_107 = arith.constant 80 : index
    %231 = vector.load %arg15[%c0_106, %c80_107] : memref<256x144xbf16, #tpu.memory_space<vmem>>, vector<256x16xbf16>
    tpu.vector_store %arg15[%c0_106, %c80_107], %230 {strides = array<i32>} : memref<256x144xbf16, #tpu.memory_space<vmem>>, vector<256x16xbf16>,
    %c39_108 = arith.constant 39 : index
    %c0_109 = arith.constant 0 : index
    %232 = vector.load %arg13[%c39_108, %c0_109] : memref<304x16xbf16, #tpu.memory_space<vmem>>, vector<256x16xbf16>
    %233 = arith.mulf %232, %19 : vector<256x16xbf16>
    %c0_110 = arith.constant 0 : index
    %c96_111 = arith.constant 96 : index
    %234 = vector.load %arg15[%c0_110, %c96_111] : memref<256x144xbf16, #tpu.memory_space<vmem>>, vector<256x16xbf16>
    tpu.vector_store %arg15[%c0_110, %c96_111], %233 {strides = array<i32>} : memref<256x144xbf16, #tpu.memory_space<vmem>>, vector<256x16xbf16>,
    %c40_112 = arith.constant 40 : index
    %c0_113 = arith.constant 0 : index
    %235 = vector.load %arg13[%c40_112, %c0_113] : memref<304x16xbf16, #tpu.memory_space<vmem>>, vector<256x16xbf16>
    %c0_114 = arith.constant 0 : index
    %c112_115 = arith.constant 112 : index
    %236 = vector.load %arg15[%c0_114, %c112_115] : memref<256x144xbf16, #tpu.memory_space<vmem>>, vector<256x16xbf16>
    tpu.vector_store %arg15[%c0_114, %c112_115], %235 {strides = array<i32>} : memref<256x144xbf16, #tpu.memory_space<vmem>>, vector<256x16xbf16>,
    %c41_116 = arith.constant 41 : index
    %c0_117 = arith.constant 0 : index
    %237 = vector.load %arg13[%c41_116, %c0_117] : memref<304x16xbf16, #tpu.memory_space<vmem>>, vector<256x16xbf16>
    %238 = arith.mulf %237, %24 : vector<256x16xbf16>
    %c0_118 = arith.constant 0 : index
    %c128_119 = arith.constant 128 : index
    %239 = vector.load %arg15[%c0_118, %c128_119] : memref<256x144xbf16, #tpu.memory_space<vmem>>, vector<256x16xbf16>
    tpu.vector_store %arg15[%c0_118, %c128_119], %238 {strides = array<i32>} : memref<256x144xbf16, #tpu.memory_space<vmem>>, vector<256x16xbf16>,
    %c0_120 = arith.constant 0 : index
    %c0_121 = arith.constant 0 : index
    %240 = vector.load %arg15[%c0_120, %c0_121] : memref<256x144xbf16, #tpu.memory_space<vmem>>, vector<256x144xbf16>
    %c0_122 = arith.constant 0 : index
    %c0_123 = arith.constant 0 : index
    %241 = vector.load %arg8[%c0_122, %c0_123] : memref<144x16xbf16, #tpu.memory_space<vmem>>, vector<144x16xbf16>
    %cst_124 = arith.constant dense<0.000000e+00> : vector<256x16xf32>
    %242 = tpu.matmul %240, %241, %cst_124 {dimension_numbers = #tpu.dot_dimension_numbers<[1], [0], [0], [1], [0, 0, 1, 1], [], []>} : vector<256x144xbf16>, vector<144x16xbf16>, vector<256x16xf32> -> vector<256x16xf32>
    %c0_125 = arith.constant 0 : index
    %c0_126 = arith.constant 0 : index
    %243 = vector.load %arg9[%c0_125, %c0_126] : memref<1x16xf32, #tpu.memory_space<vmem>>, vector<1x16xf32>
    %244 = vector.broadcast %243 : vector<1x16xf32> to vector<256x16xf32>
    %245 = arith.mulf %242, %244 : vector<256x16xf32>
    %c0_127 = arith.constant 0 : index
    %c0_128 = arith.constant 0 : index
    %246 = vector.load %arg10[%c0_127, %c0_128] : memref<1x16xf32, #tpu.memory_space<vmem>>, vector<1x16xf32>
    %247 = vector.broadcast %246 : vector<1x16xf32> to vector<256x16xf32>
    %248 = arith.addf %245, %247 : vector<256x16xf32>
    %cst_129 = arith.constant 0.000000e+00 : f32
    %249 = vector.broadcast %cst_129 : f32 to vector<256x16xf32>
    %250 = arith.maximumf %248, %249 : vector<256x16xf32>
    %251 = tpu.transpose %250, [1, 0] : vector<256x16xf32> -> vector<16x256xf32>
    %c0_130 = arith.constant 0 : index
    %c0_131 = arith.constant 0 : index
    %c0_132 = arith.constant 0 : index
    %252 = vector.load %arg11[%c0_130, %c0_131, %c0_132] : memref<1x16x256xf32, #tpu.memory_space<vmem>>, vector<1x16x256xf32>
    %253 = vector.shape_cast %252 : vector<1x16x256xf32> to vector<16x256xf32>
    %254 = vector.shape_cast %251 : vector<16x256xf32> to vector<1x16x256xf32>
    tpu.vector_store %arg11[%c0_130, %c0_131, %c0_132], %254 {strides = array<i32>} : memref<1x16x256xf32, #tpu.memory_space<vmem>>, vector<1x16x256xf32>,
    return
  }
  func.func @transform_0(%arg0: i32) -> (i32, i32, i32) {
    %c0_i32 = arith.constant 0 : i32
    %c0_i32_0 = arith.constant 0 : i32
    %c0_i32_1 = arith.constant 0 : i32
    return %arg0, %c0_i32, %c0_i32_0 : i32, i32, i32
  }
  func.func @transform_1(%arg0: i32) -> (i32, i32, i32) {
    %c0_i32 = arith.constant 0 : i32
    %c0_i32_0 = arith.constant 0 : i32
    %c0_i32_1 = arith.constant 0 : i32
    return %arg0, %c0_i32, %c0_i32_0 : i32, i32, i32
  }
  func.func @transform_2(%arg0: i32) -> (i32, i32) {
    %c0_i32 = arith.constant 0 : i32
    %c0_i32_0 = arith.constant 0 : i32
    %c0_i32_1 = arith.constant 0 : i32
    return %c0_i32, %c0_i32_0 : i32, i32
  }
  func.func @transform_3(%arg0: i32) -> (i32, i32) {
    %c0_i32 = arith.constant 0 : i32
    %c0_i32_0 = arith.constant 0 : i32
    %c0_i32_1 = arith.constant 0 : i32
    return %c0_i32, %c0_i32_0 : i32, i32
  }
  func.func @transform_4(%arg0: i32) -> (i32, i32) {
    %c0_i32 = arith.constant 0 : i32
    %c0_i32_0 = arith.constant 0 : i32
    %c0_i32_1 = arith.constant 0 : i32
    return %c0_i32, %c0_i32_0 : i32, i32
  }
  func.func @transform_5(%arg0: i32) -> (i32, i32) {
    %c0_i32 = arith.constant 0 : i32
    %c0_i32_0 = arith.constant 0 : i32
    %c0_i32_1 = arith.constant 0 : i32
    return %c0_i32, %c0_i32_0 : i32, i32
  }
  func.func @transform_6(%arg0: i32) -> (i32, i32) {
    %c0_i32 = arith.constant 0 : i32
    %c0_i32_0 = arith.constant 0 : i32
    %c0_i32_1 = arith.constant 0 : i32
    return %c0_i32, %c0_i32_0 : i32, i32
  }
  func.func @transform_7(%arg0: i32) -> (i32, i32) {
    %c0_i32 = arith.constant 0 : i32
    %c0_i32_0 = arith.constant 0 : i32
    %c0_i32_1 = arith.constant 0 : i32
    return %c0_i32, %c0_i32_0 : i32, i32
  }
  func.func @transform_8(%arg0: i32) -> (i32, i32) {
    %c0_i32 = arith.constant 0 : i32
    %c0_i32_0 = arith.constant 0 : i32
    %c0_i32_1 = arith.constant 0 : i32
    return %c0_i32, %c0_i32_0 : i32, i32
  }
  func.func @transform_9(%arg0: i32) -> (i32, i32) {
    %c0_i32 = arith.constant 0 : i32
    %c0_i32_0 = arith.constant 0 : i32
    %c0_i32_1 = arith.constant 0 : i32
    return %c0_i32, %c0_i32_0 : i32, i32
  }
  func.func @transform_10(%arg0: i32) -> (i32, i32, i32) {
    %c0_i32 = arith.constant 0 : i32
    %c0_i32_0 = arith.constant 0 : i32
    %c0_i32_1 = arith.constant 0 : i32
    return %arg0, %c0_i32, %c0_i32_0 : i32, i32, i32
  }
}

</mosaic_0001>

<bundles_post_ra>
// kernel: tpu_custom_call.1
= control target key start
LH: loop header
LB: loop body
LE: loop exit
PB: predicated region body
PF: predicated region fallthrough
CT: control target
= control target key end

     0   :  { %15 = vsyncpa [#allocation7], 0  ;;  %s10985_s0 = inlined_call_operand.vmem [shape: f32[2,16,64], index: 0, kind: input, shape index: {}]   ;;  %s10986_s1 = inlined_call_operand.vmem [shape: f32[2,8,256], index: 1, kind: input, shape index: {}]   ;;  %s10987_s2 = inlined_call_operand.vmem [shape: f32[16,32], index: 2, kind: input, shape index: {}]   ;;  %s10988_s3 = inlined_call_operand.vmem [shape: f32[1,32], index: 3, kind: input, shape index: {}]   ;;  %s10989_s4 = inlined_call_operand.vmem [shape: bf16[144,16], index: 4, kind: input, shape index: {}]   ;;  %s10990_s5 = inlined_call_operand.vmem [shape: f32[1,16], index: 5, kind: input, shape index: {}]   ;;  %s10991_s6 = inlined_call_operand.vmem [shape: f32[1,16], index: 6, kind: input, shape index: {}]   ;;  %s10992_s7 = inlined_call_operand.vmem [shape: bf16[144,16], index: 7, kind: input, shape index: {}]   ;;  %s10993_s8 = inlined_call_operand.vmem [shape: f32[1,16], index: 8, kind: input, shape index: {}]   ;;  %s10994_s9 = inlined_call_operand.vmem [shape: f32[1,16], index: 9, kind: input, shape index: {}]   ;;  %s10995_s10 = inlined_call_operand.hbm [shape: f32[2,16,256], index: 10, kind: output, shape index: {}]  }
   0x1   :  { %17 = vsyncpa [#allocation7 + $0x1], 0  ;;  %s7626_s13 = smov 0   ;;  %s7628_s14 = smov 0  }
   0x2   :  { %s7630_s15 = smov 0   ;;  %s7632_s16 = smov 0  }
   0x3 LB: > { %s7647_s17 = sadd.s32 4294967295, %s7554_s16   ;;  %s7075_s18 = sadd.s32 4294967294, %s7554_s16   ;;  %s7554_s16 = sphi %s7632_s16, %s11217_s16   ;;  %s7550_s15 = sphi %s7630_s15, %s11216_s15   ;;  %s7546_s14 = sphi %s7628_s14, %s11215_s14   ;;  %s7542_s13 = sphi %s7626_s13, %s11214_s13  }
   0x4   : > { %s7651_s19 = sadd.s32 1, %s7554_s16   ;;  %s250_s20 = sadd.s32 1, %s7550_s15 }
   0x5   : > { %s247_s21 = ssub.s32 %s7554_s16, %s7651_s19  ;;  %p260_p0 = scmp.ne.s32.totalorder %s7550_s15, %s7546_s14 }
   0x6   : > { %p248_p1 = scmp.eq.s32.totalorder %s247_s21, 0  ;;  %p261_p2 = scmp.eq.s32.totalorder %s7647_s17, 1 }
   0x7   : > { %p266_p3 = scmp.ne.s32.totalorder %s7546_s14, %s7542_s13  ;;  %p267_p4 = scmp.eq.s32.totalorder %s7075_s18, 1 }
   0x8   : > { %s7662_s22 = scalar_select %p248_p1, %s7550_s15, %s250_s20  }
   0x9   : > { %p7664_p5 = por %p261_p2, %p260_p0  ;;  %p7668_p6 = por %p267_p4, %p266_p3 }
   0xa   : > { %p7078_p7 = scmp.ge.s32.totalorder %s7554_s16, 1  ;;  %p325_p8 = scmp.lt.s32.totalorder %s7554_s16, 3 }
   0xc   : > { %p326_p9 = pnand %p7078_p7, %p325_p8 }
   0xe   : > { %329 = sbr.rel (%p326_p9) target bundleno = 1931 (0x78b), region = 60 }
  0x15   : > { %p368_p10 = scmp.lt.s32.totalorder %s7647_s17, 1  ;;  %v841_v0 = vld [vmem:[%s10987_s2] sm:$0xff]  ;;  %v842_v1 = vld [vmem:[%s10987_s2 + $0x8] sm:$0xff]  ;;  %vm379_vm0 = vcmask 130048   ;;  %v390_v16 = vlaneseq  ;;  %v10996_v20 = vmov 0.0   ;;  %vm991_vm2 = vcmask 64512  }
  0x16   : > { %v7293_v3 = vpack.c.bf16 %v842_v1, %v841_v0  ;;  %vm1886_vm3 = vcmask 1043456   ;;  %vm381_vm5 = vcmask 125952   ;;  %s7560_s30 = smov 104   ;;  %s11071_s11 = smov 16  }
  0x17   : > { %s369_s25 = scalar_select %p368_p10, %s7647_s17, 1  ;;  %v7696_v17 = vshrl.u32 %v390_v16, 7  ;;  %v7698_v18 = vand.u32 127, %v390_v16 }
  0x18   : > { %7294 = vmatprep.subr.bf16.mxu0 %v7293_v3  ;;  %s7563_s20 = smov 112   ;;  %s7564_s21 = smov 64  }
  0x19   : > { %s7200_s26 = sshll.u32 %s369_s25, 4  ;;  %7296 = vmatpush3.bf16.msra.mxu0 %v7293_v3  ;;  %v981_v19 = vshra.s32 %v7696_v17, 1  ;;  %s7565_s12 = smov 32  }
  0x1a   : > { %s372_s29 = scalar_lea.vmem %s10985_s0, %s7200_s26  ;;  %s377_s25 = scalar_lea.vmem %s10986_s1, %s7200_s26 }
  0x1b   : > { %v807_v2 = vld [vmem:[%s372_s29] sm:$0xff]  ;;  %v808_v4 = vld [vmem:[%s372_s29 + $0x8] sm:$0xff]  ;;  %vm983_vm1 = vcmp.eq.s32.totalorder %v981_v19, %v7698_v18  ;;  %s7557_s26 = smov 8   ;;  %s7559_s29 = smov 120  }
  0x1c   : > { %809 = vxpose.xlu0.b32.start [1/2] (short) (narrow) %v807_v2, 64  ;;  %v1788_v5 = vld [vmem:[%s377_s25] sm:$0xff]  ;;  %v1789_v6 = vld [vmem:[%s377_s25 + $0x8] sm:$0xff]  ;;  %v7703_v21 = vsel %vm983_vm1, 1.0, %v10996_v20  ;;  %vm2184_vm1 = vsmask.f32 4352 }
  0x1d   : > { %v7350_v7 = vpack.i.bf16 %v1789_v6, %v1788_v5  ;;  %7255 = vmatprep.mubr.msk.f32.mxu1 %vm991_vm2, %v7703_v21  ;;  %s7568_s18 = smov 96   ;;  %s7202_s25 = sshll.u32 %s7647_s17, 9 }
  0x1e   : > { %s7569_s17 = smov [#allocation6]  }
  0x20   : > { %810 = vxpose.xlu0.b32.end [2/2] (short) (narrow) %v808_v4, 64 }
  0x39   : > { %7351 = vxpose.xlu0.b32.start.end [1/1] (short) %v7350_v7, 128 }
  0x9c   : > { %v825_v8 = vpop.trf.xlu0 }
  0x9d   : > { %7241 = vmatprep.mubr.msk.f32.mxu0 %vm379_vm0, %v825_v8 }
  0xa0   : > { %v826_v9 = vpop.trf.xlu0 }
  0xa1   : > { %7242 = vmatmul.mubr.msk.f32.vlgmr.msra.gmra.mrb[0].mxu0 %vm379_vm0, %v826_v9 }
  0xa4   : > { %v827_v10 = vpop.trf.xlu0 }
  0xa5   : > { %7244 = vmatprep.mubr.msk.f32.mxu0 %vm379_vm0, %v827_v10 }
  0xa8   : > { %v828_v11 = vpop.trf.xlu0 }
  0xa9   : > { %7245 = vmatmul.mubr.msk.f32.gmra.mrb[2].mxu0 %vm379_vm0, %v828_v11 }
  0xac   : > { %v829_v12 = vpop.trf.xlu0 }
  0xad   : > { %7247 = vmatprep.mubr.msk.f32.mxu0 %vm379_vm0, %v829_v12 }
  0xb0   : > { %v830_v13 = vpop.trf.xlu0 }
  0xb1   : > { %7248 = vmatmul.mubr.msk.f32.gmra.mrb[4].mxu0 %vm379_vm0, %v830_v13 }
  0xb4   : > { %v831_v14 = vpop.trf.xlu0 }
  0xb5   : > { %7250 = vmatprep.mubr.msk.f32.mxu0 %vm379_vm0, %v831_v14 }
  0xb8   : > { %v832_v15 = vpop.trf.xlu0 }
  0xb9   : > { %7251 = vmatmul.mubr.msk.f32.gmra.mrb[6].mxu0 %vm379_vm0, %v832_v15 }
  0xba   : > { %7280 = vmatprep.mubr.msk.f32.mxu0 %vm991_vm2, %v7703_v21 }
  0xbc   : > { %v7352_v22 = vpop.trf.xlu0 }
  0xbd   : > { %v7353_v23 = vunpack.i.l.bf16 %v7352_v22  ;;  %v7356_v28 = vunpack.i.h.bf16 %v7352_v22 }
  0xc0   : > { %v7357_v24 = vpop.trf.xlu0 }
  0xc1   : > { %v7358_v25 = vunpack.i.l.bf16 %v7357_v24  ;;  %v7361_v29 = vunpack.i.h.bf16 %v7357_v24 }
  0xc3   : > { %v1854_v26 = vpack.c.bf16 %v7358_v25, %v7353_v23  ;;  %v7710_v36 = vpack.c.bf16 %v7361_v29, %v7356_v28 }
  0xc4   : > { %v7362_v27 = vpop.trf.xlu0 }
  0xc5   : > { %v1887_v30 = vrot.slane %v1854_v26, 4  ;;  %v7366_v31 = vunpack.i.h.bf16 %v7362_v27  ;;  %v7363_v32 = vunpack.i.l.bf16 %v7362_v27  ;;  %v1902_v41 = vrot.slane %v7710_v36, 4 }
  0xc7   : > { %1918 = vrot.lane.b32.xlu1 %v1887_v30, %s7557_s26 }
  0xc8   : > { %v7367_v33 = vpop.trf.xlu0 }
  0xc9   : > { %v7371_v34 = vunpack.i.h.bf16 %v7367_v33  ;;  %v7368_v35 = vunpack.i.l.bf16 %v7367_v33 }
  0xcb   : > { %v1855_v37 = vpack.c.bf16 %v7368_v35, %v7363_v32  ;;  %v1863_v38 = vpack.c.bf16 %v7371_v34, %v7366_v31 }
  0xcc   : > { %v7372_v39 = vpop.trf.xlu0 }
  0xcd   : > { %v1888_v40 = vrot.slane %v1855_v37, 4  ;;  %v1904_v42 = vrot.slane %v1863_v38, 4  ;;  %v7376_v43 = vunpack.i.h.bf16 %v7372_v39  ;;  %v7373_v44 = vunpack.i.l.bf16 %v7372_v39 }
  0xcf   : > { %v1889_v46 = vsel %vm1886_vm3, %v1887_v30, %v1888_v40  ;;  %v1905_v49 = vsel %vm1886_vm3, %v1902_v41, %v1904_v42 }
  0xd0   : > { %v7377_v45 = vpop.trf.xlu0  ;;  %1920 = vrot.lane.b32.xlu1 %v1889_v46, %s7557_s26 }
  0xd1   : > { %v7381_v47 = vunpack.i.h.bf16 %v7377_v45  ;;  %v7378_v48 = vunpack.i.l.bf16 %v7377_v45 }
  0xd3   : > { %v1856_v50 = vpack.c.bf16 %v7378_v48, %v7373_v44  ;;  %v1864_v51 = vpack.c.bf16 %v7381_v47, %v7376_v43 }
  0xd4   : > { %v7382_v52 = vpop.trf.xlu0  ;;  %1936 = vrot.lane.b32.xlu1 %v1905_v49, %s7557_s26 }
  0xd5   : > { %v1890_v53 = vrot.slane %v1856_v50, 4  ;;  %v1906_v54 = vrot.slane %v1864_v51, 4  ;;  %v7386_v55 = vunpack.i.h.bf16 %v7382_v52  ;;  %v7383_v56 = vunpack.i.l.bf16 %v7382_v52 }
  0xd7   : > { %v1891_v58 = vsel %vm1886_vm3, %v1888_v40, %v1890_v53  ;;  %v1907_v61 = vsel %vm1886_vm3, %v1904_v42, %v1906_v54 }
  0xd8   : > { %v7387_v57 = vpop.trf.xlu0  ;;  %1922 = vrot.lane.b32.xlu1 %v1891_v58, %s7557_s26 }
  0xd9   : > { %v7391_v59 = vunpack.i.h.bf16 %v7387_v57  ;;  %v7388_v60 = vunpack.i.l.bf16 %v7387_v57 }
  0xdb   : > { %v1857_v62 = vpack.c.bf16 %v7388_v60, %v7383_v56  ;;  %v1865_v63 = vpack.c.bf16 %v7391_v59, %v7386_v55  ;;  %v7749_v59 = vadd.s32 8, %v7696_v17 }
  0xdc   : > { %v7392_v0 = vpop.trf.xlu0  ;;  %1938 = vrot.lane.b32.xlu1 %v1907_v61, %s7557_s26  ;;  %v7116_v61 = vld [vmem:[%s10988_s3] ss:$0 sm:$0xff] }
  0xdd   : > { %v1892_v1 = vrot.slane %v1857_v62, 4  ;;  %v1908_v2 = vrot.slane %v1865_v63, 4  ;;  %v7396_v3 = vunpack.i.h.bf16 %v7392_v0  ;;  %v7393_v4 = vunpack.i.l.bf16 %v7392_v0 }
  0xde   : > { %v982_v60 = vshra.s32 %v7749_v59, 1 }
  0xdf   : > { %v1893_v6 = vsel %vm1886_vm3, %v1890_v53, %v1892_v1  ;;  %v1909_v9 = vsel %vm1886_vm3, %v1906_v54, %v1908_v2 }
  0xe0   : > { %v7397_v5 = vpop.trf.xlu0  ;;  %1924 = vrot.lane.b32.xlu1 %v1893_v6, %s7557_s26  ;;  %vm984_vm4 = vcmp.eq.s32.totalorder %v982_v60, %v7698_v18 }
  0xe1   : > { %v7401_v7 = vunpack.i.h.bf16 %v7397_v5  ;;  %v7398_v8 = vunpack.i.l.bf16 %v7397_v5 }
  0xe3   : > { %v1858_v10 = vpack.c.bf16 %v7398_v8, %v7393_v4  ;;  %v1866_v11 = vpack.c.bf16 %v7401_v7, %v7396_v3 }
  0xe4   : > { %v7402_v12 = vpop.trf.xlu0  ;;  %1940 = vrot.lane.b32.xlu1 %v1909_v9, %s7557_s26 }
  0xe5   : > { %v1894_v13 = vrot.slane %v1858_v10, 4  ;;  %v1910_v14 = vrot.slane %v1866_v11, 4  ;;  %v7406_v15 = vunpack.i.h.bf16 %v7402_v12  ;;  %v7403_v16 = vunpack.i.l.bf16 %v7402_v12 }
  0xe7   : > { %v1895_v22 = vsel %vm1886_vm3, %v1892_v1, %v1894_v13  ;;  %v1911_v25 = vsel %vm1886_vm3, %v1908_v2, %v1910_v14 }
  0xe8   : > { %v7407_v19 = vpop.trf.xlu0  ;;  %1926 = vrot.lane.b32.xlu1 %v1895_v22, %s7557_s26 }
  0xe9   : > { %v7411_v23 = vunpack.i.h.bf16 %v7407_v19  ;;  %v7408_v24 = vunpack.i.l.bf16 %v7407_v19 }
  0xeb   : > { %v1859_v26 = vpack.c.bf16 %v7408_v24, %v7403_v16  ;;  %v1867_v27 = vpack.c.bf16 %v7411_v23, %v7406_v15 }
  0xec   : > { %v7412_v28 = vpop.trf.xlu0  ;;  %1942 = vrot.lane.b32.xlu1 %v1911_v25, %s7557_s26 }
  0xed   : > { %v1896_v29 = vrot.slane %v1859_v26, 4  ;;  %v1912_v30 = vrot.slane %v1867_v27, 4  ;;  %v7416_v31 = vunpack.i.h.bf16 %v7412_v28  ;;  %v7413_v32 = vunpack.i.l.bf16 %v7412_v28 }
  0xef   : > { %v1897_v34 = vsel %vm1886_vm3, %v1894_v13, %v1896_v29  ;;  %v1913_v35 = vsel %vm1886_vm3, %v1910_v14, %v1912_v30 }
  0xf0   : > { %v7417_v33 = vpop.trf.xlu0  ;;  %1928 = vrot.lane.b32.xlu1 %v1897_v34, %s7557_s26  ;;  %1944 = vrot.lane.b32.xlu0 %v1913_v35, %s7557_s26 }
  0xf1   : > { %v7421_v37 = vunpack.i.h.bf16 %v7417_v33  ;;  %v7418_v38 = vunpack.i.l.bf16 %v7417_v33 }
  0xf3   : > { %v1860_v39 = vpack.c.bf16 %v7418_v38, %v7413_v32  ;;  %v1868_v40 = vpack.c.bf16 %v7421_v37, %v7416_v31 }
  0xf4   : > { %v7422_v42 = vpop.trf.xlu0 }
  0xf5   : > { %v1898_v43 = vrot.slane %v1860_v39, 4  ;;  %v1914_v44 = vrot.slane %v1868_v40, 4  ;;  %v7423_v45 = vunpack.i.l.bf16 %v7422_v42  ;;  %v7426_v47 = vunpack.i.h.bf16 %v7422_v42 }
  0xf7   : > { %v1899_v46 = vsel %vm1886_vm3, %v1896_v29, %v1898_v43  ;;  %v1915_v49 = vsel %vm1886_vm3, %v1912_v30, %v1914_v44 }
  0xf8   : > { %v7427_v48 = vpop.trf.xlu0  ;;  %1930 = vrot.lane.b32.xlu1 %v1899_v46, %s7557_s26 }
  0xf9   : > { %v7428_v50 = vunpack.i.l.bf16 %v7427_v48  ;;  %v7431_v51 = vunpack.i.h.bf16 %v7427_v48 }
  0xfb   : > { %v1861_v52 = vpack.c.bf16 %v7428_v50, %v7423_v45  ;;  %v1869_v53 = vpack.c.bf16 %v7431_v51, %v7426_v47 }
  0xfc   : > { %1946 = vrot.lane.b32.xlu1 %v1915_v49, %s7557_s26 }
  0xfd   : > { %v1900_v54 = vrot.slane %v1861_v52, 4  ;;  %v1916_v55 = vrot.slane %v1869_v53, 4 }
  0xff   : > { %v1901_v56 = vsel %vm1886_vm3, %v1898_v43, %v1900_v54  ;;  %1950 = vrot.lane.b32.xlu0 %v1916_v55, %s7557_s26  ;;  %v1917_v57 = vsel %vm1886_vm3, %v1914_v44, %v1916_v55  ;;  %v1903_v58 = vsel %vm1886_vm3, %v1900_v54, %v1902_v41  ;;  %v986_v41 = vsel %vm984_vm4, 1.0, %v10996_v20 }
 0x100   : > { %1932 = vrot.lane.b32.xlu1 %v1901_v56, %s7557_s26  ;;  %v987_v55 = vand.u32 1, %v7696_v17  ;;  %v988_v56 = vand.u32 1, %v7749_v59 }
 0x102   : > { %vm7877_vm6 = vcmp.eq.s32.totalorder %v987_v55, 1  ;;  %vm7881_vm7 = vcmp.eq.s32.totalorder %v988_v56, 1 }
 0x103   : > { %1948 = vrot.lane.b32.xlu0 %v1917_v57, %s7557_s26  ;;  %v10998_v57 = vmov 0  }
 0x104   : > { %1934 = vrot.lane.b32.xlu1 %v1903_v58, %s7557_s26  ;;  %380 = vst.msk [vmem:[#allocation2] sm:$0xff] %vm379_vm0, %v10998_v57  ;;  %385 = vst.msk [vmem:[#allocation2 + $0x90] sm:$0xff] %vm379_vm0, %v10998_v57 }
 0x105   : > { %382 = vst.msk [vmem:[#allocation2 + $0x8] sm:$0xf] %vm381_vm5, %v10998_v57  ;;  %387 = vst.msk [vmem:[#allocation3 + $0x8] sm:$0xf] %vm381_vm5, %v10998_v57 }
 0x106   : > { %386 = vst.msk [vmem:[#allocation3] sm:$0xff] %vm379_vm0, %v10998_v57  ;;  %389 = vst.msk [vmem:[#allocation3 + $0x90] sm:$0xff] %vm379_vm0, %v10998_v57 }
 0x139   : > { %v7833_v40 = vpop.permute.xlu1 %1918 }
 0x142   : > { %v7835_v42 = vpop.permute.xlu1 %1920 }
 0x146   : > { %v7837_v43 = vpop.permute.xlu1 %1936 }
 0x14a   : > { %v7839_v44 = vpop.permute.xlu1 %1922 }
 0x14e   : > { %v7841_v45 = vpop.permute.xlu1 %1938 }
 0x14f   : > { %11074 = vst [vmem:[#allocation9_spill] sm:$0xff] %v7841_v45 }
 0x152   : > { %v7843_v46 = vpop.permute.xlu1 %1924 }
 0x156   : > { %v7845_v47 = vpop.permute.xlu1 %1940 }
 0x15a   : > { %v7847_v48 = vpop.permute.xlu1 %1926 }
 0x15e   : > { %v7849_v49 = vpop.permute.xlu1 %1942 }
 0x15f   : > { %11075 = vst [vmem:[#allocation10_spill] sm:$0xff] %v7849_v49 }
 0x162   : > { %v7851_v50 = vpop.permute.xlu1 %1928 }
 0x16a   : > { %v7853_v51 = vpop.permute.xlu1 %1930 }
 0x16e   : > { %v7855_v52 = vpop.permute.xlu1 %1946 }
 0x16f   : > { %11076 = vst [vmem:[#allocation11_spill] sm:$0xff] %v7855_v52 }
 0x172   : > { %v7857_v53 = vpop.permute.xlu1 %1932 }
 0x174   : > { %v7243_v62 = vpop.f32.mrb[0].mxu0 }
 0x175   : > { %v940_v63 = vpop.f32.mrb[1].mxu0  ;;  %v946_v0 = vadd.f32 %v7243_v62, %v7116_v61 }
 0x176   : > { %v941_v36 = vadd.f32 %v7116_v61, %v940_v63  ;;  %v7859_v54 = vpop.permute.xlu1 %1934 }
 0x178   : > { %7253 = vmatprep.subr.mxu1 %v941_v36 }
 0x179   : > { %7254 = vmatpush3.msra.mxu1 %v941_v36 }
 0x17a   : > { %7256 = vmatmul.mubr.msk.f32.vlgmr.msra.gmra.mrb[0].mxu1 %vm991_vm2, %v986_v41  ;;  %7258 = vmatprep.subr.mxu1 %v946_v0 }
 0x17b   : > { %7259 = vmatpush3.msra.mxu1 %v946_v0  ;;  %7260 = vmatprep.mubr.msk.f32.mxu1 %vm991_vm2, %v7703_v21 }
 0x17c   : > { %v7246_v1 = vpop.f32.mrb[2].mxu0 }
 0x17d   : > { %v950_v2 = vpop.f32.mrb[3].mxu0  ;;  %v956_v3 = vadd.f32 %v7246_v1, %v7116_v61 }
 0x17e   : > { %v951_v4 = vadd.f32 %v7116_v61, %v950_v2  ;;  %7261 = vmatmul.mubr.msk.f32.vlgmr.msra.gmra.mrb[2].mxu1 %vm991_vm2, %v986_v41 }
 0x17f   : > { %7265 = vmatprep.mubr.msk.f32.mxu1 %vm991_vm2, %v7703_v21 }
 0x180   : > { %7263 = vmatprep.subr.mxu1 %v951_v4 }
 0x181   : > { %7264 = vmatpush3.msra.mxu1 %v951_v4 }
 0x182   : > { %7266 = vmatmul.mubr.msk.f32.vlgmr.msra.gmra.mrb[4].mxu1 %vm991_vm2, %v986_v41  ;;  %7268 = vmatprep.subr.mxu1 %v956_v3 }
 0x183   : > { %7269 = vmatpush3.msra.mxu1 %v956_v3  ;;  %7270 = vmatprep.mubr.msk.f32.mxu1 %vm991_vm2, %v7703_v21 }
 0x184   : > { %v7249_v18 = vpop.f32.mrb[4].mxu0 }
 0x185   : > { %v966_v5 = vadd.f32 %v7249_v18, %v7116_v61  ;;  %v960_v6 = vpop.f32.mrb[5].mxu0 }
 0x186   : > { %7271 = vmatmul.mubr.msk.f32.vlgmr.msra.gmra.mrb[6].mxu1 %vm991_vm2, %v986_v41  ;;  %v961_v7 = vadd.f32 %v7116_v61, %v960_v6 }
 0x187   : > { %7278 = vmatprep.subr.mxu0 %v966_v5  ;;  %7275 = vmatprep.mubr.msk.f32.mxu1 %vm991_vm2, %v7703_v21 }
 0x188   : > { %7279 = vmatpush3.msra.mxu0 %v966_v5  ;;  %7273 = vmatprep.subr.mxu1 %v961_v7 }
 0x189   : > { %7281 = vmatmul.mubr.msk.f32.vlgmr.msra.gmra.mrb[8].mxu0 %vm991_vm2, %v986_v41  ;;  %7274 = vmatpush3.msra.mxu1 %v961_v7 }
 0x18a   : > { %7276 = vmatmul.mubr.msk.f32.vlgmr.msra.gmra.mrb[8].mxu1 %vm991_vm2, %v986_v41  ;;  %7290 = vmatprep.mubr.msk.f32.mxu0 %vm991_vm2, %v7703_v21 }
 0x18b   : > { %7285 = vmatprep.mubr.msk.f32.mxu1 %vm991_vm2, %v7703_v21 }
 0x18c   : > { %v7252_v8 = vpop.f32.mrb[6].mxu0 }
 0x18d   : > { %v976_v9 = vadd.f32 %v7252_v8, %v7116_v61  ;;  %v970_v10 = vpop.f32.mrb[7].mxu0 }
 0x18e   : > { %v971_v11 = vadd.f32 %v7116_v61, %v970_v10  ;;  %v393_v61 = vadd.s32 16, %v7696_v17 }
 0x18f   : > { %7288 = vmatprep.subr.mxu0 %v976_v9 }
 0x190   : > { %7289 = vmatpush3.msra.mxu0 %v976_v9  ;;  %7283 = vmatprep.subr.mxu1 %v971_v11 }
 0x191   : > { %7291 = vmatmul.mubr.msk.f32.vlgmr.msra.gmra.mrb[10].mxu0 %vm991_vm2, %v986_v41  ;;  %7284 = vmatpush3.msra.mxu1 %v971_v11 }
 0x192   : > { %7286 = vmatmul.mubr.msk.f32.vlgmr.msra.gmra.mrb[10].mxu1 %vm991_vm2, %v986_v41  ;;  %4299 = vmatprep.subr.bf16.mxu1 %v10998_v57  ;;  %vm2006_vm2 = vsmask.f32 3328 }
 0x193   : > { %6648 = vmatprep.subr.bf16.mxu0 %v10998_v57 }
 0x24d   : > { %v7777_v12 = vpop.f32.mrb[0].mxu1 }
 0x24e   : > { %v7779_v13 = vpop.f32.mrb[1].mxu1 }
 0x24f   : > { %v7432_v14 = vpack.i.bf16 %v7777_v12, %v7779_v13 }
 0x251   : > { %v7783_v21 = vpop.f32.mrb[2].mxu1  ;;  %7433 = vrot.lane.b32.xlu1 %v7432_v14, %s7557_s26 }
 0x252   : > { %v7786_v15 = vpop.f32.mrb[3].mxu1 }
 0x253   : > { %v7437_v16 = vpack.i.bf16 %v7783_v21, %v7786_v15 }
 0x255   : > { %v7790_v19 = vpop.f32.mrb[4].mxu1  ;;  %7438 = vrot.lane.b32.xlu1 %v7437_v16, %s7557_s26 }
 0x256   : > { %v7793_v22 = vpop.f32.mrb[5].mxu1 }
 0x257   : > { %v7442_v23 = vpack.i.bf16 %v7790_v19, %v7793_v22 }
 0x259   : > { %v7797_v24 = vpop.f32.mrb[6].mxu1  ;;  %7443 = vrot.lane.b32.xlu1 %v7442_v23, %s7557_s26 }
 0x25a   : > { %v7800_v25 = vpop.f32.mrb[7].mxu1 }
 0x25b   : > { %v7447_v26 = vpack.i.bf16 %v7797_v24, %v7800_v25 }
 0x25c   : > { %v7804_v27 = vpop.f32.mrb[8].mxu0 }
 0x25d   : > { %7448 = vrot.lane.b32.xlu1 %v7447_v26, %s7557_s26  ;;  %v7807_v28 = vpop.f32.mrb[9].mxu0  ;;  %v7809_v29 = vpop.f32.mrb[8].mxu1 }
 0x25e   : > { %v7452_v30 = vpack.i.bf16 %v7804_v27, %v7807_v28  ;;  %v7813_v31 = vpop.f32.mrb[9].mxu1 }
 0x25f   : > { %v7457_v32 = vpack.i.bf16 %v7809_v29, %v7813_v31 }
 0x261   : > { %7453 = vrot.lane.b32.xlu1 %v7452_v30, %s7557_s26 }
 0x264   : > { %v7818_v33 = vpop.f32.mrb[10].mxu0 }
 0x265   : > { %7458 = vrot.lane.b32.xlu1 %v7457_v32, %s7557_s26  ;;  %v7821_v34 = vpop.f32.mrb[11].mxu0  ;;  %v7823_v35 = vpop.f32.mrb[10].mxu1 }
 0x266   : > { %v7462_v37 = vpack.i.bf16 %v7818_v33, %v7821_v34  ;;  %v7827_v38 = vpop.f32.mrb[11].mxu1 }
 0x267   : > { %v7467_v39 = vpack.i.bf16 %v7823_v35, %v7827_v38 }
 0x269   : > { %7463 = vrot.lane.b32.xlu1 %v7462_v37, %s7557_s26 }
 0x26d   : > { %7468 = vrot.lane.b32.xlu1 %v7467_v39, %s7557_s26  ;;  %s7566_s26 = smov 48  }
 0x2c3   : > { %v7434_v58 = vpop.permute.xlu1 %7433 }
 0x2c4   : > { %v7436_v62 = vunpack.i.h.bf16 %v7434_v58  ;;  %v7435_v63 = vunpack.i.l.bf16 %v7434_v58 }
 0x2c6   : > { %v1085_v36 = vsel %vm7877_vm6, %v7779_v13, %v7435_v63  ;;  %v1086_v41 = vsel %vm7881_vm7, %v7777_v12, %v7436_v62 }
 0x2c7   : > { %v7439_v0 = vpop.permute.xlu1 %7438  ;;  %v1087_v1 = vpack.c.bf16 %v1086_v41, %v1085_v36 }
 0x2c8   : > { %v7441_v2 = vunpack.i.h.bf16 %v7439_v0  ;;  %v7440_v3 = vunpack.i.l.bf16 %v7439_v0 }
 0x2c9   : > { %v1089_v4 = vrot.slane %v1087_v1, 4 }
 0x2ca   : > { %v1185_v18 = vsel %vm7877_vm6, %v7786_v15, %v7440_v3  ;;  %v1186_v5 = vsel %vm7881_vm7, %v7783_v21, %v7441_v2 }
 0x2cb   : > { %v7444_v6 = vpop.permute.xlu1 %7443  ;;  %1090 = vrot.lane.b32.xlu1 %v1089_v4, %s7559_s29  ;;  %v1187_v7 = vpack.c.bf16 %v1186_v5, %v1185_v18 }
 0x2cc   : > { %v7446_v8 = vunpack.i.h.bf16 %v7444_v6  ;;  %v7445_v9 = vunpack.i.l.bf16 %v7444_v6 }
 0x2cd   : > { %v1189_v10 = vrot.slane %v1187_v7, 4 }
 0x2ce   : > { %v1283_v11 = vsel %vm7877_vm6, %v7793_v22, %v7445_v9  ;;  %v1284_v12 = vsel %vm7881_vm7, %v7790_v19, %v7446_v8  ;;  %v423_v8 = vand.u32 15, %v7696_v17 }
 0x2cf   : > { %v7449_v13 = vpop.permute.xlu1 %7448  ;;  %1190 = vrot.lane.b32.xlu0 %v1189_v10, %s7559_s29  ;;  %1097 = vrot.lane.b32.xlu1 %v1089_v4, %s7560_s30  ;;  %v1285_v14 = vpack.c.bf16 %v1284_v12, %v1283_v11  ;;  %v396_v11 = vadd.s32 40, %v7696_v17  ;;  %v11001_v12 = vmov 1.0  }
 0x2d0   : > { %v7451_v21 = vunpack.i.h.bf16 %v7449_v13  ;;  %v7450_v15 = vunpack.i.l.bf16 %v7449_v13  ;;  %vm455_vm10 = vcmp.ne.s32.totalorder %v423_v8, 0 }
 0x2d1   : > { %v1287_v32 = vrot.slane %v1285_v14, 4 }
 0x2d2   : > { %v1381_v16 = vsel %vm7877_vm6, %v7800_v25, %v7450_v15  ;;  %v1382_v22 = vsel %vm7881_vm7, %v7797_v24, %v7451_v21  ;;  %v7084_v15 = vsel %vm455_vm10, 1.0, %v10996_v20 }
 0x2d3   : > { %v7454_v23 = vpop.permute.xlu1 %7453  ;;  %1195 = vrot.lane.b32.xlu1 %v1189_v10, %s7560_s30  ;;  %v1383_v19 = vpack.c.bf16 %v1382_v22, %v1381_v16  ;;  %v425_v10 = vand.u32 15, %v393_v61  ;;  %v428_v16 = vand.u32 15, %v396_v11 }
 0x2d4   : > { %v7456_v26 = vunpack.i.h.bf16 %v7454_v23  ;;  %v7455_v30 = vunpack.i.l.bf16 %v7454_v23 }
 0x2d5   : > { %v1385_v41 = vrot.slane %v1383_v19, 4  ;;  %vm457_vm11 = vcmp.ne.s32.totalorder %v425_v10, 0  ;;  %v398_v19 = vadd.s32 56, %v7696_v17  ;;  %vm492_vm12 = vcmp.ne.s32.totalorder %v428_v16, 15 }
 0x2d6   : > { %v1577_v37 = vsel %vm7877_vm6, %v7807_v28, %v7455_v30  ;;  %v1578_v39 = vsel %vm7881_vm7, %v7804_v27, %v7456_v26  ;;  %v7085_v26 = vsel %vm457_vm11, 1.0, %v10996_v20  ;;  %v397_v30 = vadd.s32 48, %v7696_v17 }
 0x2d7   : > { %v7459_v25 = vpop.permute.xlu1 %7458  ;;  %1288 = vrot.lane.b32.xlu1 %v1287_v32, %s7559_s29  ;;  %v1579_v55 = vpack.c.bf16 %v1578_v39, %v1577_v37 }
 0x2d8   : > { %v7461_v24 = vunpack.i.h.bf16 %v7459_v25  ;;  %v7460_v56 = vunpack.i.l.bf16 %v7459_v25 }
 0x2d9   : > { %v1581_v6 = vrot.slane %v1579_v55, 4 }
 0x2da   : > { %v1479_v58 = vsel %vm7877_vm6, %v7813_v31, %v7460_v56  ;;  %v1480_v62 = vsel %vm7881_vm7, %v7809_v29, %v7461_v24  ;;  %v648_v56 = vpack.c.bf16 %v11001_v12, %v7085_v26 }
 0x2db   : > { %v7464_v63 = vpop.permute.xlu1 %7463  ;;  %1293 = vrot.lane.b32.xlu1 %v1287_v32, %s7560_s30  ;;  %v1481_v28 = vpack.c.bf16 %v1480_v62, %v1479_v58  ;;  %v647_v32 = vpack.c.bf16 %v11001_v12, %v7084_v15  ;;  %v430_v58 = vand.u32 15, %v398_v19  ;;  %v429_v62 = vand.u32 15, %v397_v30 }
 0x2dc   : > { %v7466_v36 = vunpack.i.h.bf16 %v7464_v63  ;;  %v7465_v27 = vunpack.i.l.bf16 %v7464_v63  ;;  %v401_v30 = vadd.s32 80, %v7696_v17 }
 0x2dd   : > { %v1483_v7 = vrot.slane %v1481_v28, 4  ;;  %v2008_v63 = vshrl.u32 %v647_v32, 16  ;;  %v7102_v28 = vsel %vm492_vm12, 1.0, %v10996_v20  ;;  %vm494_vm14 = vcmp.ne.s32.totalorder %v430_v58, 15 }
 0x2de   : > { %v1773_v0 = vsel %vm7877_vm6, %v7821_v34, %v7465_v27  ;;  %v1774_v1 = vsel %vm7881_vm7, %v7818_v33, %v7466_v36  ;;  %v400_v36 = vadd.s32 72, %v7696_v17  ;;  %vm461_vm15 = vcmp.ne.s32.totalorder %v429_v62, 0 }
 0x2df   : > { %v7469_v31 = vpop.permute.xlu1 %7468  ;;  %1386 = vrot.lane.b32.xlu1 %v1385_v41, %s7559_s29  ;;  %v1775_v2 = vpack.c.bf16 %v1774_v1, %v1773_v0  ;;  %v2011_v0 = vshll.u32 %v647_v32, 16  ;;  %v399_v1 = vadd.s32 64, %v7696_v17 }
 0x2e0   : > { %v7471_v29 = vunpack.i.h.bf16 %v7469_v31  ;;  %v7470_v3 = vunpack.i.l.bf16 %v7469_v31 }
 0x2e1   : > { %v1777_v4 = vrot.slane %v1775_v2, 4  ;;  %v2016_v2 = vshrl.u32 %v648_v56, 16 }
 0x2e2   : > { %v1675_v18 = vsel %vm7877_vm6, %v7827_v38, %v7470_v3  ;;  %v1676_v5 = vsel %vm7881_vm7, %v7823_v35, %v7471_v29  ;;  %v394_v35 = vadd.s32 24, %v7696_v17  ;;  %v424_v38 = vand.u32 15, %v7749_v59  ;;  %v2501_v3 = vld [vmem:[#allocation2] sm:$0xf0] }
 0x2e3   : > { %1783 = vrot.lane.b32.xlu0 %v1777_v4, %s7560_s30  ;;  %1391 = vrot.lane.b32.xlu1 %v1385_v41, %s7560_s30  ;;  %v1677_v33 = vpack.c.bf16 %v1676_v5, %v1675_v18  ;;  %v395_v59 = vadd.s32 32, %v7696_v17  ;;  %v2019_v29 = vshll.u32 %v648_v56, 16  ;;  %v402_v5 = vadd.s32 88, %v7696_v17 }
 0x2e4   : > { %v426_v60 = vand.u32 15, %v394_v35  ;;  %vm488_vm8 = vcmp.ne.s32.totalorder %v424_v38, 15  ;;  %v7103_v35 = vsel %vm494_vm14, 1.0, %v10996_v20  ;;  %v431_v38 = vand.u32 15, %v399_v1 }
 0x2e5   : > { %v1679_v34 = vrot.slane %v1677_v33, 4  ;;  %v7100_v9 = vsel %vm488_vm8, 1.0, %v10996_v20  ;;  %v427_v37 = vand.u32 15, %v395_v59  ;;  %v2010_v33 = vrot.slane %v2008_v63, 4 }
 0x2e6   : > { %vm490_vm9 = vcmp.ne.s32.totalorder %v426_v60, 15  ;;  %v791_v13 = vpack.c.bf16 %v7100_v9, %v11001_v12  ;;  %v7976_v60 = vld [vmem:[#allocation2] sm:$0xf0]  ;;  %v7087_v9 = vsel %vm461_vm15, 1.0, %v10996_v20  ;;  %v2018_v10 = vrot.slane %v2016_v2, 4 }
 0x2e7   : > { %1685 = vrot.lane.b32.xlu0 %v1679_v34, %s7560_s30  ;;  %1582 = vrot.lane.b32.xlu1 %v1581_v6, %s7559_s29  ;;  %v7101_v14 = vsel %vm490_vm9, 1.0, %v10996_v20  ;;  %vm459_vm13 = vcmp.ne.s32.totalorder %v427_v37, 0  ;;  %v2021_v11 = vrot.slane %v2019_v29, 5  ;;  %vm463_vm6 = vcmp.ne.s32.totalorder %v431_v38, 0 }
 0x2e8   : > { %v792_v21 = vpack.c.bf16 %v7101_v14, %v11001_v12  ;;  %v2519_v22 = vshrl.u32 %v791_v13, 16  ;;  %v2522_v23 = vshll.u32 %v791_v13, 16  ;;  %v7086_v18 = vsel %vm459_vm13, 1.0, %v10996_v20 }
 0x2e9   : > { %v649_v8 = vpack.c.bf16 %v11001_v12, %v7086_v18  ;;  %v434_v14 = vand.u32 15, %v402_v5  ;;  %v404_v56 = vadd.s32 104, %v7696_v17 }
 0x2ea   : > { %v2527_v39 = vshrl.u32 %v792_v21, 16  ;;  %v2530_v25 = vshll.u32 %v792_v21, 16  ;;  %v2521_v55 = vrot.slane %v2519_v22, 3  ;;  %v2524_v24 = vrot.slane %v2522_v23, 4 }
 0x2eb   : > { %1587 = vrot.lane.b32.xlu1 %v1581_v6, %s7560_s30  ;;  %v794_v21 = vpack.c.bf16 %v7103_v35, %v11001_v12  ;;  %v650_v22 = vpack.c.bf16 %v11001_v12, %v7087_v9  ;;  %v2025_v26 = vshrl.u32 %v649_v8, 16  ;;  %v2028_v37 = vshll.u32 %v649_v8, 16 }
 0x2ec   : > { %v2529_v27 = vrot.slane %v2527_v39, 3  ;;  %v2532_v41 = vrot.slane %v2530_v25, 4  ;;  %v7968_v31 = vor.u32 %v2524_v24, %v2521_v55  ;;  %vm498_vm7 = vcmp.ne.s32.totalorder %v434_v14, 15 }
 0x2ed   : > { %v2545_v55 = vshrl.u32 %v794_v21, 16  ;;  %v7088_v24 = vsel %vm463_vm6, 1.0, %v10996_v20  ;;  %v2548_v62 = vshll.u32 %v794_v21, 16  ;;  %v2034_v63 = vshrl.u32 %v650_v22, 16 }
 0x2ee   : > { %11081 = vst [vmem:[#allocation12_spill] sm:$0xff] %v7968_v31  ;;  %v7973_v6 = vor.u32 %v2532_v41, %v2529_v27  ;;  %v2678_v61 = vmul.bf16 %v7968_v31, %v2501_v3  ;;  %v7105_v41 = vsel %vm498_vm7, 1.0, %v10996_v20  ;;  %v2027_v29 = vrot.slane %v2025_v26, 4 }
 0x2ef   : > { %1484 = vrot.lane.b32.xlu1 %v1483_v7, %s7559_s29  ;;  %v651_v3 = vpack.c.bf16 %v11001_v12, %v7088_v24  ;;  %v2030_v18 = vrot.slane %v2028_v37, 5  ;;  %v2547_v5 = vrot.slane %v2545_v55, 3  ;;  %v796_v38 = vpack.c.bf16 %v7105_v41, %v11001_v12 }
 0x2f0   : > { %v7986_v16 = vsel %vm2184_vm1, %v7968_v31, %v7973_v6  ;;  %v2696_v23 = vshrl.u32 %v2678_v61, 16  ;;  %v2699_v19 = vshll.u32 %v2678_v61, 16  ;;  %v403_v9 = vadd.s32 96, %v7696_v17 }
 0x2f1   : > { %11082 = vst [vmem:[#allocation13_spill] sm:$0xff] %v7986_v16  ;;  %v405_v14 = vadd.s32 112, %v7696_v17  ;;  %v2566_v26 = vshll.u32 %v796_v38, 16  ;;  %vm1095_vm6 = vcmask 60416  }
 0x2f2   : > { %v7997_v1 = vrot.slane %v2696_v23, 4  ;;  %v7999_v2 = vrot.slane %v2699_v19, 5  ;;  %v2563_v19 = vshrl.u32 %v796_v38, 16  ;;  %v1989_v38 = vld [vmem:[#allocation2] sm:$0xf8] }
 0x2f3   : > { %1489 = vrot.lane.b32.xlu1 %v1483_v7, %s7560_s30  ;;  %v2013_v7 = vrot.slane %v2011_v0, 5  ;;  %v433_v0 = vand.u32 15, %v401_v30 }
 0x2f5   : > { %v7993_v58 = vor.u32 %v2013_v7, %v2010_v33  ;;  %v436_v33 = vand.u32 15, %v404_v56  ;;  %v2036_v7 = vrot.slane %v2034_v63, 4  ;;  %vm465_vm8 = vcmp.ne.s32.totalorder %v433_v0, 0 }
 0x2f6   : > { %v7089_v30 = vsel %vm465_vm8, 1.0, %v10996_v20  ;;  %v2565_v0 = vrot.slane %v2563_v19, 3  ;;  %vm1969_vm8 = vcmask 130116  }
 0x2f7   : > { %1778 = vrot.lane.b32.xlu1 %v1777_v4, %s7559_s29  ;;  %v793_v4 = vpack.c.bf16 %v7102_v28, %v11001_v12  ;;  %11083 = vst [vmem:[#allocation14_spill] sm:$0xff] %v7993_v58  ;;  %v2037_v28 = vshll.u32 %v650_v22, 16  ;;  %v2031_v22 = vor.u32 %v2030_v18, %v2027_v29  ;;  %vm500_vm9 = vcmp.ne.s32.totalorder %v436_v33, 15 }
 0x2f8   : > { %v7106_v56 = vsel %vm500_vm9, 1.0, %v10996_v20  ;;  %v2568_v29 = vrot.slane %v2566_v26, 4 }
 0x2f9   : > { %v2536_v13 = vshrl.u32 %v793_v4, 16  ;;  %v2539_v59 = vshll.u32 %v793_v4, 16  ;;  %v2039_v35 = vrot.slane %v2037_v28, 5  ;;  %v406_v28 = vadd.s32 120, %v7696_v17 }
 0x2fb   : > { %1680 = vrot.lane.b32.xlu1 %v1679_v34, %s7559_s29  ;;  %v432_v34 = vand.u32 15, %v400_v36  ;;  %v2538_v32 = vrot.slane %v2536_v13, 3  ;;  %v2541_v25 = vrot.slane %v2539_v59, 4  ;;  %v2022_v36 = vor.u32 %v2021_v11, %v2018_v10  ;;  %s7567_s29 = smov 80  }
 0x2fc   : > { %v2043_v11 = vshrl.u32 %v651_v3, 16  ;;  %v2046_v13 = vshll.u32 %v651_v3, 16  ;;  %v407_v3 = vadd.s32 128, %v7696_v17 }
 0x2fd   : > { %vm496_vm4 = vcmp.ne.s32.totalorder %v432_v34, 15  ;;  %v2542_v4 = vor.u32 %v2541_v25, %v2538_v32  ;;  %v2550_v34 = vrot.slane %v2548_v62, 4  ;;  %v8006_v10 = vsel %vm2006_vm2, %v7993_v58, %v2022_v36 }
 0x2fe   : > { %v7104_v39 = vsel %vm496_vm4, 1.0, %v10996_v20  ;;  %11084 = vst [vmem:[#allocation15_spill] sm:$0xff] %v8006_v10  ;;  %v2040_v32 = vor.u32 %v2039_v35, %v2036_v7  ;;  %v435_v25 = vand.u32 15, %v403_v9  ;;  %v2045_v55 = vrot.slane %v2043_v11, 4 }
 0x2ff   : > { %v795_v27 = vpack.c.bf16 %v7104_v39, %v11001_v12  ;;  %v8013_v21 = vsel %vm2184_vm1, %v7973_v6, %v2542_v4  ;;  %v2551_v23 = vor.u32 %v2550_v34, %v2547_v5  ;;  %v2048_v24 = vrot.slane %v2046_v13, 5 }
 0x300   : > { %11085 = vst [vmem:[#allocation16_spill] sm:$0xff] %v8013_v21  ;;  %v437_v62 = vand.u32 15, %v405_v14  ;;  %v8018_v63 = vsel %vm2006_vm2, %v2022_v36, %v2031_v22  ;;  %v652_v6 = vpack.c.bf16 %v11001_v12, %v7089_v30  ;;  %v8028_v18 = vsel %vm2006_vm2, %v2031_v22, %v2040_v32 }
 0x301   : > { %v2554_v61 = vshrl.u32 %v795_v27, 16  ;;  %v2557_v8 = vshll.u32 %v795_v27, 16  ;;  %11086 = vst [vmem:[#allocation17_spill] sm:$0xff] %v8018_v63  ;;  %v408_v27 = vadd.s32 136, %v7696_v17  ;;  %v8024_v41 = vsel %vm2184_vm1, %v2542_v4, %v2551_v23  ;;  %11088 = vst [vmem:[#allocation19_spill] sm:$0xff] %v8028_v18 }
 0x302   : > { %11087 = vst [vmem:[#allocation18_spill] sm:$0xff] %v8024_v41  ;;  %v797_v5 = vpack.c.bf16 %v7106_v56, %v11001_v12  ;;  %vm467_vm10 = vcmp.ne.s32.totalorder %v435_v25, 0  ;;  %v410_v36 = vadd.s32 152, %v7696_v17  ;;  %v8032_v34 = vor.u32 %v2048_v24, %v2045_v55 }
 0x303   : > { %v2556_v37 = vrot.slane %v2554_v61, 3  ;;  %v2559_v39 = vrot.slane %v2557_v8, 4  ;;  %vm469_vm11 = vcmp.ne.s32.totalorder %v437_v62, 0  ;;  %v412_v7 = vadd.s32 168, %v7696_v17 }
 0x304   : > { %v2052_v4 = vshrl.u32 %v652_v6, 16  ;;  %v438_v35 = vand.u32 15, %v406_v28  ;;  %v440_v61 = vand.u32 15, %v408_v27  ;;  %v409_v8 = vadd.s32 144, %v7696_v17 }
 0x305   : > { %v2560_v33 = vor.u32 %v2559_v39, %v2556_v37  ;;  %v8036_v9 = vor.u32 %v2568_v29, %v2565_v0  ;;  %v2055_v11 = vshll.u32 %v652_v6, 16  ;;  %v7090_v13 = vsel %vm467_vm10, 1.0, %v10996_v20  ;;  %v8058_v29 = vpop.permute.xlu0 %1944 }
 0x306   : > { %v439_v14 = vand.u32 15, %v407_v3  ;;  %v2572_v22 = vshrl.u32 %v797_v5, 16  ;;  %v2575_v19 = vshll.u32 %v797_v5, 16  ;;  %v7091_v26 = vsel %vm469_vm11, 1.0, %v10996_v20  ;;  %11094 = vst [vmem:[#allocation23_spill] sm:$0xff] %v8058_v29 }
 0x307   : > { %v442_v30 = vand.u32 15, %v410_v36  ;;  %v8041_v37 = vsel %vm2184_vm1, %v2551_v23, %v2560_v33  ;;  %v8045_v39 = vsel %vm2006_vm2, %v2040_v32, %v8032_v34  ;;  %v2167_v25 = vmul.bf16 %v7993_v58, %v1989_v38 }
 0x308   : > { %11089 = vst [vmem:[#allocation20_spill] sm:$0xff] %v8041_v37  ;;  %11090 = vst [vmem:[#allocation21_spill] sm:$0xff] %v8045_v39  ;;  %v444_v55 = vand.u32 15, %v412_v7  ;;  %v653_v24 = vpack.c.bf16 %v11001_v12, %v7090_v13  ;;  %vm502_vm12 = vcmp.ne.s32.totalorder %v438_v35, 15  ;;  %vm504_vm13 = vcmp.ne.s32.totalorder %v440_v61, 15 }
 0x309   : > { %v441_v56 = vand.u32 15, %v409_v8  ;;  %v2054_v62 = vrot.slane %v2052_v4, 4  ;;  %v2057_v6 = vrot.slane %v2055_v11, 5  ;;  %v654_v28 = vpack.c.bf16 %v11001_v12, %v7091_v26 }
 0x30a   : > { %vm471_vm14 = vcmp.ne.s32.totalorder %v439_v14, 0  ;;  %v8052_v23 = vsel %vm2184_vm1, %v2560_v33, %v8036_v9  ;;  %v2574_v27 = vrot.slane %v2572_v22, 3  ;;  %v2577_v32 = vrot.slane %v2575_v19, 4  ;;  %v8071_v19 = vpop.permute.xlu0 %1950 }
 0x30b   : > { %11091 = vst [vmem:[#allocation22_spill] sm:$0xff] %v8052_v23  ;;  %vm8054_vm15 = vcmp.ne.s32.totalorder %v442_v30, 15  ;;  %vm1093_vm4 = vcmask 64516   ;;  %v7107_v3 = vsel %vm502_vm12, 1.0, %v10996_v20  ;;  %v2186_v5 = vshrl.u32 %v2167_v25, 16 }
 0x30c   : > { %v7108_v36 = vsel %vm504_vm13, 1.0, %v10996_v20  ;;  %vm508_vm7 = vcmp.ne.s32.totalorder %v444_v55, 15  ;;  %v2061_v7 = vshrl.u32 %v653_v24, 16  ;;  %v2189_v33 = vshll.u32 %v2167_v25, 16 }
 0x30d   : > { %v7092_v4 = vsel %vm471_vm14, 1.0, %v10996_v20  ;;  %vm473_vm9 = vcmp.ne.s32.totalorder %v441_v56, 0  ;;  %v2064_v35 = vshll.u32 %v653_v24, 16  ;;  %v2070_v38 = vshrl.u32 %v654_v28, 16 }
 0x30e   : > { %v2073_v61 = vshll.u32 %v654_v28, 16  ;;  %v7109_v8 = vsel %vm8054_vm15, 1.0, %v10996_v20  ;;  %v8066_v11 = vor.u32 %v2057_v6, %v2054_v62  ;;  %v798_v13 = vpack.c.bf16 %v7107_v3, %v11001_v12 }
 0x30f   : > { %v799_v14 = vpack.c.bf16 %v7108_v36, %v11001_v12  ;;  %v7110_v22 = vsel %vm508_vm7, 1.0, %v10996_v20  ;;  %v8073_v26 = vor.u32 %v2577_v32, %v2574_v27  ;;  %v655_v30 = vpack.c.bf16 %v11001_v12, %v7092_v4 }
 0x310   : > { %v7093_v25 = vsel %vm473_vm9, 1.0, %v10996_v20  ;;  %v411_v55 = vadd.s32 160, %v7696_v17  ;;  %vm1971_vm10 = vcmask 130112   ;;  %v2063_v24 = vrot.slane %v2061_v7, 4 }
 0x311   : > { %v8078_v56 = vrot.slane %v2186_v5, 3  ;;  %v8080_v62 = vrot.slane %v2189_v33, 4  ;;  %v800_v6 = vpack.c.bf16 %v7109_v8, %v11001_v12  ;;  %v2066_v28 = vrot.slane %v2064_v35, 5 }
 0x312   : > { %v2072_v0 = vrot.slane %v2070_v38, 4  ;;  %v2075_v3 = vrot.slane %v2073_v61, 5  ;;  %v801_v27 = vpack.c.bf16 %v7110_v22, %v11001_v12  ;;  %v2581_v32 = vshrl.u32 %v798_v13, 16  ;;  %v8088_v38 = vpop.permute.xlu0 %1948 }
 0x313   : > { %v2584_v36 = vshll.u32 %v798_v13, 16  ;;  %v2590_v4 = vshrl.u32 %v799_v14, 16  ;;  %v656_v59 = vpack.c.bf16 %v11001_v12, %v7093_v25  ;;  %v2593_v15 = vshll.u32 %v799_v14, 16  ;;  %11095 = vst [vmem:[#allocation24_spill] sm:$0xff] %v8088_v38 }
 0x314   : > { %v2079_v20 = vshrl.u32 %v655_v30, 16  ;;  %v443_v57 = vand.u32 15, %v411_v55  ;;  %v413_v5 = vadd.s32 176, %v7696_v17  ;;  %v2082_v7 = vshll.u32 %v655_v30, 16 }
 0x315   : > { %v2599_v33 = vshrl.u32 %v800_v6, 16  ;;  %v414_v23 = vadd.s32 184, %v7696_v17  ;;  %v416_v35 = vadd.s32 200, %v7696_v17  ;;  %v2602_v8 = vshll.u32 %v800_v6, 16 }
 0x316   : > { %v2608_v22 = vshrl.u32 %v801_v27, 16  ;;  %v2611_v13 = vshll.u32 %v801_v27, 16  ;;  %vm383_vm11 = vcmask 130052   ;;  %v2583_v14 = vrot.slane %v2581_v32, 3 }
 0x317   : > { %v2586_v25 = vrot.slane %v2584_v36, 4  ;;  %v2088_v55 = vshrl.u32 %v656_v59, 16  ;;  %v2091_v30 = vshll.u32 %v656_v59, 16  ;;  %v11096_v12 = vmov 0  }
 0x318   : > { %384 = vst.msk [vmem:[#allocation2 + $0x88] sm:$0xf0] %vm383_vm11, %v11096_v12  ;;  %388 = vst.msk [vmem:[#allocation3 + $0x88] sm:$0xf0] %vm383_vm11, %v11096_v12  ;;  %v2592_v6 = vrot.slane %v2590_v4, 3  ;;  %v2595_v27 = vrot.slane %v2593_v15, 4  ;;  %v2076_v4 = vor.u32 %v2075_v3, %v2072_v0 }
 0x319   : > { %vm8098_vm12 = vcmp.ne.s32.totalorder %v443_v57, 0  ;;  %v2081_v32 = vrot.slane %v2079_v20, 4  ;;  %v2084_v36 = vrot.slane %v2082_v7, 5  ;;  %v446_v29 = vand.u32 15, %v414_v23 }
 0x31a   : > { %v448_v59 = vand.u32 15, %v416_v35  ;;  %v2601_v38 = vrot.slane %v2599_v33, 3  ;;  %v2604_v52 = vrot.slane %v2602_v8, 4  ;;  %v2610_v18 = vrot.slane %v2608_v22, 3 }
 0x31b   : > { %v2613_v45 = vrot.slane %v2611_v13, 4  ;;  %v2090_v57 = vrot.slane %v2088_v55, 4  ;;  %v2093_v20 = vrot.slane %v2091_v30, 5  ;;  %v11099_v15 = vmov 0.0  }
 0x31c   : > { %v7094_v23 = vsel %vm8098_vm12, 1.0, %v11099_v15  ;;  %v2085_v39 = vor.u32 %v2084_v36, %v2081_v32  ;;  %vm8124_vm14 = vcmp.ne.s32.totalorder %v446_v29, 15  ;;  %vm8128_vm15 = vcmp.ne.s32.totalorder %v448_v59, 15 }
 0x31d   : > { %v8137_v0 = vor.u32 %v2604_v52, %v2601_v38  ;;  %v8139_v3 = vor.u32 %v2613_v45, %v2610_v18  ;;  %v11108_v7 = vmov 1.0   ;;  %v8154_v52 = vor.u32 %v2093_v20, %v2090_v57 }
 0x31e   : > { %v8142_v33 = vpack.c.bf16 %v11108_v7, %v7094_v23  ;;  %v7112_v22 = vsel %vm8128_vm15, 1.0, %v11099_v15  ;;  %v11114_v30 = vrot.slane %v7976_v60, 4  ;;  %vm1987_vm7 = vcmask 126016  }
 0x31f   : > { %v8211_v20 = vpack.c.bf16 %v7112_v22, %v11108_v7  ;;  %vm3146_vm12 = vcmask 523648   ;;  %vm3529_vm15 = vcmask 786048  }
 0x33d   : > { %v1091_v61 = vpop.permute.xlu1 %1090 }
 0x33e   : > { %1094 = vst.msk [vmem:[#allocation2 + $0x8] sm:$0xf0] %vm1093_vm4, %v1091_v61 }
 0x33f   : > { %1096 = vst.msk [vmem:[#allocation2 + $0x10] sm:$0xf] %vm1095_vm6, %v1091_v61  ;;  %v445_v61 = vand.u32 15, %v413_v5 }
 0x340   : > { %1970 = vst.msk [vmem:[#allocation2 + $0x8] sm:$0xf0] %vm1969_vm8, %v7833_v40  ;;  %v2067_v40 = vor.u32 %v2066_v28, %v2063_v24  ;;  %v8122_v28 = vor.u32 %v2595_v27, %v2592_v6  ;;  %v8191_v27 = vsel %vm2006_vm2, %v2085_v39, %v8154_v52 }
 0x341   : > { %v1191_v49 = vpop.permute.xlu0 %1190  ;;  %v1098_v37 = vpop.permute.xlu1 %1097  ;;  %vm8118_vm13 = vcmp.ne.s32.totalorder %v445_v61, 0  ;;  %11115 = vst [vmem:[#allocation32_spill] sm:$0xff] %v8191_v27 }
 0x342   : > { %1193 = vst.msk [vmem:[#allocation2 + $0x18] sm:$0xf0] %vm1093_vm4, %v1191_v49  ;;  %1100 = vst.msk [vmem:[#allocation2 + $0x10] sm:$0xf0] %vm1093_vm4, %v1098_v37  ;;  %v8150_v35 = vsel %vm2006_vm2, %v8066_v11, %v2067_v40  ;;  %v7095_v45 = vsel %vm8118_vm13, 1.0, %v11099_v15  ;;  %v8171_v13 = vsel %vm2006_vm2, %v2067_v40, %v2076_v4  ;;  %vm3278_vm13 = vcmask 654848  }
 0x343   : > { %1194 = vst.msk [vmem:[#allocation2 + $0x20] sm:$0xf] %vm1095_vm6, %v1191_v49  ;;  %1101 = vst.msk [vmem:[#allocation2 + $0x18] sm:$0xf] %vm1095_vm6, %v1098_v37  ;;  %v8116_v49 = vsel %vm2006_vm2, %v8032_v34, %v8066_v11  ;;  %v2587_v37 = vor.u32 %v2586_v25, %v2583_v14  ;;  %v8135_v34 = vsel %vm2184_vm1, %v8036_v9, %v8073_v26  ;;  %v7111_v11 = vsel %vm8124_vm14, 1.0, %v11099_v15 }
 0x344   : > { %1972 = vst.msk [vmem:[#allocation2 + $0x10] sm:$0xff] %vm1971_vm10, %v7835_v42  ;;  %1973 = vst.msk [vmem:[#allocation2 + $0x18] sm:$0xff] %vm1971_vm10, %v7839_v44  ;;  %v8182_v25 = vsel %vm2006_vm2, %v2076_v4, %v2085_v39  ;;  %v8205_v40 = vpack.c.bf16 %v11108_v7, %v7095_v45  ;;  %v8208_v57 = vpack.c.bf16 %v7111_v11, %v11108_v7  ;;  %v7472_v11 = vld [vmem:[%s10989_s4] sm:$0xff]  }
 0x345   : > { %11100 = vst [vmem:[#allocation25_spill] sm:$0xff] %v8116_v49  ;;  %v1196_v44 = vpop.permute.xlu1 %1195  ;;  %11107 = vst [vmem:[#allocation26_spill] sm:$0xff] %v8135_v34  ;;  %v8179_v14 = vsel %vm2184_vm1, %v2587_v37, %v8122_v28  ;;  %4300 = vmatpush1.bf16.msra.mxu1 %v7472_v11 }
 0x346   : > { %1198 = vst.msk [vmem:[#allocation2 + $0x20] sm:$0xf0] %vm1093_vm4, %v1196_v44  ;;  %11109 = vst [vmem:[#allocation27_spill] sm:$0xff] %v8150_v35  ;;  %4301 = vmatprep.subr.bf16.mxu1 %v11096_v12 }
 0x347   : > { %1199 = vst.msk [vmem:[#allocation2 + $0x28] sm:$0xf] %vm1095_vm6, %v1196_v44  ;;  %v8146_v29 = vld [vmem:[#allocation2 + $0x8] sm:$0xff]  ;;  %11110 = vst [vmem:[#allocation28_spill] sm:$0xff] %v8171_v13 }
 0x348   : > { %1974 = vst.msk [vmem:[#allocation2 + $0x20] sm:$0xff] %vm1971_vm10, %v7843_v46  ;;  %v11006_v18 = vrot.slane %v8146_v29, 4  ;;  %v3163_v38 = vld [vmem:[#allocation2 + $0x8] sm:$0xf0]  ;;  %v2679_v8 = vmul.bf16 %v7986_v16, %v8146_v29  ;;  %v8175_v46 = vsel %vm2184_vm1, %v8073_v26, %v2587_v37  ;;  %11112 = vst [vmem:[#allocation30_spill] sm:$0xff] %v8179_v14  ;;  %v8196_v26 = vsel %vm2184_vm1, %v8137_v0, %v8139_v3 }
 0x349   : > { %11111 = vst [vmem:[#allocation29_spill] sm:$0xff] %v8175_v46  ;;  %11113 = vst [vmem:[#allocation31_spill] sm:$0xff] %v8182_v25  ;;  %v1289_v55 = vpop.permute.xlu1 %1288  ;;  %v3197_v59 = vrot.slane %v3163_v38, 4  ;;  %v2912_v45 = vld [vmem:[#allocation2 + $0x8] sm:$0xf8] }
 0x34a   : > { %v2405_v6 = vsel %vm1886_vm3, %v11114_v30, %v11006_v18  ;;  %11116 = vst [vmem:[#allocation33_spill] sm:$0xff] %v8196_v26  ;;  %1291 = vst.msk [vmem:[#allocation2 + $0x28] sm:$0xf0] %vm1093_vm4, %v1289_v55  ;;  %v2704_v39 = vshrl.u32 %v2679_v8, 16  ;;  %v2707_v42 = vshll.u32 %v2679_v8, 16 }
 0x34b   : > { %v3929_v32 = vld [vmem:[#allocation2 + $0x10] sm:$0xf0]  ;;  %1292 = vst.msk [vmem:[#allocation2 + $0x30] sm:$0xf] %vm1095_vm6, %v1289_v55  ;;  %2436 = vrot.lane.b32.xlu1 %v2405_v6, %s11071_s11  ;;  %v8202_v36 = vld [vmem:[#allocation2 + $0x18] sm:$0xff] }
 0x34c   : > { %v3797_v60 = vld [vmem:[#allocation2 + $0x10] sm:$0xf0]  ;;  %v3946_v23 = vmul.bf16 %v3929_v32, %v7968_v31  ;;  %1975 = vst.msk [vmem:[#allocation2 + $0x28] sm:$0xff] %vm1971_vm10, %v7847_v48  ;;  %v8217_v37 = vrot.slane %v8202_v36, 4  ;;  %v3947_v44 = vmul.bf16 %v8202_v36, %v7986_v16 }
 0x34d   : > { %v3831_v4 = vrot.slane %v3797_v60, 4  ;;  %v3164_v24 = vld [vmem:[#allocation2 + $0x10] sm:$0xff]  ;;  %v1294_v55 = vpop.permute.xlu1 %1293  ;;  %v2706_v60 = vrot.slane %v2704_v39, 4  ;;  %v11117_v39 = vrot.slane %v8146_v29, 4 }
 0x34e   : > { %v3198_v5 = vrot.slane %v3164_v24, 4  ;;  %v2930_v38 = vmul.bf16 %v3164_v24, %v8006_v10  ;;  %v3964_v48 = vshrl.u32 %v3946_v23, 16  ;;  %v3967_v22 = vshll.u32 %v3946_v23, 16  ;;  %1296 = vst.msk [vmem:[#allocation2 + $0x30] sm:$0xf0] %vm1093_vm4, %v1294_v55  ;;  %v7474_v29 = vld [vmem:[%s10989_s4 + $0x10] sm:$0xff]  }
 0x34f   : > { %v3833_v30 = vsel %vm1886_vm3, %v3831_v4, %v8217_v37  ;;  %1297 = vst.msk [vmem:[#allocation2 + $0x38] sm:$0xf] %vm1095_vm6, %v1294_v55  ;;  %v8238_v4 = vld [vmem:[#allocation2 + $0x20] sm:$0xff]  ;;  %v3972_v55 = vshrl.u32 %v3947_v44, 16  ;;  %v3975_v9 = vshll.u32 %v3947_v44, 16  ;;  %v2709_v23 = vrot.slane %v2707_v42, 5 }
 0x350   : > { %3864 = vrot.lane.b32.xlu1 %v3833_v30, %s7563_s20  ;;  %v3199_v8 = vsel %vm1886_vm3, %v3197_v59, %v3198_v5  ;;  %1976 = vst.msk [vmem:[#allocation2 + $0x30] sm:$0xff] %vm1971_vm10, %v7851_v50  ;;  %v3966_v6 = vrot.slane %v3964_v48, 4  ;;  %v2929_v30 = vmul.bf16 %v2912_v45, %v7993_v58  ;;  %v7473_v59 = vld [vmem:[%s10989_s4 + $0x8] sm:$0xff]   ;;  %v3969_v32 = vrot.slane %v3967_v22, 5 }
 0x351   : > { %3230 = vrot.lane.b32.xlu0 %v3199_v8, %s7564_s21  ;;  %v2955_v61 = vshrl.u32 %v2930_v38, 16  ;;  %v3295_v50 = vld [vmem:[#allocation2 + $0x8] sm:$0xf0]  ;;  %v1387_v8 = vpop.permute.xlu1 %1386  ;;  %v3201_v18 = vsel %vm1886_vm3, %v3198_v5, %v8217_v37  ;;  %v3974_v44 = vrot.slane %v3972_v55, 4  ;;  %v3977_v48 = vrot.slane %v3975_v9, 5  ;;  %4302 = vmatpush1.bf16.msra.mxu1 %v7473_v59 }
 0x352   : > { %v2958_v26 = vshll.u32 %v2930_v38, 16  ;;  %1389 = vst.msk [vmem:[#allocation2 + $0x38] sm:$0xf0] %vm1093_vm4, %v1387_v8  ;;  %v2407_v42 = vsel %vm1886_vm3, %v11117_v39, %v3198_v5  ;;  %v11008_v45 = vrot.slane %v8238_v4, 4  ;;  %v3970_v11 = vor.u32 %v3969_v32, %v3966_v6  ;;  %4303 = vmatprep.subr.bf16.mxu1 %v11096_v12 }
 0x353   : > { %1390 = vst.msk [vmem:[#allocation2 + $0x40] sm:$0xf] %vm1095_vm6, %v1387_v8  ;;  %v3313_v22 = vmul.bf16 %v3164_v24, %v7986_v16  ;;  %v8258_v9 = vor.u32 %v3977_v48, %v3974_v44  ;;  %v2947_v38 = vshrl.u32 %v2929_v30, 16  ;;  %v2950_v55 = vshll.u32 %v2929_v30, 16 }
 0x354   : > { %3232 = vrot.lane.b32.xlu1 %v3201_v18, %s7564_s21  ;;  %1977 = vst.msk [vmem:[#allocation2 + $0x38] sm:$0xff] %vm1971_vm10, %v7853_v51  ;;  %v3312_v8 = vmul.bf16 %v3295_v50, %v7968_v31  ;;  %v8264_v5 = vor.u32 %v2709_v23, %v2706_v60  ;;  %v2957_v6 = vrot.slane %v2955_v61, 3  ;;  %v2680_v32 = vmul.bf16 %v3164_v24, %v8013_v21 }
 0x355   : > { %2438 = vrot.lane.b32.xlu0 %v2407_v42, %s11071_s11  ;;  %v419_v51 = vadd.s32 224, %v7696_v17  ;;  %v1784_v44 = vpop.permute.xlu0 %1783  ;;  %v1392_v48 = vpop.permute.xlu1 %1391  ;;  %v3979_v30 = vsel %vm2006_vm2, %v3970_v11, %v8258_v9  ;;  %v2960_v50 = vrot.slane %v2958_v26, 4  ;;  %v3338_v59 = vshrl.u32 %v3313_v22, 16  ;;  %4304 = vmatpush1.bf16.msra.mxu1 %v7474_v29  ;;  %v7475_v11 = vld [vmem:[%s10989_s4 + $0x18] sm:$0xff]  }
 0x356   : > { %v3341_v39 = vshll.u32 %v3313_v22, 16  ;;  %1786 = vst.msk [vmem:[#allocation2 + $0x80] sm:$0xf0] %vm1093_vm4, %v1784_v44  ;;  %1394 = vst.msk [vmem:[#allocation2 + $0x40] sm:$0xf0] %vm1093_vm4, %v1392_v48  ;;  %v8280_v61 = vsel %vm1886_vm3, %v8217_v37, %v11008_v45  ;;  %v2713_v26 = vshrl.u32 %v2680_v32, 16  ;;  %4305 = vmatprep.subr.bf16.mxu1 %v11096_v12 }
 0x357   : > { %1787 = vst.msk [vmem:[#allocation2 + $0x88] sm:$0xf] %vm1095_vm6, %v1784_v44  ;;  %1395 = vst.msk [vmem:[#allocation2 + $0x48] sm:$0xf] %vm1095_vm6, %v1392_v48  ;;  %v2716_v24 = vshll.u32 %v2680_v32, 16  ;;  %v421_v60 = vadd.s32 240, %v7696_v17 }
 0x358   : > { %2440 = vrot.lane.b32.xlu1 %v3201_v18, %s11071_s11  ;;  %4131 = vst.msk [vmem:[#allocation4 + $0x8] sm:$0xff] %vm379_vm0, %v3979_v30  ;;  %v2949_v18 = vrot.slane %v2947_v38, 3  ;;  %v2952_v23 = vrot.slane %v2950_v55, 4  ;;  %v3330_v42 = vshrl.u32 %v3312_v8, 16  ;;  %v3333_v37 = vshll.u32 %v3312_v8, 16 }
 0x359   : > { %1988 = vst.msk [vmem:[#allocation2 + $0x88] sm:$0xf] %vm1987_vm7, %v8071_v19  ;;  %3866 = vrot.lane.b32.xlu0 %v8280_v61, %s7563_s20  ;;  %v11118_v22 = vshrl.u32 %v8142_v33, 16  ;;  %v11119_v19 = vshll.u32 %v8142_v33, 16  ;;  %v451_v48 = vand.u32 15, %v419_v51  ;;  %v1686_v38 = vpop.permute.xlu0 %1685  ;;  %v1583_v55 = vpop.permute.xlu1 %1582  ;;  %v11120_v8 = vor.u32 %v7999_v2, %v7997_v1  ;;  %4306 = vmatpush1.bf16.msra.mxu1 %v7475_v11 }
 0x35a   : > { %1978 = vst.msk [vmem:[#allocation2 + $0x40] sm:$0xff] %vm1971_vm10, %v7857_v53  ;;  %v2620_v53 = vshll.u32 %v8208_v57, 16  ;;  %v8304_v30 = vor.u32 %v2960_v50, %v2957_v6  ;;  %v3340_v45 = vrot.slane %v3338_v59, 4  ;;  %v2715_v33 = vrot.slane %v2713_v26, 4  ;;  %4307 = vmatprep.subr.bf16.mxu1 %v11096_v12 }
 0x35b   : > { %v2099_v32 = vrot.slane %v11118_v22, 4  ;;  %v2102_v44 = vrot.slane %v11119_v19, 5  ;;  %v2711_v29 = vsel %vm2006_vm2, %v11120_v8, %v8264_v5  ;;  %v3343_v22 = vrot.slane %v3341_v39, 5  ;;  %1688 = vst.msk [vmem:[#allocation2 + $0x70] sm:$0xf0] %vm1093_vm4, %v1686_v38  ;;  %v7476_v39 = vld [vmem:[%s10989_s4 + $0x20] sm:$0xff]  }
 0x35c   : > { %1689 = vst.msk [vmem:[#allocation2 + $0x78] sm:$0xf] %vm1095_vm6, %v1686_v38  ;;  %1586 = vst.msk [vmem:[#allocation2 + $0x60] sm:$0xf] %vm1095_vm6, %v1583_v55  ;;  %2847 = vrot.lane.b32.xlu1 %v2711_v29, %s7565_s12  ;;  %v2718_v51 = vrot.slane %v2716_v24, 5  ;;  %v2626_v1 = vshrl.u32 %v8211_v20, 16  ;;  %v2953_v6 = vor.u32 %v2952_v23, %v2949_v18 }
 0x35d   : > { %1585 = vst.msk [vmem:[#allocation2 + $0x58] sm:$0xf0] %vm1093_vm4, %v1583_v55  ;;  %v453_v2 = vand.u32 15, %v421_v60  ;;  %3234 = vrot.lane.b32.xlu0 %v8280_v61, %s7564_s21  ;;  %v3332_v50 = vrot.slane %v3330_v42, 4  ;;  %v3335_v59 = vrot.slane %v3333_v37, 5  ;;  %v2629_v19 = vshll.u32 %v8211_v20, 16  ;;  %v1588_v42 = vpop.permute.xlu1 %1587  ;;  %4308 = vmatpush1.bf16.msra.mxu1 %v7476_v39 }
 0x35e   : > { %v2103_v38 = vor.u32 %v2102_v44, %v2099_v32  ;;  %v11121_v26 = vshrl.u32 %v8205_v40, 16  ;;  %v11122_v55 = vshll.u32 %v8205_v40, 16  ;;  %vm8323_vm8 = vcmp.ne.s32.totalorder %v451_v48, 0  ;;  %v3546_v20 = vld [vmem:[#allocation2 + $0x10] sm:$0xf8]  ;;  %v8339_v48 = vld [vmem:[#allocation2 + $0x28] sm:$0xff]  ;;  %4309 = vmatprep.subr.bf16.mxu1 %v11096_v12 }
 0x35f   : > { %v4148_v23 = vld [vmem:[#allocation4 + $0x8] sm:$0xff]  ;;  %v2962_v37 = vsel %vm2184_vm1, %v2953_v6, %v8304_v30  ;;  %v8329_v11 = vor.u32 %v3343_v22, %v3340_v45  ;;  %v11125_v32 = vshrl.u32 %v8208_v57, 16  ;;  %v2622_v8 = vrot.slane %v2620_v53, 4  ;;  %1590 = vst.msk [vmem:[#allocation2 + $0x60] sm:$0xf0] %vm1093_vm4, %v1588_v42  ;;  %v8356_v22 = vld [vmem:[#allocation2 + $0x30] sm:$0xff] }
 0x360   : > { %v2108_v24 = vrot.slane %v11121_v26, 4  ;;  %v2111_v60 = vrot.slane %v11122_v55, 5  ;;  %7150 = vmatprep.mubr.msk.bf16.mxu1 %vm379_vm0, %v4148_v23  ;;  %1591 = vst.msk [vmem:[#allocation2 + $0x68] sm:$0xf] %vm1095_vm6, %v1588_v42  ;;  %3098 = vrot.lane.b32.xlu1 %v2962_v37, %s7566_s26  ;;  %v8337_v40 = vor.u32 %v2718_v51, %v2715_v33  ;;  %v3564_v45 = vmul.bf16 %v8202_v36, %v8006_v10 }
 0x361   : > { %v2619_v44 = vrot.slane %v11125_v32, 3  ;;  %v8346_v57 = vsel %vm2184_vm1, %v8122_v28, %v8137_v0  ;;  %vm8348_vm9 = vcmp.ne.s32.totalorder %v453_v2, 0  ;;  %1982 = vst.msk [vmem:[#allocation2 + $0x60] sm:$0xff] %vm1971_vm10, %v7845_v47  ;;  %2442 = vrot.lane.b32.xlu0 %v8280_v61, %s11071_s11  ;;  %v3336_v29 = vor.u32 %v3335_v59, %v3332_v50  ;;  %v7477_v28 = vld [vmem:[%s10989_s4 + $0x28] sm:$0xff]  }
 0x362   : > { %11126 = vst [vmem:[#allocation34_spill] sm:$0xff] %v8346_v57  ;;  %v3565_v33 = vmul.bf16 %v8238_v4, %v8018_v63  ;;  %v2628_v51 = vrot.slane %v2626_v1, 3  ;;  %v7098_v0 = vsel %vm8323_vm8, 1.0, %v11099_v15  ;;  %v3563_v47 = vmul.bf16 %v3546_v20, %v7993_v58  ;;  %v1485_v1 = vpop.permute.xlu1 %1484  ;;  %4310 = vmatpush1.bf16.msra.mxu1 %v7477_v28 }
 0x363   : > { %v8369_v61 = vsel %vm2006_vm2, %v8154_v52, %v2103_v38  ;;  %v8371_v2 = vor.u32 %v2111_v60, %v2108_v24  ;;  %v2631_v6 = vrot.slane %v2629_v19, 4  ;;  %v3345_v50 = vsel %vm2006_vm2, %v3336_v29, %v8329_v11  ;;  %1487 = vst.msk [vmem:[#allocation2 + $0x48] sm:$0xf0] %vm1093_vm4, %v1485_v1  ;;  %4311 = vmatprep.subr.bf16.mxu1 %v11096_v12 }
 0x364   : > { %v3836_v59 = vrot.slane %v8339_v48, 4  ;;  %v2623_v39 = vor.u32 %v2622_v8, %v2619_v44  ;;  %v7099_v26 = vsel %vm8348_vm9, 1.0, %v11099_v15  ;;  %1488 = vst.msk [vmem:[#allocation2 + $0x50] sm:$0xf] %vm1095_vm6, %v1485_v1  ;;  %3481 = vrot.lane.b32.xlu1 %v3345_v50, %s7567_s29  ;;  %v2720_v52 = vsel %vm2006_vm2, %v8264_v5, %v8337_v40  ;;  %v7478_v5 = vld [vmem:[%s10989_s4 + $0x30] sm:$0xff]  }
 0x365   : > { %11129 = vst [vmem:[#allocation35_spill] sm:$0xff] %v8371_v2  ;;  %v11009_v19 = vrot.slane %v8356_v22, 4  ;;  %v3589_v24 = vshrl.u32 %v3564_v45, 16  ;;  %v661_v55 = vpack.c.bf16 %v11108_v7, %v7098_v0  ;;  %1979 = vst.msk [vmem:[#allocation2 + $0x48] sm:$0xff] %vm1971_vm10, %v7859_v54  ;;  %2849 = vrot.lane.b32.xlu0 %v2720_v52, %s7565_s12  ;;  %v3592_v60 = vshll.u32 %v3564_v45, 16 }
 0x366   : > { %v3598_v18 = vshrl.u32 %v3565_v33, 16  ;;  %v3601_v23 = vshll.u32 %v3565_v33, 16  ;;  %v2681_v42 = vmul.bf16 %v8202_v36, %v8024_v41  ;;  %v3581_v37 = vshrl.u32 %v3563_v47, 16  ;;  %v1490_v44 = vpop.permute.xlu1 %1489  ;;  %4312 = vmatpush1.bf16.msra.mxu1 %v7478_v5 }
 0x367   : > { %v3584_v20 = vshll.u32 %v3563_v47, 16  ;;  %v8398_v32 = vsel %vm2006_vm2, %v2103_v38, %v8371_v2  ;;  %v8400_v54 = vor.u32 %v2631_v6, %v2628_v51  ;;  %v11131_v8 = vrot.slane %v8238_v4, 4  ;;  %1492 = vst.msk [vmem:[#allocation2 + $0x50] sm:$0xf0] %vm1093_vm4, %v1490_v44  ;;  %v11132_v47 = vld [vmem:[#allocation9_spill] sm:$0xff]  ;;  %4313 = vmatprep.subr.bf16.mxu1 %v11096_v12 }
 0x368   : > { %v2931_v53 = vmul.bf16 %v8202_v36, %v8018_v63  ;;  %v8409_v29 = vpack.c.bf16 %v11108_v7, %v7099_v26  ;;  %v8412_v33 = vadd.s32 192, %v7696_v17  ;;  %1493 = vst.msk [vmem:[#allocation2 + $0x58] sm:$0xf] %vm1095_vm6, %v1490_v44  ;;  %v3839_v38 = vsel %vm1886_vm3, %v3836_v59, %v11009_v19  ;;  %v11133_v44 = vld [vmem:[#allocation19_spill] sm:$0xff] }
 0x369   : > { %11130 = vst [vmem:[#allocation36_spill] sm:$0xff] %v8400_v54  ;;  %v3837_v45 = vsel %vm1886_vm3, %v11131_v8, %v3836_v59  ;;  %v3591_v51 = vrot.slane %v3589_v24, 3  ;;  %v2133_v28 = vshrl.u32 %v661_v55, 16  ;;  %v2136_v0 = vshll.u32 %v661_v55, 16  ;;  %1980 = vst.msk [vmem:[#allocation2 + $0x50] sm:$0xff] %vm1971_vm10, %v7837_v43  ;;  %3870 = vrot.lane.b32.xlu0 %v3839_v38, %s7563_s20  ;;  %v7479_v59 = vld [vmem:[%s10989_s4 + $0x38] sm:$0xff]  }
 0x36a   : > { %3868 = vrot.lane.b32.xlu1 %v3837_v45, %s7563_s20  ;;  %1981 = vst.msk [vmem:[#allocation2 + $0x58] sm:$0xff] %vm1971_vm10, %v11132_v47  ;;  %v3594_v6 = vrot.slane %v3592_v60, 4  ;;  %v3600_v1 = vrot.slane %v3598_v18, 3  ;;  %v3603_v50 = vrot.slane %v3601_v23, 4  ;;  %v2722_v26 = vshrl.u32 %v2681_v42, 16  ;;  %v1779_v8 = vpop.permute.xlu1 %1778  ;;  %4314 = vmatpush1.bf16.msra.mxu1 %v7479_v59 }
 0x36b   : > { %v3583_v52 = vrot.slane %v3581_v37, 3  ;;  %v3586_v24 = vrot.slane %v3584_v20, 4  ;;  %v2725_v55 = vshll.u32 %v2681_v42, 16  ;;  %v2932_v43 = vmul.bf16 %v8238_v4, %v11133_v44  ;;  %1781 = vst.msk [vmem:[#allocation2 + $0x78] sm:$0xf0] %vm1093_vm4, %v1779_v8  ;;  %v11136_v37 = vld [vmem:[#allocation11_spill] sm:$0xff]  ;;  %4315 = vmatprep.subr.bf16.mxu1 %v11096_v12 }
 0x36c   : > { %v2964_v47 = vshrl.u32 %v2931_v53, 16  ;;  %v2967_v19 = vshll.u32 %v2931_v53, 16  ;;  %v8433_v60 = vsel %vm2184_vm1, %v8139_v3, %v2623_v39  ;;  %v8437_v18 = vsel %vm2184_vm1, %v2623_v39, %v8400_v54  ;;  %1782 = vst.msk [vmem:[#allocation2 + $0x80] sm:$0xf] %vm1095_vm6, %v1779_v8  ;;  %v11137_v39 = vld [vmem:[#allocation24_spill] sm:$0xff] }
 0x36d   : > { %11134 = vst [vmem:[#allocation9_spill] sm:$0xff] %v8433_v60  ;;  %11135 = vst [vmem:[#allocation37_spill] sm:$0xff] %v8437_v18  ;;  %v3314_v23 = vmul.bf16 %v8202_v36, %v8013_v21  ;;  %v2142_v42 = vshrl.u32 %v8409_v29, 16  ;;  %v2145_v5 = vshll.u32 %v8409_v29, 16  ;;  %3238 = vrot.lane.b32.xlu0 %v3839_v38, %s7564_s21  ;;  %v3595_v20 = vor.u32 %v3594_v6, %v3591_v51  ;;  %v7480_v36 = vld [vmem:[%s10989_s4 + $0x40] sm:$0xff]  }
 0x36e   : > { %3236 = vrot.lane.b32.xlu1 %v3837_v45, %s7564_s21  ;;  %1985 = vst.msk [vmem:[#allocation2 + $0x78] sm:$0xff] %vm1971_vm10, %v11136_v37  ;;  %1986 = vst.msk [vmem:[#allocation2 + $0x80] sm:$0xff] %vm1971_vm10, %v11137_v39  ;;  %v8452_v53 = vor.u32 %v3603_v50, %v3600_v1  ;;  %v2135_v8 = vrot.slane %v2133_v28, 4  ;;  %v2138_v29 = vrot.slane %v2136_v0, 5  ;;  %v3587_v16 = vor.u32 %v3586_v24, %v3583_v52  ;;  %v1990_v37 = vld [vmem:[#allocation2 + $0x8] sm:$0xff]  ;;  %v1681_v39 = vpop.permute.xlu1 %1680  ;;  %v11140_v52 = vld [vmem:[#allocation23_spill] sm:$0xff] }
 0x36f   : > { %v2724_v3 = vrot.slane %v2722_v26, 4  ;;  %v2727_v58 = vrot.slane %v2725_v55, 5  ;;  %v2973_v31 = vshrl.u32 %v2932_v43, 16  ;;  %v2966_v54 = vrot.slane %v2964_v47, 3  ;;  %1683 = vst.msk [vmem:[#allocation2 + $0x68] sm:$0xf0] %vm1093_vm4, %v1681_v39  ;;  %4316 = vmatpush1.bf16.msra.mxu1 %v7480_v36 }
 0x370   : > { %v2969_v2 = vrot.slane %v2967_v19, 4  ;;  %v2976_v51 = vshll.u32 %v2932_v43, 16  ;;  %v3315_v6 = vmul.bf16 %v8238_v4, %v8024_v41  ;;  %1684 = vst.msk [vmem:[#allocation2 + $0x70] sm:$0xf] %vm1095_vm6, %v1681_v39  ;;  %v3347_v28 = vshrl.u32 %v3314_v23, 16  ;;  %v11138_v1 = vld [vmem:[#allocation20_spill] sm:$0xff] }
 0x371   : > { %v3350_v0 = vshll.u32 %v3314_v23, 16  ;;  %v2682_v50 = vmul.bf16 %v8238_v4, %v11138_v1  ;;  %v2144_v26 = vrot.slane %v2142_v42, 4  ;;  %v3948_v59 = vmul.bf16 %v8238_v4, %v8013_v21  ;;  %v11139_v19 = vld [vmem:[#allocation10_spill] sm:$0xff]  ;;  %1984 = vst.msk [vmem:[#allocation2 + $0x70] sm:$0xff] %vm1971_vm10, %v11140_v52  ;;  %2446 = vrot.lane.b32.xlu0 %v3839_v38, %s11071_s11 }
 0x372   : > { %2444 = vrot.lane.b32.xlu1 %v3837_v45, %s11071_s11  ;;  %1983 = vst.msk [vmem:[#allocation2 + $0x68] sm:$0xff] %vm1971_vm10, %v11139_v19  ;;  %v3949_v45 = vmul.bf16 %v8339_v48, %v8024_v41  ;;  %v8475_v24 = vmul.bf16 %v8006_v10, %v1990_v37  ;;  %v2147_v55 = vrot.slane %v2145_v5, 5  ;;  %v3605_v43 = vsel %vm2184_vm1, %v3595_v20, %v8452_v53 }
 0x373   : > { %v3596_v4 = vsel %vm2184_vm1, %v3587_v16, %v3595_v20  ;;  %v8480_v47 = vor.u32 %v2727_v58, %v2724_v3  ;;  %v2975_v23 = vrot.slane %v2973_v31, 3  ;;  %v2970_v42 = vor.u32 %v2969_v2, %v2966_v54 }
 0x374   : > { %v2978_v39 = vrot.slane %v2976_v51, 4  ;;  %v3356_v19 = vshrl.u32 %v3315_v6, 16  ;;  %v3359_v38 = vshll.u32 %v3315_v6, 16  ;;  %v3349_v52 = vrot.slane %v3347_v28, 4 }
 0x375   : > { %v3352_v37 = vrot.slane %v3350_v0, 5  ;;  %v2731_v41 = vshrl.u32 %v2682_v50, 16  ;;  %v2734_v36 = vshll.u32 %v2682_v50, 16  ;;  %v3981_v5 = vshrl.u32 %v3948_v59, 16  ;;  %3732 = vrot.lane.b32.xlu0 %v3596_v4, %s7568_s18  ;;  %v11143_v50 = vld [vmem:[#allocation21_spill] sm:$0xff] }
 0x376   : > { %3734 = vrot.lane.b32.xlu1 %v3605_v43, %s7568_s18  ;;  %v3984_v21 = vshll.u32 %v3948_v59, 16  ;;  %v8484_v10 = vor.u32 %v2138_v29, %v2135_v8  ;;  %v8486_v16 = vor.u32 %v2147_v55, %v2144_v26  ;;  %v2729_v31 = vsel %vm2006_vm2, %v8337_v40, %v8480_v47 }
 0x377   : > { %v3990_v58 = vshrl.u32 %v3949_v45, 16  ;;  %v3993_v2 = vshll.u32 %v3949_v45, 16  ;;  %v3950_v54 = vmul.bf16 %v8356_v22, %v11138_v1  ;;  %v2971_v3 = vsel %vm2184_vm1, %v8304_v30, %v2970_v42 }
 0x378   : > { %11141 = vst [vmem:[#allocation11_spill] sm:$0xff] %v8484_v10  ;;  %11142 = vst [vmem:[#allocation24_spill] sm:$0xff] %v8486_v16  ;;  %v8495_v20 = vor.u32 %v2978_v39, %v2975_v23  ;;  %v3358_v51 = vrot.slane %v3356_v19, 4  ;;  %v3361_v6 = vrot.slane %v3359_v38, 5  ;;  %v3353_v8 = vor.u32 %v3352_v37, %v3349_v52  ;;  %v11145_v19 = vld [vmem:[#allocation22_spill] sm:$0xff] }
 0x379   : > { %v2733_v29 = vrot.slane %v2731_v41, 4  ;;  %v2736_v28 = vrot.slane %v2734_v36, 5  ;;  %v3566_v40 = vmul.bf16 %v8339_v48, %v11133_v44  ;;  %v3983_v0 = vrot.slane %v3981_v5, 4  ;;  %3100 = vrot.lane.b32.xlu0 %v2971_v3, %s7566_s26  ;;  %v8523_v37 = vld [vmem:[#allocation2 + $0x38] sm:$0xff] }
 0x37a   : > { %2851 = vrot.lane.b32.xlu1 %v2729_v31, %s7565_s12  ;;  %v2933_v26 = vmul.bf16 %v8339_v48, %v11143_v50  ;;  %v3316_v30 = vmul.bf16 %v8339_v48, %v11138_v1  ;;  %v8508_v59 = vsel %vm2006_vm2, %v8484_v10, %v8486_v16  ;;  %v3986_v45 = vrot.slane %v3984_v21, 5  ;;  %v8526_v31 = vld [vmem:[#allocation2 + $0x40] sm:$0xff] }
 0x37b   : > { %11144 = vst [vmem:[#allocation10_spill] sm:$0xff] %v8508_v59  ;;  %v3992_v41 = vrot.slane %v3990_v58, 4  ;;  %v3999_v55 = vshrl.u32 %v3950_v54, 16  ;;  %v3567_v43 = vmul.bf16 %v8356_v22, %v11143_v50  ;;  %v3995_v4 = vrot.slane %v3993_v2, 5 }
 0x37c   : > { %v2980_v23 = vsel %vm2184_vm1, %v2970_v42, %v8495_v20  ;;  %v8514_v39 = vor.u32 %v3361_v6, %v3358_v51  ;;  %v2683_v38 = vmul.bf16 %v8339_v48, %v11145_v19  ;;  %v3354_v52 = vsel %vm2006_vm2, %v8329_v11, %v3353_v8 }
 0x37d   : > { %v8521_v21 = vor.u32 %v2736_v28, %v2733_v29  ;;  %v3607_v36 = vshrl.u32 %v3566_v40, 16  ;;  %v3610_v5 = vshll.u32 %v3566_v40, 16  ;;  %3483 = vrot.lane.b32.xlu0 %v3354_v52, %s7567_s29  ;;  %v2982_v42 = vshrl.u32 %v2933_v26, 16 }
 0x37e   : > { %3102 = vrot.lane.b32.xlu1 %v2980_v23, %s7566_s26  ;;  %v2985_v58 = vshll.u32 %v2933_v26, 16  ;;  %v3365_v2 = vshrl.u32 %v3316_v30, 16  ;;  %v3368_v3 = vshll.u32 %v3316_v30, 16  ;;  %v4001_v48 = vrot.slane %v3999_v55, 4 }
 0x37f   : > { %v4002_v51 = vshll.u32 %v3950_v54, 16  ;;  %v3616_v6 = vshrl.u32 %v3567_v43, 16  ;;  %v3619_v23 = vshll.u32 %v3567_v43, 16  ;;  %v3363_v11 = vsel %vm2006_vm2, %v3353_v8, %v8514_v39 }
 0x380   : > { %v3840_v29 = vrot.slane %v8523_v37, 4  ;;  %v2740_v28 = vshrl.u32 %v2683_v38, 16  ;;  %v2743_v1 = vshll.u32 %v2683_v38, 16  ;;  %v2738_v40 = vsel %vm2006_vm2, %v8480_v47, %v8521_v21 }
 0x381   : > { %v3842_v26 = vrot.slane %v8526_v31, 4  ;;  %v3609_v30 = vrot.slane %v3607_v36, 3  ;;  %v3612_v55 = vrot.slane %v3610_v5, 4  ;;  %2853 = vrot.lane.b32.xlu0 %v2738_v40, %s7565_s12  ;;  %v2984_v54 = vrot.slane %v2982_v42, 3  ;;  %v8542_v36 = vld [vmem:[#allocation2 + $0x48] sm:$0xff] }
 0x382   : > { %3485 = vrot.lane.b32.xlu1 %v3363_v11, %s7567_s29  ;;  %v2987_v43 = vrot.slane %v2985_v58, 4  ;;  %v3367_v52 = vrot.slane %v3365_v2, 4  ;;  %v3370_v8 = vrot.slane %v3368_v3, 5  ;;  %v4004_v12 = vrot.slane %v4002_v51, 5 }
 0x383   : > { %v3618_v16 = vrot.slane %v3616_v6, 3  ;;  %v3621_v10 = vrot.slane %v3619_v23, 4  ;;  %v3951_v38 = vmul.bf16 %v8523_v37, %v11145_v19  ;;  %v11146_v11 = vrot.slane %v8356_v22, 4 }
 0x384   : > { %v2742_v59 = vrot.slane %v2740_v28, 4  ;;  %v2745_v7 = vrot.slane %v2743_v1, 5  ;;  %v2934_v5 = vmul.bf16 %v8356_v22, %v8116_v49  ;;  %v8546_v42 = vor.u32 %v3986_v45, %v3983_v0 }
 0x385   : > { %v3841_v47 = vsel %vm1886_vm3, %v11146_v11, %v3840_v29  ;;  %v8548_v58 = vor.u32 %v3995_v4, %v3992_v41  ;;  %v3317_v2 = vmul.bf16 %v8356_v22, %v11145_v19  ;;  %v2684_v3 = vmul.bf16 %v8356_v22, %v8135_v34 }
 0x386   : > { %3872 = vrot.lane.b32.xlu1 %v3841_v47, %s7563_s20  ;;  %3240 = vrot.lane.b32.xlu0 %v3841_v47, %s7564_s21  ;;  %v3843_v1 = vsel %vm1886_vm3, %v3840_v29, %v3842_v26  ;;  %v3613_v51 = vor.u32 %v3612_v55, %v3609_v30  ;;  %v8557_v6 = vor.u32 %v2987_v43, %v2984_v54  ;;  %v4008_v45 = vshrl.u32 %v3951_v38, 16 }
 0x387   : > { %v8559_v23 = vor.u32 %v3370_v8, %v3367_v52  ;;  %v8561_v0 = vor.u32 %v3621_v10, %v3618_v16  ;;  %v4011_v41 = vshll.u32 %v3951_v38, 16  ;;  %v3844_v4 = vrot.slane %v8542_v36, 4  ;;  %v8587_v8 = vld [vmem:[#allocation2 + $0x58] sm:$0xff] }
 0x388   : > { %v8564_v28 = vor.u32 %v4004_v12, %v4001_v48  ;;  %v8566_v40 = vor.u32 %v2745_v7, %v2742_v59  ;;  %v2991_v22 = vshrl.u32 %v2934_v5, 16  ;;  %v2994_v11 = vshll.u32 %v2934_v5, 16 }
 0x389   : > { %v3374_v29 = vshrl.u32 %v3317_v2, 16  ;;  %v3377_v30 = vshll.u32 %v3317_v2, 16  ;;  %v2749_v55 = vshrl.u32 %v2684_v3, 16  ;;  %v2752_v54 = vshll.u32 %v2684_v3, 16 }
 0x38a   : > { %11147 = vst [vmem:[#allocation23_spill] sm:$0xff] %v8564_v28  ;;  %3874 = vrot.lane.b32.xlu1 %v3843_v1, %s7563_s20  ;;  %2448 = vrot.lane.b32.xlu0 %v3841_v47, %s11071_s11  ;;  %v3614_v10 = vsel %vm2184_vm1, %v8452_v53, %v3613_v51  ;;  %v2989_v12 = vsel %vm2184_vm1, %v8495_v20, %v8557_v6  ;;  %v4010_v48 = vrot.slane %v4008_v45, 4  ;;  %v4013_v43 = vrot.slane %v4011_v41, 5  ;;  %v8585_v53 = vld [vmem:[#allocation2 + $0x50] sm:$0xff] }
 0x38b   : > { %v3372_v7 = vsel %vm2006_vm2, %v8514_v39, %v8559_v23  ;;  %v3568_v16 = vmul.bf16 %v8523_v37, %v8116_v49  ;;  %v3623_v59 = vsel %vm2184_vm1, %v3613_v51, %v8561_v0  ;;  %v8583_v52 = vsel %vm1886_vm3, %v3842_v26, %v3844_v4 }
 0x38c   : > { %v2747_v20 = vsel %vm2006_vm2, %v8521_v21, %v8566_v40  ;;  %v2993_v39 = vrot.slane %v2991_v22, 3  ;;  %v2996_v38 = vrot.slane %v2994_v11, 4  ;;  %v3952_v47 = vmul.bf16 %v8526_v31, %v8135_v34 }
 0x38d   : > { %v3376_v5 = vrot.slane %v3374_v29, 4  ;;  %v3379_v2 = vrot.slane %v3377_v30, 5  ;;  %v2751_v3 = vrot.slane %v2749_v55, 4  ;;  %v2754_v26 = vrot.slane %v2752_v54, 5 }
 0x38e   : > { %3242 = vrot.lane.b32.xlu1 %v3843_v1, %s7564_s21  ;;  %3736 = vrot.lane.b32.xlu0 %v3614_v10, %s7568_s18  ;;  %v3846_v51 = vrot.slane %v8585_v53, 4  ;;  %v3848_v45 = vrot.slane %v8587_v8, 4  ;;  %v3625_v41 = vshrl.u32 %v3568_v16, 16  ;;  %v2194_v21 = vshrl.u32 %v8475_v24, 16 }
 0x38f   : > { %v8599_v22 = vor.u32 %v4013_v43, %v4010_v48  ;;  %v3628_v11 = vshll.u32 %v3568_v16, 16  ;;  %v3569_v19 = vmul.bf16 %v8526_v31, %v8150_v35  ;;  %v2197_v29 = vshll.u32 %v8475_v24, 16 }
 0x390   : > { %v4017_v30 = vshrl.u32 %v3952_v47, 16  ;;  %v4020_v55 = vshll.u32 %v3952_v47, 16  ;;  %v2936_v54 = vmul.bf16 %v8526_v31, %v8171_v13  ;;  %v2196_v10 = vrot.slane %v2194_v21, 3 }
 0x391   : > { %11148 = vst [vmem:[#allocation38_spill] sm:$0xff] %v8599_v22  ;;  %v8607_v28 = vor.u32 %v2996_v38, %v2993_v39  ;;  %v8609_v18 = vor.u32 %v3379_v2, %v3376_v5  ;;  %v8611_v48 = vor.u32 %v2754_v26, %v2751_v3  ;;  %v2199_v16 = vrot.slane %v2197_v29, 4  ;;  %v8622_v5 = vld [vmem:[#allocation2 + $0x60] sm:$0xff]  ;;  %v1991_v22 = vld [vmem:[#allocation2 + $0x10] sm:$0xff] }
 0x392   : > { %2450 = vrot.lane.b32.xlu1 %v3843_v1, %s11071_s11  ;;  %3104 = vrot.lane.b32.xlu0 %v2989_v12, %s7566_s26  ;;  %v8615_v43 = vsel %vm1886_vm3, %v3846_v51, %v3848_v45  ;;  %v8618_v24 = vsel %vm1886_vm3, %v3844_v4, %v3846_v51  ;;  %v3627_v47 = vrot.slane %v3625_v41, 3  ;;  %v2935_v21 = vmul.bf16 %v8523_v37, %v8150_v35 }
 0x393   : > { %v3630_v1 = vrot.slane %v3628_v11, 4  ;;  %v3634_v39 = vshrl.u32 %v3569_v19, 16  ;;  %v3637_v38 = vshll.u32 %v3569_v19, 16  ;;  %v2200_v2 = vor.u32 %v2199_v16, %v2196_v10 }
 0x394   : > { %v4019_v3 = vrot.slane %v4017_v30, 4  ;;  %v4022_v26 = vrot.slane %v4020_v55, 5  ;;  %v3009_v29 = vshrl.u32 %v2936_v54, 16  ;;  %v3012_v12 = vshll.u32 %v2936_v54, 16 }
 0x395   : > { %v2998_v4 = vsel %vm2184_vm1, %v8557_v6, %v8607_v28  ;;  %v3381_v51 = vsel %vm2006_vm2, %v8559_v23, %v8609_v18  ;;  %v3318_v19 = vmul.bf16 %v8523_v37, %v8135_v34  ;;  %v11149_v41 = vor.u32 %v8080_v62, %v8078_v56 }
 0x396   : > { %3738 = vrot.lane.b32.xlu1 %v3623_v59, %s7568_s18  ;;  %3487 = vrot.lane.b32.xlu0 %v3372_v7, %s7567_s29  ;;  %v8641_v59 = vsel %vm2006_vm2, %v8566_v40, %v8611_v48  ;;  %v11035_v6 = vrot.slane %v8622_v5, 4  ;;  %v3000_v30 = vshrl.u32 %v2935_v21, 16  ;;  %v3003_v55 = vshll.u32 %v2935_v21, 16 }
 0x397   : > { %v2201_v11 = vsel %vm2184_vm1, %v11149_v41, %v2200_v2  ;;  %v3631_v23 = vor.u32 %v3630_v1, %v3627_v47  ;;  %v3636_v54 = vrot.slane %v3634_v39, 3  ;;  %v3639_v10 = vrot.slane %v3637_v38, 4 }
 0x398   : > { %2353 = vst.msk [vmem:[#allocation4] sm:$0xff] %vm379_vm0, %v2201_v11  ;;  %v2169_v56 = vmul.bf16 %v8018_v63, %v1991_v22  ;;  %v8646_v62 = vor.u32 %v4022_v26, %v4019_v3  ;;  %v3011_v16 = vrot.slane %v3009_v29, 3  ;;  %v3014_v7 = vrot.slane %v3012_v12, 4 }
 0x399   : > { %v3319_v41 = vmul.bf16 %v8526_v31, %v8175_v46  ;;  %v8654_v40 = vsel %vm1886_vm3, %v3848_v45, %v11035_v6  ;;  %v3383_v21 = vshrl.u32 %v3318_v19, 16  ;;  %v3002_v22 = vrot.slane %v3000_v30, 3 }
 0x39a   : > { %2855 = vrot.lane.b32.xlu1 %v2747_v20, %s7565_s12  ;;  %v2203_v47 = vshrl.u32 %v2169_v56, 16  ;;  %v2206_v1 = vshll.u32 %v2169_v56, 16  ;;  %3876 = vrot.lane.b32.xlu0 %v8583_v52, %s7563_s20  ;;  %v3005_v39 = vrot.slane %v3003_v55, 4  ;;  %v3953_v38 = vmul.bf16 %v8542_v36, %v8175_v46  ;;  %v1992_v20 = vld [vmem:[#allocation2 + $0x18] sm:$0xff] }
 0x39b   : > { %v2686_v3 = vmul.bf16 %v8526_v31, %v8179_v14  ;;  %v8664_v26 = vsel %vm2184_vm1, %v8561_v0, %v3631_v23  ;;  %v8666_v45 = vor.u32 %v3639_v10, %v3636_v54  ;;  %v8668_v11 = vor.u32 %v3014_v7, %v3011_v16 }
 0x39c   : > { %v2205_v29 = vrot.slane %v2203_v47, 3  ;;  %v2208_v12 = vrot.slane %v2206_v1, 4  ;;  %v3386_v56 = vshll.u32 %v3318_v19, 16  ;;  %v3392_v30 = vshrl.u32 %v3319_v41, 16 }
 0x39d   : > { %v3395_v55 = vshll.u32 %v3319_v41, 16  ;;  %v3385_v6 = vrot.slane %v3383_v21, 4  ;;  %v2685_v31 = vmul.bf16 %v8523_v37, %v8175_v46  ;;  %v2170_v63 = vmul.bf16 %v11133_v44, %v1992_v20 }
 0x39e   : > { %3106 = vrot.lane.b32.xlu1 %v2998_v4, %s7566_s26  ;;  %v2209_v34 = vor.u32 %v2208_v12, %v2205_v29  ;;  %3244 = vrot.lane.b32.xlu0 %v8583_v52, %s7564_s21  ;;  %v4026_v0 = vshrl.u32 %v3953_v38, 16  ;;  %v4029_v54 = vshll.u32 %v3953_v38, 16  ;;  %v2767_v10 = vshrl.u32 %v2686_v3, 16 }
 0x39f   : > { %v3954_v19 = vmul.bf16 %v8585_v53, %v8179_v14  ;;  %v2770_v16 = vshll.u32 %v2686_v3, 16  ;;  %v2212_v4 = vshrl.u32 %v2170_v63, 16  ;;  %v2215_v41 = vshll.u32 %v2170_v63, 16 }
 0x3a0   : > { %v2210_v7 = vsel %vm2184_vm1, %v2200_v2, %v2209_v34  ;;  %v3388_v21 = vrot.slane %v3386_v56, 5  ;;  %v3394_v47 = vrot.slane %v3392_v30, 4  ;;  %v3397_v37 = vrot.slane %v3395_v55, 5 }
 0x3a1   : > { %v3570_v1 = vmul.bf16 %v8542_v36, %v8171_v13  ;;  %2354 = vst.msk [vmem:[#allocation4 + $0x10] sm:$0xff] %vm379_vm0, %v2210_v7  ;;  %v2758_v38 = vshrl.u32 %v2685_v31, 16  ;;  %v2761_v20 = vshll.u32 %v2685_v31, 16  ;;  %v2214_v29 = vrot.slane %v2212_v4, 3 }
 0x3a2   : > { %3489 = vrot.lane.b32.xlu1 %v3381_v51, %s7567_s29  ;;  %v2217_v12 = vrot.slane %v2215_v41, 4  ;;  %2452 = vrot.lane.b32.xlu0 %v8583_v52, %s11071_s11  ;;  %v4028_v2 = vrot.slane %v4026_v0, 4  ;;  %v4031_v3 = vrot.slane %v4029_v54, 5  ;;  %v4035_v63 = vshrl.u32 %v3954_v19, 16  ;;  %v1993_v41 = vld [vmem:[#allocation2 + $0x20] sm:$0xff] }
 0x3a3   : > { %v4038_v56 = vshll.u32 %v3954_v19, 16  ;;  %v3006_v30 = vor.u32 %v3005_v39, %v3002_v22  ;;  %v2769_v55 = vrot.slane %v2767_v10, 4  ;;  %v2772_v46 = vrot.slane %v2770_v16, 5 }
 0x3a4   : > { %v2218_v44 = vor.u32 %v2217_v12, %v2214_v29  ;;  %v8687_v7 = vsel %vm2184_vm1, %v3631_v23, %v8666_v45  ;;  %v8689_v51 = vor.u32 %v3397_v37, %v3394_v47  ;;  %v3643_v31 = vshrl.u32 %v3570_v1, 16 }
 0x3a5   : > { %v3646_v4 = vshll.u32 %v3570_v1, 16  ;;  %v8695_v52 = vsel %vm2184_vm1, %v3006_v30, %v8668_v11  ;;  %v2760_v22 = vrot.slane %v2758_v38, 4  ;;  %v2763_v39 = vrot.slane %v2761_v20, 5 }
 0x3a6   : > { %2857 = vrot.lane.b32.xlu1 %v8641_v59, %s7565_s12  ;;  %v2219_v0 = vsel %vm2184_vm1, %v2209_v34, %v2218_v44  ;;  %3880 = vrot.lane.b32.xlu0 %v8615_v43, %s7563_s20  ;;  %v3389_v23 = vor.u32 %v3388_v21, %v3385_v6  ;;  %v8700_v54 = vor.u32 %v4031_v3, %v4028_v2  ;;  %v4037_v10 = vrot.slane %v4035_v63, 4 }
 0x3a7   : > { %v4040_v19 = vrot.slane %v4038_v56, 5  ;;  %2355 = vst.msk [vmem:[#allocation4 + $0x20] sm:$0xff] %vm379_vm0, %v2219_v0  ;;  %v8703_v16 = vor.u32 %v2772_v46, %v2769_v55  ;;  %v8707_v59 = vsel %vm2184_vm1, %v8607_v28, %v3006_v30  ;;  %v3571_v47 = vmul.bf16 %v8585_v53, %v8182_v25 }
 0x3a8   : > { %v2171_v34 = vmul.bf16 %v11143_v50, %v1993_v41  ;;  %v8714_v6 = vsel %vm2006_vm2, %v3389_v23, %v8689_v51  ;;  %v3645_v21 = vrot.slane %v3643_v31, 3  ;;  %v3648_v37 = vrot.slane %v3646_v4, 4 }
 0x3a9   : > { %v2937_v1 = vmul.bf16 %v8542_v36, %v8182_v25  ;;  %v2764_v46 = vor.u32 %v2763_v39, %v2760_v22  ;;  %v2938_v28 = vmul.bf16 %v8585_v53, %v8191_v27  ;;  %v3320_v38 = vmul.bf16 %v8542_v36, %v8179_v14 }
 0x3aa   : > { %3878 = vrot.lane.b32.xlu1 %v8618_v24, %s7563_s20  ;;  %v2221_v20 = vshrl.u32 %v2171_v34, 16  ;;  %3248 = vrot.lane.b32.xlu0 %v8615_v43, %s7564_s21  ;;  %v8726_v29 = vor.u32 %v4040_v19, %v4037_v10  ;;  %v8730_v12 = vsel %vm2006_vm2, %v8609_v18, %v3389_v23  ;;  %v3321_v2 = vmul.bf16 %v8585_v53, %v8346_v57 }
 0x3ab   : > { %v2224_v3 = vshll.u32 %v2171_v34, 16  ;;  %v8736_v63 = vsel %vm2006_vm2, %v2764_v46, %v8703_v16  ;;  %v3652_v56 = vshrl.u32 %v3571_v47, 16  ;;  %v3655_v30 = vshll.u32 %v3571_v47, 16 }
 0x3ac   : > { %11150 = vst [vmem:[#allocation39_spill] sm:$0xff] %v8726_v29  ;;  %v2223_v55 = vrot.slane %v2221_v20, 3  ;;  %v8738_v31 = vor.u32 %v3648_v37, %v3645_v21  ;;  %v3018_v4 = vshrl.u32 %v2937_v1, 16  ;;  %v3021_v41 = vshll.u32 %v2937_v1, 16  ;;  %v11151_v20 = vld [vmem:[#allocation33_spill] sm:$0xff] }
 0x3ad   : > { %v2226_v22 = vrot.slane %v2224_v3, 4  ;;  %v3027_v18 = vshrl.u32 %v2938_v28, 16  ;;  %v3030_v39 = vshll.u32 %v2938_v28, 16  ;;  %v3401_v0 = vshrl.u32 %v3320_v38, 16 }
 0x3ae   : > { %3246 = vrot.lane.b32.xlu1 %v8618_v24, %s7564_s21  ;;  %v3404_v23 = vshll.u32 %v3320_v38, 16  ;;  %2456 = vrot.lane.b32.xlu0 %v8615_v43, %s11071_s11  ;;  %v3410_v10 = vshrl.u32 %v3321_v2, 16  ;;  %v3413_v19 = vshll.u32 %v3321_v2, 16  ;;  %v3955_v47 = vmul.bf16 %v8587_v8, %v8346_v57 }
 0x3af   : > { %v8746_v34 = vor.u32 %v2226_v22, %v2223_v55  ;;  %v3654_v21 = vrot.slane %v3652_v56, 3  ;;  %v3657_v37 = vrot.slane %v3655_v30, 4  ;;  %v2687_v1 = vmul.bf16 %v8542_v36, %v8346_v57 }
 0x3b0   : > { %v2688_v28 = vmul.bf16 %v8585_v53, %v11151_v20  ;;  %v3020_v3 = vrot.slane %v3018_v4, 3  ;;  %v3023_v38 = vrot.slane %v3021_v41, 4  ;;  %v3956_v43 = vmul.bf16 %v8622_v5, %v11151_v20 }
 0x3b1   : > { %v2228_v2 = vsel %vm2184_vm1, %v2218_v44, %v8746_v34  ;;  %v3029_v55 = vrot.slane %v3027_v18, 3  ;;  %v3032_v56 = vrot.slane %v3030_v39, 4  ;;  %v3403_v30 = vrot.slane %v3401_v0, 4 }
 0x3b2   : > { %2454 = vrot.lane.b32.xlu1 %v8618_v24, %s11071_s11  ;;  %v3406_v22 = vrot.slane %v3404_v23, 5  ;;  %2356 = vst.msk [vmem:[#allocation4 + $0x30] sm:$0xff] %vm379_vm0, %v2228_v2  ;;  %3740 = vrot.lane.b32.xlu0 %v8664_v26, %s7568_s18  ;;  %v3412_v36 = vrot.slane %v3410_v10, 4  ;;  %v3415_v53 = vrot.slane %v3413_v19, 5  ;;  %v4044_v4 = vshrl.u32 %v3955_v47, 16 }
 0x3b3   : > { %v4047_v41 = vshll.u32 %v3955_v47, 16  ;;  %v2776_v57 = vshrl.u32 %v2687_v1, 16  ;;  %v2779_v14 = vshll.u32 %v2687_v1, 16  ;;  %v2785_v50 = vshrl.u32 %v2688_v28, 16 }
 0x3b4   : > { %v2788_v44 = vshll.u32 %v2688_v28, 16  ;;  %v8761_v29 = vor.u32 %v3657_v37, %v3654_v21  ;;  %v4053_v24 = vshrl.u32 %v3956_v43, 16  ;;  %v4056_v18 = vshll.u32 %v3956_v43, 16 }
 0x3b5   : > { %v3572_v39 = vmul.bf16 %v8587_v8, %v8191_v27  ;;  %vm2484_vm4 = vcmask 261248   ;;  %v3024_v26 = vor.u32 %v3023_v38, %v3020_v3  ;;  %v8767_v0 = vor.u32 %v3032_v56, %v3029_v55 }
 0x3b6   : > { %3882 = vrot.lane.b32.xlu1 %v8654_v40, %s7563_s20  ;;  %v8771_v23 = vsel %vm2006_vm2, %v8611_v48, %v2764_v46  ;;  %v3573_v10 = vmul.bf16 %v8622_v5, %v8369_v61  ;;  %3742 = vrot.lane.b32.xlu0 %v8687_v7, %s7568_s18  ;;  %v3407_v19 = vor.u32 %v3406_v22, %v3403_v30  ;;  %v4046_v21 = vrot.slane %v4044_v4, 4 }
 0x3b7   : > { %v8777_v47 = vor.u32 %v3415_v53, %v3412_v36  ;;  %v4049_v37 = vrot.slane %v4047_v41, 5  ;;  %v2778_v1 = vrot.slane %v2776_v57, 4  ;;  %v2781_v28 = vrot.slane %v2779_v14, 5  ;;  %v1994_v36 = vld [vmem:[#allocation2 + $0x28] sm:$0xff] }
 0x3b8   : > { %v2787_v3 = vrot.slane %v2785_v50, 4  ;;  %v2790_v38 = vrot.slane %v2788_v44, 5  ;;  %v4055_v43 = vrot.slane %v4053_v24, 4  ;;  %v4058_v2 = vrot.slane %v4056_v18, 5 }
 0x3b9   : > { %v3661_v55 = vshrl.u32 %v3572_v39, 16  ;;  %v3664_v48 = vshll.u32 %v3572_v39, 16  ;;  %v8784_v7 = vsel %vm2184_vm1, %v8738_v31, %v8761_v29  ;;  %v8789_v46 = vsel %vm2184_vm1, %v8666_v45, %v8738_v31  ;;  %v1995_v45 = vld [vmem:[#allocation2 + $0x30] sm:$0xff] }
 0x3ba   : > { %3250 = vrot.lane.b32.xlu1 %v8654_v40, %s7564_s21  ;;  %v3670_v14 = vshrl.u32 %v3573_v10, 16  ;;  %v3673_v57 = vshll.u32 %v3573_v10, 16  ;;  %3110 = vrot.lane.b32.xlu0 %v8695_v52, %s7566_s26  ;;  %v8795_v50 = vsel %vm2184_vm1, %v3024_v26, %v8767_v0  ;;  %v8797_v56 = vor.u32 %v4049_v37, %v4046_v21 }
 0x3bb   : > { %v2939_v30 = vmul.bf16 %v8587_v8, %v8369_v61  ;;  %v2940_v22 = vmul.bf16 %v8622_v5, %v8398_v32  ;;  %v8805_v31 = vsel %vm2006_vm2, %v3407_v19, %v8777_v47  ;;  %v2782_v53 = vor.u32 %v2781_v28, %v2778_v1 }
 0x3bc   : > { %11152 = vst [vmem:[#allocation40_spill] sm:$0xff] %v8797_v56  ;;  %v8807_v52 = vor.u32 %v2790_v38, %v2787_v3  ;;  %v8811_v4 = vsel %vm2184_vm1, %v8668_v11, %v3024_v26  ;;  %v8813_v41 = vor.u32 %v4058_v2, %v4055_v43  ;;  %v3663_v44 = vrot.slane %v3661_v55, 3 }
 0x3bd   : > { %v3666_v24 = vrot.slane %v3664_v48, 4  ;;  %v8817_v18 = vsel %vm2006_vm2, %v8689_v51, %v3407_v19  ;;  %v3672_v39 = vrot.slane %v3670_v14, 3  ;;  %v3675_v10 = vrot.slane %v3673_v57, 4 }
 0x3be   : > { %11153 = vst [vmem:[#allocation41_spill] sm:$0xff] %v8813_v41  ;;  %2458 = vrot.lane.b32.xlu1 %v8654_v40, %s11071_s11  ;;  %v2172_v21 = vmul.bf16 %v8116_v49, %v1994_v36  ;;  %v2173_v37 = vmul.bf16 %v8150_v35, %v1995_v45  ;;  %3493 = vrot.lane.b32.xlu0 %v8714_v6, %s7567_s29  ;;  %v3036_v11 = vshrl.u32 %v2939_v30, 16  ;;  %v3039_v26 = vshll.u32 %v2939_v30, 16  ;;  %v2437_v40 = vpop.permute.xlu1 %2436  ;;  %v1996_v36 = vld [vmem:[#allocation2 + $0x38] sm:$0xff] }
 0x3bf   : > { %v3045_v1 = vshrl.u32 %v2940_v22, 16  ;;  %v3048_v28 = vshll.u32 %v2940_v22, 16  ;;  %v11154_v3 = vand.u32 15, %v8412_v33  ;;  %2485 = vst.msk [vmem:[#allocation4] sm:$0xff] %vm2484_vm4, %v2437_v40  ;;  %v8834_v6 = vsel %vm2006_vm2, %v2782_v53, %v8807_v52 }
 0x3c0   : > { %v2230_v19 = vshrl.u32 %v2172_v21, 16  ;;  %v2233_v38 = vshll.u32 %v2172_v21, 16  ;;  %v2239_v43 = vshrl.u32 %v2173_v37, 16  ;;  %v2242_v2 = vshll.u32 %v2173_v37, 16 }
 0x3c1   : > { %vm8827_vm6 = vcmp.ne.s32.totalorder %v11154_v3, 0  ;;  %v8836_v55 = vor.u32 %v3666_v24, %v3663_v44  ;;  %v8840_v33 = vsel %vm2006_vm2, %v8703_v16, %v2782_v53  ;;  %v3322_v48 = vmul.bf16 %v8587_v8, %v11151_v20 }
 0x3c2   : > { %3108 = vrot.lane.b32.xlu1 %v8707_v59, %s7566_s26  ;;  %v2232_v14 = vrot.slane %v2230_v19, 3  ;;  %v2235_v57 = vrot.slane %v2233_v38, 4  ;;  %v2241_v30 = vrot.slane %v2239_v43, 3  ;;  %v2244_v22 = vrot.slane %v2242_v2, 4  ;;  %2861 = vrot.lane.b32.xlu0 %v8736_v63, %s7565_s12  ;;  %v8852_v53 = vpop.permute.xlu1 %3864 }
 0x3c3   : > { %v8848_v45 = vor.u32 %v3675_v10, %v3672_v39  ;;  %v3038_v44 = vrot.slane %v3036_v11, 3  ;;  %v3041_v24 = vrot.slane %v3039_v26, 4  ;;  %v3323_v16 = vmul.bf16 %v8622_v5, %v8433_v60  ;;  %v8856_v40 = vpop.permute.xlu0 %3230  ;;  %v8864_v10 = vld [vmem:[#allocation2 + $0x68] sm:$0xff] }
 0x3c4   : > { %v3047_v21 = vrot.slane %v3045_v1, 3  ;;  %v3050_v37 = vrot.slane %v3048_v28, 4  ;;  %v2236_v59 = vor.u32 %v2235_v57, %v2232_v14  ;;  %v8854_v3 = vor.u32 %v2244_v22, %v2241_v30  ;;  %v1997_v14 = vld [vmem:[#allocation2 + $0x40] sm:$0xff] }
 0x3c5   : > { %v3419_v19 = vshrl.u32 %v3322_v48, 16  ;;  %v3422_v38 = vshll.u32 %v3322_v48, 16  ;;  %v3988_v63 = vsel %vm2006_vm2, %v8258_v9, %v8546_v42  ;;  %v2174_v39 = vmul.bf16 %v8171_v13, %v1996_v36 }
 0x3c6   : > { %3491 = vrot.lane.b32.xlu1 %v8730_v12, %s7567_s29  ;;  %vm2895_vm10 = vcmask 392448   ;;  %v2689_v11 = vmul.bf16 %v8587_v8, %v8433_v60  ;;  %v2246_v26 = vsel %vm2184_vm1, %v2236_v59, %v8854_v3  ;;  %v2237_v1 = vsel %vm2184_vm1, %v8746_v34, %v2236_v59  ;;  %4132 = vst.msk [vmem:[#allocation4 + $0x18] sm:$0xff] %vm379_vm0, %v3988_v63  ;;  %v8886_v43 = vpop.permute.xlu1 %3232 }
 0x3c7   : > { %v3997_v9 = vsel %vm2006_vm2, %v8546_v42, %v8548_v58  ;;  %3746 = vrot.lane.b32.xlu0 %v8784_v7, %s7568_s18  ;;  %v8881_v12 = vsel %vm2184_vm1, %v8836_v55, %v8848_v45  ;;  %v3428_v8 = vshrl.u32 %v3323_v16, 16  ;;  %v3431_v28 = vshll.u32 %v3323_v16, 16  ;;  %2358 = vst.msk [vmem:[#allocation4 + $0x50] sm:$0xff] %vm379_vm0, %v2246_v26  ;;  %2357 = vst.msk [vmem:[#allocation4 + $0x40] sm:$0xff] %vm379_vm0, %v2237_v1  ;;  %v2439_v57 = vpop.permute.xlu0 %2438  ;;  %v8895_v16 = vld [vmem:[#allocation2 + $0x70] sm:$0xff] }
 0x3c8   : > { %v2248_v34 = vshrl.u32 %v2174_v39, 16  ;;  %4133 = vst.msk [vmem:[#allocation4 + $0x28] sm:$0xff] %vm379_vm0, %v3997_v9  ;;  %v8888_v42 = vor.u32 %v3041_v24, %v3038_v44  ;;  %v8890_v2 = vor.u32 %v3050_v37, %v3047_v21  ;;  %v2251_v7 = vshll.u32 %v2174_v39, 16  ;;  %v11157_v1 = vld [vmem:[#allocation37_spill] sm:$0xff] }
 0x3c9   : > { %v417_v48 = vadd.s32 208, %v7696_v17  ;;  %v3421_v30 = vrot.slane %v3419_v19, 4  ;;  %v3424_v22 = vrot.slane %v3422_v38, 5  ;;  %v3957_v36 = vmul.bf16 %v8864_v10, %v8433_v60  ;;  %2486 = vst.msk [vmem:[#allocation4 + $0x10] sm:$0xff] %vm2484_vm4, %v2439_v57 }
 0x3ca   : > { %v2250_v59 = vrot.slane %v2248_v34, 3  ;;  %2859 = vrot.lane.b32.xlu1 %v8771_v23, %s7565_s12  ;;  %v2794_v44 = vshrl.u32 %v2689_v11, 16  ;;  %v2253_v24 = vrot.slane %v2251_v7, 4  ;;  %v7096_v37 = vsel %vm8827_vm6, 1.0, %v11099_v15  ;;  %v2441_v26 = vpop.permute.xlu1 %2440 }
 0x3cb   : > { %v449_v21 = vand.u32 15, %v417_v48  ;;  %3114 = vrot.lane.b32.xlu0 %v8795_v50, %s7566_s26  ;;  %v3430_v19 = vrot.slane %v3428_v8, 4  ;;  %v3433_v38 = vrot.slane %v3431_v28, 5  ;;  %v2797_v63 = vshll.u32 %v2689_v11, 16  ;;  %v8910_v51 = vpop.permute.xlu0 %3866  ;;  %2487 = vst.msk [vmem:[#allocation4 + $0x20] sm:$0xff] %vm2484_vm4, %v2441_v26 }
 0x3cc   : > { %v2175_v39 = vmul.bf16 %v8182_v25, %v1997_v14  ;;  %v2690_v23 = vmul.bf16 %v8622_v5, %v11157_v1  ;;  %v3958_v9 = vmul.bf16 %v8895_v16, %v11157_v1  ;;  %v2254_v34 = vor.u32 %v2253_v24, %v2250_v59 }
 0x3cd   : > { %vm481_vm14 = vcmp.ne.s32.totalorder %v449_v21, 0  ;;  %v4062_v50 = vshrl.u32 %v3957_v36, 16  ;;  %v8916_v11 = vsel %vm2184_vm1, %v8761_v29, %v8836_v55  ;;  %v11158_v28 = vmov 1.0  }
 0x3ce   : > { %v7097_v8 = vsel %vm481_vm14, 1.0, %v11099_v15  ;;  %v659_v7 = vpack.c.bf16 %v11158_v28, %v7096_v37  ;;  %3744 = vrot.lane.b32.xlu1 %v8789_v46, %s7568_s18  ;;  %v4065_v48 = vshll.u32 %v3957_v36, 16  ;;  %v2796_v14 = vrot.slane %v2794_v44, 4  ;;  %v2848_v37 = vpop.permute.xlu1 %2847 }
 0x3cf   : > { %v2255_v57 = vsel %vm2184_vm1, %v8854_v3, %v2254_v34  ;;  %v660_v59 = vpack.c.bf16 %v11158_v28, %v7097_v8  ;;  %3497 = vrot.lane.b32.xlu0 %v8805_v31, %s7567_s29  ;;  %v2799_v29 = vrot.slane %v2797_v63, 5  ;;  %v2257_v55 = vshrl.u32 %v2175_v39, 16  ;;  %v8929_v60 = vpop.permute.xlu0 %3234  ;;  %2896 = vst.msk [vmem:[#allocation4] sm:$0xff] %vm2895_vm10, %v2848_v37 }
 0x3d0   : > { %2359 = vst.msk [vmem:[#allocation4 + $0x60] sm:$0xff] %vm379_vm0, %v2255_v57  ;;  %v2260_v24 = vshll.u32 %v2175_v39, 16  ;;  %v418_v21 = vadd.s32 216, %v7696_v17  ;;  %v2803_v46 = vshrl.u32 %v2690_v23, 16  ;;  %v2806_v26 = vshll.u32 %v2690_v23, 16 }
 0x3d1   : > { %v4071_v36 = vshrl.u32 %v3958_v9, 16  ;;  %v4074_v44 = vshll.u32 %v3958_v9, 16  ;;  %v2115_v3 = vshrl.u32 %v659_v7, 16  ;;  %v2259_v8 = vrot.slane %v2257_v55, 3 }
 0x3d2   : > { %v2262_v20 = vrot.slane %v2260_v24, 4  ;;  %v450_v31 = vand.u32 15, %v418_v21  ;;  %3112 = vrot.lane.b32.xlu1 %v8811_v4, %s7566_s26  ;;  %v3425_v63 = vor.u32 %v3424_v22, %v3421_v30  ;;  %v2124_v39 = vshrl.u32 %v660_v59, 16  ;;  %v3099_v55 = vpop.permute.xlu1 %3098  ;;  %v8944_v22 = vld [vmem:[#allocation2 + $0x80] sm:$0xff] }
 0x3d3   : > { %v2127_v57 = vshll.u32 %v660_v59, 16  ;;  %v2118_v25 = vshll.u32 %v659_v7, 16  ;;  %2865 = vrot.lane.b32.xlu0 %v8834_v6, %s7565_s12  ;;  %v8936_v23 = vor.u32 %v3433_v38, %v3430_v19  ;;  %v4064_v9 = vrot.slane %v4062_v50, 4  ;;  %v2443_v7 = vpop.permute.xlu0 %2442  ;;  %3147 = vst.msk [vmem:[#allocation4] sm:$0xff] %vm3146_vm12, %v3099_v55  ;;  %v8947_v38 = vld [vmem:[#allocation2 + $0x88] sm:$0xff] }
 0x3d4   : > { %v8938_v13 = vor.u32 %v2262_v20, %v2259_v8  ;;  %vm8940_vm7 = vcmp.ne.s32.totalorder %v450_v31, 15  ;;  %v4067_v24 = vrot.slane %v4065_v48, 5  ;;  %v2800_v21 = vor.u32 %v2799_v29, %v2796_v14  ;;  %2488 = vst.msk [vmem:[#allocation4 + $0x30] sm:$0xff] %vm2484_vm4, %v2443_v7 }
 0x3d5   : > { %v2805_v4 = vrot.slane %v2803_v46, 4  ;;  %v2808_v30 = vrot.slane %v2806_v26, 5  ;;  %v4073_v6 = vrot.slane %v4071_v36, 4  ;;  %v4076_v19 = vrot.slane %v4074_v44, 5  ;;  %3279 = vst.msk [vmem:[#allocation4] sm:$0xff] %vm3278_vm13, %v8856_v40  ;;  %v8978_v44 = vld [vmem:[#allocation2 + $0x78] sm:$0xff] }
 0x3d6   : > { %v2117_v20 = vrot.slane %v2115_v3, 4  ;;  %v2264_v50 = vsel %vm2184_vm1, %v2254_v34, %v8938_v13  ;;  %3495 = vrot.lane.b32.xlu1 %v8817_v18, %s7567_s29  ;;  %v2126_v48 = vrot.slane %v2124_v39, 4  ;;  %v2129_v14 = vrot.slane %v2127_v57, 5  ;;  %v3482_v46 = vpop.permute.xlu1 %3481  ;;  %v11163_v3 = vld [vmem:[#allocation10_spill] sm:$0xff] }
 0x3d7   : > { %v2120_v59 = vrot.slane %v2118_v25, 5  ;;  %2360 = vst.msk [vmem:[#allocation4 + $0x70] sm:$0xff] %vm379_vm0, %v2264_v50  ;;  %v7113_v29 = vsel %vm8940_vm7, 1.0, %v11099_v15  ;;  %3750 = vrot.lane.b32.xlu0 %v8881_v12, %s7568_s18  ;;  %v3052_v34 = vsel %vm2184_vm1, %v8888_v42, %v8890_v2  ;;  %v3435_v18 = vsel %vm2006_vm2, %v3425_v63, %v8936_v23  ;;  %v2850_v31 = vpop.permute.xlu0 %2849  ;;  %v11167_v50 = vld [vmem:[#allocation23_spill] sm:$0xff] }
 0x3d8   : > { %v3043_v25 = vsel %vm2184_vm1, %v8767_v0, %v8888_v42  ;;  %v8971_v40 = vrot.slane %v8944_v22, 4  ;;  %v8973_v26 = vor.u32 %v4067_v24, %v4064_v9  ;;  %v8975_v36 = vor.u32 %v2808_v30, %v2805_v4  ;;  %3530 = vst.msk [vmem:[#allocation4] sm:$0xff] %vm3529_vm15, %v3482_v46  ;;  %v11170_v46 = vld [vmem:[#allocation35_spill] sm:$0xff] }
 0x3d9   : > { %v3852_v12 = vrot.slane %v8864_v10, 4  ;;  %v3578_v8 = vmul.bf16 %v8947_v38, %v11163_v3  ;;  %v8985_v0 = vsel %vm2006_vm2, %v8777_v47, %v3425_v63  ;;  %v11056_v42 = vrot.slane %v8947_v38, 4  ;;  %2897 = vst.msk [vmem:[#allocation4 + $0x10] sm:$0xff] %vm2895_vm10, %v2850_v31  ;;  %v11171_v31 = vld [vmem:[#allocation38_spill] sm:$0xff] }
 0x3da   : > { %11161 = vst [vmem:[#allocation42_spill] sm:$0xff] %v8971_v40  ;;  %11162 = vst [vmem:[#allocation43_spill] sm:$0xff] %v8973_v26  ;;  %v3574_v39 = vmul.bf16 %v8864_v10, %v8398_v32  ;;  %v804_v57 = vpack.c.bf16 %v7113_v29, %v11158_v28  ;;  %2863 = vrot.lane.b32.xlu1 %v8840_v33, %s7565_s12  ;;  %v2810_v9 = vsel %vm2006_vm2, %v2800_v21, %v8975_v36  ;;  %vm3780_vm8 = vcmask 917248  }
 0x3db   : > { %v8996_v37 = vor.u32 %v4076_v19, %v4073_v6  ;;  %v2130_v55 = vor.u32 %v2129_v14, %v2126_v48  ;;  %v2121_v47 = vor.u32 %v2120_v59, %v2117_v20  ;;  %3118 = vrot.lane.b32.xlu0 %v3052_v34, %s7566_s26  ;;  %v9003_v63 = vsel %vm1886_vm3, %v8971_v40, %v11056_v42 }
 0x3dc   : > { %v9007_v24 = vsel %vm2006_vm2, %v8807_v52, %v2800_v21  ;;  %v3854_v33 = vrot.slane %v8895_v16, 4  ;;  %v9011_v4 = vrot.slane %v8978_v44, 4  ;;  %v9013_v30 = vpop.permute.xlu1 %3868  ;;  %v11166_v7 = vrot.slane %v8622_v5, 4  ;;  %v9023_v52 = vpop.permute.xlu0 %3870  ;;  %v11169_v5 = vld [vmem:[#allocation11_spill] sm:$0xff] }
 0x3dd   : > { %11164 = vst [vmem:[#allocation10_spill] sm:$0xff] %v8996_v37  ;;  %v3715_v19 = vshrl.u32 %v3578_v8, 16  ;;  %v3718_v20 = vshll.u32 %v3578_v8, 16  ;;  %v4006_v48 = vsel %vm2006_vm2, %v8548_v58, %v11167_v50  ;;  %11168 = vst [vmem:[#allocation23_spill] sm:$0xff] %v9023_v52  ;;  %v3679_v21 = vshrl.u32 %v3574_v39, 16 }
 0x3de   : > { %11165 = vst [vmem:[#allocation44_spill] sm:$0xff] %v9011_v4  ;;  %v9018_v6 = vsel %vm1886_vm3, %v11166_v7, %v3852_v12  ;;  %v2635_v14 = vshrl.u32 %v804_v57, 16  ;;  %v2638_v59 = vshll.u32 %v804_v57, 16  ;;  %4134 = vst.msk [vmem:[#allocation4 + $0x38] sm:$0xff] %vm379_vm0, %v4006_v48  ;;  %v420_v29 = vadd.s32 232, %v7696_v17  ;;  %3748 = vrot.lane.b32.xlu1 %v8916_v11, %s7568_s18 }
 0x3df   : > { %v9031_v34 = vsel %vm2006_vm2, %v2130_v55, %v11169_v5  ;;  %v9035_v8 = vsel %vm2006_vm2, %v11170_v46, %v2121_v47  ;;  %v3682_v58 = vshll.u32 %v3574_v39, 16  ;;  %v4015_v57 = vsel %vm2006_vm2, %v11167_v50, %v11171_v31  ;;  %3501 = vrot.lane.b32.xlu0 %v3435_v18, %s7567_s29  ;;  %v1998_v46 = vld [vmem:[#allocation2 + $0x48] sm:$0xff] }
 0x3e0   : > { %v9042_v7 = vsel %vm1886_vm3, %v3852_v12, %v3854_v33  ;;  %v9046_v11 = vsel %vm1886_vm3, %v3854_v33, %v9011_v4  ;;  %v3575_v48 = vmul.bf16 %v8895_v16, %v9035_v8  ;;  %v452_v5 = vand.u32 15, %v420_v29  ;;  %4135 = vst.msk [vmem:[#allocation4 + $0x48] sm:$0xff] %vm379_vm0, %v4015_v57  ;;  %v9051_v39 = vpop.permute.xlu1 %3236  ;;  %v9058_v33 = vpop.permute.xlu0 %3238 }
 0x3e1   : > { %vm3912_vm9 = vcmask 1048448   ;;  %v3717_v50 = vrot.slane %v3715_v19, 3  ;;  %v3720_v18 = vrot.slane %v3718_v20, 4  ;;  %v9054_v42 = vsel %vm2006_vm2, %v2121_v47, %v2130_v55  ;;  %11172 = vst [vmem:[#allocation11_spill] sm:$0xff] %v9058_v33 }
 0x3e2   : > { %v2941_v12 = vmul.bf16 %v8864_v10, %v9035_v8  ;;  %v3577_v35 = vmul.bf16 %v8944_v22, %v9031_v34  ;;  %v2942_v29 = vmul.bf16 %v8895_v16, %v9054_v42  ;;  %v2637_v57 = vrot.slane %v2635_v14, 3  ;;  %3116 = vrot.lane.b32.xlu1 %v3043_v25, %s7566_s26 }
 0x3e3   : > { %v2640_v49 = vrot.slane %v2638_v59, 4  ;;  %v3681_v19 = vrot.slane %v3679_v21, 3  ;;  %v3684_v20 = vrot.slane %v3682_v58, 4  ;;  %vm516_vm6 = vcmp.ne.s32.totalorder %v452_v5, 15  ;;  %2869 = vrot.lane.b32.xlu0 %v2810_v9, %s7565_s12 }
 0x3e4   : > { %v2176_v55 = vmul.bf16 %v8191_v27, %v1998_v46  ;;  %v9070_v47 = vsel %vm1886_vm3, %v9011_v4, %v8971_v40  ;;  %v3688_v33 = vshrl.u32 %v3575_v48, 16  ;;  %v3691_v52 = vshll.u32 %v3575_v48, 16  ;;  %v2445_v59 = vpop.permute.xlu1 %2444  ;;  %v2447_v5 = vpop.permute.xlu0 %2446 }
 0x3e5   : > { %v3324_v14 = vmul.bf16 %v8864_v10, %v11157_v1  ;;  %v9074_v37 = vor.u32 %v3720_v18, %v3717_v50  ;;  %v3054_v25 = vshrl.u32 %v2941_v12, 16  ;;  %v3057_v21 = vshll.u32 %v2941_v12, 16  ;;  %2489 = vst.msk [vmem:[#allocation4 + $0x40] sm:$0xff] %vm2484_vm4, %v2445_v59  ;;  %2490 = vst.msk [vmem:[#allocation4 + $0x50] sm:$0xff] %vm2484_vm4, %v2447_v5 }
 0x3e6   : > { %v7114_v58 = vsel %vm516_vm6, 1.0, %v11099_v15  ;;  %v3706_v9 = vshrl.u32 %v3577_v35, 16  ;;  %v3709_v46 = vshll.u32 %v3577_v35, 16  ;;  %v3063_v27 = vshrl.u32 %v2942_v29, 16  ;;  %3499 = vrot.lane.b32.xlu1 %v8985_v0, %s7567_s29 }
 0x3e7   : > { %v9078_v4 = vor.u32 %v2640_v49, %v2637_v57  ;;  %v3685_v48 = vor.u32 %v3684_v20, %v3681_v19  ;;  %v3066_v50 = vshll.u32 %v2942_v29, 16  ;;  %v2266_v18 = vshrl.u32 %v2176_v55, 16  ;;  %3892 = vrot.lane.b32.xlu0 %v9003_v63, %s7563_s20  ;;  %v11173_v20 = vld [vmem:[#allocation36_spill] sm:$0xff] }
 0x3e8   : > { %v2269_v1 = vshll.u32 %v2176_v55, 16  ;;  %v3690_v12 = vrot.slane %v3688_v33, 3  ;;  %v3693_v40 = vrot.slane %v3691_v52, 4  ;;  %v3437_v59 = vshrl.u32 %v3324_v14, 16  ;;  %v9086_v26 = vpop.permute.xlu1 %3734  ;;  %v3733_v56 = vpop.permute.xlu0 %3732 }
 0x3e9   : > { %v805_v35 = vpack.c.bf16 %v7114_v58, %v11158_v28  ;;  %v3056_v49 = vrot.slane %v3054_v25, 3  ;;  %v3059_v57 = vrot.slane %v3057_v21, 4  ;;  %v2268_v5 = vrot.slane %v2266_v18, 3  ;;  %3781 = vst.msk [vmem:[#allocation4] sm:$0xff] %vm3780_vm8, %v3733_v56  ;;  %v2000_v25 = vld [vmem:[#allocation2 + $0x58] sm:$0xff] }
 0x3ea   : > { %v2271_v41 = vrot.slane %v2269_v1, 4  ;;  %v3708_v0 = vrot.slane %v3706_v9, 3  ;;  %v3711_v19 = vrot.slane %v3709_v46, 4  ;;  %v3065_v29 = vrot.slane %v3063_v27, 3  ;;  %2867 = vrot.lane.b32.xlu1 %v9007_v24, %s7565_s12  ;;  %3913 = vst.msk [vmem:[#allocation4] sm:$0xff] %vm3912_vm9, %v8852_v53 }
 0x3eb   : > { %v9091_v55 = vsel %vm2184_vm1, %v11173_v20, %v9078_v4  ;;  %v3068_v63 = vrot.slane %v3066_v50, 4  ;;  %v3440_v33 = vshll.u32 %v3324_v14, 16  ;;  %3884 = vrot.lane.b32.xlu0 %v9018_v6, %s7563_s20  ;;  %v9104_v27 = vor.u32 %v3693_v40, %v3690_v12 }
 0x3ec   : > { %v3325_v52 = vmul.bf16 %v8895_v16, %v9091_v55  ;;  %v9098_v1 = vor.u32 %v2271_v41, %v2268_v5  ;;  %v9108_v56 = vsel %vm2184_vm1, %v8848_v45, %v3685_v48  ;;  %v2644_v24 = vshrl.u32 %v805_v35, 16  ;;  %v2852_v58 = vpop.permute.xlu1 %2851  ;;  %v3101_v40 = vpop.permute.xlu0 %3100 }
 0x3ed   : > { %v2647_v21 = vshll.u32 %v805_v35, 16  ;;  %v3439_v9 = vrot.slane %v3437_v59, 4  ;;  %v3959_v41 = vmul.bf16 %v8978_v44, %v9091_v55  ;;  %v9114_v14 = vmul.bf16 %v8864_v10, %v9091_v55  ;;  %2898 = vst.msk [vmem:[#allocation4 + $0x20] sm:$0xff] %vm2895_vm10, %v2852_v58 }
 0x3ee   : > { %v2273_v53 = vsel %vm2184_vm1, %v8938_v13, %v9098_v1  ;;  %v9120_v45 = vor.u32 %v3711_v19, %v3708_v0  ;;  %v3060_v46 = vor.u32 %v3059_v57, %v3056_v49  ;;  %v422_v50 = vadd.s32 248, %v7696_v17  ;;  %3148 = vst.msk [vmem:[#allocation4 + $0x10] sm:$0xff] %vm3146_vm12, %v3101_v40  ;;  %3886 = vrot.lane.b32.xlu1 %v9042_v7, %s7563_s20 }
 0x3ef   : > { %2361 = vst.msk [vmem:[#allocation4 + $0x80] sm:$0xff] %vm379_vm0, %v2273_v53  ;;  %v2178_v18 = vmul.bf16 %v8398_v32, %v2000_v25  ;;  %v9128_v10 = vor.u32 %v3068_v63, %v3065_v29  ;;  %v3442_v13 = vrot.slane %v3440_v33, 5  ;;  %v3446_v12 = vshrl.u32 %v3325_v52, 16  ;;  %3252 = vrot.lane.b32.xlu0 %v9018_v6, %s7564_s21 }
 0x3f0   : > { %v9132_v59 = vmul.bf16 %v8978_v44, %v9054_v42  ;;  %3280 = vst.msk [vmem:[#allocation4 + $0x10] sm:$0xff] %vm3278_vm13, %v8886_v43  ;;  %v3449_v17 = vshll.u32 %v3325_v52, 16  ;;  %v2646_v35 = vrot.slane %v2644_v24, 3  ;;  %v2649_v49 = vrot.slane %v2647_v21, 4  ;;  %v3103_v5 = vpop.permute.xlu1 %3102  ;;  %v3484_v63 = vpop.permute.xlu0 %3483 }
 0x3f1   : > { %v454_v57 = vand.u32 15, %v422_v50  ;;  %v9140_v0 = vsel %vm2184_vm1, %v3685_v48, %v9104_v27  ;;  %v4080_v19 = vshrl.u32 %v3959_v41, 16  ;;  %v4083_v29 = vshll.u32 %v3959_v41, 16  ;;  %3149 = vst.msk [vmem:[#allocation4 + $0x20] sm:$0xff] %vm3146_vm12, %v3103_v5  ;;  %v4147_v25 = vld [vmem:[#allocation4] sm:$0xff] }
 0x3f2   : > { %v2812_v20 = vshrl.u32 %v9114_v14, 16  ;;  %v9147_v43 = vsel %vm2184_vm1, %v9120_v45, %v9074_v37  ;;  %v9151_v52 = vsel %vm2184_vm1, %v8890_v2, %v3060_v46  ;;  %v2284_v48 = vshrl.u32 %v2178_v18, 16  ;;  %3531 = vst.msk [vmem:[#allocation4 + $0x10] sm:$0xff] %vm3529_vm15, %v3484_v63  ;;  %3254 = vrot.lane.b32.xlu1 %v9042_v7, %s7564_s21  ;;  %v1999_v41 = vld [vmem:[#allocation2 + $0x50] sm:$0xff]  ;;  %4332 = vmatmul.mubr.bf16.vlgmr.msra.gmra.mrb[12].mxu1 %v4147_v25 }
 0x3f3   : > { %vm9153_vm14 = vcmp.ne.s32.totalorder %v454_v57, 15  ;;  %3281 = vst.msk [vmem:[#allocation4 + $0x20] sm:$0xff] %vm3278_vm13, %v8929_v60  ;;  %v9164_v24 = vsel %vm2184_vm1, %v3060_v46, %v9128_v10  ;;  %v9166_v2 = vor.u32 %v3442_v13, %v3439_v9  ;;  %v2815_v21 = vshll.u32 %v9114_v14, 16  ;;  %2460 = vrot.lane.b32.xlu0 %v9018_v6, %s11071_s11  ;;  %v4150_v60 = vld [vmem:[#allocation4 + $0x18] sm:$0xff] }
 0x3f4   : > { %v3697_v58 = vshrl.u32 %v9132_v59, 16  ;;  %3782 = vst.msk [vmem:[#allocation4 + $0x10] sm:$0xff] %vm3780_vm8, %v9086_v26  ;;  %v9174_v53 = vrot.slane %v3446_v12, 4  ;;  %v9176_v40 = vrot.slane %v3449_v17, 5  ;;  %v2650_v46 = vor.u32 %v2649_v49, %v2646_v35  ;;  %7151 = vmatprep.mubr.msk.bf16.mxu1 %vm379_vm0, %v4150_v60  ;;  %v3486_v26 = vpop.permute.xlu1 %3485  ;;  %v2854_v12 = vpop.permute.xlu0 %2853 }
 0x3f5   : > { %v7115_v9 = vsel %vm9153_vm14, 1.0, %v11099_v15  ;;  %3914 = vst.msk [vmem:[#allocation4 + $0x10] sm:$0xff] %vm3912_vm9, %v8910_v51  ;;  %v9184_v14 = vrot.slane %v4080_v19, 4  ;;  %v9186_v6 = vrot.slane %v4083_v29, 5  ;;  %v9188_v50 = vrot.slane %v2812_v20, 4 }
 0x3f6   : > { %v806_v13 = vpack.c.bf16 %v7115_v9, %v11158_v28  ;;  %3532 = vst.msk [vmem:[#allocation4 + $0x20] sm:$0xff] %vm3529_vm15, %v3486_v26  ;;  %v9194_v15 = vsel %vm2184_vm1, %v9078_v4, %v2650_v46  ;;  %v2286_v17 = vrot.slane %v2284_v48, 3  ;;  %v2287_v51 = vshll.u32 %v2178_v18, 16  ;;  %2462 = vrot.lane.b32.xlu1 %v9042_v7, %s11071_s11 }
 0x3f7   : > { %v2177_v35 = vmul.bf16 %v8369_v61, %v1999_v41  ;;  %2899 = vst.msk [vmem:[#allocation4 + $0x30] sm:$0xff] %vm2895_vm10, %v2854_v12  ;;  %v2692_v49 = vmul.bf16 %v8895_v16, %v9194_v15  ;;  %v3700_v28 = vshll.u32 %v9132_v59, 16  ;;  %3888 = vrot.lane.b32.xlu0 %v9046_v11, %s7563_s20  ;;  %v2943_v4 = vmul.bf16 %v8978_v44, %v9031_v34 }
 0x3f8   : > { %v2653_v57 = vshrl.u32 %v806_v13, 16  ;;  %v2656_v5 = vshll.u32 %v806_v13, 16  ;;  %v2289_v18 = vrot.slane %v2287_v51, 4  ;;  %v9207_v20 = vpop.permute.xlu1 %3872  ;;  %v2817_v63 = vrot.slane %v2815_v21, 5  ;;  %v9211_v59 = vpop.permute.xlu0 %3240 }
 0x3f9   : > { %v2275_v19 = vshrl.u32 %v2177_v35, 16  ;;  %v2278_v29 = vshll.u32 %v2177_v35, 16  ;;  %v2944_v7 = vmul.bf16 %v8944_v22, %v11163_v3  ;;  %v3960_v48 = vmul.bf16 %v8944_v22, %v9194_v15 }
 0x3fa   : > { %v2655_v16 = vrot.slane %v2653_v57, 3  ;;  %v2658_v33 = vrot.slane %v2656_v5, 4  ;;  %v9215_v25 = vor.u32 %v2289_v18, %v2286_v17  ;;  %3890 = vrot.lane.b32.xlu1 %v9070_v47, %s7563_s20  ;;  %v2821_v9 = vshrl.u32 %v2692_v49, 16  ;;  %v4152_v5 = vld [vmem:[#allocation4 + $0x28] sm:$0xff] }
 0x3fb   : > { %v2277_v41 = vrot.slane %v2275_v19, 3  ;;  %v2280_v60 = vrot.slane %v2278_v29, 4  ;;  %v2824_v26 = vshll.u32 %v2692_v49, 16  ;;  %v3699_v21 = vrot.slane %v3697_v58, 3  ;;  %3256 = vrot.lane.b32.xlu0 %v9046_v11, %s7564_s21 }
 0x3fc   : > { %v9219_v13 = vor.u32 %v2658_v33, %v2655_v16  ;;  %v4149_v12 = vld [vmem:[#allocation4 + $0x10] sm:$0xff]  ;;  %v3702_v51 = vrot.slane %v3700_v28, 4  ;;  %v3072_v35 = vshrl.u32 %v2943_v4, 16  ;;  %v4024_v17 = vsel %vm2006_vm2, %v11171_v31, %v8646_v62  ;;  %v9226_v18 = vpop.permute.xlu1 %3874  ;;  %v2449_v28 = vpop.permute.xlu0 %2448 }
 0x3fd   : > { %v2281_v57 = vor.u32 %v2280_v60, %v2277_v41  ;;  %4340 = vmatmul.mubr.bf16.gmra.mrb[16].mxu1 %v4149_v12  ;;  %v3075_v19 = vshll.u32 %v2943_v4, 16  ;;  %v3081_v49 = vshrl.u32 %v2944_v7, 16  ;;  %v3084_v58 = vshll.u32 %v2944_v7, 16  ;;  %4136 = vst.msk [vmem:[#allocation4 + $0x58] sm:$0xff] %vm379_vm0, %v4024_v17  ;;  %v2001_v4 = vld [vmem:[#allocation2 + $0x60] sm:$0xff] }
 0x3fe   : > { %v9230_v29 = vsel %vm2184_vm1, %v2650_v46, %v9219_v13  ;;  %7152 = vmatprep.mubr.msk.bf16.mxu1 %vm379_vm0, %v4152_v5  ;;  %v4089_v16 = vshrl.u32 %v3960_v48, 16  ;;  %v4092_v33 = vshll.u32 %v3960_v48, 16  ;;  %v3326_v31 = vmul.bf16 %v8978_v44, %v9194_v15  ;;  %2491 = vst.msk [vmem:[#allocation4 + $0x60] sm:$0xff] %vm2484_vm4, %v2449_v28  ;;  %3258 = vrot.lane.b32.xlu1 %v9070_v47, %s7564_s21 }
 0x3ff   : > { %v2291_v41 = vsel %vm2184_vm1, %v2281_v57, %v9215_v25  ;;  %v9243_v46 = vor.u32 %v9176_v40, %v9174_v53  ;;  %v2823_v7 = vrot.slane %v2821_v9, 4  ;;  %v2826_v60 = vrot.slane %v2824_v26, 5  ;;  %2464 = vrot.lane.b32.xlu0 %v9046_v11, %s11071_s11 }
 0x400   : > { %2363 = vst.msk [vmem:[#allocation4 + $0xa0] sm:$0xff] %vm379_vm0, %v2291_v41  ;;  %v2282_v48 = vsel %vm2184_vm1, %v9098_v1, %v2281_v57  ;;  %v2818_v12 = vor.u32 %v2817_v63, %v9188_v50  ;;  %v9251_v17 = vor.u32 %v3702_v51, %v3699_v21  ;;  %v3074_v5 = vrot.slane %v3072_v35, 3  ;;  %v9256_v53 = vpop.permute.xlu1 %3242  ;;  %v3737_v57 = vpop.permute.xlu0 %3736 }
 0x401   : > { %v3961_v47 = vmul.bf16 %v8947_v38, %v9230_v29  ;;  %2362 = vst.msk [vmem:[#allocation4 + $0x90] sm:$0xff] %vm379_vm0, %v2282_v48  ;;  %v3077_v40 = vrot.slane %v3075_v19, 4  ;;  %v3083_v9 = vrot.slane %v3081_v49, 3  ;;  %v3086_v26 = vrot.slane %v3084_v58, 4 }
 0x402   : > { %v2179_v1 = vmul.bf16 %v9035_v8, %v2001_v4  ;;  %v4091_v28 = vrot.slane %v4089_v16, 4  ;;  %v4094_v11 = vrot.slane %v4092_v33, 5  ;;  %v3455_v41 = vshrl.u32 %v3326_v31, 16  ;;  %3783 = vst.msk [vmem:[#allocation4 + $0x20] sm:$0xff] %vm3780_vm8, %v3737_v57  ;;  %3760 = vrot.lane.b32.xlu1 %v9147_v43, %s7568_s18  ;;  %v11177_v57 = vld [vmem:[#allocation40_spill] sm:$0xff] }
 0x403   : > { %v3458_v50 = vshll.u32 %v3326_v31, 16  ;;  %v3453_v63 = vsel %vm2006_vm2, %v9166_v2, %v9243_v46  ;;  %v9267_v21 = vor.u32 %v9186_v6, %v9184_v14  ;;  %v9272_v51 = vsel %vm2006_vm2, %v8936_v23, %v9166_v2  ;;  %3915 = vst.msk [vmem:[#allocation4 + $0x20] sm:$0xff] %vm3912_vm9, %v9013_v30  ;;  %3754 = vrot.lane.b32.xlu0 %v9140_v0, %s7568_s18  ;;  %v2517_v2 = vld [vmem:[#allocation2 + $0x80] sm:$0x1f] }
 0x404   : > { %v9274_v35 = vor.u32 %v2826_v60, %v2823_v7  ;;  %v9283_v43 = vsel %vm2184_vm1, %v9251_v17, %v9120_v45  ;;  %v9287_v14 = vsel %vm2006_vm2, %v8975_v36, %v2818_v12  ;;  %v4098_v6 = vshrl.u32 %v3961_v47, 16  ;;  %v2451_v19 = vpop.permute.xlu1 %2450  ;;  %v3105_v0 = vpop.permute.xlu0 %3104 }
 0x405   : > { %v4101_v23 = vshll.u32 %v3961_v47, 16  ;;  %v9289_v49 = vor.u32 %v3077_v40, %v3074_v5  ;;  %v9291_v58 = vor.u32 %v3086_v26, %v3083_v9  ;;  %v2293_v30 = vshrl.u32 %v2179_v1, 16  ;;  %2492 = vst.msk [vmem:[#allocation4 + $0x70] sm:$0xff] %vm2484_vm4, %v2451_v19  ;;  %v2003_v40 = vld [vmem:[#allocation2 + $0x70] sm:$0xff]  ;;  %v2004_v9 = vld [vmem:[#allocation2 + $0x78] sm:$0xff] }
 0x406   : > { %v2296_v16 = vshll.u32 %v2179_v1, 16  ;;  %v9294_v33 = vor.u32 %v4094_v11, %v4091_v28  ;;  %v9298_v45 = vmul.bf16 %v8944_v22, %v9230_v29  ;;  %v9300_v36 = vrot.slane %v3455_v41, 4  ;;  %3150 = vst.msk [vmem:[#allocation4 + $0x30] sm:$0xff] %vm3146_vm12, %v3105_v0  ;;  %3752 = vrot.lane.b32.xlu1 %v9108_v56, %s7568_s18  ;;  %v2002_v22 = vld [vmem:[#allocation2 + $0x68] sm:$0xff]  ;;  %v11178_v28 = vld [vmem:[#allocation41_spill] sm:$0xff]  ;;  %v11180_v0 = vld [vmem:[#allocation10_spill] sm:$0xff] }
 0x407   : > { %v9302_v31 = vrot.slane %v3458_v50, 5  ;;  %v9309_v4 = vsel %vm2006_vm2, %v2818_v12, %v9274_v35  ;;  %v9312_v7 = vmul.bf16 %v9219_v13, %v2517_v2  ;;  %v2295_v60 = vrot.slane %v2293_v30, 3  ;;  %3282 = vst.msk [vmem:[#allocation4 + $0x30] sm:$0xff] %vm3278_vm13, %v9051_v39  ;;  %3122 = vrot.lane.b32.xlu0 %v9164_v24, %s7566_s26  ;;  %v11176_v39 = vld [vmem:[#allocation39_spill] sm:$0xff] }
 0x408   : > { %v2298_v48 = vrot.slane %v2296_v16, 4  ;;  %v4100_v5 = vrot.slane %v4098_v6, 4  ;;  %v4103_v47 = vrot.slane %v4101_v23, 5  ;;  %v9320_v56 = vmul.bf16 %v8978_v44, %v9230_v29  ;;  %v3739_v26 = vpop.permute.xlu1 %3738  ;;  %v11179_v6 = vld [vmem:[#allocation43_spill] sm:$0xff] }
 0x409   : > { %v4033_v12 = vsel %vm2006_vm2, %v8646_v62, %v8700_v54  ;;  %v4042_v24 = vsel %vm2006_vm2, %v8700_v54, %v11176_v39  ;;  %v4051_v44 = vsel %vm2006_vm2, %v11176_v39, %v11177_v57  ;;  %v4060_v11 = vsel %vm2006_vm2, %v11177_v57, %v11178_v28  ;;  %v3488_v62 = vpop.permute.xlu0 %3487 }
 0x40a   : > { %v9325_v1 = vor.u32 %v2298_v48, %v2295_v60  ;;  %4137 = vst.msk [vmem:[#allocation4 + $0x68] sm:$0xff] %vm379_vm0, %v4033_v12  ;;  %v3464_v41 = vshrl.u32 %v9298_v45, 16  ;;  %v3467_v50 = vshll.u32 %v9298_v45, 16  ;;  %4138 = vst.msk [vmem:[#allocation4 + $0x78] sm:$0xff] %vm379_vm0, %v4042_v24  ;;  %v2180_v54 = vmul.bf16 %v9054_v42, %v2002_v22  ;;  %3120 = vrot.lane.b32.xlu1 %v9151_v52, %s7566_s26  ;;  %v4151_v2 = vld [vmem:[#allocation4 + $0x20] sm:$0xff]  ;;  %v4154_v52 = vld [vmem:[#allocation4 + $0x38] sm:$0xff] }
 0x40b   : > { %4139 = vst.msk [vmem:[#allocation4 + $0x88] sm:$0xff] %vm379_vm0, %v4051_v44  ;;  %4140 = vst.msk [vmem:[#allocation4 + $0x98] sm:$0xff] %vm379_vm0, %v4060_v11  ;;  %v4069_v23 = vsel %vm2006_vm2, %v11178_v28, %v11179_v6  ;;  %v2181_v30 = vmul.bf16 %v9031_v34, %v2003_v40  ;;  %v2182_v16 = vmul.bf16 %v11163_v3, %v2004_v9  ;;  %v2005_v60 = vld [vmem:[#allocation2 + $0x80] sm:$0xf]  ;;  %3505 = vrot.lane.b32.xlu0 %v3453_v63, %s7567_s29  ;;  %v11182_v28 = vld [vmem:[#allocation24_spill] sm:$0xff] }
 0x40c   : > { %3533 = vst.msk [vmem:[#allocation4 + $0x30] sm:$0xff] %vm3529_vm15, %v3488_v62  ;;  %v2300_v19 = vsel %vm2184_vm1, %v9215_v25, %v9325_v1  ;;  %v4078_v45 = vsel %vm2006_vm2, %v11179_v6, %v11180_v0  ;;  %4348 = vmatmul.mubr.bf16.gmra.mrb[20].mxu1 %v4151_v2  ;;  %v9360_v48 = vor.u32 %v4103_v47, %v4100_v5  ;;  %v2302_v25 = vshrl.u32 %v2180_v54, 16  ;;  %v11181_v40 = vld [vmem:[#allocation23_spill] sm:$0xff]  ;;  %v2856_v63 = vpop.permute.xlu1 %2855  ;;  %v3945_v62 = vld [vmem:[#allocation2 + $0x90] sm:$0x1f] }
 0x40d   : > { %4141 = vst.msk [vmem:[#allocation4 + $0xa8] sm:$0xff] %vm379_vm0, %v4069_v23  ;;  %2364 = vst.msk [vmem:[#allocation4 + $0xb0] sm:$0xff] %vm379_vm0, %v2300_v19  ;;  %v2305_v22 = vshll.u32 %v2180_v54, 16  ;;  %v4087_v12 = vsel %vm2006_vm2, %v11180_v0, %v9267_v21  ;;  %7153 = vmatprep.mubr.msk.bf16.mxu1 %vm379_vm0, %v4154_v52  ;;  %v2311_v9 = vshrl.u32 %v2181_v30, 16  ;;  %v2320_v5 = vshrl.u32 %v2182_v16, 16  ;;  %v9371_v39 = vpop.permute.xlu0 %3876 }
 0x40e   : > { %3784 = vst.msk [vmem:[#allocation4 + $0x30] sm:$0xff] %vm3780_vm8, %v3739_v26  ;;  %v2314_v26 = vshll.u32 %v2181_v30, 16  ;;  %v2323_v47 = vshll.u32 %v2182_v16, 16  ;;  %v2304_v24 = vrot.slane %v2302_v25, 3  ;;  %v4096_v44 = vsel %vm2006_vm2, %v9267_v21, %v9294_v33  ;;  %3503 = vrot.lane.b32.xlu1 %v9272_v51, %s7567_s29 }
 0x40f   : > { %4142 = vst.msk [vmem:[#allocation4 + $0xb8] sm:$0xff] %vm379_vm0, %v4078_v45  ;;  %4143 = vst.msk [vmem:[#allocation4 + $0xc8] sm:$0xff] %vm379_vm0, %v4087_v12  ;;  %v2307_v57 = vrot.slane %v2305_v22, 4  ;;  %v2183_v11 = vmul.bf16 %v11182_v28, %v2005_v60  ;;  %v2313_v54 = vrot.slane %v2311_v9, 3  ;;  %v2322_v23 = vrot.slane %v2320_v5, 3  ;;  %2873 = vrot.lane.b32.xlu0 %v9309_v4, %s7565_s12 }
 0x410   : > { %3916 = vst.msk [vmem:[#allocation4 + $0x30] sm:$0xff] %vm3912_vm9, %v11181_v40  ;;  %v2316_v6 = vrot.slane %v2314_v26, 4  ;;  %v2325_v2 = vrot.slane %v2323_v47, 4  ;;  %v4105_v21 = vsel %vm2006_vm2, %v9294_v33, %v9360_v48  ;;  %v3107_v0 = vpop.permute.xlu1 %3106  ;;  %v3466_v45 = vrot.slane %v3464_v41, 4  ;;  %v3562_v33 = vld [vmem:[#allocation2 + $0x90] sm:$0xf] }
 0x411   : > { %2900 = vst.msk [vmem:[#allocation4 + $0x40] sm:$0xff] %vm2895_vm10, %v2856_v63  ;;  %v2308_v19 = vor.u32 %v2307_v57, %v2304_v24  ;;  %v2329_v30 = vshrl.u32 %v2183_v11, 16  ;;  %v2332_v16 = vshll.u32 %v2183_v11, 16  ;;  %v3962_v52 = vmul.bf16 %v3945_v62, %v9219_v13  ;;  %v9388_v25 = vpop.permute.xlu0 %3244  ;;  %v11183_v63 = vld [vmem:[#allocation11_spill] sm:$0xff]  ;;  %v4156_v47 = vld [vmem:[#allocation4 + $0x48] sm:$0xff] }
 0x412   : > { %4144 = vst.msk [vmem:[#allocation4 + $0xd8] sm:$0xff] %vm379_vm0, %v4096_v44  ;;  %v2317_v60 = vor.u32 %v2316_v6, %v2313_v54  ;;  %v2326_v51 = vor.u32 %v2325_v2, %v2322_v23  ;;  %4145 = vst.msk [vmem:[#allocation4 + $0xe8] sm:$0xff] %vm379_vm0, %v4105_v21  ;;  %v3469_v4 = vrot.slane %v3467_v50, 5  ;;  %2871 = vrot.lane.b32.xlu1 %v9287_v14, %s7565_s12  ;;  %v2833_v23 = vshll.u32 %v9320_v56, 16 }
 0x413   : > { %3151 = vst.msk [vmem:[#allocation4 + $0x40] sm:$0xff] %vm3146_vm12, %v3107_v0  ;;  %v2309_v22 = vsel %vm2184_vm1, %v9325_v1, %v2308_v19  ;;  %v2331_v12 = vrot.slane %v2329_v30, 3  ;;  %v2334_v40 = vrot.slane %v2332_v16, 4  ;;  %v4107_v26 = vshrl.u32 %v3962_v52, 16  ;;  %3758 = vrot.lane.b32.xlu0 %v9283_v43, %s7568_s18  ;;  %v2928_v30 = vld [vmem:[#allocation2 + $0x88] sm:$0xf] }
 0x414   : > { %3283 = vst.msk [vmem:[#allocation4 + $0x40] sm:$0xff] %vm3278_vm13, %v11183_v63  ;;  %v2318_v41 = vsel %vm2184_vm1, %v2308_v19, %v2317_v60  ;;  %v2327_v9 = vsel %vm2184_vm1, %v2317_v60, %v2326_v51  ;;  %v4110_v50 = vshll.u32 %v3962_v52, 16  ;;  %v3704_v5 = vsel %vm2184_vm1, %v9104_v27, %v9251_v17  ;;  %v3490_v24 = vpop.permute.xlu1 %3489  ;;  %v3179_v19 = vld [vmem:[#allocation2 + $0x88] sm:$0xf]  ;;  %v11184_v63 = vld [vmem:[#allocation42_spill] sm:$0xff] }
 0x415   : > { %2365 = vst.msk [vmem:[#allocation4 + $0xc0] sm:$0xff] %vm379_vm0, %v2309_v22  ;;  %2366 = vst.msk [vmem:[#allocation4 + $0xd0] sm:$0xff] %vm379_vm0, %v2318_v41  ;;  %v2335_v14 = vor.u32 %v2334_v40, %v2331_v12  ;;  %v3088_v57 = vsel %vm2184_vm1, %v9289_v49, %v9291_v58  ;;  %v3461_v43 = vor.u32 %v9302_v31, %v9300_v36  ;;  %v4109_v44 = vrot.slane %v4107_v26, 4  ;;  %v2453_v62 = vpop.permute.xlu0 %2452 }
 0x416   : > { %2367 = vst.msk [vmem:[#allocation4 + $0xe0] sm:$0xff] %vm379_vm0, %v2327_v9  ;;  %v4112_v11 = vrot.slane %v4110_v50, 5  ;;  %v2839_v27 = vshrl.u32 %v9312_v7, 16  ;;  %v2842_v17 = vshll.u32 %v9312_v7, 16  ;;  %v3579_v54 = vmul.bf16 %v3562_v33, %v11182_v28  ;;  %3756 = vrot.lane.b32.xlu1 %v3704_v5, %s7568_s18  ;;  %v2385_v5 = vld [vmem:[#allocation2 + $0x80] sm:$0xf] }
 0x417   : > { %v4153_v1 = vld [vmem:[#allocation4 + $0x30] sm:$0xff]  ;;  %3534 = vst.msk [vmem:[#allocation4 + $0x40] sm:$0xff] %vm3529_vm15, %v3490_v24  ;;  %v2336_v6 = vsel %vm2184_vm1, %v2326_v51, %v2335_v14  ;;  %v9420_v36 = vor.u32 %v3469_v4, %v3466_v45  ;;  %v2830_v31 = vshrl.u32 %v9320_v56, 16  ;;  %3126 = vrot.lane.b32.xlu0 %v3088_v57, %s7566_s26  ;;  %v3079_v0 = vsel %vm2184_vm1, %v9128_v10, %v9289_v49  ;;  %v3311_v10 = vld [vmem:[#allocation2 + $0x88] sm:$0x1f] }
 0x418   : > { %4356 = vmatmul.mubr.bf16.gmra.mrb[24].mxu1 %v4153_v1  ;;  %2493 = vst.msk [vmem:[#allocation4 + $0x80] sm:$0xff] %vm2484_vm4, %v2453_v62  ;;  %v4113_v2 = vor.u32 %v4112_v11, %v4109_v44  ;;  %v2858_v7 = vpop.permute.xlu1 %2857  ;;  %v2841_v56 = vrot.slane %v2839_v27, 4  ;;  %v3724_v45 = vshrl.u32 %v3579_v54, 16  ;;  %v3727_v60 = vshll.u32 %v3579_v54, 16 }
 0x419   : > { %7154 = vmatprep.mubr.msk.bf16.mxu1 %vm379_vm0, %v4156_v47  ;;  %2368 = vst.msk [vmem:[#allocation4 + $0xf0] sm:$0xff] %vm379_vm0, %v2336_v6  ;;  %v9428_v21 = vpop.permute.xlu0 %3880  ;;  %v3471_v51 = vsel %vm2006_vm2, %v3461_v43, %v9420_v36  ;;  %v2832_v52 = vrot.slane %v2830_v31, 4  ;;  %v2844_v4 = vrot.slane %v2842_v17, 5  ;;  %v3228_v22 = vrot.slane %v3179_v19, 4 }
 0x41a   : > { %v4114_v16 = vsel %vm2006_vm2, %v9360_v48, %v4113_v2  ;;  %2901 = vst.msk [vmem:[#allocation4 + $0x50] sm:$0xff] %vm2895_vm10, %v2858_v7  ;;  %3124 = vrot.lane.b32.xlu1 %v3079_v0, %s7566_s26  ;;  %v2835_v48 = vrot.slane %v2833_v23, 5  ;;  %v2945_v12 = vmul.bf16 %v2928_v30, %v11182_v28  ;;  %v3462_v41 = vsel %vm2006_vm2, %v9243_v46, %v3461_v43  ;;  %v11185_v2 = vld [vmem:[#allocation44_spill] sm:$0xff] }
 0x41b   : > { %4146 = vst.msk [vmem:[#allocation4 + $0xf8] sm:$0xff] %vm379_vm0, %v4114_v16  ;;  %3509 = vrot.lane.b32.xlu0 %v3471_v51, %s7567_s29  ;;  %v3229_v33 = vsel %vm1886_vm3, %v11184_v63, %v3228_v22  ;;  %v2845_v26 = vor.u32 %v2844_v4, %v2841_v56  ;;  %v3726_v50 = vrot.slane %v3724_v45, 3  ;;  %v3729_v1 = vrot.slane %v3727_v60, 4  ;;  %v3813_v60 = vld [vmem:[#allocation2 + $0x90] sm:$0xf]  ;;  %v4158_v22 = vld [vmem:[#allocation4 + $0x58] sm:$0xff] }
 0x41c   : > { %v9440_v40 = vpop.permute.xlu1 %3878  ;;  %v2836_v9 = vor.u32 %v2835_v48, %v2832_v52  ;;  %v3090_v14 = vshrl.u32 %v2945_v12, 16  ;;  %v3093_v47 = vshll.u32 %v2945_v12, 16  ;;  %v3328_v24 = vmul.bf16 %v3311_v10, %v9219_v13 }
 0x41d   : > { %v9442_v49 = vpop.permute.xlu0 %3248  ;;  %v2434_v46 = vrot.slane %v2385_v5, 4  ;;  %v3730_v62 = vor.u32 %v3729_v1, %v3726_v50  ;;  %v3862_v48 = vrot.slane %v3813_v60, 4  ;;  %v11186_v10 = vrot.slane %v8947_v38, 4 }
 0x41e   : > { %3507 = vrot.lane.b32.xlu1 %v3462_v41, %s7567_s29  ;;  %v2837_v11 = vsel %vm2006_vm2, %v9274_v35, %v2836_v9  ;;  %v2846_v43 = vsel %vm2006_vm2, %v2836_v9, %v2845_v26  ;;  %v3092_v27 = vrot.slane %v3090_v14, 3  ;;  %v3095_v17 = vrot.slane %v3093_v47, 4 }
 0x41f   : > { %3260 = vrot.lane.b32.xlu0 %v3229_v33, %s7564_s21  ;;  %v3473_v54 = vshrl.u32 %v3328_v24, 16  ;;  %v3476_v6 = vshll.u32 %v3328_v24, 16  ;;  %v2435_v35 = vsel %vm1886_vm3, %v11185_v2, %v2434_v46  ;;  %v3731_v7 = vsel %vm2184_vm1, %v9074_v37, %v3730_v62 }
 0x420   : > { %v9451_v57 = vpop.permute.xlu1 %3246  ;;  %v3096_v19 = vor.u32 %v3095_v17, %v3092_v27  ;;  %v3863_v63 = vsel %vm1886_vm3, %v11186_v10, %v3862_v48  ;;  %v4170_v10 = vld [vmem:[#allocation4 + $0xb8] sm:$0xff] }
 0x421   : > { %v2457_v44 = vpop.permute.xlu0 %2456  ;;  %v3475_v30 = vrot.slane %v3473_v54, 4  ;;  %v3478_v16 = vrot.slane %v3476_v6, 5  ;;  %v4166_v54 = vld [vmem:[#allocation4 + $0x98] sm:$0xff] }
 0x422   : > { %2495 = vst.msk [vmem:[#allocation4 + $0xa0] sm:$0xff] %vm2484_vm4, %v2457_v44  ;;  %2875 = vrot.lane.b32.xlu1 %v2837_v11, %s7565_s12  ;;  %v3097_v45 = vsel %vm2184_vm1, %v9291_v58, %v3096_v19 }
 0x423   : > { %2877 = vrot.lane.b32.xlu0 %v2846_v43, %s7565_s12  ;;  %v3479_v37 = vor.u32 %v3478_v16, %v3475_v30  ;;  %v4164_v43 = vld [vmem:[#allocation4 + $0x88] sm:$0xff] }
 0x424   : > { %v2455_v31 = vpop.permute.xlu1 %2454 }
 0x425   : > { %v3741_v23 = vpop.permute.xlu0 %3740  ;;  %2494 = vst.msk [vmem:[#allocation4 + $0x90] sm:$0xff] %vm2484_vm4, %v2455_v31 }
 0x426   : > { %3785 = vst.msk [vmem:[#allocation4 + $0x40] sm:$0xff] %vm3780_vm8, %v3741_v23  ;;  %2466 = vrot.lane.b32.xlu1 %v2435_v35, %s11071_s11  ;;  %v4168_v35 = vld [vmem:[#allocation4 + $0xa8] sm:$0xff] }
 0x427   : > { %3917 = vst.msk [vmem:[#allocation4 + $0x40] sm:$0xff] %vm3912_vm9, %v9207_v20  ;;  %3762 = vrot.lane.b32.xlu0 %v3731_v7, %s7568_s18  ;;  %v3480_v20 = vsel %vm2006_vm2, %v9420_v36, %v3479_v37 }
 0x428   : > { %v9469_v0 = vpop.permute.xlu1 %3882 }
 0x429   : > { %v3743_v56 = vpop.permute.xlu0 %3742 }
 0x42a   : > { %3128 = vrot.lane.b32.xlu1 %v3097_v45, %s7566_s26 }
 0x42c   : > { %v9474_v51 = vpop.permute.xlu1 %3250 }
 0x42d   : > { %v3111_v52 = vpop.permute.xlu0 %3110 }
 0x42e   : > { %3511 = vrot.lane.b32.xlu1 %v3480_v20, %s7567_s29  ;;  %v4155_v4 = vld [vmem:[#allocation4 + $0x40] sm:$0xff] }
 0x42f   : > { %4364 = vmatmul.mubr.bf16.gmra.mrb[28].mxu1 %v4155_v4 }
 0x430   : > { %7155 = vmatprep.mubr.msk.bf16.mxu1 %vm379_vm0, %v4158_v22  ;;  %v2459_v12 = vpop.permute.xlu1 %2458 }
 0x431   : > { %v3494_v58 = vpop.permute.xlu0 %3493  ;;  %2496 = vst.msk [vmem:[#allocation4 + $0xb0] sm:$0xff] %vm2484_vm4, %v2459_v12 }
 0x432   : > { %3894 = vrot.lane.b32.xlu1 %v3863_v63, %s7563_s20 }
 0x434   : > { %v3109_v33 = vpop.permute.xlu1 %3108 }
 0x435   : > { %v2862_v36 = vpop.permute.xlu0 %2861  ;;  %3152 = vst.msk [vmem:[#allocation4 + $0x50] sm:$0xff] %vm3146_vm12, %v3109_v33 }
 0x436   : > { %2903 = vst.msk [vmem:[#allocation4 + $0x70] sm:$0xff] %vm2895_vm10, %v2862_v36 }
 0x437   : > { %3284 = vst.msk [vmem:[#allocation4 + $0x50] sm:$0xff] %vm3278_vm13, %v9211_v59 }
 0x438   : > { %v3492_v41 = vpop.permute.xlu1 %3491 }
 0x439   : > { %v3747_v9 = vpop.permute.xlu0 %3746  ;;  %3535 = vst.msk [vmem:[#allocation4 + $0x50] sm:$0xff] %vm3529_vm15, %v3492_v41 }
 0x43a   : > { %3786 = vst.msk [vmem:[#allocation4 + $0x50] sm:$0xff] %vm3780_vm8, %v3743_v56 }
 0x43b   : > { %3918 = vst.msk [vmem:[#allocation4 + $0x50] sm:$0xff] %vm3912_vm9, %v9226_v18  ;;  %v4160_v18 = vld [vmem:[#allocation4 + $0x68] sm:$0xff] }
 0x43c   : > { %v2860_v38 = vpop.permute.xlu1 %2859 }
 0x43d   : > { %v3115_v26 = vpop.permute.xlu0 %3114  ;;  %2902 = vst.msk [vmem:[#allocation4 + $0x60] sm:$0xff] %vm2895_vm10, %v2860_v38  ;;  %v4172_v38 = vld [vmem:[#allocation4 + $0xc8] sm:$0xff] }
 0x43e   : > { %3153 = vst.msk [vmem:[#allocation4 + $0x60] sm:$0xff] %vm3146_vm12, %v3111_v52 }
 0x43f   : > { %3285 = vst.msk [vmem:[#allocation4 + $0x60] sm:$0xff] %vm3278_vm13, %v9256_v53 }
 0x440   : > { %3536 = vst.msk [vmem:[#allocation4 + $0x60] sm:$0xff] %vm3529_vm15, %v3494_v58  ;;  %v3745_v59 = vpop.permute.xlu1 %3744 }
 0x441   : > { %v3498_v50 = vpop.permute.xlu0 %3497  ;;  %3787 = vst.msk [vmem:[#allocation4 + $0x60] sm:$0xff] %vm3780_vm8, %v3745_v59 }
 0x442   : > { %3919 = vst.msk [vmem:[#allocation4 + $0x60] sm:$0xff] %vm3912_vm9, %v9371_v39  ;;  %v4157_v1 = vld [vmem:[#allocation4 + $0x50] sm:$0xff]  ;;  %v4162_v39 = vld [vmem:[#allocation4 + $0x78] sm:$0xff] }
 0x443   : > { %4372 = vmatmul.mubr.bf16.gmra.mrb[32].mxu1 %v4157_v1 }
 0x444   : > { %7156 = vmatprep.mubr.msk.bf16.mxu1 %vm379_vm0, %v4160_v18  ;;  %v3113_v5 = vpop.permute.xlu1 %3112 }
 0x445   : > { %v2866_v14 = vpop.permute.xlu0 %2865  ;;  %3154 = vst.msk [vmem:[#allocation4 + $0x70] sm:$0xff] %vm3146_vm12, %v3113_v5  ;;  %v4174_v5 = vld [vmem:[#allocation4 + $0xd8] sm:$0xff] }
 0x446   : > { %2905 = vst.msk [vmem:[#allocation4 + $0x90] sm:$0xff] %vm2895_vm10, %v2866_v14 }
 0x447   : > { %3286 = vst.msk [vmem:[#allocation4 + $0x70] sm:$0xff] %vm3278_vm13, %v9388_v25 }
 0x448   : > { %v3496_v53 = vpop.permute.xlu1 %3495 }
 0x449   : > { %v3751_v47 = vpop.permute.xlu0 %3750  ;;  %3537 = vst.msk [vmem:[#allocation4 + $0x70] sm:$0xff] %vm3529_vm15, %v3496_v53  ;;  %v4159_v24 = vld [vmem:[#allocation4 + $0x60] sm:$0xff] }
 0x44a   : > { %3788 = vst.msk [vmem:[#allocation4 + $0x70] sm:$0xff] %vm3780_vm8, %v3747_v9 }
 0x44b   : > { %3920 = vst.msk [vmem:[#allocation4 + $0x70] sm:$0xff] %vm3912_vm9, %v9440_v40  ;;  %4380 = vmatmul.mubr.bf16.gmra.mrb[36].mxu1 %v4159_v24 }
 0x44c   : > { %7157 = vmatprep.mubr.msk.bf16.mxu1 %vm379_vm0, %v4162_v39  ;;  %v2864_v44 = vpop.permute.xlu1 %2863  ;;  %v4176_v39 = vld [vmem:[#allocation4 + $0xe8] sm:$0xff] }
 0x44d   : > { %v3119_v11 = vpop.permute.xlu0 %3118  ;;  %2904 = vst.msk [vmem:[#allocation4 + $0x80] sm:$0xff] %vm2895_vm10, %v2864_v44 }
 0x44e   : > { %3155 = vst.msk [vmem:[#allocation4 + $0x80] sm:$0xff] %vm3146_vm12, %v3115_v26 }
 0x44f   : > { %3287 = vst.msk [vmem:[#allocation4 + $0x80] sm:$0xff] %vm3278_vm13, %v9451_v57 }
 0x450   : > { %3538 = vst.msk [vmem:[#allocation4 + $0x80] sm:$0xff] %vm3529_vm15, %v3498_v50  ;;  %v3749_v25 = vpop.permute.xlu1 %3748 }
 0x451   : > { %v3502_v46 = vpop.permute.xlu0 %3501  ;;  %3789 = vst.msk [vmem:[#allocation4 + $0x80] sm:$0xff] %vm3780_vm8, %v3749_v25 }
 0x452   : > { %3921 = vst.msk [vmem:[#allocation4 + $0x80] sm:$0xff] %vm3912_vm9, %v9428_v21  ;;  %v4161_v40 = vld [vmem:[#allocation4 + $0x70] sm:$0xff] }
 0x453   : > { %4388 = vmatmul.mubr.bf16.gmra.mrb[40].mxu1 %v4161_v40  ;;  %v4178_v40 = vld [vmem:[#allocation4 + $0xf8] sm:$0xff] }
 0x454   : > { %7158 = vmatprep.mubr.msk.bf16.mxu1 %vm379_vm0, %v4164_v43  ;;  %v3117_v62 = vpop.permute.xlu1 %3116 }
 0x455   : > { %v2870_v27 = vpop.permute.xlu0 %2869  ;;  %3156 = vst.msk [vmem:[#allocation4 + $0x90] sm:$0xff] %vm3146_vm12, %v3117_v62 }
 0x456   : > { %2907 = vst.msk [vmem:[#allocation4 + $0xb0] sm:$0xff] %vm2895_vm10, %v2870_v27  ;;  %v9581_v27 = vld [vmem:[%s10990_s5] ss:$0 sm:$0xff] }
 0x457   : > { %3288 = vst.msk [vmem:[#allocation4 + $0x90] sm:$0xff] %vm3278_vm13, %v9442_v49 }
 0x458   : > { %v3500_v57 = vpop.permute.xlu1 %3499 }
 0x459   : > { %v9524_v17 = vpop.permute.xlu0 %3892  ;;  %3539 = vst.msk [vmem:[#allocation4 + $0x90] sm:$0xff] %vm3529_vm15, %v3500_v57  ;;  %v4163_v21 = vld [vmem:[#allocation4 + $0x80] sm:$0xff] }
 0x45a   : > { %3790 = vst.msk [vmem:[#allocation4 + $0x90] sm:$0xff] %vm3780_vm8, %v3751_v47 }
 0x45b   : > { %3922 = vst.msk [vmem:[#allocation4 + $0x90] sm:$0xff] %vm3912_vm9, %v9469_v0  ;;  %4396 = vmatmul.mubr.bf16.gmra.mrb[44].mxu1 %v4163_v21 }
 0x45c   : > { %7159 = vmatprep.mubr.msk.bf16.mxu1 %vm379_vm0, %v4166_v54  ;;  %v2868_v6 = vpop.permute.xlu1 %2867 }
 0x45d   : > { %v3885_v31 = vpop.permute.xlu0 %3884  ;;  %2906 = vst.msk [vmem:[#allocation4 + $0xa0] sm:$0xff] %vm2895_vm10, %v2868_v6 }
 0x45e   : > { %3157 = vst.msk [vmem:[#allocation4 + $0xa0] sm:$0xff] %vm3146_vm12, %v3119_v11 }
 0x45f   : > { %3289 = vst.msk [vmem:[#allocation4 + $0xa0] sm:$0xff] %vm3278_vm13, %v9474_v51 }
 0x460   : > { %3540 = vst.msk [vmem:[#allocation4 + $0xa0] sm:$0xff] %vm3529_vm15, %v3502_v46  ;;  %v3887_v49 = vpop.permute.xlu1 %3886 }
 0x461   : > { %v3253_v23 = vpop.permute.xlu0 %3252 }
 0x462   : > { %v4165_v2 = vld [vmem:[#allocation4 + $0x90] sm:$0xff] }
 0x463   : > { %4404 = vmatmul.mubr.bf16.gmra.mrb[48].mxu1 %v4165_v2 }
 0x464   : > { %7160 = vmatprep.mubr.msk.bf16.mxu1 %vm379_vm0, %v4168_v35  ;;  %v3255_v7 = vpop.permute.xlu1 %3254 }
 0x465   : > { %v2461_v19 = vpop.permute.xlu0 %2460 }
 0x466   : > { %2497 = vst.msk [vmem:[#allocation4 + $0xc0] sm:$0xff] %vm2484_vm4, %v2461_v19 }
 0x468   : > { %v2463_v30 = vpop.permute.xlu1 %2462 }
 0x469   : > { %v3889_v16 = vpop.permute.xlu0 %3888  ;;  %2498 = vst.msk [vmem:[#allocation4 + $0xd0] sm:$0xff] %vm2484_vm4, %v2463_v30 }
 0x46c   : > { %v3891_v0 = vpop.permute.xlu1 %3890 }
 0x46d   : > { %v3257_v56 = vpop.permute.xlu0 %3256 }
 0x470   : > { %v3259_v45 = vpop.permute.xlu1 %3258 }
 0x471   : > { %v2465_v60 = vpop.permute.xlu0 %2464 }
 0x472   : > { %2499 = vst.msk [vmem:[#allocation4 + $0xe0] sm:$0xff] %vm2484_vm4, %v2465_v60 }
 0x474   : > { %v3761_v37 = vpop.permute.xlu1 %3760 }
 0x475   : > { %v3755_v51 = vpop.permute.xlu0 %3754 }
 0x478   : > { %v3753_v52 = vpop.permute.xlu1 %3752 }
 0x479   : > { %v3123_v20 = vpop.permute.xlu0 %3122  ;;  %3791 = vst.msk [vmem:[#allocation4 + $0xa0] sm:$0xff] %vm3780_vm8, %v3753_v52 }
 0x47a   : > { %3923 = vst.msk [vmem:[#allocation4 + $0xa0] sm:$0xff] %vm3912_vm9, %v3885_v31 }
 0x47c   : > { %v3121_v48 = vpop.permute.xlu1 %3120 }
 0x47d   : > { %v3506_v4 = vpop.permute.xlu0 %3505  ;;  %3158 = vst.msk [vmem:[#allocation4 + $0xb0] sm:$0xff] %vm3146_vm12, %v3121_v48  ;;  %v11187_v48 = vld [vmem:[#allocation12_spill] sm:$0xff] }
 0x47e   : > { %3290 = vst.msk [vmem:[#allocation4 + $0xb0] sm:$0xff] %vm3278_vm13, %v3253_v23 }
 0x480   : > { %v3504_v22 = vpop.permute.xlu1 %3503 }
 0x481   : > { %v2874_v12 = vpop.permute.xlu0 %2873  ;;  %3541 = vst.msk [vmem:[#allocation4 + $0xb0] sm:$0xff] %vm3529_vm15, %v3504_v22  ;;  %v4167_v58 = vld [vmem:[#allocation4 + $0xa0] sm:$0xff] }
 0x482   : > { %2909 = vst.msk [vmem:[#allocation4 + $0xd0] sm:$0xff] %vm2895_vm10, %v2874_v12  ;;  %4412 = vmatmul.mubr.bf16.gmra.mrb[52].mxu1 %v4167_v58  ;;  %v11188_v12 = vmov 0  }
 0x483   : > { %3792 = vst.msk [vmem:[#allocation4 + $0xb0] sm:$0xff] %vm3780_vm8, %v3755_v51  ;;  %7161 = vmatprep.mubr.msk.bf16.mxu1 %vm379_vm0, %v4170_v10 }
 0x484   : > { %3924 = vst.msk [vmem:[#allocation4 + $0xb0] sm:$0xff] %vm3912_vm9, %v3887_v49  ;;  %v2872_v63 = vpop.permute.xlu1 %2871 }
 0x485   : > { %v3759_v33 = vpop.permute.xlu0 %3758  ;;  %2908 = vst.msk [vmem:[#allocation4 + $0xc0] sm:$0xff] %vm2895_vm10, %v2872_v63  ;;  %v4885_v63 = vld [vmem:[#allocation3] sm:$0xf0] }
 0x486   : > { %3159 = vst.msk [vmem:[#allocation4 + $0xc0] sm:$0xff] %vm3146_vm12, %v3123_v20 }
 0x487   : > { %3291 = vst.msk [vmem:[#allocation4 + $0xc0] sm:$0xff] %vm3278_vm13, %v3255_v7 }
 0x488   : > { %3542 = vst.msk [vmem:[#allocation4 + $0xc0] sm:$0xff] %vm3529_vm15, %v3506_v4  ;;  %v3757_v36 = vpop.permute.xlu1 %3756 }
 0x489   : > { %v3127_v41 = vpop.permute.xlu0 %3126  ;;  %3793 = vst.msk [vmem:[#allocation4 + $0xc0] sm:$0xff] %vm3780_vm8, %v3757_v36 }
 0x48a   : > { %3925 = vst.msk [vmem:[#allocation4 + $0xc0] sm:$0xff] %vm3912_vm9, %v3889_v16  ;;  %v5016_v16 = vld [vmem:[#allocation3] sm:$0xf0] }
 0x48b   : > { %v4169_v9 = vld [vmem:[#allocation4 + $0xb0] sm:$0xff]  ;;  %v5033_v4 = vmul.bf16 %v5016_v16, %v11187_v48 }
 0x48c   : > { %4420 = vmatmul.mubr.bf16.gmra.mrb[56].mxu1 %v4169_v9  ;;  %v3125_v26 = vpop.permute.xlu1 %3124 }
 0x48d   : > { %7162 = vmatprep.mubr.msk.bf16.mxu1 %vm379_vm0, %v4172_v38  ;;  %v3510_v59 = vpop.permute.xlu0 %3509  ;;  %3160 = vst.msk [vmem:[#allocation4 + $0xd0] sm:$0xff] %vm3146_vm12, %v3125_v26  ;;  %v5054_v36 = vshll.u32 %v5033_v4, 16  ;;  %v4919_v38 = vrot.slane %v4885_v63, 4 }
 0x48e   : > { %3292 = vst.msk [vmem:[#allocation4 + $0xd0] sm:$0xff] %vm3278_vm13, %v3257_v56 }
 0x490   : > { %v3508_v50 = vpop.permute.xlu1 %3507 }
 0x491   : > { %3543 = vst.msk [vmem:[#allocation4 + $0xd0] sm:$0xff] %vm3529_vm15, %v3508_v50  ;;  %v4171_v1 = vld [vmem:[#allocation4 + $0xc0] sm:$0xff]  ;;  %v3261_v18 = vpop.permute.xlu0 %3260 }
 0x492   : > { %3794 = vst.msk [vmem:[#allocation4 + $0xd0] sm:$0xff] %vm3780_vm8, %v3759_v33  ;;  %v5051_v33 = vshrl.u32 %v5033_v4, 16 }
 0x493   : > { %3926 = vst.msk [vmem:[#allocation4 + $0xd0] sm:$0xff] %vm3912_vm9, %v3891_v0 }
 0x494   : > { %4428 = vmatmul.mubr.bf16.gmra.mrb[60].mxu1 %v4171_v1  ;;  %v2876_v14 = vpop.permute.xlu1 %2875  ;;  %v5053_v50 = vrot.slane %v5051_v33, 4  ;;  %v5056_v1 = vrot.slane %v5054_v36, 5 }
 0x495   : > { %7163 = vmatprep.mubr.msk.bf16.mxu1 %vm379_vm0, %v4174_v5  ;;  %2910 = vst.msk [vmem:[#allocation4 + $0xe0] sm:$0xff] %vm2895_vm10, %v2876_v14  ;;  %v2878_v47 = vpop.permute.xlu0 %2877  ;;  %v11189_v5 = vld [vmem:[#allocation14_spill] sm:$0xff] }
 0x496   : > { %3161 = vst.msk [vmem:[#allocation4 + $0xe0] sm:$0xff] %vm3146_vm12, %v3127_v41  ;;  %v4667_v41 = vld [vmem:[#allocation3] sm:$0xf8] }
 0x497   : > { %3293 = vst.msk [vmem:[#allocation4 + $0xe0] sm:$0xff] %vm3278_vm13, %v3259_v45  ;;  %v4684_v14 = vmul.bf16 %v4667_v41, %v11189_v5 }
 0x498   : > { %3544 = vst.msk [vmem:[#allocation4 + $0xe0] sm:$0xff] %vm3529_vm15, %v3510_v59  ;;  %v2467_v53 = vpop.permute.xlu1 %2466 }
 0x499   : > { %3795 = vst.msk [vmem:[#allocation4 + $0xe0] sm:$0xff] %vm3780_vm8, %v3761_v37  ;;  %v3763_v25 = vpop.permute.xlu0 %3762  ;;  %v7481_v37 = vld [vmem:[%s10992_s7] sm:$0xff]  }
 0x49a   : > { %2500 = vst.msk [vmem:[#allocation4 + $0xf0] sm:$0xff] %vm2484_vm4, %v2467_v53  ;;  %v4173_v24 = vld [vmem:[#allocation4 + $0xd0] sm:$0xff]  ;;  %6649 = vmatpush1.bf16.msra.mxu0 %v7481_v37 }
 0x49b   : > { %3927 = vst.msk [vmem:[#allocation4 + $0xe0] sm:$0xff] %vm3912_vm9, %v9524_v17  ;;  %v9586_v17 = vld [vmem:[%s10991_s6] ss:$0 sm:$0xff]  ;;  %6650 = vmatprep.subr.bf16.mxu0 %v11188_v12 }
 0x49c   : > { %2911 = vst.msk [vmem:[#allocation4 + $0xf0] sm:$0xff] %vm2895_vm10, %v2878_v47  ;;  %4436 = vmatmul.mubr.bf16.gmra.mrb[64].mxu1 %v4173_v24  ;;  %v3129_v44 = vpop.permute.xlu1 %3128  ;;  %v11190_v47 = vld [vmem:[#allocation13_spill] sm:$0xff] }
 0x49d   : > { %7164 = vmatprep.mubr.msk.bf16.mxu1 %vm379_vm0, %v4176_v39  ;;  %3162 = vst.msk [vmem:[#allocation4 + $0xf0] sm:$0xff] %vm3146_vm12, %v3129_v44 }
 0x49e   : > { %3294 = vst.msk [vmem:[#allocation4 + $0xf0] sm:$0xff] %vm3278_vm13, %v3261_v18 }
 0x4a0   : > { %v3512_v11 = vpop.permute.xlu1 %3511 }
 0x4a1   : > { %3545 = vst.msk [vmem:[#allocation4 + $0xf0] sm:$0xff] %vm3529_vm15, %v3512_v11 }
 0x4a2   : > { %v4175_v46 = vld [vmem:[#allocation4 + $0xe0] sm:$0xff]  ;;  %3796 = vst.msk [vmem:[#allocation4 + $0xf0] sm:$0xff] %vm3780_vm8, %v3763_v25 }
 0x4a4   : > { %4444 = vmatmul.mubr.bf16.gmra.mrb[68].mxu1 %v4175_v46  ;;  %v3895_v43 = vpop.permute.xlu1 %3894  ;;  %v11191_v46 = vld [vmem:[#allocation15_spill] sm:$0xff] }
 0x4a5   : > { %7165 = vmatprep.mubr.msk.bf16.mxu1 %vm379_vm0, %v4178_v40  ;;  %3928 = vst.msk [vmem:[#allocation4 + $0xf0] sm:$0xff] %vm3912_vm9, %v3895_v43 }
 0x4ac   : > { %v4177_v62 = vld [vmem:[#allocation4 + $0xf0] sm:$0xff] }
 0x4ad   : > { %4452 = vmatmul.mubr.bf16.gmra.mrb[72].mxu1 %v4177_v62 }
 0x4c5   : > { %v4333_v57 = vpop.f32.mrb[12].mxu1 }
 0x4c6   : > { %v4467_v21 = vmul.f32 %v9581_v27, %v4333_v57  ;;  %v4335_v54 = vpop.f32.mrb[13].mxu1 }
 0x4c7   : > { %v4336_v6 = vpop.f32.mrb[14].mxu1 }
 0x4c8   : > { %v4506_v31 = vadd.f32 %v9586_v17, %v4467_v21  ;;  %v4468_v49 = vmul.f32 %v9581_v27, %v4336_v6  ;;  %v4338_v23 = vpop.f32.mrb[15].mxu1  ;;  %v5057_v6 = vor.u32 %v5056_v1, %v5053_v50 }
 0x4c9   : > { %v4705_v23 = vshll.u32 %v4684_v14, 16 }
 0x4ca   : > { %v4507_v2 = vadd.f32 %v9586_v17, %v4468_v49  ;;  %v4538_v35 = vmax.f32 %v4506_v31, 0.0  ;;  %v4702_v49 = vshrl.u32 %v4684_v14, 16 }
 0x4cc   : > { %v4539_v7 = vmax.f32 %v4507_v2, 0.0 }
 0x4ce   : > { %v4570_v19 = vpack.c.bf16 %v4539_v7, %v4538_v35 }
 0x4d0   : > { %v4341_v30 = vpop.f32.mrb[16].mxu1  ;;  %v4602_v45 = vrot.slane %v4570_v19, 4 }
 0x4d1   : > { %v4469_v0 = vmul.f32 %v9581_v27, %v4341_v30  ;;  %v4343_v56 = vpop.f32.mrb[17].mxu1 }
 0x4d2   : > { %v4344_v60 = vpop.f32.mrb[18].mxu1  ;;  %4650 = vst.msk [vmem:[#allocation3 + $0x8] sm:$0xf0] %vm383_vm11, %v4602_v45 }
 0x4d3   : > { %v4508_v51 = vadd.f32 %v9586_v17, %v4469_v0  ;;  %v4470_v52 = vmul.f32 %v9581_v27, %v4344_v60  ;;  %v4346_v20 = vpop.f32.mrb[19].mxu1 }
 0x4d5   : > { %v4509_v22 = vadd.f32 %v9586_v17, %v4470_v52  ;;  %v4540_v58 = vmax.f32 %v4508_v51, 0.0 }
 0x4d7   : > { %v4541_v10 = vmax.f32 %v4509_v22, 0.0  ;;  %v9633_v22 = vrot.slane %v4702_v49, 3 }
 0x4d9   : > { %v9602_v9 = vpack.c.bf16 %v4541_v10, %v4540_v58  ;;  %v9605_v59 = vld [vmem:[#allocation3 + $0x8] sm:$0xff]  ;;  %v9635_v58 = vrot.slane %v4705_v23, 4 }
 0x4da   : > { %v5266_v18 = vld [vmem:[#allocation3 + $0x8] sm:$0xf8]  ;;  %v4920_v53 = vrot.slane %v9605_v59, 4  ;;  %v5034_v24 = vmul.bf16 %v9605_v59, %v11190_v47  ;;  %v9618_v40 = vmul.bf16 %v9605_v59, %v11191_v46 }
 0x4db   : > { %v4603_v26 = vrot.slane %v9602_v9, 4  ;;  %v5283_v39 = vmul.bf16 %v5266_v18, %v11189_v5  ;;  %v5647_v44 = vld [vmem:[#allocation3 + $0x8] sm:$0xf0] }
 0x4dc   : > { %v5664_v25 = vmul.bf16 %v5647_v44, %v11187_v48  ;;  %v4921_v43 = vsel %vm1886_vm3, %v4919_v38, %v4920_v53  ;;  %v5059_v62 = vshrl.u32 %v5034_v24, 16  ;;  %v5062_v57 = vshll.u32 %v5034_v24, 16  ;;  %v5516_v30 = vld [vmem:[#allocation3 + $0x8] sm:$0xf0] }
 0x4dd   : > { %v4604_v11 = vsel %vm1886_vm3, %v4602_v45, %v4603_v26  ;;  %v5301_v21 = vshrl.u32 %v5283_v39, 16  ;;  %4952 = vrot.lane.b32.xlu0 %v4921_v43, %s11071_s11  ;;  %v5304_v31 = vshll.u32 %v5283_v39, 16  ;;  %v4710_v37 = vshrl.u32 %v9618_v40, 16 }
 0x4de   : > { %4651 = vst.msk [vmem:[#allocation3 + $0x10] sm:$0xff] %vm379_vm0, %v4604_v11  ;;  %v5061_v7 = vrot.slane %v5059_v62, 4  ;;  %v5064_v19 = vrot.slane %v5062_v57, 5  ;;  %v5682_v16 = vshrl.u32 %v5664_v25, 16  ;;  %v5685_v60 = vshll.u32 %v5664_v25, 16  ;;  %v11192_v62 = vld [vmem:[#allocation16_spill] sm:$0xff] }
 0x4df   : > { %v4349_v54 = vpop.f32.mrb[20].mxu1  ;;  %v9624_v56 = vrot.slane %v5301_v21, 3  ;;  %v9626_v45 = vrot.slane %v5304_v31, 4  ;;  %v5550_v33 = vrot.slane %v5516_v30, 4  ;;  %v4712_v1 = vrot.slane %v4710_v37, 3 }
 0x4e0   : > { %v4471_v2 = vmul.f32 %v9581_v27, %v4349_v54  ;;  %v4351_v35 = vpop.f32.mrb[21].mxu1  ;;  %v9631_v4 = vor.u32 %v5064_v19, %v5061_v7  ;;  %v9640_v36 = vrot.slane %v5682_v16, 4  ;;  %v9645_v50 = vrot.slane %v5685_v60, 5 }
 0x4e1   : > { %v4352_v0 = vpop.f32.mrb[22].mxu1  ;;  %v5307_v59 = vor.u32 %v9626_v45, %v9624_v56  ;;  %v4713_v18 = vshll.u32 %v9618_v40, 16 }
 0x4e2   : > { %v4510_v51 = vadd.f32 %v9586_v17, %v4471_v2  ;;  %v4472_v52 = vmul.f32 %v9581_v27, %v4352_v0  ;;  %v4354_v20 = vpop.f32.mrb[23].mxu1  ;;  %v5066_v63 = vsel %vm2006_vm2, %v5057_v6, %v9631_v4 }
 0x4e3   : > { %5202 = vrot.lane.b32.xlu1 %v5066_v63, %s7565_s12  ;;  %v7482_v63 = vld [vmem:[%s10992_s7 + $0x8] sm:$0xff]  }
 0x4e4   : > { %v4511_v10 = vadd.f32 %v9586_v17, %v4472_v52  ;;  %v4542_v14 = vmax.f32 %v4510_v51, 0.0  ;;  %6651 = vmatpush1.bf16.msra.mxu0 %v7482_v63 }
 0x4e5   : > { %v6278_v41 = vld [vmem:[#allocation3 + $0x10] sm:$0xf0]  ;;  %6652 = vmatprep.subr.bf16.mxu0 %v11188_v12 }
 0x4e6   : > { %v5517_v38 = vld [vmem:[#allocation3 + $0x10] sm:$0xff]  ;;  %v4543_v24 = vmax.f32 %v4511_v10, 0.0  ;;  %v9652_v25 = vmul.bf16 %v6278_v41, %v11187_v48 }
 0x4e7   : > { %v9648_v39 = vrot.slane %v5517_v38, 4  ;;  %v5284_v44 = vmul.bf16 %v5517_v38, %v11191_v46  ;;  %v5897_v11 = vld [vmem:[#allocation3 + $0x10] sm:$0xf8]  ;;  %v5665_v43 = vmul.bf16 %v5517_v38, %v11190_v47  ;;  %v5035_v57 = vmul.bf16 %v5517_v38, %v11192_v62 }
 0x4e8   : > { %v5914_v21 = vmul.bf16 %v5897_v11, %v11189_v5  ;;  %v9657_v54 = vpack.c.bf16 %v4543_v24, %v4542_v14  ;;  %v4715_v14 = vrot.slane %v4713_v18, 4  ;;  %v4669_v18 = vld [vmem:[#allocation3 + $0x10] sm:$0xff] }
 0x4e9   : > { %v5552_v40 = vsel %vm1886_vm3, %v5550_v33, %v9648_v39  ;;  %v4923_v31 = vsel %vm1886_vm3, %v4920_v53, %v9648_v39  ;;  %v5309_v49 = vshrl.u32 %v5284_v44, 16  ;;  %v5312_v2 = vshll.u32 %v5284_v44, 16  ;;  %v7483_v44 = vld [vmem:[%s10992_s7 + $0x10] sm:$0xff]  }
 0x4ea   : > { %5583 = vrot.lane.b32.xlu1 %v5552_v40, %s7564_s21  ;;  %v5690_v35 = vshrl.u32 %v5665_v43, 16  ;;  %v5693_v7 = vshll.u32 %v5665_v43, 16  ;;  %v4605_v5 = vrot.slane %v9657_v54, 4  ;;  %v5068_v16 = vshrl.u32 %v5035_v57, 16  ;;  %6653 = vmatpush1.bf16.msra.mxu0 %v7483_v44 }
 0x4eb   : > { %v4357_v6 = vpop.f32.mrb[24].mxu1  ;;  %v5311_v30 = vrot.slane %v5309_v49, 3  ;;  %v5071_v0 = vshll.u32 %v5035_v57, 16  ;;  %v5314_v60 = vrot.slane %v5312_v2, 4  ;;  %v5932_v38 = vshrl.u32 %v5914_v21, 16  ;;  %6654 = vmatprep.subr.bf16.mxu0 %v11188_v12 }
 0x4ec   : > { %v4473_v23 = vmul.f32 %v9581_v27, %v4357_v6  ;;  %v4359_v48 = vpop.f32.mrb[25].mxu1  ;;  %v5692_v37 = vrot.slane %v5690_v35, 4  ;;  %v4606_v51 = vsel %vm1886_vm3, %v4603_v26, %v4605_v5  ;;  %v5695_v52 = vrot.slane %v5693_v7, 5 }
 0x4ed   : > { %v4360_v19 = vpop.f32.mrb[26].mxu1  ;;  %v5070_v20 = vrot.slane %v5068_v16, 4  ;;  %v5073_v10 = vrot.slane %v5071_v0, 5  ;;  %4652 = vst.msk [vmem:[#allocation3 + $0x18] sm:$0xff] %vm379_vm0, %v4606_v51  ;;  %v9677_v41 = vor.u32 %v5314_v60, %v5311_v30  ;;  %v5935_v24 = vshll.u32 %v5914_v21, 16 }
 0x4ee   : > { %v4512_v56 = vadd.f32 %v9586_v17, %v4473_v23  ;;  %v4474_v45 = vmul.f32 %v9581_v27, %v4360_v19  ;;  %v4362_v53 = vpop.f32.mrb[27].mxu1  ;;  %4954 = vrot.lane.b32.xlu1 %v4923_v31, %s11071_s11  ;;  %v4708_v26 = vor.u32 %v9635_v58, %v9633_v22  ;;  %v9686_v57 = vor.u32 %v5695_v52, %v5692_v37  ;;  %v6147_v21 = vld [vmem:[#allocation3 + $0x10] sm:$0xf0]  ;;  %v11193_v23 = vld [vmem:[#allocation17_spill] sm:$0xff] }
 0x4ef   : > { %v5316_v43 = vsel %vm2184_vm1, %v5307_v59, %v9677_v41  ;;  %v9688_v54 = vor.u32 %v5073_v10, %v5070_v20  ;;  %v9692_v22 = vrot.slane %v5932_v38, 3  ;;  %v9694_v58 = vrot.slane %v5935_v24, 4  ;;  %v7485_v10 = vld [vmem:[%s10992_s7 + $0x20] sm:$0xff]  }
 0x4f0   : > { %v4513_v33 = vadd.f32 %v9586_v17, %v4474_v45  ;;  %v4544_v9 = vmax.f32 %v4512_v56, 0.0  ;;  %5452 = vrot.lane.b32.xlu0 %v5316_v43, %s7566_s26  ;;  %v6313_v6 = vshrl.u32 %v9652_v25, 16  ;;  %v6316_v40 = vshll.u32 %v9652_v25, 16 }
 0x4f1   : > { %v5688_v59 = vor.u32 %v9645_v50, %v9640_v36  ;;  %v9702_v49 = vor.u32 %v4715_v14, %v4712_v1  ;;  %v9705_v48 = vmul.bf16 %v4669_v18, %v11193_v23  ;;  %v6181_v7 = vrot.slane %v6147_v21, 4 }
 0x4f2   : > { %v4545_v11 = vmax.f32 %v4513_v33, 0.0  ;;  %v5075_v36 = vsel %vm2006_vm2, %v9631_v4, %v9688_v54  ;;  %v5938_v50 = vor.u32 %v9694_v58, %v9692_v22  ;;  %v6315_v1 = vrot.slane %v6313_v6, 4  ;;  %v7484_v4 = vld [vmem:[%s10992_s7 + $0x18] sm:$0xff]  }
 0x4f3   : > { %v5697_v35 = vsel %vm2006_vm2, %v5688_v59, %v9686_v57  ;;  %v4717_v25 = vsel %vm2184_vm1, %v4708_v26, %v9702_v49  ;;  %v6318_v30 = vrot.slane %v6316_v40, 5  ;;  %v4722_v37 = vshll.u32 %v9705_v48, 16  ;;  %6655 = vmatpush1.bf16.msra.mxu0 %v7484_v4  ;;  %v11195_v4 = vld [vmem:[#allocation19_spill] sm:$0xff] }
 0x4f4   : > { %v9698_v31 = vpack.c.bf16 %v4545_v11, %v4544_v9  ;;  %v6279_v19 = vld [vmem:[#allocation3 + $0x18] sm:$0xff]  ;;  %5833 = vrot.lane.b32.xlu0 %v5697_v35, %s7567_s29  ;;  %4869 = vst.msk [vmem:[#allocation5] sm:$0xff] %vm379_vm0, %v4717_v25  ;;  %6656 = vmatprep.subr.bf16.mxu0 %v11188_v12 }
 0x4f5   : > { %v6296_v16 = vmul.bf16 %v6279_v19, %v11190_v47  ;;  %v9724_v56 = vrot.slane %v6279_v19, 4  ;;  %v5915_v45 = vmul.bf16 %v6279_v19, %v11191_v46  ;;  %v5285_v53 = vmul.bf16 %v6279_v19, %v11193_v23  ;;  %v11194_v46 = vld [vmem:[#allocation18_spill] sm:$0xff] }
 0x4f6   : > { %v4607_v2 = vrot.slane %v9698_v31, 4  ;;  %v5666_v60 = vmul.bf16 %v6279_v19, %v11192_v62  ;;  %v4719_v47 = vshrl.u32 %v9705_v48, 16  ;;  %v5036_v20 = vmul.bf16 %v6279_v19, %v11194_v46 }
 0x4f7   : > { %v5940_v51 = vshrl.u32 %v5915_v45, 16  ;;  %v5943_v52 = vshll.u32 %v5915_v45, 16  ;;  %v5318_v63 = vshrl.u32 %v5285_v53, 16  ;;  %v5321_v33 = vshll.u32 %v5285_v53, 16  ;;  %6657 = vmatpush1.bf16.msra.mxu0 %v7485_v10  ;;  %v11196_v10 = vld [vmem:[#allocation20_spill] sm:$0xff] }
 0x4f8   : > { %v4608_v0 = vsel %vm1886_vm3, %v4605_v5, %v4607_v2  ;;  %v6183_v5 = vsel %vm1886_vm3, %v6181_v7, %v9724_v56  ;;  %5204 = vrot.lane.b32.xlu0 %v5075_v36, %s7565_s12  ;;  %v6321_v38 = vshrl.u32 %v6296_v16, 16  ;;  %v6324_v14 = vshll.u32 %v6296_v16, 16  ;;  %6658 = vmatprep.subr.bf16.mxu0 %v11188_v12  ;;  %v7486_v36 = vld [vmem:[%s10992_s7 + $0x28] sm:$0xff]  }
 0x4f9   : > { %4653 = vst.msk [vmem:[#allocation3 + $0x20] sm:$0xff] %vm379_vm0, %v4608_v0  ;;  %v5942_v9 = vrot.slane %v5940_v51, 3  ;;  %v5945_v24 = vrot.slane %v5943_v52, 4  ;;  %v5699_v26 = vshrl.u32 %v5666_v60, 16  ;;  %v5702_v44 = vshll.u32 %v5666_v60, 16 }
 0x4fa   : > { %v5320_v11 = vrot.slane %v5318_v63, 3  ;;  %v5323_v43 = vrot.slane %v5321_v33, 4  ;;  %v6323_v18 = vrot.slane %v6321_v38, 4  ;;  %v6326_v21 = vrot.slane %v6324_v14, 5 }
 0x4fb   : > { %v9743_v22 = vor.u32 %v5945_v24, %v5942_v9  ;;  %v5701_v58 = vrot.slane %v5699_v26, 4  ;;  %v5704_v6 = vrot.slane %v5702_v44, 5  ;;  %v5077_v40 = vshrl.u32 %v5036_v20, 16  ;;  %6659 = vmatpush1.bf16.msra.mxu0 %v7486_v36 }
 0x4fc   : > { %6214 = vrot.lane.b32.xlu0 %v6183_v5, %s7563_s20  ;;  %v9746_v59 = vor.u32 %v5323_v43, %v5320_v11  ;;  %v6319_v48 = vor.u32 %v6318_v30, %v6315_v1  ;;  %v9748_v35 = vor.u32 %v6326_v21, %v6323_v18  ;;  %v5080_v19 = vshll.u32 %v5036_v20, 16  ;;  %6660 = vmatprep.subr.bf16.mxu0 %v11188_v12 }
 0x4fd   : > { %v5947_v25 = vsel %vm2184_vm1, %v5938_v50, %v9743_v22  ;;  %v5554_v1 = vsel %vm1886_vm3, %v9648_v39, %v9724_v56  ;;  %v4721_v0 = vrot.slane %v4719_v47, 3  ;;  %v9767_v50 = vor.u32 %v5704_v6, %v5701_v58  ;;  %v7487_v39 = vld [vmem:[%s10992_s7 + $0x30] sm:$0xff]  }
 0x4fe   : > { %6083 = vrot.lane.b32.xlu1 %v5947_v25, %s7568_s18  ;;  %v6328_v30 = vsel %vm2006_vm2, %v6319_v48, %v9748_v35  ;;  %v5079_v45 = vrot.slane %v5077_v40, 4  ;;  %v4724_v60 = vrot.slane %v4722_v37, 4  ;;  %v5082_v52 = vrot.slane %v5080_v19, 5  ;;  %v7488_v25 = vld [vmem:[%s10992_s7 + $0x38] sm:$0xff]   ;;  %v4670_v19 = vld [vmem:[#allocation3 + $0x18] sm:$0xff] }
 0x4ff   : > { %6480 = vst.msk [vmem:[#allocation5 + $0x8] sm:$0xff] %vm379_vm0, %v6328_v30  ;;  %6661 = vmatpush1.bf16.msra.mxu0 %v7487_v39  ;;  %v5706_v43 = vsel %vm2006_vm2, %v9686_v57, %v9767_v50  ;;  %v4687_v39 = vmul.bf16 %v4670_v19, %v11195_v4 }
 0x500   : > { %v9751_v7 = vld [vmem:[#allocation3 + $0x20] sm:$0xff]  ;;  %5585 = vrot.lane.b32.xlu0 %v5554_v1, %s7564_s21  ;;  %6662 = vmatprep.subr.bf16.mxu0 %v11188_v12  ;;  %v5083_v58 = vor.u32 %v5082_v52, %v5079_v45  ;;  %v4725_v48 = vor.u32 %v4724_v60, %v4721_v0 }
 0x501   : > { %v5916_v16 = vmul.bf16 %v9751_v7, %v11193_v23  ;;  %v5286_v53 = vmul.bf16 %v9751_v7, %v11195_v4  ;;  %v5325_v23 = vsel %vm2184_vm1, %v9677_v41, %v9746_v59  ;;  %v5667_v51 = vmul.bf16 %v9751_v7, %v11194_v46 }
 0x502   : > { %v5037_v63 = vmul.bf16 %v9751_v7, %v11196_v10  ;;  %5454 = vrot.lane.b32.xlu1 %v5325_v23, %s7566_s26  ;;  %v4365_v41 = vpop.f32.mrb[28].mxu1  ;;  %v4726_v60 = vsel %vm2184_vm1, %v9702_v49, %v4725_v48  ;;  %v7489_v23 = vld [vmem:[%s10992_s7 + $0x40] sm:$0xff]   ;;  %v5084_v49 = vsel %vm2006_vm2, %v9688_v54, %v5083_v58  ;;  %v4731_v52 = vshll.u32 %v4687_v39, 16 }
 0x503   : > { %v5949_v47 = vshrl.u32 %v5916_v16, 16  ;;  %v5952_v5 = vshll.u32 %v5916_v16, 16  ;;  %v5327_v37 = vshrl.u32 %v5286_v53, 16  ;;  %v5330_v20 = vshll.u32 %v5286_v53, 16  ;;  %v4367_v11 = vpop.f32.mrb[29].mxu1  ;;  %6663 = vmatpush1.bf16.msra.mxu0 %v7488_v25  ;;  %4870 = vst.msk [vmem:[#allocation5 + $0x10] sm:$0xff] %vm379_vm0, %v4726_v60 }
 0x504   : > { %v5708_v14 = vshrl.u32 %v5667_v51, 16  ;;  %v5711_v9 = vshll.u32 %v5667_v51, 16  ;;  %4956 = vrot.lane.b32.xlu0 %v5554_v1, %s11071_s11  ;;  %v4475_v44 = vmul.f32 %v9581_v27, %v4365_v41  ;;  %v4368_v21 = vpop.f32.mrb[30].mxu1  ;;  %v5086_v40 = vshrl.u32 %v5037_v63, 16  ;;  %6664 = vmatprep.subr.bf16.mxu0 %v11188_v12 }
 0x505   : > { %v5951_v33 = vrot.slane %v5949_v47, 3  ;;  %v5954_v38 = vrot.slane %v5952_v5, 4  ;;  %v5329_v24 = vrot.slane %v5327_v37, 3  ;;  %v5332_v26 = vrot.slane %v5330_v20, 4  ;;  %v4370_v57 = vpop.f32.mrb[31].mxu1 }
 0x506   : > { %v5710_v6 = vrot.slane %v5708_v14, 4  ;;  %v4514_v36 = vadd.f32 %v9586_v17, %v4475_v44  ;;  %v4476_v1 = vmul.f32 %v9581_v27, %v4368_v21  ;;  %v6497_v30 = vld [vmem:[#allocation5 + $0x8] sm:$0xff]  ;;  %5835 = vrot.lane.b32.xlu1 %v5706_v43, %s7567_s29  ;;  %v5713_v45 = vrot.slane %v5711_v9, 5 }
 0x507   : > { %v9789_v18 = vor.u32 %v5954_v38, %v5951_v33  ;;  %7177 = vmatprep.mubr.msk.bf16.mxu0 %vm379_vm0, %v6497_v30  ;;  %v9802_v0 = vor.u32 %v5332_v26, %v5329_v24  ;;  %v5089_v53 = vshll.u32 %v5037_v63, 16  ;;  %v6297_v47 = vmul.bf16 %v9751_v7, %v11192_v62  ;;  %6665 = vmatpush1.bf16.msra.mxu0 %v7489_v23 }
 0x508   : > { %v6184_v5 = vrot.slane %v9751_v7, 4  ;;  %v4728_v51 = vshrl.u32 %v4687_v39, 16  ;;  %v4546_v37 = vmax.f32 %v4514_v36, 0.0  ;;  %v9820_v62 = vor.u32 %v5713_v45, %v5710_v6 }
 0x509   : > { %v5956_v16 = vsel %vm2184_vm1, %v9743_v22, %v9789_v18  ;;  %v4515_v22 = vadd.f32 %v9586_v17, %v4476_v1  ;;  %v5088_v63 = vrot.slane %v5086_v40, 4  ;;  %v5334_v33 = vsel %vm2184_vm1, %v9746_v59, %v9802_v0  ;;  %v11197_v1 = vld [vmem:[#allocation21_spill] sm:$0xff] }
 0x50a   : > { %6085 = vrot.lane.b32.xlu0 %v5956_v16, %s7568_s18  ;;  %5206 = vrot.lane.b32.xlu1 %v5084_v49, %s7565_s12  ;;  %v5091_v38 = vrot.slane %v5089_v53, 5  ;;  %v4730_v12 = vrot.slane %v4728_v51, 3  ;;  %v4733_v14 = vrot.slane %v4731_v52, 4  ;;  %v6185_v7 = vsel %vm1886_vm3, %v9724_v56, %v6184_v5  ;;  %v11198_v53 = vld [vmem:[#allocation22_spill] sm:$0xff] }
 0x50b   : > { %v4547_v20 = vmax.f32 %v4515_v22, 0.0  ;;  %v6330_v41 = vshrl.u32 %v6297_v47, 16  ;;  %v6333_v24 = vshll.u32 %v6297_v47, 16  ;;  %v5715_v59 = vsel %vm2006_vm2, %v9767_v50, %v9820_v62  ;;  %v4671_v52 = vld [vmem:[#allocation3 + $0x20] sm:$0xff] }
 0x50c   : > { %v9830_v9 = vor.u32 %v4733_v14, %v4730_v12  ;;  %v9837_v44 = vor.u32 %v5091_v38, %v5088_v63 }
 0x50d   : > { %v9825_v54 = vpack.c.bf16 %v4547_v20, %v4546_v37  ;;  %v6332_v43 = vrot.slane %v6330_v41, 4  ;;  %v6335_v21 = vrot.slane %v6333_v24, 5 }
 0x50e   : > { %5456 = vrot.lane.b32.xlu0 %v5334_v33, %s7566_s26  ;;  %6216 = vrot.lane.b32.xlu1 %v6185_v7, %s7563_s20  ;;  %v4735_v11 = vsel %vm2184_vm1, %v4725_v48, %v9830_v9  ;;  %v5093_v6 = vsel %vm2006_vm2, %v5083_v58, %v9837_v44 }
 0x50f   : > { %v4609_v26 = vrot.slane %v9825_v54, 4  ;;  %4871 = vst.msk [vmem:[#allocation5 + $0x20] sm:$0xff] %vm379_vm0, %v4735_v11  ;;  %v9849_v50 = vor.u32 %v6335_v21, %v6332_v43  ;;  %v4688_v11 = vmul.bf16 %v4671_v52, %v11197_v1 }
 0x511   : > { %v4610_v56 = vsel %vm1886_vm3, %v4607_v2, %v4609_v26  ;;  %v6337_v40 = vsel %vm2006_vm2, %v9748_v35, %v9849_v50 }
 0x512   : > { %5837 = vrot.lane.b32.xlu0 %v5715_v59, %s7567_s29  ;;  %4654 = vst.msk [vmem:[#allocation3 + $0x28] sm:$0xff] %vm379_vm0, %v4610_v56  ;;  %5587 = vrot.lane.b32.xlu1 %v6185_v7, %s7564_s21  ;;  %6481 = vst.msk [vmem:[#allocation5 + $0x18] sm:$0xff] %vm379_vm0, %v6337_v40 }
 0x516   : > { %5208 = vrot.lane.b32.xlu0 %v5093_v6, %s7565_s12  ;;  %4958 = vrot.lane.b32.xlu1 %v6185_v7, %s11071_s11  ;;  %v4373_v31 = vpop.f32.mrb[32].mxu1 }
 0x517   : > { %v4477_v48 = vmul.f32 %v9581_v27, %v4373_v31  ;;  %v4375_v25 = vpop.f32.mrb[33].mxu1 }
 0x518   : > { %v4376_v19 = vpop.f32.mrb[34].mxu1 }
 0x519   : > { %v9860_v2 = vld [vmem:[#allocation3 + $0x28] sm:$0xff]  ;;  %v4516_v30 = vadd.f32 %v9586_v17, %v4477_v48  ;;  %v4478_v57 = vmul.f32 %v9581_v27, %v4376_v19  ;;  %v4378_v16 = vpop.f32.mrb[35].mxu1  ;;  %v4737_v19 = vshrl.u32 %v4688_v11, 16 }
 0x51a   : > { %v6186_v36 = vrot.slane %v9860_v2, 4  ;;  %v5917_v58 = vmul.bf16 %v9860_v2, %v11195_v4  ;;  %v5287_v35 = vmul.bf16 %v9860_v2, %v11197_v1  ;;  %v5668_v45 = vmul.bf16 %v9860_v2, %v11196_v10 }
 0x51b   : > { %v5038_v60 = vmul.bf16 %v9860_v2, %v11198_v53  ;;  %v4517_v22 = vadd.f32 %v9586_v17, %v4478_v57  ;;  %v4548_v38 = vmax.f32 %v4516_v30, 0.0  ;;  %v6298_v43 = vmul.bf16 %v9860_v2, %v11194_v46  ;;  %v4672_v57 = vld [vmem:[#allocation3 + $0x28] sm:$0xff] }
 0x51c   : > { %v6187_v39 = vsel %vm1886_vm3, %v6184_v5, %v6186_v36  ;;  %v5958_v23 = vshrl.u32 %v5917_v58, 16  ;;  %v5961_v4 = vshll.u32 %v5917_v58, 16  ;;  %v5336_v47 = vshrl.u32 %v5287_v35, 16 }
 0x51d   : > { %6218 = vrot.lane.b32.xlu0 %v6187_v39, %s7563_s20  ;;  %v5339_v49 = vshll.u32 %v5287_v35, 16  ;;  %v5717_v51 = vshrl.u32 %v5668_v45, 16  ;;  %v5720_v33 = vshll.u32 %v5668_v45, 16  ;;  %v4549_v12 = vmax.f32 %v4517_v22, 0.0 }
 0x51e   : > { %v5960_v37 = vrot.slane %v5958_v23, 3  ;;  %v5963_v20 = vrot.slane %v5961_v4, 4  ;;  %v5338_v63 = vrot.slane %v5336_v47, 3  ;;  %v4381_v41 = vpop.f32.mrb[36].mxu1  ;;  %v5095_v59 = vshrl.u32 %v5038_v60, 16 }
 0x51f   : > { %v5341_v14 = vrot.slane %v5339_v49, 4  ;;  %v5719_v7 = vrot.slane %v5717_v51, 4  ;;  %v5722_v24 = vrot.slane %v5720_v33, 5  ;;  %v4575_v21 = vpack.c.bf16 %v4549_v12, %v4548_v38  ;;  %v4383_v6 = vpop.f32.mrb[37].mxu1 }
 0x520   : > { %v9879_v5 = vor.u32 %v5963_v20, %v5960_v37  ;;  %v4479_v56 = vmul.f32 %v9581_v27, %v4381_v41  ;;  %v5098_v40 = vshll.u32 %v5038_v60, 16  ;;  %v4384_v48 = vpop.f32.mrb[38].mxu1  ;;  %v5097_v45 = vrot.slane %v5095_v59, 4  ;;  %v11199_v37 = vld [vmem:[#allocation25_spill] sm:$0xff] }
 0x521   : > { %5589 = vrot.lane.b32.xlu0 %v6187_v39, %s7564_s21  ;;  %v9889_v25 = vor.u32 %v5341_v14, %v5338_v63  ;;  %v4611_v58 = vrot.slane %v4575_v21, 4  ;;  %v4480_v46 = vmul.f32 %v9581_v27, %v4384_v48  ;;  %v4386_v30 = vpop.f32.mrb[39].mxu1  ;;  %v9894_v16 = vor.u32 %v5722_v24, %v5719_v7 }
 0x522   : > { %v5965_v31 = vsel %vm2184_vm1, %v9789_v18, %v9879_v5  ;;  %v4518_v35 = vadd.f32 %v9586_v17, %v4479_v56  ;;  %v4739_v60 = vrot.slane %v4737_v19, 3  ;;  %v4740_v23 = vshll.u32 %v4688_v11, 16 }
 0x523   : > { %6087 = vrot.lane.b32.xlu1 %v5965_v31, %s7568_s18  ;;  %v4612_v18 = vsel %vm1886_vm3, %v4609_v26, %v4611_v58  ;;  %v4519_v4 = vadd.f32 %v9586_v17, %v4480_v46  ;;  %v5100_v47 = vrot.slane %v5098_v40, 5  ;;  %v6339_v22 = vshrl.u32 %v6298_v43, 16 }
 0x524   : > { %4655 = vst.msk [vmem:[#allocation3 + $0x30] sm:$0xff] %vm379_vm0, %v4612_v18  ;;  %v5343_v49 = vsel %vm2184_vm1, %v9802_v0, %v9889_v25  ;;  %v4742_v51 = vrot.slane %v4740_v23, 4  ;;  %v6342_v52 = vshll.u32 %v6298_v43, 16  ;;  %v4689_v20 = vmul.bf16 %v4672_v57, %v11199_v37 }
 0x525   : > { %4960 = vrot.lane.b32.xlu0 %v6187_v39, %s11071_s11  ;;  %v4550_v63 = vmax.f32 %v4518_v35, 0.0  ;;  %v4551_v54 = vmax.f32 %v4519_v4, 0.0  ;;  %v6341_v26 = vrot.slane %v6339_v22, 4  ;;  %v5724_v0 = vsel %vm2006_vm2, %v9820_v62, %v9894_v16 }
 0x526   : > { %v4389_v33 = vpop.f32.mrb[40].mxu1  ;;  %v4743_v38 = vor.u32 %v4742_v51, %v4739_v60  ;;  %v6344_v39 = vrot.slane %v6342_v52, 5  ;;  %v4746_v12 = vshrl.u32 %v4689_v20, 16  ;;  %v4749_v14 = vshll.u32 %v4689_v20, 16 }
 0x527   : > { %5458 = vrot.lane.b32.xlu1 %v5343_v49, %s7566_s26  ;;  %v4576_v7 = vpack.c.bf16 %v4551_v54, %v4550_v63  ;;  %v4481_v41 = vmul.f32 %v9581_v27, %v4389_v33  ;;  %v4391_v24 = vpop.f32.mrb[41].mxu1  ;;  %v9911_v59 = vor.u32 %v5100_v47, %v5097_v45 }
 0x528   : > { %v4392_v11 = vpop.f32.mrb[42].mxu1  ;;  %v4744_v43 = vsel %vm2184_vm1, %v9830_v9, %v4743_v38  ;;  %v9915_v21 = vor.u32 %v6344_v39, %v6341_v26  ;;  %v4748_v56 = vrot.slane %v4746_v12, 3  ;;  %v4751_v6 = vrot.slane %v4749_v14, 4 }
 0x529   : > { %v4613_v40 = vrot.slane %v4576_v7, 4  ;;  %v4520_v31 = vadd.f32 %v9586_v17, %v4481_v41  ;;  %v4482_v48 = vmul.f32 %v9581_v27, %v4392_v11  ;;  %v4394_v19 = vpop.f32.mrb[43].mxu1  ;;  %4872 = vst.msk [vmem:[#allocation5 + $0x30] sm:$0xff] %vm379_vm0, %v4744_v43  ;;  %v5102_v57 = vsel %vm2006_vm2, %v9837_v44, %v9911_v59  ;;  %v11200_v44 = vld [vmem:[#allocation26_spill] sm:$0xff] }
 0x52a   : > { %v6346_v62 = vsel %vm2006_vm2, %v9849_v50, %v9915_v21  ;;  %v9924_v35 = vor.u32 %v4751_v6, %v4748_v56 }
 0x52b   : > { %5839 = vrot.lane.b32.xlu1 %v5724_v0, %s7567_s29  ;;  %v9926_v9 = vld [vmem:[#allocation3 + $0x30] sm:$0xff]  ;;  %v4614_v46 = vsel %vm1886_vm3, %v4611_v58, %v4613_v40  ;;  %v4521_v30 = vadd.f32 %v9586_v17, %v4482_v48  ;;  %6482 = vst.msk [vmem:[#allocation5 + $0x28] sm:$0xff] %vm379_vm0, %v6346_v62  ;;  %v4552_v45 = vmax.f32 %v4520_v31, 0.0 }
 0x52c   : > { %4656 = vst.msk [vmem:[#allocation3 + $0x38] sm:$0xff] %vm379_vm0, %v4614_v46  ;;  %v6188_v60 = vrot.slane %v9926_v9, 4  ;;  %v5918_v50 = vmul.bf16 %v9926_v9, %v11197_v1  ;;  %v5288_v23 = vmul.bf16 %v9926_v9, %v11199_v37  ;;  %v5669_v18 = vmul.bf16 %v9926_v9, %v11198_v53 }
 0x52d   : > { %v4553_v58 = vmax.f32 %v4521_v30, 0.0  ;;  %v5039_v4 = vmul.bf16 %v9926_v9, %v11200_v44  ;;  %v4753_v47 = vsel %vm2184_vm1, %v4743_v38, %v9924_v35 }
 0x52e   : > { %v4397_v22 = vpop.f32.mrb[44].mxu1  ;;  %v6189_v1 = vsel %vm1886_vm3, %v6186_v36, %v6188_v60  ;;  %v5967_v49 = vshrl.u32 %v5918_v50, 16  ;;  %v5970_v51 = vshll.u32 %v5918_v50, 16  ;;  %v5345_v52 = vshrl.u32 %v5288_v23, 16  ;;  %4873 = vst.msk [vmem:[#allocation5 + $0x40] sm:$0xff] %vm379_vm0, %v4753_v47 }
 0x52f   : > { %5210 = vrot.lane.b32.xlu1 %v5102_v57, %s7565_s12  ;;  %v4577_v20 = vpack.c.bf16 %v4553_v58, %v4552_v45  ;;  %v4483_v63 = vmul.f32 %v9581_v27, %v4397_v22  ;;  %v4399_v54 = vpop.f32.mrb[45].mxu1  ;;  %v5348_v26 = vshll.u32 %v5288_v23, 16  ;;  %v5726_v33 = vshrl.u32 %v5669_v18, 16  ;;  %v11201_v22 = vld [vmem:[#allocation27_spill] sm:$0xff] }
 0x530   : > { %v4400_v39 = vpop.f32.mrb[46].mxu1  ;;  %v5969_v38 = vrot.slane %v5967_v49, 3  ;;  %v5972_v12 = vrot.slane %v5970_v51, 4  ;;  %v5347_v14 = vrot.slane %v5345_v52, 3  ;;  %v5729_v7 = vshll.u32 %v5669_v18, 16 }
 0x531   : > { %v4615_v41 = vrot.slane %v4577_v20, 4  ;;  %v4522_v2 = vadd.f32 %v9586_v17, %v4483_v63  ;;  %v4484_v36 = vmul.f32 %v9581_v27, %v4400_v39  ;;  %v4402_v24 = vpop.f32.mrb[47].mxu1  ;;  %v5350_v0 = vrot.slane %v5348_v26, 4 }
 0x532   : > { %v5973_v11 = vor.u32 %v5972_v12, %v5969_v38  ;;  %v5728_v43 = vrot.slane %v5726_v33, 4  ;;  %v5731_v56 = vrot.slane %v5729_v7, 5  ;;  %v5104_v62 = vshrl.u32 %v5039_v4, 16 }
 0x533   : > { %6220 = vrot.lane.b32.xlu1 %v6189_v1, %s7563_s20  ;;  %v9957_v6 = vld [vmem:[#allocation3 + $0x38] sm:$0xff]  ;;  %v4616_v31 = vsel %vm1886_vm3, %v4613_v40, %v4615_v41  ;;  %v4523_v48 = vadd.f32 %v9586_v17, %v4484_v36  ;;  %v5351_v19 = vor.u32 %v5350_v0, %v5347_v14  ;;  %v4554_v57 = vmax.f32 %v4522_v2, 0.0 }
 0x534   : > { %4657 = vst.msk [vmem:[#allocation3 + $0x40] sm:$0xff] %vm379_vm0, %v4616_v31  ;;  %v5974_v46 = vsel %vm2184_vm1, %v9879_v5, %v5973_v11  ;;  %v5919_v30 = vmul.bf16 %v9957_v6, %v11199_v37  ;;  %v9968_v50 = vor.u32 %v5731_v56, %v5728_v43  ;;  %v5107_v40 = vshll.u32 %v5039_v4, 16 }
 0x535   : > { %v4555_v45 = vmax.f32 %v4523_v48, 0.0  ;;  %6089 = vrot.lane.b32.xlu0 %v5974_v46, %s7568_s18  ;;  %v5352_v58 = vsel %vm2184_vm1, %v9889_v25, %v5351_v19  ;;  %v5289_v5 = vmul.bf16 %v9957_v6, %v11201_v22  ;;  %v5106_v52 = vrot.slane %v5104_v62, 4 }
 0x536   : > { %v4405_v23 = vpop.f32.mrb[48].mxu1  ;;  %v5976_v18 = vshrl.u32 %v5919_v30, 16  ;;  %v5979_v47 = vshll.u32 %v5919_v30, 16  ;;  %v5109_v20 = vrot.slane %v5107_v40, 5  ;;  %v5733_v0 = vsel %vm2006_vm2, %v9894_v16, %v9968_v50 }
 0x537   : > { %5591 = vrot.lane.b32.xlu1 %v6189_v1, %s7564_s21  ;;  %v4578_v49 = vpack.c.bf16 %v4555_v45, %v4554_v57  ;;  %v4485_v37 = vmul.f32 %v9581_v27, %v4405_v23  ;;  %v4407_v51 = vpop.f32.mrb[49].mxu1  ;;  %v5354_v33 = vshrl.u32 %v5289_v5, 16  ;;  %v5357_v4 = vshll.u32 %v5289_v5, 16 }
 0x538   : > { %v4408_v63 = vpop.f32.mrb[50].mxu1  ;;  %v5978_v54 = vrot.slane %v5976_v18, 3  ;;  %v5981_v26 = vrot.slane %v5979_v47, 4  ;;  %v5670_v31 = vmul.bf16 %v9957_v6, %v11200_v44  ;;  %v6190_v62 = vrot.slane %v9957_v6, 4  ;;  %v11203_v51 = vld [vmem:[#allocation28_spill] sm:$0xff] }
 0x539   : > { %v4617_v39 = vrot.slane %v4578_v49, 4  ;;  %v4524_v38 = vadd.f32 %v9586_v17, %v4485_v37  ;;  %v4486_v25 = vmul.f32 %v9581_v27, %v4408_v63  ;;  %5460 = vrot.lane.b32.xlu0 %v5352_v58, %s7566_s26  ;;  %v4410_v12 = vpop.f32.mrb[51].mxu1  ;;  %v5356_v7 = vrot.slane %v5354_v33, 3 }
 0x53a   : > { %v9979_v14 = vor.u32 %v5981_v26, %v5978_v54  ;;  %v5359_v2 = vrot.slane %v5357_v4, 4  ;;  %v5735_v46 = vshrl.u32 %v5670_v31, 16  ;;  %v5738_v30 = vshll.u32 %v5670_v31, 16 }
 0x53b   : > { %4962 = vrot.lane.b32.xlu1 %v6189_v1, %s11071_s11  ;;  %v4618_v36 = vsel %vm1886_vm3, %v4615_v41, %v4617_v39  ;;  %v4525_v24 = vadd.f32 %v9586_v17, %v4486_v25  ;;  %v9986_v43 = vld [vmem:[#allocation3 + $0x40] sm:$0xff]  ;;  %v5110_v1 = vor.u32 %v5109_v20, %v5106_v52  ;;  %v4556_v41 = vmax.f32 %v4524_v38, 0.0  ;;  %v11202_v17 = vld [vmem:[#allocation29_spill] sm:$0xff] }
 0x53c   : > { %4658 = vst.msk [vmem:[#allocation3 + $0x48] sm:$0xff] %vm379_vm0, %v4618_v36  ;;  %v5983_v27 = vsel %vm2184_vm1, %v5973_v11, %v9979_v14  ;;  %v9991_v56 = vor.u32 %v5359_v2, %v5356_v7  ;;  %v5040_v16 = vmul.bf16 %v9957_v6, %v11202_v17  ;;  %v5920_v40 = vmul.bf16 %v9986_v43, %v11201_v22  ;;  %v11204_v36 = vld [vmem:[#allocation30_spill] sm:$0xff] }
 0x53d   : > { %v4557_v48 = vmax.f32 %v4525_v24, 0.0  ;;  %5841 = vrot.lane.b32.xlu0 %v5733_v0, %s7567_s29  ;;  %v5111_v23 = vsel %vm2006_vm2, %v9911_v59, %v5110_v1  ;;  %v5737_v18 = vrot.slane %v5735_v46, 4  ;;  %v5740_v47 = vrot.slane %v5738_v30, 5  ;;  %v11205_v24 = vld [vmem:[#allocation31_spill] sm:$0xff] }
 0x53e   : > { %v5113_v57 = vshrl.u32 %v5040_v16, 16  ;;  %v5116_v45 = vshll.u32 %v5040_v16, 16  ;;  %v5361_v58 = vsel %vm2184_vm1, %v5351_v19, %v9991_v56  ;;  %v5290_v52 = vmul.bf16 %v9986_v43, %v11203_v51 }
 0x53f   : > { %6091 = vrot.lane.b32.xlu1 %v5983_v27, %s7568_s18  ;;  %v10000_v11 = vpack.c.bf16 %v4557_v48, %v4556_v41  ;;  %v10013_v20 = vor.u32 %v5740_v47, %v5737_v18  ;;  %v5985_v19 = vshrl.u32 %v5920_v40, 16  ;;  %v5988_v54 = vshll.u32 %v5920_v40, 16 }
 0x540   : > { %v5115_v49 = vrot.slane %v5113_v57, 4  ;;  %v5118_v37 = vrot.slane %v5116_v45, 5  ;;  %v5671_v26 = vmul.bf16 %v9986_v43, %v11202_v17  ;;  %v6191_v33 = vsel %vm1886_vm3, %v6188_v60, %v6190_v62 }
 0x541   : > { %v4619_v5 = vrot.slane %v10000_v11, 4  ;;  %5212 = vrot.lane.b32.xlu0 %v5111_v23, %s7565_s12  ;;  %v5742_v4 = vsel %vm2006_vm2, %v9968_v50, %v10013_v20  ;;  %v5366_v25 = vshll.u32 %v5290_v52, 16  ;;  %v5041_v60 = vmul.bf16 %v9986_v43, %v11204_v36 }
 0x542   : > { %v10029_v38 = vor.u32 %v5118_v37, %v5115_v49  ;;  %v5744_v7 = vshrl.u32 %v5671_v26, 16  ;;  %v5747_v2 = vshll.u32 %v5671_v26, 16  ;;  %v6192_v50 = vrot.slane %v9986_v43, 4 }
 0x543   : > { %5462 = vrot.lane.b32.xlu1 %v5361_v58, %s7566_s26  ;;  %v10015_v63 = vld [vmem:[#allocation3 + $0x48] sm:$0xff]  ;;  %v4620_v59 = vsel %vm1886_vm3, %v4617_v39, %v4619_v5  ;;  %v5363_v39 = vshrl.u32 %v5290_v52, 16  ;;  %v5987_v27 = vrot.slane %v5985_v19, 3  ;;  %v5990_v31 = vrot.slane %v5988_v54, 4  ;;  %v11206_v54 = vld [vmem:[#allocation34_spill] sm:$0xff] }
 0x544   : > { %4659 = vst.msk [vmem:[#allocation3 + $0x50] sm:$0xff] %vm379_vm0, %v4620_v59  ;;  %v5921_v12 = vmul.bf16 %v10015_v63, %v11203_v51  ;;  %v5291_v0 = vmul.bf16 %v10015_v63, %v11205_v24  ;;  %v5120_v48 = vsel %vm2006_vm2, %v5110_v1, %v10029_v38  ;;  %v5122_v46 = vshrl.u32 %v5041_v60, 16 }
 0x545   : > { %6222 = vrot.lane.b32.xlu0 %v6191_v33, %s7563_s20  ;;  %v5125_v30 = vshll.u32 %v5041_v60, 16  ;;  %v10044_v57 = vmul.bf16 %v9926_v9, %v11196_v10  ;;  %v5365_v23 = vrot.slane %v5363_v39, 3  ;;  %v5368_v58 = vrot.slane %v5366_v25, 4 }
 0x546   : > { %v5994_v41 = vshrl.u32 %v5921_v12, 16  ;;  %v5997_v16 = vshll.u32 %v5921_v12, 16  ;;  %v5372_v45 = vshrl.u32 %v5291_v0, 16  ;;  %v5375_v40 = vshll.u32 %v5291_v0, 16 }
 0x547   : > { %5843 = vrot.lane.b32.xlu1 %v5742_v4, %s7567_s29  ;;  %v5746_v18 = vrot.slane %v5744_v7, 4  ;;  %v5749_v47 = vrot.slane %v5747_v2, 5  ;;  %v6193_v49 = vsel %vm1886_vm3, %v6190_v62, %v6192_v50  ;;  %v5991_v1 = vor.u32 %v5990_v31, %v5987_v27 }
 0x548   : > { %v5996_v37 = vrot.slane %v5994_v41, 3  ;;  %v5672_v52 = vmul.bf16 %v10015_v63, %v11204_v36  ;;  %v5999_v10 = vrot.slane %v5997_v16, 4  ;;  %v5124_v9 = vrot.slane %v5122_v46, 4 }
 0x549   : > { %5593 = vrot.lane.b32.xlu0 %v6191_v33, %s7564_s21  ;;  %v5127_v19 = vrot.slane %v5125_v30, 5  ;;  %v5042_v26 = vmul.bf16 %v10015_v63, %v11206_v54  ;;  %v5374_v4 = vrot.slane %v5372_v45, 3  ;;  %v5377_v39 = vrot.slane %v5375_v40, 4 }
 0x54a   : > { %v5753_v62 = vshrl.u32 %v5672_v52, 16  ;;  %v5756_v25 = vshll.u32 %v5672_v52, 16  ;;  %v5369_v12 = vor.u32 %v5368_v58, %v5365_v23  ;;  %v5750_v7 = vor.u32 %v5749_v47, %v5746_v18  ;;  %v11207_v18 = vld [vmem:[#allocation32_spill] sm:$0xff] }
 0x54b   : > { %5214 = vrot.lane.b32.xlu1 %v5120_v48, %s7565_s12  ;;  %v10051_v59 = vld [vmem:[#allocation3 + $0x50] sm:$0xff]  ;;  %v5131_v2 = vshrl.u32 %v5042_v26, 16  ;;  %v5134_v60 = vshll.u32 %v5042_v26, 16  ;;  %v6194_v0 = vrot.slane %v10015_v63, 4  ;;  %v5992_v16 = vsel %vm2184_vm1, %v9979_v14, %v5991_v1 }
 0x54c   : > { %v5755_v27 = vrot.slane %v5753_v62, 4  ;;  %v5758_v31 = vrot.slane %v5756_v25, 5  ;;  %v5922_v41 = vmul.bf16 %v10051_v59, %v11205_v24  ;;  %v10066_v46 = vor.u32 %v5999_v10, %v5996_v37  ;;  %v4673_v25 = vld [vmem:[#allocation3 + $0x30] sm:$0xff] }
 0x54d   : > { %4964 = vrot.lane.b32.xlu0 %v6191_v33, %s11071_s11  ;;  %v10062_v33 = vmul.bf16 %v9957_v6, %v11198_v53  ;;  %v5128_v30 = vor.u32 %v5127_v19, %v5124_v9  ;;  %v10071_v45 = vor.u32 %v5377_v39, %v5374_v4  ;;  %v5133_v40 = vrot.slane %v5131_v2, 4 }
 0x54e   : > { %v5136_v23 = vrot.slane %v5134_v60, 5  ;;  %v11070_v53 = vrot.slane %v10051_v59, 4  ;;  %v10076_v6 = vmul.bf16 %v9986_v43, %v11200_v44  ;;  %v10080_v14 = vmul.bf16 %v10015_v63, %v11202_v17 }
 0x54f   : > { %6224 = vrot.lane.b32.xlu1 %v6193_v49, %s7563_s20  ;;  %v4953_v48 = vpop.permute.xlu0 %4952  ;;  %v5370_v58 = vsel %vm2184_vm1, %v9991_v56, %v5369_v12  ;;  %v5292_v47 = vmul.bf16 %v10051_v59, %v11207_v18  ;;  %v5751_v37 = vsel %vm2006_vm2, %v10013_v20, %v5750_v7  ;;  %v10089_v52 = vsel %vm1886_vm3, %v6192_v50, %v6194_v0 }
 0x550   : > { %5000 = vst.msk [vmem:[#allocation5] sm:$0xff] %vm2484_vm4, %v4953_v48  ;;  %v10091_v10 = vor.u32 %v5758_v31, %v5755_v27  ;;  %v6003_v44 = vshrl.u32 %v5922_v41, 16  ;;  %v6001_v43 = vsel %vm2184_vm1, %v5991_v1, %v10066_v46  ;;  %v5129_v17 = vsel %vm2006_vm2, %v10029_v38, %v5128_v30  ;;  %v10115_v38 = vld [vmem:[%s10990_s5] ss:$0 sm:$0xff] }
 0x551   : > { %6093 = vrot.lane.b32.xlu0 %v5992_v16, %s7568_s18  ;;  %v6006_v63 = vshll.u32 %v5922_v41, 16  ;;  %v10099_v56 = vmul.bf16 %v10051_v59, %v11206_v54  ;;  %v5379_v50 = vsel %vm2184_vm1, %v5369_v12, %v10071_v45  ;;  %v10105_v9 = vor.u32 %v5136_v23, %v5133_v40  ;;  %v10132_v41 = vld [vmem:[%s10991_s6] ss:$0 sm:$0xff] }
 0x552   : > { %v10110_v1 = vsel %vm1886_vm3, %v6194_v0, %v11070_v53  ;;  %v5381_v4 = vshrl.u32 %v5292_v47, 16  ;;  %v5384_v39 = vshll.u32 %v5292_v47, 16  ;;  %v6348_v62 = vshrl.u32 %v10044_v57, 16  ;;  %v11208_v0 = vld [vmem:[#allocation33_spill] sm:$0xff] }
 0x553   : > { %5595 = vrot.lane.b32.xlu1 %v6193_v49, %s7564_s21  ;;  %v5760_v2 = vsel %vm2006_vm2, %v5750_v7, %v10091_v10  ;;  %v10122_v60 = vrot.slane %v6003_v44, 3  ;;  %v10126_v27 = vmul.bf16 %v10051_v59, %v11208_v0  ;;  %v6351_v31 = vshll.u32 %v10044_v57, 16 }
 0x554   : > { %v10136_v23 = vrot.slane %v6006_v63, 4  ;;  %v10143_v57 = vsel %vm2006_vm2, %v5128_v30, %v10105_v9  ;;  %v4690_v44 = vmul.bf16 %v4673_v25, %v11201_v22  ;;  %v10147_v63 = vrot.slane %v5381_v4, 3 }
 0x555   : > { %5464 = vrot.lane.b32.xlu0 %v5370_v58, %s7566_s26  ;;  %v4413_v20 = vpop.f32.mrb[52].mxu1  ;;  %v5203_v26 = vpop.permute.xlu1 %5202  ;;  %v6350_v58 = vrot.slane %v6348_v62, 4  ;;  %v6353_v47 = vrot.slane %v6351_v31, 5  ;;  %v6360_v62 = vshll.u32 %v10062_v33, 16  ;;  %v6366_v31 = vshrl.u32 %v10076_v6, 16 }
 0x556   : > { %v4487_v19 = vmul.f32 %v10115_v38, %v4413_v20  ;;  %5250 = vst.msk [vmem:[#allocation5] sm:$0xff] %vm2895_vm10, %v5203_v26  ;;  %v4674_v20 = vld [vmem:[#allocation3 + $0x38] sm:$0xff]  ;;  %v4758_v53 = vshll.u32 %v4690_v44, 16 }
 0x557   : > { %4966 = vrot.lane.b32.xlu1 %v6193_v49, %s11071_s11  ;;  %v4415_v49 = vpop.f32.mrb[53].mxu1  ;;  %v4691_v22 = vmul.bf16 %v4674_v20, %v11203_v51  ;;  %v4675_v20 = vld [vmem:[#allocation3 + $0x40] sm:$0xff] }
 0x558   : > { %v4416_v12 = vpop.f32.mrb[54].mxu1  ;;  %v4526_v48 = vadd.f32 %v10132_v41, %v4487_v19  ;;  %v10149_v49 = vrot.slane %v5384_v39, 4  ;;  %v4760_v25 = vrot.slane %v4758_v53, 4  ;;  %v6369_v53 = vshll.u32 %v10076_v6, 16 }
 0x559   : > { %v4488_v16 = vmul.f32 %v10115_v38, %v4416_v12  ;;  %v4418_v40 = vpop.f32.mrb[55].mxu1  ;;  %5845 = vrot.lane.b32.xlu0 %v5751_v37, %s7567_s29  ;;  %v6357_v37 = vshrl.u32 %v10062_v33, 16  ;;  %v6362_v33 = vrot.slane %v6360_v62, 5  ;;  %v4767_v51 = vshll.u32 %v4691_v22, 16 }
 0x55a   : > { %v4558_v12 = vmax.f32 %v4526_v48, 0.0  ;;  %v4755_v40 = vshrl.u32 %v4690_v44, 16 }
 0x55b   : > { %6095 = vrot.lane.b32.xlu1 %v6001_v43, %s7568_s18  ;;  %v4527_v19 = vadd.f32 %v10132_v41, %v4488_v16  ;;  %v6354_v43 = vor.u32 %v6353_v47, %v6350_v58  ;;  %v6359_v7 = vrot.slane %v6357_v37, 4  ;;  %v4764_v47 = vshrl.u32 %v4691_v22, 16 }
 0x55c   : > { %v5584_v26 = vpop.permute.xlu1 %5583  ;;  %v4757_v39 = vrot.slane %v4755_v40, 3 }
 0x55d   : > { %v4559_v30 = vmax.f32 %v4527_v19, 0.0  ;;  %5216 = vrot.lane.b32.xlu0 %v5129_v17, %s7565_s12  ;;  %v6355_v4 = vsel %vm2006_vm2, %v9915_v21, %v6354_v43  ;;  %v6368_v21 = vrot.slane %v6366_v31, 4  ;;  %v4766_v40 = vrot.slane %v4764_v47, 3 }
 0x55e   : > { %6483 = vst.msk [vmem:[#allocation5 + $0x38] sm:$0xff] %vm379_vm0, %v6355_v4  ;;  %v4761_v44 = vor.u32 %v4760_v25, %v4757_v39  ;;  %v6371_v25 = vrot.slane %v6369_v53, 5 }
 0x55f   : > { %5466 = vrot.lane.b32.xlu1 %v5379_v50, %s7566_s26  ;;  %v10159_v48 = vpack.c.bf16 %v4559_v30, %v4558_v12  ;;  %v4421_v58 = vpop.f32.mrb[56].mxu1  ;;  %v6363_v12 = vor.u32 %v6362_v33, %v6359_v7  ;;  %v4769_v30 = vrot.slane %v4767_v51, 4  ;;  %v6378_v51 = vshll.u32 %v10080_v14, 16 }
 0x560   : > { %v4955_v16 = vpop.permute.xlu1 %4954  ;;  %v4489_v17 = vmul.f32 %v10115_v38, %v4421_v58  ;;  %v4423_v50 = vpop.f32.mrb[57].mxu1  ;;  %v4762_v6 = vsel %vm2184_vm1, %v9924_v35, %v4761_v44  ;;  %v5765_v58 = vshll.u32 %v10099_v56, 16  ;;  %v6372_v11 = vor.u32 %v6371_v25, %v6368_v21 }
 0x561   : > { %5001 = vst.msk [vmem:[#allocation5 + $0x10] sm:$0xff] %vm2484_vm4, %v4955_v16  ;;  %v4621_v19 = vrot.slane %v10159_v48, 4  ;;  %v4424_v37 = vpop.f32.mrb[58].mxu1  ;;  %6226 = vrot.lane.b32.xlu0 %v10089_v52, %s7563_s20  ;;  %v6364_v31 = vsel %vm2006_vm2, %v6354_v43, %v6363_v12  ;;  %v4770_v16 = vor.u32 %v4769_v30, %v4766_v40 }
 0x562   : > { %v4528_v62 = vadd.f32 %v10132_v41, %v4489_v17  ;;  %v5453_v4 = vpop.permute.xlu0 %5452  ;;  %v4490_v22 = vmul.f32 %v10115_v38, %v4424_v37  ;;  %v4426_v39 = vpop.f32.mrb[59].mxu1  ;;  %4874 = vst.msk [vmem:[#allocation5 + $0x50] sm:$0xff] %vm379_vm0, %v4762_v6  ;;  %6484 = vst.msk [vmem:[#allocation5 + $0x48] sm:$0xff] %vm379_vm0, %v6364_v31  ;;  %v6380_v37 = vrot.slane %v6378_v51, 5 }
 0x563   : > { %5847 = vrot.lane.b32.xlu1 %v5760_v2, %s7567_s29  ;;  %v4622_v7 = vsel %vm1886_vm3, %v4619_v5, %v4621_v19  ;;  %5500 = vst.msk [vmem:[#allocation5] sm:$0xff] %vm3146_vm12, %v5453_v4  ;;  %v4692_v2 = vmul.bf16 %v4675_v20, %v11205_v24  ;;  %v6375_v5 = vshrl.u32 %v10080_v14, 16  ;;  %v4771_v33 = vsel %vm2184_vm1, %v4761_v44, %v4770_v16 }
 0x564   : > { %4660 = vst.msk [vmem:[#allocation3 + $0x58] sm:$0xff] %vm379_vm0, %v4622_v7  ;;  %v4529_v35 = vadd.f32 %v10132_v41, %v4490_v22  ;;  %v4560_v24 = vmax.f32 %v4528_v62, 0.0  ;;  %4875 = vst.msk [vmem:[#allocation5 + $0x60] sm:$0xff] %vm379_vm0, %v4771_v33  ;;  %v10199_v14 = vor.u32 %v10136_v23, %v10122_v60  ;;  %v5140_v4 = vshrl.u32 %v10126_v27, 16 }
 0x565   : > { %5631 = vst.msk [vmem:[#allocation5] sm:$0xff] %vm3278_vm13, %v5584_v26  ;;  %v4773_v47 = vshrl.u32 %v4692_v2, 16  ;;  %v4776_v43 = vshll.u32 %v4692_v2, 16  ;;  %5597 = vrot.lane.b32.xlu0 %v10089_v52, %s7564_s21  ;;  %v6373_v26 = vsel %vm2006_vm2, %v6363_v12, %v6372_v11  ;;  %v6377_v21 = vrot.slane %v6375_v5, 4 }
 0x566   : > { %v4561_v17 = vmax.f32 %v4529_v35, 0.0  ;;  %v5834_v50 = vpop.permute.xlu0 %5833  ;;  %6485 = vst.msk [vmem:[#allocation5 + $0x58] sm:$0xff] %vm379_vm0, %v6373_v26  ;;  %v11209_v12 = vshrl.u32 %v10099_v56, 16  ;;  %v10210_v60 = vor.u32 %v10149_v49, %v10147_v63  ;;  %v5143_v23 = vshll.u32 %v10126_v27, 16 }
 0x567   : > { %5218 = vrot.lane.b32.xlu1 %v10143_v57, %s7565_s12  ;;  %5881 = vst.msk [vmem:[#allocation5] sm:$0xff] %vm3529_vm15, %v5834_v50  ;;  %v4429_v44 = vpop.f32.mrb[60].mxu1  ;;  %v4775_v53 = vrot.slane %v4773_v47, 3  ;;  %v4778_v20 = vrot.slane %v4776_v43, 4  ;;  %v10215_v6 = vor.u32 %v6380_v37, %v6377_v21  ;;  %v5767_v49 = vrot.slane %v5765_v58, 5 }
 0x568   : > { %v10202_v40 = vpack.c.bf16 %v4561_v17, %v4560_v24  ;;  %v4491_v57 = vmul.f32 %v10115_v38, %v4429_v44  ;;  %v4431_v30 = vpop.f32.mrb[61].mxu1  ;;  %v5764_v62 = vrot.slane %v11209_v12, 4  ;;  %v6010_v58 = vsel %vm2184_vm1, %v10066_v46, %v10199_v14 }
 0x569   : > { %v4432_v22 = vpop.f32.mrb[62].mxu1  ;;  %v10213_v39 = vor.u32 %v4778_v20, %v4775_v53  ;;  %4968 = vrot.lane.b32.xlu0 %v10089_v52, %s11071_s11  ;;  %v6382_v35 = vsel %vm2006_vm2, %v6372_v11, %v10215_v6  ;;  %v5142_v33 = vrot.slane %v5140_v4, 4  ;;  %v5145_v11 = vrot.slane %v5143_v23, 5  ;;  %v11210_v30 = vld [vmem:[#allocation9_spill] sm:$0xff] }
 0x56a   : > { %v4623_v25 = vrot.slane %v10202_v40, 4  ;;  %v4530_v7 = vadd.f32 %v10132_v41, %v4491_v57  ;;  %v5205_v31 = vpop.permute.xlu0 %5204  ;;  %v4492_v56 = vmul.f32 %v10115_v38, %v4432_v22  ;;  %v4434_v63 = vpop.f32.mrb[63].mxu1  ;;  %6486 = vst.msk [vmem:[#allocation5 + $0x68] sm:$0xff] %vm379_vm0, %v6382_v35  ;;  %v5388_v51 = vsel %vm2184_vm1, %v10071_v45, %v10210_v60 }
 0x56b   : > { %6228 = vrot.lane.b32.xlu1 %v10110_v1, %s7563_s20  ;;  %v10224_v27 = vld [vmem:[#allocation3 + $0x58] sm:$0xff]  ;;  %5251 = vst.msk [vmem:[#allocation5 + $0x10] sm:$0xff] %vm2895_vm10, %v5205_v31  ;;  %v4780_v2 = vsel %vm2184_vm1, %v4770_v16, %v10213_v39  ;;  %v10253_v24 = vor.u32 %v5767_v49, %v5764_v62 }
 0x56c   : > { %v4624_v5 = vsel %vm1886_vm3, %v4621_v19, %v4623_v25  ;;  %v4531_v52 = vadd.f32 %v10132_v41, %v4492_v56  ;;  %4876 = vst.msk [vmem:[#allocation5 + $0x70] sm:$0xff] %vm379_vm0, %v4780_v2  ;;  %v5923_v16 = vmul.bf16 %v10224_v27, %v11207_v18  ;;  %v5293_v48 = vmul.bf16 %v10224_v27, %v8369_v61 }
 0x56d   : > { %4661 = vst.msk [vmem:[#allocation3 + $0x60] sm:$0xff] %vm379_vm0, %v4624_v5  ;;  %v5674_v19 = vmul.bf16 %v10224_v27, %v11208_v0  ;;  %v4562_v47 = vmax.f32 %v4530_v7, 0.0  ;;  %6097 = vrot.lane.b32.xlu0 %v6010_v58, %s7568_s18  ;;  %v5044_v12 = vmul.bf16 %v10224_v27, %v11210_v30  ;;  %v5769_v2 = vsel %vm2006_vm2, %v10091_v10, %v10253_v24 }
 0x56e   : > { %v4563_v43 = vmax.f32 %v4531_v52, 0.0  ;;  %v6215_v46 = vpop.permute.xlu0 %6214  ;;  %v6012_v50 = vshrl.u32 %v5923_v16, 16  ;;  %v6015_v26 = vshll.u32 %v5923_v16, 16  ;;  %v5390_v21 = vshrl.u32 %v5293_v48, 16 }
 0x56f   : > { %5599 = vrot.lane.b32.xlu1 %v10110_v1, %s7564_s21  ;;  %v4437_v17 = vpop.f32.mrb[64].mxu1  ;;  %v5393_v44 = vshll.u32 %v5293_v48, 16  ;;  %v5771_v57 = vshrl.u32 %v5674_v19, 16  ;;  %v10273_v5 = vor.u32 %v5145_v11, %v5142_v33  ;;  %v5774_v52 = vshll.u32 %v5674_v19, 16 }
 0x570   : > { %v10255_v53 = vpack.c.bf16 %v4563_v43, %v4562_v47  ;;  %v4493_v20 = vmul.f32 %v10115_v38, %v4437_v17  ;;  %v6084_v37 = vpop.permute.xlu1 %6083  ;;  %v4439_v40 = vpop.f32.mrb[65].mxu1  ;;  %v6014_v62 = vrot.slane %v6012_v50, 3  ;;  %v6017_v4 = vrot.slane %v6015_v26, 4 }
 0x571   : > { %6131 = vst.msk [vmem:[#allocation5] sm:$0xff] %vm3780_vm8, %v6084_v37  ;;  %v4440_v45 = vpop.f32.mrb[66].mxu1  ;;  %v5392_v22 = vrot.slane %v5390_v21, 3  ;;  %v5395_v23 = vrot.slane %v5393_v44, 4  ;;  %5468 = vrot.lane.b32.xlu0 %v5388_v51, %s7566_s26  ;;  %v5776_v33 = vrot.slane %v5774_v52, 5  ;;  %v5149_v11 = vshrl.u32 %v5044_v12, 16 }
 0x572   : > { %v4625_v7 = vrot.slane %v10255_v53, 4  ;;  %v4532_v31 = vadd.f32 %v10132_v41, %v4493_v20  ;;  %6262 = vst.msk [vmem:[#allocation5] sm:$0xff] %vm3912_vm9, %v6215_v46  ;;  %v5586_v56 = vpop.permute.xlu0 %5585  ;;  %v4494_v63 = vmul.f32 %v10115_v38, %v4440_v45  ;;  %v4442_v49 = vpop.f32.mrb[67].mxu1  ;;  %v10271_v35 = vor.u32 %v6017_v4, %v6014_v62 }
 0x573   : > { %4970 = vrot.lane.b32.xlu1 %v10110_v1, %s11071_s11  ;;  %v10279_v43 = vor.u32 %v5395_v23, %v5392_v22  ;;  %v5773_v1 = vrot.slane %v5771_v57, 4  ;;  %v5152_v19 = vshll.u32 %v5044_v12, 16  ;;  %v5147_v53 = vsel %vm2006_vm2, %v10105_v9, %v10273_v5 }
 0x574   : > { %v10275_v58 = vld [vmem:[#allocation3 + $0x60] sm:$0xff]  ;;  %v4626_v16 = vsel %vm1886_vm3, %v4623_v25, %v4625_v7  ;;  %v4533_v48 = vadd.f32 %v10132_v41, %v4494_v63  ;;  %v5455_v47 = vpop.permute.xlu1 %5454  ;;  %v6019_v10 = vsel %vm2184_vm1, %v10199_v14, %v10271_v35  ;;  %v4564_v46 = vmax.f32 %v4532_v31, 0.0 }
 0x575   : > { %4662 = vst.msk [vmem:[#allocation3 + $0x68] sm:$0xff] %vm379_vm0, %v4626_v16  ;;  %5849 = vrot.lane.b32.xlu0 %v5769_v2, %s7567_s29  ;;  %v5924_v50 = vmul.bf16 %v10275_v58, %v8369_v61  ;;  %v6198_v20 = vrot.slane %v10224_v27, 4  ;;  %v5397_v57 = vsel %vm2184_vm1, %v10210_v60, %v10279_v43  ;;  %v10303_v12 = vor.u32 %v5776_v33, %v5773_v1 }
 0x576   : > { %5501 = vst.msk [vmem:[#allocation5 + $0x10] sm:$0xff] %vm3146_vm12, %v5455_v47  ;;  %v4565_v51 = vmax.f32 %v4533_v48, 0.0  ;;  %v4957_v25 = vpop.permute.xlu0 %4956  ;;  %v5151_v45 = vrot.slane %v5149_v11, 4  ;;  %v5154_v62 = vrot.slane %v5152_v19, 5  ;;  %v5294_v63 = vmul.bf16 %v10275_v58, %v8398_v32 }
 0x577   : > { %5632 = vst.msk [vmem:[#allocation5 + $0x10] sm:$0xff] %vm3278_vm13, %v5586_v56  ;;  %6099 = vrot.lane.b32.xlu1 %v6019_v10, %s7568_s18  ;;  %v4445_v17 = vpop.f32.mrb[68].mxu1  ;;  %v6499_v56 = vld [vmem:[#allocation5 + $0x18] sm:$0xff]  ;;  %v6021_v60 = vshrl.u32 %v5924_v50, 16  ;;  %v6024_v49 = vshll.u32 %v5924_v50, 16  ;;  %v11211_v48 = vrot.slane %v10051_v59, 4  ;;  %v5675_v10 = vmul.bf16 %v10275_v58, %v11210_v30 }
 0x578   : > { %5002 = vst.msk [vmem:[#allocation5 + $0x20] sm:$0xff] %vm2484_vm4, %v4957_v25  ;;  %v10292_v26 = vpack.c.bf16 %v4565_v51, %v4564_v46  ;;  %v4495_v14 = vmul.f32 %v10115_v38, %v4445_v17  ;;  %v5836_v21 = vpop.permute.xlu1 %5835  ;;  %v4447_v44 = vpop.f32.mrb[69].mxu1  ;;  %v10323_v1 = vor.u32 %v5154_v62, %v5151_v45  ;;  %v5778_v46 = vsel %vm2006_vm2, %v10253_v24, %v10303_v12 }
 0x579   : > { %5882 = vst.msk [vmem:[#allocation5 + $0x10] sm:$0xff] %vm3529_vm15, %v5836_v21  ;;  %v4448_v37 = vpop.f32.mrb[70].mxu1  ;;  %v6496_v40 = vld [vmem:[#allocation5] sm:$0xff]  ;;  %5220 = vrot.lane.b32.xlu0 %v5147_v53, %s7565_s12  ;;  %v6199_v47 = vsel %vm1886_vm3, %v11211_v48, %v6198_v20  ;;  %v5399_v51 = vshrl.u32 %v5294_v63, 16  ;;  %v6023_v25 = vrot.slane %v6021_v60, 3  ;;  %v6026_v17 = vrot.slane %v6024_v49, 4 }
 0x57a   : > { %v4627_v4 = vrot.slane %v10292_v26, 4  ;;  %v4534_v22 = vadd.f32 %v10132_v41, %v4495_v14  ;;  %v4496_v9 = vmul.f32 %v10115_v38, %v4448_v37  ;;  %6681 = vmatmul.mubr.bf16.vlgmr.msra.gmra.mrb[12].mxu0 %v6496_v40  ;;  %v4450_v31 = vpop.f32.mrb[71].mxu1  ;;  %v5402_v50 = vshll.u32 %v5294_v63, 16  ;;  %v4676_v60 = vld [vmem:[#allocation3 + $0x48] sm:$0xff] }
 0x57b   : > { %5470 = vrot.lane.b32.xlu1 %v5397_v57, %s7566_s26  ;;  %7178 = vmatprep.mubr.msk.bf16.mxu0 %vm379_vm0, %v6499_v56  ;;  %v5156_v44 = vsel %vm2006_vm2, %v10273_v5, %v10323_v1  ;;  %v6200_v24 = vrot.slane %v10275_v58, 4  ;;  %v5401_v45 = vrot.slane %v5399_v51, 3  ;;  %v5780_v62 = vshrl.u32 %v5675_v10, 16  ;;  %v11212_v56 = vld [vmem:[#allocation37_spill] sm:$0xff] }
 0x57c   : > { %v6086_v23 = vpop.permute.xlu0 %6085  ;;  %v4628_v2 = vsel %vm1886_vm3, %v4625_v7, %v4627_v4  ;;  %v4535_v52 = vadd.f32 %v10132_v41, %v4496_v9  ;;  %v5207_v16 = vpop.permute.xlu1 %5206  ;;  %v10327_v33 = vld [vmem:[#allocation3 + $0x68] sm:$0xff]  ;;  %v4566_v7 = vmax.f32 %v4534_v22, 0.0  ;;  %v10348_v9 = vor.u32 %v6026_v17, %v6023_v25 }
 0x57d   : > { %6132 = vst.msk [vmem:[#allocation5 + $0x10] sm:$0xff] %vm3780_vm8, %v6086_v23  ;;  %6230 = vrot.lane.b32.xlu0 %v6199_v47, %s7563_s20  ;;  %v5925_v53 = vmul.bf16 %v10327_v33, %v8398_v32  ;;  %v5404_v5 = vrot.slane %v5402_v50, 4  ;;  %v5783_v31 = vshll.u32 %v5675_v10, 16  ;;  %v5045_v63 = vmul.bf16 %v10275_v58, %v11212_v56 }
 0x57e   : > { %4663 = vst.msk [vmem:[#allocation3 + $0x70] sm:$0xff] %vm379_vm0, %v4628_v2  ;;  %v4567_v11 = vmax.f32 %v4535_v52, 0.0  ;;  %v10361_v10 = vmul.bf16 %v10051_v59, %v11204_v36  ;;  %v5782_v36 = vrot.slane %v5780_v62, 4  ;;  %v10374_v59 = vmul.bf16 %v4676_v60, %v11207_v18 }
 0x57f   : > { %5252 = vst.msk [vmem:[#allocation5 + $0x20] sm:$0xff] %vm2895_vm10, %v5207_v16  ;;  %5851 = vrot.lane.b32.xlu1 %v5778_v46, %s7567_s29  ;;  %v10380_v46 = vor.u32 %v5404_v5, %v5401_v45  ;;  %v5785_v51 = vrot.slane %v5783_v31, 5  ;;  %v5676_v45 = vmul.bf16 %v10327_v33, %v11212_v56 }
 0x580   : > { %v5457_v19 = vpop.permute.xlu0 %5456  ;;  %v10335_v26 = vpack.c.bf16 %v4567_v11, %v4566_v7  ;;  %v6217_v14 = vpop.permute.xlu1 %6216  ;;  %v5295_v7 = vmul.bf16 %v10327_v33, %v9035_v8  ;;  %v6030_v11 = vshrl.u32 %v5925_v53, 16  ;;  %v4782_v31 = vshrl.u32 %v10374_v59, 16 }
 0x581   : > { %5502 = vst.msk [vmem:[#allocation5 + $0x20] sm:$0xff] %vm3146_vm12, %v5457_v19  ;;  %v4453_v21 = vpop.f32.mrb[72].mxu1  ;;  %5601 = vrot.lane.b32.xlu0 %v6199_v47, %s7564_s21  ;;  %v6033_v19 = vshll.u32 %v5925_v53, 16  ;;  %v6501_v53 = vld [vmem:[#allocation5 + $0x28] sm:$0xff]  ;;  %v10396_v5 = vor.u32 %v5785_v51, %v5782_v36  ;;  %v10411_v51 = vmul.bf16 %v10224_v27, %v11206_v54 }
 0x582   : > { %6263 = vst.msk [vmem:[#allocation5 + $0x10] sm:$0xff] %vm3912_vm9, %v6217_v14  ;;  %v4629_v37 = vrot.slane %v10335_v26, 4  ;;  %v4497_v40 = vmul.f32 %v10115_v38, %v4453_v21  ;;  %v4455_v57 = vpop.f32.mrb[73].mxu1  ;;  %v5161_v21 = vshll.u32 %v5045_v63, 16 }
 0x583   : > { %5222 = vrot.lane.b32.xlu1 %v5156_v44, %s7565_s12  ;;  %v4456_v23 = vpop.f32.mrb[74].mxu1  ;;  %v6035_v57 = vrot.slane %v6033_v19, 4 }
 0x584   : > { %v5838_v22 = vpop.permute.xlu0 %5837  ;;  %v4630_v49 = vsel %vm1886_vm3, %v4627_v4, %v4629_v37  ;;  %v4536_v2 = vadd.f32 %v10132_v41, %v4497_v40  ;;  %v4498_v52 = vmul.f32 %v10115_v38, %v4456_v23  ;;  %v5588_v16 = vpop.permute.xlu1 %5587  ;;  %v6201_v38 = vsel %vm1886_vm3, %v6198_v20, %v6200_v24 }
 0x585   : > { %v4458_v48 = vpop.f32.mrb[75].mxu1  ;;  %4664 = vst.msk [vmem:[#allocation3 + $0x78] sm:$0xff] %vm379_vm0, %v4630_v49  ;;  %4972 = vrot.lane.b32.xlu0 %v6199_v47, %s11071_s11  ;;  %v5158_v47 = vshrl.u32 %v5045_v63, 16  ;;  %v5408_v20 = vshrl.u32 %v5295_v7, 16  ;;  %v10382_v44 = vld [vmem:[#allocation3 + $0x70] sm:$0xff]  ;;  %v6032_v40 = vrot.slane %v6030_v11, 3  ;;  %v5406_v23 = vsel %vm2184_vm1, %v10279_v43, %v10380_v46 }
 0x586   : > { %5633 = vst.msk [vmem:[#allocation5 + $0x20] sm:$0xff] %vm3278_vm13, %v5588_v16  ;;  %v4537_v4 = vadd.f32 %v10132_v41, %v4498_v52  ;;  %v6028_v41 = vsel %vm2184_vm1, %v10271_v35, %v10348_v9  ;;  %v4568_v25 = vmax.f32 %v4536_v2, 0.0  ;;  %v5411_v35 = vshll.u32 %v5295_v7, 16 }
 0x587   : > { %5883 = vst.msk [vmem:[#allocation5 + $0x20] sm:$0xff] %vm3529_vm15, %v5838_v22  ;;  %6232 = vrot.lane.b32.xlu1 %v6201_v38, %s7563_s20  ;;  %v5046_v22 = vmul.bf16 %v10327_v33, %v9091_v55  ;;  %v6384_v63 = vshrl.u32 %v10361_v10, 16  ;;  %v5160_v49 = vrot.slane %v5158_v47, 4  ;;  %v5163_v2 = vrot.slane %v5161_v21, 5 }
 0x588   : > { %v4569_v17 = vmax.f32 %v4537_v4, 0.0  ;;  %v4959_v50 = vpop.permute.xlu1 %4958  ;;  %v5209_v18 = vpop.permute.xlu0 %5208  ;;  %v5926_v52 = vmul.bf16 %v10382_v44, %v9035_v8  ;;  %v10402_v16 = vor.u32 %v6035_v57, %v6032_v40  ;;  %v5410_v48 = vrot.slane %v5408_v20, 3 }
 0x589   : > { %v6498_v14 = vld [vmem:[#allocation5 + $0x10] sm:$0xff]  ;;  %5003 = vst.msk [vmem:[#allocation5 + $0x30] sm:$0xff] %vm2484_vm4, %v4959_v50  ;;  %6101 = vrot.lane.b32.xlu0 %v6028_v41, %s7568_s18  ;;  %v5413_v7 = vrot.slane %v5411_v35, 4  ;;  %v5789_v11 = vshrl.u32 %v5676_v45, 16  ;;  %v5792_v4 = vshll.u32 %v5676_v45, 16  ;;  %v5167_v36 = vshrl.u32 %v5046_v22, 16 }
 0x58a   : > { %6689 = vmatmul.mubr.bf16.gmra.mrb[16].mxu0 %v6498_v14  ;;  %v4585_v62 = vpack.c.bf16 %v4569_v17, %v4568_v25  ;;  %5253 = vst.msk [vmem:[#allocation5 + $0x30] sm:$0xff] %vm2895_vm10, %v5209_v18  ;;  %v5170_v41 = vshll.u32 %v5046_v22, 16  ;;  %v10415_v47 = vmul.bf16 %v10275_v58, %v11208_v0  ;;  %v5296_v26 = vmul.bf16 %v10382_v44, %v9054_v42 }
 0x58b   : > { %7179 = vmatprep.mubr.msk.bf16.mxu0 %vm379_vm0, %v6501_v53  ;;  %5603 = vrot.lane.b32.xlu1 %v6201_v38, %s7564_s21  ;;  %v5787_v25 = vsel %vm2006_vm2, %v10303_v12, %v10396_v5  ;;  %v5164_v17 = vor.u32 %v5163_v2, %v5160_v49  ;;  %v6039_v54 = vshrl.u32 %v5926_v52, 16  ;;  %v6042_v27 = vshll.u32 %v5926_v52, 16 }
 0x58c   : > { %v4631_v60 = vrot.slane %v4585_v62, 4  ;;  %v6037_v0 = vsel %vm2184_vm1, %v10348_v9, %v10402_v16  ;;  %v10429_v50 = vor.u32 %v5413_v7, %v5410_v48  ;;  %v5677_v14 = vmul.bf16 %v10382_v44, %v9091_v55  ;;  %v10434_v21 = vld [vmem:[#allocation3 + $0x78] sm:$0xff] }
 0x58d   : > { %5472 = vrot.lane.b32.xlu0 %v5406_v23, %s7566_s26  ;;  %v5791_v12 = vrot.slane %v5789_v11, 4  ;;  %v5794_v18 = vrot.slane %v5792_v4, 5  ;;  %v5169_v53 = vrot.slane %v5167_v36, 4  ;;  %v5172_v40 = vrot.slane %v5170_v41, 5 }
 0x58e   : > { %v4632_v43 = vsel %vm1886_vm3, %v4629_v37, %v4631_v60  ;;  %4666 = vst.msk [vmem:[#allocation3 + $0x88] sm:$0xf] %vm381_vm5, %v4631_v60  ;;  %v10421_v37 = vrot.slane %v4782_v31, 3  ;;  %v10439_v57 = vmul.bf16 %v10327_v33, %v11210_v30  ;;  %v6204_v9 = vrot.slane %v10382_v44, 4 }
 0x58f   : > { %v6219_v19 = vpop.permute.xlu0 %6218  ;;  %4665 = vst.msk [vmem:[#allocation3 + $0x80] sm:$0xff] %vm379_vm0, %v4632_v43  ;;  %4974 = vrot.lane.b32.xlu1 %v6201_v38, %s11071_s11  ;;  %v6202_v38 = vrot.slane %v10327_v33, 4  ;;  %v5417_v35 = vshrl.u32 %v5296_v26, 16  ;;  %v5420_v45 = vshll.u32 %v5296_v26, 16  ;;  %v10445_v62 = vmul.bf16 %v10382_v44, %v11212_v56 }
 0x590   : > { %v5165_v23 = vsel %vm2006_vm2, %v10323_v1, %v5164_v17  ;;  %v6041_v31 = vrot.slane %v6039_v54, 3  ;;  %v6044_v60 = vrot.slane %v6042_v27, 4  ;;  %v5798_v33 = vshrl.u32 %v5677_v14, 16 }
 0x591   : > { %5853 = vrot.lane.b32.xlu0 %v5787_v25, %s7567_s29  ;;  %v10453_v30 = vsel %vm1886_vm3, %v6200_v24, %v6202_v38  ;;  %v5801_v49 = vshll.u32 %v5677_v14, 16  ;;  %v5927_v2 = vmul.bf16 %v10434_v21, %v9054_v42  ;;  %v5415_v1 = vsel %vm2184_vm1, %v10380_v46, %v10429_v50 }
 0x592   : > { %v10462_v52 = vor.u32 %v5794_v18, %v5791_v12  ;;  %v10464_v58 = vor.u32 %v5172_v40, %v5169_v53  ;;  %v5047_v24 = vmul.bf16 %v10382_v44, %v9194_v15  ;;  %v10473_v48 = vsel %vm1886_vm3, %v6202_v38, %v6204_v9 }
 0x593   : > { %v5590_v20 = vpop.permute.xlu0 %5589  ;;  %6103 = vrot.lane.b32.xlu1 %v6037_v0, %s7568_s18  ;;  %v5419_v7 = vrot.slane %v5417_v35, 3  ;;  %v5422_v11 = vrot.slane %v5420_v45, 4  ;;  %v5297_v46 = vmul.bf16 %v10434_v21, %v9031_v34  ;;  %v10479_v43 = vmul.bf16 %v10434_v21, %v9091_v55 }
 0x594   : > { %v10483_v36 = vor.u32 %v6044_v60, %v6041_v31  ;;  %v5678_v41 = vmul.bf16 %v10434_v21, %v9194_v15  ;;  %v5048_v26 = vmul.bf16 %v10434_v21, %v9230_v29  ;;  %v5800_v25 = vrot.slane %v5798_v33, 4 }
 0x595   : > { %v6088_v22 = vpop.permute.xlu1 %6087  ;;  %5224 = vrot.lane.b32.xlu0 %v5165_v23, %s7565_s12  ;;  %v5803_v54 = vrot.slane %v5801_v49, 5  ;;  %v6048_v27 = vshrl.u32 %v5927_v2, 16  ;;  %v6051_v0 = vshll.u32 %v5927_v2, 16  ;;  %v5796_v55 = vsel %vm2006_vm2, %v10396_v5, %v10462_v52  ;;  %v10503_v35 = vld [vmem:[#allocation3 + $0x88] sm:$0xff] }
 0x596   : > { %6133 = vst.msk [vmem:[#allocation5 + $0x20] sm:$0xff] %vm3780_vm8, %v6088_v22  ;;  %v5174_v38 = vsel %vm2006_vm2, %v5164_v17, %v10464_v58  ;;  %v5176_v14 = vshrl.u32 %v5047_v24, 16  ;;  %v5179_v12 = vshll.u32 %v5047_v24, 16  ;;  %v10499_v18 = vor.u32 %v5422_v11, %v5419_v7 }
 0x597   : > { %6264 = vst.msk [vmem:[#allocation5 + $0x20] sm:$0xff] %vm3912_vm9, %v6219_v19  ;;  %v4961_v56 = vpop.permute.xlu0 %4960  ;;  %5474 = vrot.lane.b32.xlu1 %v5415_v1, %s7566_s26  ;;  %v10481_v19 = vld [vmem:[#allocation3 + $0x80] sm:$0xff]  ;;  %v5426_v53 = vshrl.u32 %v5297_v46, 16  ;;  %v5429_v40 = vshll.u32 %v5297_v46, 16  ;;  %v5807_v22 = vshrl.u32 %v5678_v41, 16  ;;  %v5810_v23 = vshll.u32 %v5678_v41, 16 }
 0x598   : > { %5004 = vst.msk [vmem:[#allocation5 + $0x40] sm:$0xff] %vm2484_vm4, %v4961_v56  ;;  %v5185_v5 = vshrl.u32 %v5048_v26, 16  ;;  %v5188_v31 = vshll.u32 %v5048_v26, 16  ;;  %v6046_v60 = vsel %vm2184_vm1, %v10402_v16, %v10483_v36  ;;  %v5804_v33 = vor.u32 %v5803_v54, %v5800_v25  ;;  %v6503_v56 = vld [vmem:[#allocation5 + $0x38] sm:$0xff] }
 0x599   : > { %v5459_v4 = vpop.permute.xlu1 %5458  ;;  %6234 = vrot.lane.b32.xlu0 %v10453_v30, %s7563_s20  ;;  %v6050_v49 = vrot.slane %v6048_v27, 3  ;;  %v6053_v2 = vrot.slane %v6051_v0, 4  ;;  %v5178_v1 = vrot.slane %v5176_v14, 4  ;;  %v5181_v24 = vrot.slane %v5179_v12, 5  ;;  %v4901_v12 = vld [vmem:[#allocation3 + $0x80] sm:$0xf] }
 0x59a   : > { %5503 = vst.msk [vmem:[#allocation5 + $0x30] sm:$0xff] %vm3146_vm12, %v5459_v4  ;;  %v10513_v46 = vmul.bf16 %v10503_v35, %v9230_v29  ;;  %v5424_v16 = vsel %vm2184_vm1, %v10429_v50, %v10499_v18  ;;  %v5428_v4 = vrot.slane %v5426_v53, 3  ;;  %v5431_v41 = vrot.slane %v5429_v40, 4 }
 0x59b   : > { %5634 = vst.msk [vmem:[#allocation5 + $0x30] sm:$0xff] %vm3278_vm13, %v5590_v20  ;;  %5855 = vrot.lane.b32.xlu1 %v5796_v55, %s7567_s29  ;;  %v5928_v20 = vmul.bf16 %v10481_v19, %v9031_v34  ;;  %v5809_v25 = vrot.slane %v5807_v22, 4  ;;  %v5812_v54 = vrot.slane %v5810_v23, 5  ;;  %v5187_v27 = vrot.slane %v5185_v5, 4 }
 0x59c   : > { %v5190_v0 = vrot.slane %v5188_v31, 5  ;;  %v10523_v55 = vsel %vm2006_vm2, %v10462_v52, %v5804_v33  ;;  %v6206_v14 = vrot.slane %v10434_v21, 4  ;;  %v5298_v50 = vmul.bf16 %v10481_v19, %v11163_v3 }
 0x59d   : > { %v5840_v45 = vpop.permute.xlu1 %5839  ;;  %5605 = vrot.lane.b32.xlu0 %v10453_v30, %s7564_s21  ;;  %v6057_v7 = vshrl.u32 %v5928_v20, 16  ;;  %v6060_v11 = vshll.u32 %v5928_v20, 16  ;;  %v5182_v53 = vor.u32 %v5181_v24, %v5178_v1  ;;  %v10534_v52 = vmul.bf16 %v10481_v19, %v9194_v15 }
 0x59e   : > { %5884 = vst.msk [vmem:[#allocation5 + $0x30] sm:$0xff] %vm3529_vm15, %v5840_v45  ;;  %v6500_v17 = vld [vmem:[#allocation5 + $0x20] sm:$0xff]  ;;  %v5929_v45 = vmul.bf16 %v10503_v35, %v11163_v3  ;;  %v10538_v21 = vor.u32 %v5431_v41, %v5428_v4  ;;  %v10541_v22 = vrot.slane %v10481_v19, 4  ;;  %v6447_v23 = vshrl.u32 %v10513_v46, 16  ;;  %v5282_v41 = vld [vmem:[#allocation3 + $0x88] sm:$0xf] }
 0x59f   : > { %6697 = vmatmul.mubr.bf16.gmra.mrb[20].mxu0 %v6500_v17  ;;  %5226 = vrot.lane.b32.xlu1 %v5174_v38, %s7565_s12  ;;  %v6054_v38 = vor.u32 %v6053_v2, %v6050_v49  ;;  %v6059_v40 = vrot.slane %v6057_v7, 3  ;;  %v6062_v20 = vrot.slane %v6060_v11, 4  ;;  %v10545_v31 = vor.u32 %v5812_v54, %v5809_v25  ;;  %v4677_v54 = vld [vmem:[#allocation3 + $0x50] sm:$0xff] }
 0x5a0   : > { %7180 = vmatprep.mubr.msk.bf16.mxu0 %vm379_vm0, %v6503_v56  ;;  %v10547_v17 = vor.u32 %v5190_v0, %v5187_v27  ;;  %v4950_v49 = vrot.slane %v4901_v12, 4  ;;  %v6450_v15 = vshll.u32 %v10513_v46, 16  ;;  %v5435_v56 = vshrl.u32 %v5298_v50, 16 }
 0x5a1   : > { %v5211_v26 = vpop.permute.xlu1 %5210  ;;  %4976 = vrot.lane.b32.xlu0 %v10453_v30, %s11071_s11  ;;  %v6210_v30 = vrot.slane %v10503_v35, 4  ;;  %v6055_v2 = vsel %vm2184_vm1, %v10483_v36, %v6054_v38  ;;  %v5438_v1 = vshll.u32 %v5298_v50, 16  ;;  %v10555_v24 = vsel %vm2006_vm2, %v10464_v58, %v5182_v53 }
 0x5a2   : > { %5254 = vst.msk [vmem:[#allocation5 + $0x40] sm:$0xff] %vm2895_vm10, %v5211_v26  ;;  %v10557_v7 = vor.u32 %v6062_v20, %v6059_v40  ;;  %v6066_v11 = vshrl.u32 %v5929_v45, 16  ;;  %v10561_v4 = vmul.bf16 %v10481_v19, %v9230_v29  ;;  %v10568_v36 = vsel %vm2184_vm1, %v10499_v18, %v10538_v21 }
 0x5a3   : > { %6236 = vrot.lane.b32.xlu1 %v10473_v48, %s7563_s20  ;;  %v10573_v58 = vsel %vm1886_vm3, %v6204_v9, %v6206_v14  ;;  %v10583_v29 = vsel %vm1886_vm3, %v10541_v22, %v6210_v30  ;;  %v10587_v18 = vsel %vm2006_vm2, %v5804_v33, %v10545_v31  ;;  %v10591_v44 = vsel %vm2006_vm2, %v5182_v53, %v10547_v17  ;;  %v4678_v33 = vld [vmem:[#allocation3 + $0x58] sm:$0xff] }
 0x5a4   : > { %v10594_v9 = vsel %vm1886_vm3, %v6206_v14, %v4950_v49  ;;  %v6069_v25 = vshll.u32 %v5929_v45, 16  ;;  %v5437_v27 = vrot.slane %v5435_v56, 3  ;;  %v5440_v0 = vrot.slane %v5438_v1, 4 }
 0x5a5   : > { %v6221_v5 = vpop.permute.xlu1 %6220  ;;  %6105 = vrot.lane.b32.xlu0 %v6046_v60, %s7568_s18  ;;  %v10577_v60 = vsel %vm1886_vm3, %v6206_v14, %v10541_v22  ;;  %v10598_v12 = vmul.bf16 %v5282_v41, %v11182_v28  ;;  %v4785_v50 = vshll.u32 %v10374_v59, 16  ;;  %v10605_v14 = vsel %vm2184_vm1, %v6054_v38, %v10557_v7 }
 0x5a6   : > { %v10607_v53 = vrot.slane %v6066_v11, 3  ;;  %v5816_v40 = vshrl.u32 %v10561_v4, 16  ;;  %v5819_v20 = vshll.u32 %v10561_v4, 16  ;;  %v6386_v59 = vrot.slane %v6384_v63, 4 }
 0x5a7   : > { %5607 = vrot.lane.b32.xlu1 %v10473_v48, %s7564_s21  ;;  %v6090_v26 = vpop.permute.xlu0 %6089  ;;  %v4787_v45 = vrot.slane %v4785_v50, 4  ;;  %v10617_v56 = vrot.slane %v6069_v25, 4  ;;  %v6393_v1 = vshrl.u32 %v10411_v51, 16  ;;  %v6396_v11 = vshll.u32 %v10411_v51, 16 }
 0x5a8   : > { %6134 = vst.msk [vmem:[#allocation5 + $0x30] sm:$0xff] %vm3780_vm8, %v6090_v26  ;;  %v4695_v41 = vmul.bf16 %v4678_v33, %v8398_v32  ;;  %v5444_v63 = vshrl.u32 %v10598_v12, 16  ;;  %v10629_v26 = vor.u32 %v5440_v0, %v5437_v27  ;;  %v6402_v0 = vshrl.u32 %v10415_v47, 16 }
 0x5a9   : > { %v5592_v19 = vpop.permute.xlu1 %5591  ;;  %6265 = vst.msk [vmem:[#allocation5 + $0x30] sm:$0xff] %vm3912_vm9, %v6221_v5  ;;  %5476 = vrot.lane.b32.xlu0 %v5424_v16, %s7566_s26  ;;  %v6387_v5 = vshll.u32 %v10361_v10, 16  ;;  %v4694_v16 = vmul.bf16 %v4677_v54, %v8369_v61  ;;  %v4788_v10 = vor.u32 %v4787_v45, %v10421_v37  ;;  %v6395_v25 = vrot.slane %v6393_v1, 4  ;;  %v4679_v54 = vld [vmem:[#allocation3 + $0x60] sm:$0xff]  ;;  %v4680_v1 = vld [vmem:[#allocation3 + $0x68] sm:$0xff] }
 0x5aa   : > { %v6398_v32 = vrot.slane %v6396_v11, 5  ;;  %v4800_v45 = vshrl.u32 %v4695_v41, 16  ;;  %v4803_v27 = vshll.u32 %v4695_v41, 16  ;;  %v6505_v11 = vld [vmem:[#allocation5 + $0x48] sm:$0xff] }
 0x5ab   : > { %4978 = vrot.lane.b32.xlu1 %v10473_v48, %s11071_s11  ;;  %v5461_v38 = vpop.permute.xlu0 %5460  ;;  %v6389_v48 = vrot.slane %v6387_v5, 5  ;;  %v4791_v61 = vshrl.u32 %v4694_v16, 16  ;;  %v4794_v51 = vshll.u32 %v4694_v16, 16  ;;  %v4789_v50 = vsel %vm2184_vm1, %v10213_v39, %v4788_v10 }
 0x5ac   : > { %5504 = vst.msk [vmem:[#allocation5 + $0x40] sm:$0xff] %vm3146_vm12, %v5461_v38  ;;  %v4802_v38 = vrot.slane %v4800_v45, 3  ;;  %v6405_v39 = vshll.u32 %v10415_v47, 16 }
 0x5ad   : > { %v4963_v49 = vpop.permute.xlu1 %4962  ;;  %5635 = vst.msk [vmem:[#allocation5 + $0x40] sm:$0xff] %vm3278_vm13, %v5592_v19  ;;  %5857 = vrot.lane.b32.xlu0 %v10523_v55, %s7567_s29  ;;  %v6390_v33 = vor.u32 %v6389_v48, %v6386_v59  ;;  %v4793_v37 = vrot.slane %v4791_v61, 3  ;;  %v4796_v19 = vrot.slane %v4794_v51, 4  ;;  %v6399_v55 = vor.u32 %v6398_v32, %v6395_v25 }
 0x5ae   : > { %5005 = vst.msk [vmem:[#allocation5 + $0x50] sm:$0xff] %vm2484_vm4, %v4963_v49  ;;  %v4696_v59 = vmul.bf16 %v4679_v54, %v9035_v8  ;;  %v4805_v61 = vrot.slane %v4803_v27, 4  ;;  %v6407_v8 = vrot.slane %v6405_v39, 5 }
 0x5af   : > { %6107 = vrot.lane.b32.xlu1 %v6055_v2, %s7568_s18  ;;  %v5842_v5 = vpop.permute.xlu0 %5841  ;;  %4877 = vst.msk [vmem:[#allocation5 + $0x80] sm:$0xff] %vm379_vm0, %v4789_v50  ;;  %v6391_v2 = vsel %vm2006_vm2, %v10215_v6, %v6390_v33  ;;  %v4797_v41 = vor.u32 %v4796_v19, %v4793_v37  ;;  %v6400_v48 = vsel %vm2006_vm2, %v6390_v33, %v6399_v55  ;;  %v6404_v6 = vrot.slane %v6402_v0, 4  ;;  %v4681_v19 = vld [vmem:[#allocation3 + $0x70] sm:$0xff] }
 0x5b0   : > { %5885 = vst.msk [vmem:[#allocation5 + $0x40] sm:$0xff] %vm3529_vm15, %v5842_v5  ;;  %v6502_v16 = vld [vmem:[#allocation5 + $0x30] sm:$0xff]  ;;  %v4809_v47 = vshrl.u32 %v4696_v59, 16  ;;  %v4812_v51 = vshll.u32 %v4696_v59, 16  ;;  %v4806_v50 = vor.u32 %v4805_v61, %v4802_v38  ;;  %v6414_v33 = vshll.u32 %v10439_v57, 16  ;;  %v4682_v61 = vld [vmem:[#allocation3 + $0x78] sm:$0xff] }
 0x5b1   : > { %v6092_v49 = vpop.permute.xlu1 %6091  ;;  %5228 = vrot.lane.b32.xlu0 %v10555_v24, %s7565_s12  ;;  %6705 = vmatmul.mubr.bf16.gmra.mrb[24].mxu0 %v6502_v16  ;;  %6487 = vst.msk [vmem:[#allocation5 + $0x78] sm:$0xff] %vm379_vm0, %v6391_v2  ;;  %6488 = vst.msk [vmem:[#allocation5 + $0x88] sm:$0xff] %vm379_vm0, %v6400_v48  ;;  %v6411_v24 = vshrl.u32 %v10439_v57, 16  ;;  %v4798_v54 = vsel %vm2184_vm1, %v4788_v10, %v4797_v41  ;;  %v4697_v37 = vmul.bf16 %v4680_v1, %v9054_v42 }
 0x5b2   : > { %6135 = vst.msk [vmem:[#allocation5 + $0x40] sm:$0xff] %vm3780_vm8, %v6092_v49  ;;  %7181 = vmatprep.mubr.msk.bf16.mxu0 %vm379_vm0, %v6505_v11  ;;  %v4811_v45 = vrot.slane %v4809_v47, 3  ;;  %v4814_v5 = vrot.slane %v4812_v51, 4  ;;  %v4807_v10 = vsel %vm2184_vm1, %v4797_v41, %v4806_v50  ;;  %v6416_v27 = vrot.slane %v6414_v33, 5 }
 0x5b3   : > { %5478 = vrot.lane.b32.xlu1 %v10568_v36, %s7566_s26  ;;  %v5213_v25 = vpop.permute.xlu0 %5212  ;;  %4878 = vst.msk [vmem:[#allocation5 + $0x90] sm:$0xff] %vm379_vm0, %v4798_v54  ;;  %v6408_v36 = vor.u32 %v6407_v8, %v6404_v6  ;;  %v6413_v49 = vrot.slane %v6411_v24, 4  ;;  %v4818_v57 = vshrl.u32 %v4697_v37, 16  ;;  %v4821_v0 = vshll.u32 %v4697_v37, 16  ;;  %4879 = vst.msk [vmem:[#allocation5 + $0xa0] sm:$0xff] %vm379_vm0, %v4807_v10 }
 0x5b4   : > { %5255 = vst.msk [vmem:[#allocation5 + $0x50] sm:$0xff] %vm2895_vm10, %v5213_v25  ;;  %v4815_v16 = vor.u32 %v4814_v5, %v4811_v45  ;;  %v6420_v2 = vshrl.u32 %v10445_v62, 16  ;;  %v6423_v38 = vshll.u32 %v10445_v62, 16  ;;  %v4698_v48 = vmul.bf16 %v4681_v19, %v9031_v34 }
 0x5b5   : > { %v5463_v32 = vpop.permute.xlu1 %5462  ;;  %6238 = vrot.lane.b32.xlu0 %v10573_v58, %s7563_s20  ;;  %v6409_v42 = vsel %vm2006_vm2, %v6399_v55, %v6408_v36  ;;  %v6417_v1 = vor.u32 %v6416_v27, %v6413_v49  ;;  %v4820_v11 = vrot.slane %v4818_v57, 3  ;;  %v4823_v41 = vrot.slane %v4821_v0, 4 }
 0x5b6   : > { %5505 = vst.msk [vmem:[#allocation5 + $0x50] sm:$0xff] %vm3146_vm12, %v5463_v32  ;;  %v6422_v55 = vrot.slane %v6420_v2, 4  ;;  %v6425_v6 = vrot.slane %v6423_v38, 5  ;;  %v6429_v8 = vshrl.u32 %v10479_v43, 16  ;;  %v4827_v51 = vshrl.u32 %v4698_v48, 16 }
 0x5b7   : > { %5859 = vrot.lane.b32.xlu1 %v10587_v18, %s7567_s29  ;;  %v6223_v39 = vpop.permute.xlu0 %6222  ;;  %6489 = vst.msk [vmem:[#allocation5 + $0x98] sm:$0xff] %vm379_vm0, %v6409_v42  ;;  %v4816_v18 = vsel %vm2184_vm1, %v4806_v50, %v4815_v16  ;;  %v6418_v62 = vsel %vm2006_vm2, %v6408_v36, %v6417_v1  ;;  %v4824_v47 = vor.u32 %v4823_v41, %v4820_v11  ;;  %v4830_v24 = vshll.u32 %v4698_v48, 16  ;;  %v4683_v50 = vld [vmem:[#allocation3 + $0x80] sm:$0xf] }
 0x5b8   : > { %6266 = vst.msk [vmem:[#allocation5 + $0x40] sm:$0xff] %vm3912_vm9, %v6223_v39  ;;  %v6426_v34 = vor.u32 %v6425_v6, %v6422_v55  ;;  %v6431_v25 = vrot.slane %v6429_v8, 4  ;;  %v6432_v32 = vshll.u32 %v10479_v43, 16  ;;  %v4699_v54 = vmul.bf16 %v4682_v61, %v11163_v3  ;;  %v6507_v61 = vld [vmem:[#allocation5 + $0x58] sm:$0xff] }
 0x5b9   : > { %v5844_v59 = vpop.permute.xlu1 %5843  ;;  %5609 = vrot.lane.b32.xlu0 %v10573_v58, %s7564_s21  ;;  %4880 = vst.msk [vmem:[#allocation5 + $0xb0] sm:$0xff] %vm379_vm0, %v4816_v18  ;;  %6490 = vst.msk [vmem:[#allocation5 + $0xa8] sm:$0xff] %vm379_vm0, %v6418_v62  ;;  %v4825_v45 = vsel %vm2184_vm1, %v4815_v16, %v4824_v47  ;;  %v4829_v36 = vrot.slane %v4827_v51, 3  ;;  %v4832_v5 = vrot.slane %v4830_v24, 4  ;;  %v6438_v49 = vshrl.u32 %v10534_v52, 16  ;;  %v6511_v35 = vld [vmem:[#allocation5 + $0x78] sm:$0xff] }
 0x5ba   : > { %4881 = vst.msk [vmem:[#allocation5 + $0xc0] sm:$0xff] %vm379_vm0, %v4825_v45  ;;  %v6434_v19 = vrot.slane %v6432_v32, 5  ;;  %v4836_v10 = vshrl.u32 %v4699_v54, 16  ;;  %v4839_v43 = vshll.u32 %v4699_v54, 16  ;;  %v6441_v57 = vshll.u32 %v10534_v52, 16 }
 0x5bb   : > { %5230 = vrot.lane.b32.xlu1 %v10591_v44, %s7565_s12  ;;  %v5594_v33 = vpop.permute.xlu0 %5593  ;;  %v6427_v44 = vsel %vm2006_vm2, %v6417_v1, %v6426_v34  ;;  %v4833_v3 = vor.u32 %v4832_v5, %v4829_v36  ;;  %v6440_v27 = vrot.slane %v6438_v49, 4  ;;  %v4700_v0 = vmul.bf16 %v4683_v50, %v11182_v28  ;;  %v5663_v16 = vld [vmem:[#allocation3 + $0x88] sm:$0x1f]  ;;  %v5032_v62 = vld [vmem:[#allocation3 + $0x80] sm:$0x1f] }
 0x5bc   : > { %5636 = vst.msk [vmem:[#allocation5 + $0x50] sm:$0xff] %vm3278_vm13, %v5594_v33  ;;  %v10695_v42 = vrot.slane %v5816_v40, 4  ;;  %v6435_v2 = vor.u32 %v6434_v19, %v6431_v25  ;;  %v4838_v38 = vrot.slane %v4836_v10, 3  ;;  %v4841_v39 = vrot.slane %v4839_v43, 4  ;;  %v6294_v51 = vld [vmem:[#allocation3 + $0x90] sm:$0x1f] }
 0x5bd   : > { %v5215_v37 = vpop.permute.xlu1 %5214  ;;  %5886 = vst.msk [vmem:[#allocation5 + $0x50] sm:$0xff] %vm3529_vm15, %v5844_v59  ;;  %4980 = vrot.lane.b32.xlu0 %v10573_v58, %s11071_s11  ;;  %v4834_v11 = vsel %vm2184_vm1, %v4824_v47, %v4833_v3  ;;  %v6443_v41 = vrot.slane %v6441_v57, 5  ;;  %v4845_v52 = vshrl.u32 %v4700_v0, 16  ;;  %v4848_v48 = vshll.u32 %v4700_v0, 16  ;;  %v5532_v57 = vld [vmem:[#allocation3 + $0x88] sm:$0xf] }
 0x5be   : > { %6491 = vst.msk [vmem:[#allocation5 + $0xb8] sm:$0xff] %vm379_vm0, %v6427_v44  ;;  %v5821_v40 = vrot.slane %v5819_v20, 5  ;;  %v5447_v18 = vshll.u32 %v10598_v12, 16  ;;  %4882 = vst.msk [vmem:[#allocation5 + $0xd0] sm:$0xff] %vm379_vm0, %v4834_v11  ;;  %v6436_v55 = vsel %vm2006_vm2, %v6426_v34, %v6435_v2  ;;  %v4842_v6 = vor.u32 %v4841_v39, %v4838_v38 }
 0x5bf   : > { %6240 = vrot.lane.b32.xlu1 %v10577_v60, %s7563_s20  ;;  %v4965_v58 = vpop.permute.xlu0 %4964  ;;  %v6504_v1 = vld [vmem:[#allocation5 + $0x40] sm:$0xff]  ;;  %v5680_v8 = vmul.bf16 %v5663_v16, %v9219_v13  ;;  %6492 = vst.msk [vmem:[#allocation5 + $0xc8] sm:$0xff] %vm379_vm0, %v6436_v55  ;;  %v6444_v4 = vor.u32 %v6443_v41, %v6440_v27  ;;  %v4847_v20 = vrot.slane %v4845_v52, 3  ;;  %v4850_v47 = vrot.slane %v4848_v48, 4  ;;  %v6509_v48 = vld [vmem:[#allocation5 + $0x68] sm:$0xff] }
 0x5c0   : > { %5006 = vst.msk [vmem:[#allocation5 + $0x60] sm:$0xff] %vm2484_vm4, %v4965_v58  ;;  %6713 = vmatmul.mubr.bf16.gmra.mrb[28].mxu0 %v6504_v1  ;;  %v4843_v24 = vsel %vm2184_vm1, %v4833_v3, %v4842_v6  ;;  %v6449_v34 = vrot.slane %v6447_v23, 4  ;;  %v6311_v25 = vmul.bf16 %v6294_v51, %v9219_v13  ;;  %v10720_v50 = vor.u32 %v10617_v56, %v10607_v53  ;;  %v5913_v23 = vld [vmem:[#allocation3 + $0x90] sm:$0xf] }
 0x5c1   : > { %v6225_v59 = vpop.permute.xlu1 %6224  ;;  %5256 = vst.msk [vmem:[#allocation5 + $0x60] sm:$0xff] %vm2895_vm10, %v5215_v37  ;;  %6242 = vrot.lane.b32.xlu0 %v10583_v29, %s7563_s20  ;;  %7182 = vmatprep.mubr.msk.bf16.mxu0 %vm379_vm0, %v6507_v61  ;;  %v6452_v29 = vrot.slane %v6450_v15, 5  ;;  %v5446_v33 = vrot.slane %v5444_v63, 3  ;;  %v4851_v37 = vor.u32 %v4850_v47, %v4847_v20  ;;  %v5049_v46 = vmul.bf16 %v5032_v62, %v9219_v13 }
 0x5c2   : > { %4883 = vst.msk [vmem:[#allocation5 + $0xe0] sm:$0xff] %vm379_vm0, %v4843_v24  ;;  %v6456_v45 = vshrl.u32 %v6311_v25, 16  ;;  %v6459_v36 = vshll.u32 %v6311_v25, 16  ;;  %v5449_v12 = vrot.slane %v5447_v18, 4  ;;  %v5825_v53 = vshrl.u32 %v5680_v8, 16 }
 0x5c3   : > { %5611 = vrot.lane.b32.xlu1 %v10577_v60, %s7564_s21  ;;  %v6094_v32 = vpop.permute.xlu0 %6093  ;;  %v6445_v60 = vsel %vm2006_vm2, %v6435_v2, %v6444_v4  ;;  %v6453_v15 = vor.u32 %v6452_v29, %v6449_v34  ;;  %v5828_v56 = vshll.u32 %v5680_v8, 16  ;;  %v4852_v63 = vsel %vm2184_vm1, %v4842_v6, %v4851_v37 }
 0x5c4   : > { %6136 = vst.msk [vmem:[#allocation5 + $0x50] sm:$0xff] %vm3780_vm8, %v6094_v32  ;;  %v6458_v5 = vrot.slane %v6456_v45, 4  ;;  %v6461_v49 = vrot.slane %v6459_v36, 5  ;;  %v5930_v10 = vmul.bf16 %v5913_v23, %v11182_v28  ;;  %v5194_v43 = vshrl.u32 %v5049_v46, 16 }
 0x5c5   : > { %v5596_v54 = vpop.permute.xlu1 %5595  ;;  %6493 = vst.msk [vmem:[#allocation5 + $0xd8] sm:$0xff] %vm379_vm0, %v6445_v60  ;;  %6109 = vrot.lane.b32.xlu0 %v10605_v14, %s7568_s18  ;;  %4884 = vst.msk [vmem:[#allocation5 + $0xf0] sm:$0xff] %vm379_vm0, %v4852_v63  ;;  %v6454_v13 = vsel %vm2006_vm2, %v6444_v4, %v6453_v15  ;;  %v5442_v14 = vsel %vm2184_vm1, %v10538_v21, %v10629_v26  ;;  %v5197_v3 = vshll.u32 %v5049_v46, 16  ;;  %v5827_v0 = vrot.slane %v5825_v53, 4 }
 0x5c6   : > { %6267 = vst.msk [vmem:[#allocation5 + $0x50] sm:$0xff] %vm3912_vm9, %v6225_v59  ;;  %v6462_v27 = vor.u32 %v6461_v49, %v6458_v5  ;;  %v6073_v21 = vsel %vm2184_vm1, %v10557_v7, %v10720_v50  ;;  %v5450_v28 = vor.u32 %v5449_v12, %v5446_v33  ;;  %v5830_v16 = vrot.slane %v5828_v56, 5 }
 0x5c7   : > { %4982 = vrot.lane.b32.xlu1 %v10594_v9, %s11071_s11  ;;  %v5465_v44 = vpop.permute.xlu0 %5464  ;;  %6494 = vst.msk [vmem:[#allocation5 + $0xe8] sm:$0xff] %vm379_vm0, %v6454_v13  ;;  %v5822_v9 = vor.u32 %v5821_v40, %v10695_v42  ;;  %v6075_v39 = vshrl.u32 %v5930_v10, 16  ;;  %v6078_v58 = vshll.u32 %v5930_v10, 16  ;;  %v5581_v1 = vrot.slane %v5532_v57, 4  ;;  %v6163_v40 = vld [vmem:[#allocation3 + $0x90] sm:$0xf] }
 0x5c8   : > { %5506 = vst.msk [vmem:[#allocation5 + $0x60] sm:$0xff] %vm3146_vm12, %v5465_v44  ;;  %v6463_v2 = vsel %vm2006_vm2, %v6453_v15, %v6462_v27  ;;  %v5196_v11 = vrot.slane %v5194_v43, 4  ;;  %v5199_v41 = vrot.slane %v5197_v3, 5  ;;  %v5451_v52 = vsel %vm2184_vm1, %v10629_v26, %v5450_v28  ;;  %v6513_v15 = vld [vmem:[#allocation5 + $0x88] sm:$0xff]  ;;  %v6515_v44 = vld [vmem:[#allocation5 + $0x98] sm:$0xff] }
 0x5c9   : > { %v4967_v19 = vpop.permute.xlu1 %4966  ;;  %5637 = vst.msk [vmem:[#allocation5 + $0x60] sm:$0xff] %vm3278_vm13, %v5596_v54  ;;  %5480 = vrot.lane.b32.xlu0 %v5442_v14, %s7566_s26  ;;  %v5823_v59 = vsel %vm2006_vm2, %v10545_v31, %v5822_v9  ;;  %v5831_v61 = vor.u32 %v5830_v16, %v5827_v0  ;;  %v5582_v55 = vsel %vm1886_vm3, %v10541_v22, %v5581_v1  ;;  %v6077_v8 = vrot.slane %v6075_v39, 3 }
 0x5ca   : > { %5007 = vst.msk [vmem:[#allocation5 + $0x70] sm:$0xff] %vm2484_vm4, %v4967_v19  ;;  %v5200_v6 = vor.u32 %v5199_v41, %v5196_v11  ;;  %v6080_v62 = vrot.slane %v6078_v58, 4  ;;  %v6212_v4 = vrot.slane %v6163_v40, 4  ;;  %v6521_v40 = vld [vmem:[#allocation5 + $0xc8] sm:$0xff] }
 0x5cb   : > { %6111 = vrot.lane.b32.xlu1 %v6073_v21, %s7568_s18  ;;  %v5846_v42 = vpop.permute.xlu0 %5845  ;;  %6495 = vst.msk [vmem:[#allocation5 + $0xf8] sm:$0xff] %vm379_vm0, %v6463_v2  ;;  %v5832_v26 = vsel %vm2006_vm2, %v5822_v9, %v5831_v61  ;;  %v6517_v21 = vld [vmem:[#allocation5 + $0xa8] sm:$0xff] }
 0x5cc   : > { %5887 = vst.msk [vmem:[#allocation5 + $0x60] sm:$0xff] %vm3529_vm15, %v5846_v42  ;;  %v5201_v51 = vsel %vm2006_vm2, %v10547_v17, %v5200_v6  ;;  %v6081_v22 = vor.u32 %v6080_v62, %v6077_v8  ;;  %v6213_v24 = vsel %vm1886_vm3, %v6210_v30, %v6212_v4 }
 0x5cd   : > { %v6096_v38 = vpop.permute.xlu1 %6095  ;;  %v6506_v7 = vld [vmem:[#allocation5 + $0x50] sm:$0xff]  ;;  %5861 = vrot.lane.b32.xlu0 %v5823_v59, %s7567_s29  ;;  %v6519_v59 = vld [vmem:[#allocation5 + $0xb8] sm:$0xff] }
 0x5ce   : > { %6137 = vst.msk [vmem:[#allocation5 + $0x60] sm:$0xff] %vm3780_vm8, %v6096_v38  ;;  %6721 = vmatmul.mubr.bf16.gmra.mrb[32].mxu0 %v6506_v7  ;;  %v6082_v25 = vsel %vm2184_vm1, %v10720_v50, %v6081_v22 }
 0x5cf   : > { %5482 = vrot.lane.b32.xlu1 %v5451_v52, %s7566_s26  ;;  %7183 = vmatprep.mubr.msk.bf16.mxu0 %vm379_vm0, %v6509_v48  ;;  %v5217_v31 = vpop.permute.xlu0 %5216 }
 0x5d0   : > { %5257 = vst.msk [vmem:[#allocation5 + $0x70] sm:$0xff] %vm2895_vm10, %v5217_v31 }
 0x5d1   : > { %v5467_v18 = vpop.permute.xlu1 %5466  ;;  %5613 = vrot.lane.b32.xlu0 %v5582_v55, %s7564_s21  ;;  %s10938_s21 = scalar_lea.hbm %s10995_s10, %s7202_s25 }
 0x5d2   : > { %5507 = vst.msk [vmem:[#allocation5 + $0x70] sm:$0xff] %vm3146_vm12, %v5467_v18 }
 0x5d3   : > { %5863 = vrot.lane.b32.xlu1 %v5832_v26, %s7567_s29  ;;  %v6227_v20 = vpop.permute.xlu0 %6226  ;;  %s365_s29 = sand.u32 1, %s7546_s14  }
 0x5d4   : > { %6268 = vst.msk [vmem:[#allocation5 + $0x60] sm:$0xff] %vm3912_vm9, %v6227_v20 }
 0x5d5   : > { %v5848_v47 = vpop.permute.xlu1 %5847  ;;  %5232 = vrot.lane.b32.xlu0 %v5201_v51, %s7565_s12  ;;  %s10943_s12 = scalar_lea.sflag [#allocation7], %s365_s29 }
 0x5d7   : > { %6244 = vrot.lane.b32.xlu1 %v6213_v24, %s7563_s20  ;;  %v5598_v34 = vpop.permute.xlu0 %5597 }
 0x5d8   : > { %5638 = vst.msk [vmem:[#allocation5 + $0x70] sm:$0xff] %vm3278_vm13, %v5598_v34 }
 0x5d9   : > { %v5219_v29 = vpop.permute.xlu1 %5218  ;;  %5888 = vst.msk [vmem:[#allocation5 + $0x70] sm:$0xff] %vm3529_vm15, %v5848_v47  ;;  %6113 = vrot.lane.b32.xlu0 %v6082_v25, %s7568_s18  ;;  %v6523_v47 = vld [vmem:[#allocation5 + $0xd8] sm:$0xff]  ;;  %s7079_s18 = sshll.u32 %s365_s29, 5 }
 0x5da   : > { %s10914_s28 = scalar_lea.vmem [#allocation6], %s7079_s18  ;;  %s7496_s18 = sshll.u32 %s7569_s17, 4  ;;  %s7497_s18 = int_to_ptr.vmem [resolvable:$false] %s7496_s18 }
 0x5db   : > { %v4969_v17 = vpop.permute.xlu0 %4968  ;;  %v6508_v54 = vld [vmem:[#allocation5 + $0x60] sm:$0xff]  ;;  %s7001_s30 = sshll.u32 %s10914_s28, 4  ;;  %s7498_s11 = scalar_lea.vmem %s7497_s18, 1024  ;;  %s10933_s30 = int_to_ptr.vmem [resolvable:$true] %s7001_s30 }
 0x5dc   : > { %5008 = vst.msk [vmem:[#allocation5 + $0x80] sm:$0xff] %vm2484_vm4, %v4969_v17  ;;  %6729 = vmatmul.mubr.bf16.gmra.mrb[36].mxu0 %v6508_v54  ;;  %s7492_s26 = scalar_lea.vmem %s10933_s30, 512  ;;  %p7499_p0 = scmp.lt.s32.totalorder %s10933_s30, %s7497_s18 }
 0x5dd   : > { %v6229_v32 = vpop.permute.xlu1 %6228  ;;  %5258 = vst.msk [vmem:[#allocation5 + $0x80] sm:$0xff] %vm2895_vm10, %v5219_v29  ;;  %7184 = vmatprep.mubr.msk.bf16.mxu0 %vm379_vm0, %v6511_v35  ;;  %v6525_v35 = vld [vmem:[#allocation5 + $0xe8] sm:$0xff]  ;;  %p7493_p11 = scmp.ne.s32.totalorder %s10933_s30, %s7492_s26  ;;  %p7500_p1 = scmp.lt.s32.totalorder %s7498_s11, %s7492_s26 }
 0x5df   : > { %v6098_v30 = vpop.permute.xlu0 %6097  ;;  %p7494_p12 = pnand %p7493_p11, %p7664_p5  ;;  %p7501_p2 = por %p7500_p1, %p7499_p0 }
 0x5e0   : > { %6138 = vst.msk [vmem:[#allocation5 + $0x70] sm:$0xff] %vm3780_vm8, %v6098_v30 }
 0x5e1   : > { %v5600_v33 = vpop.permute.xlu1 %5599  ;;  %6269 = vst.msk [vmem:[#allocation5 + $0x70] sm:$0xff] %vm3912_vm9, %v6229_v32  ;;  %p7495_p13 = pneg %p7494_p12 }
 0x5e3   : > { %v5469_v50 = vpop.permute.xlu0 %5468  ;;  %p7502_p3 = pnand %p7501_p2, %p7495_p13 }
 0x5e4   : > { %5508 = vst.msk [vmem:[#allocation5 + $0x80] sm:$0xff] %vm3146_vm12, %v5469_v50 }
 0x5e5   : > { %v4971_v60 = vpop.permute.xlu1 %4970  ;;  %5639 = vst.msk [vmem:[#allocation5 + $0x80] sm:$0xff] %vm3278_vm13, %v5600_v33 }
 0x5e6   : > { %5009 = vst.msk [vmem:[#allocation5 + $0x90] sm:$0xff] %vm2484_vm4, %v4971_v60 }
 0x5e7   : > { %v5850_v37 = vpop.permute.xlu0 %5849 }
 0x5e8   : > { %5889 = vst.msk [vmem:[#allocation5 + $0x80] sm:$0xff] %vm3529_vm15, %v5850_v37  ;;  %v6510_v23 = vld [vmem:[#allocation5 + $0x70] sm:$0xff] }
 0x5e9   : > { %v6100_v46 = vpop.permute.xlu1 %6099  ;;  %6737 = vmatmul.mubr.bf16.gmra.mrb[40].mxu0 %v6510_v23  ;;  %v10848_v37 = vld [vmem:[%s10993_s8] ss:$0 sm:$0xff] }
 0x5ea   : > { %6139 = vst.msk [vmem:[#allocation5 + $0x80] sm:$0xff] %vm3780_vm8, %v6100_v46  ;;  %7185 = vmatprep.mubr.msk.bf16.mxu0 %vm379_vm0, %v6513_v15  ;;  %v6527_v46 = vld [vmem:[#allocation5 + $0xf8] sm:$0xff] }
 0x5eb   : > { %v5221_v45 = vpop.permute.xlu0 %5220 }
 0x5ec   : > { %5259 = vst.msk [vmem:[#allocation5 + $0x90] sm:$0xff] %vm2895_vm10, %v5221_v45 }
 0x5ed   : > { %v5471_v36 = vpop.permute.xlu1 %5470 }
 0x5ee   : > { %5509 = vst.msk [vmem:[#allocation5 + $0x90] sm:$0xff] %vm3146_vm12, %v5471_v36  ;;  %v10856_v36 = vld [vmem:[%s10994_s9] ss:$0 sm:$0xff] }
 0x5ef   : > { %v6231_v12 = vpop.permute.xlu0 %6230 }
 0x5f0   : > { %6270 = vst.msk [vmem:[#allocation5 + $0x80] sm:$0xff] %vm3912_vm9, %v6231_v12 }
 0x5f1   : > { %v5852_v53 = vpop.permute.xlu1 %5851 }
 0x5f3   : > { %v5602_v56 = vpop.permute.xlu0 %5601 }
 0x5f4   : > { %5640 = vst.msk [vmem:[#allocation5 + $0x90] sm:$0xff] %vm3278_vm13, %v5602_v56 }
 0x5f5   : > { %v5223_v63 = vpop.permute.xlu1 %5222  ;;  %5890 = vst.msk [vmem:[#allocation5 + $0x90] sm:$0xff] %vm3529_vm15, %v5852_v53 }
 0x5f7   : > { %v4973_v13 = vpop.permute.xlu0 %4972  ;;  %v6512_v5 = vld [vmem:[#allocation5 + $0x80] sm:$0xff] }
 0x5f8   : > { %5010 = vst.msk [vmem:[#allocation5 + $0xa0] sm:$0xff] %vm2484_vm4, %v4973_v13  ;;  %6745 = vmatmul.mubr.bf16.gmra.mrb[44].mxu0 %v6512_v5 }
 0x5f9   : > { %v6233_v49 = vpop.permute.xlu1 %6232  ;;  %5260 = vst.msk [vmem:[#allocation5 + $0xa0] sm:$0xff] %vm2895_vm10, %v5223_v63  ;;  %7186 = vmatprep.mubr.msk.bf16.mxu0 %vm379_vm0, %v6515_v44 }
 0x5fb   : > { %v6102_v19 = vpop.permute.xlu0 %6101 }
 0x5fc   : > { %6140 = vst.msk [vmem:[#allocation5 + $0x90] sm:$0xff] %vm3780_vm8, %v6102_v19 }
 0x5fd   : > { %v5604_v14 = vpop.permute.xlu1 %5603  ;;  %6271 = vst.msk [vmem:[#allocation5 + $0x90] sm:$0xff] %vm3912_vm9, %v6233_v49 }
 0x5ff   : > { %v5473_v10 = vpop.permute.xlu0 %5472 }
 0x600   : > { %5510 = vst.msk [vmem:[#allocation5 + $0xa0] sm:$0xff] %vm3146_vm12, %v5473_v10 }
 0x601   : > { %v4975_v9 = vpop.permute.xlu1 %4974  ;;  %5641 = vst.msk [vmem:[#allocation5 + $0xa0] sm:$0xff] %vm3278_vm13, %v5604_v14 }
 0x602   : > { %5011 = vst.msk [vmem:[#allocation5 + $0xb0] sm:$0xff] %vm2484_vm4, %v4975_v9 }
 0x603   : > { %v5854_v43 = vpop.permute.xlu0 %5853 }
 0x604   : > { %5891 = vst.msk [vmem:[#allocation5 + $0xa0] sm:$0xff] %vm3529_vm15, %v5854_v43  ;;  %v6514_v27 = vld [vmem:[#allocation5 + $0x90] sm:$0xff] }
 0x605   : > { %v6104_v3 = vpop.permute.xlu1 %6103  ;;  %6753 = vmatmul.mubr.bf16.gmra.mrb[48].mxu0 %v6514_v27 }
 0x606   : > { %6141 = vst.msk [vmem:[#allocation5 + $0xa0] sm:$0xff] %vm3780_vm8, %v6104_v3  ;;  %7187 = vmatprep.mubr.msk.bf16.mxu0 %vm379_vm0, %v6517_v21 }
 0x607   : > { %v5225_v28 = vpop.permute.xlu0 %5224 }
 0x608   : > { %5261 = vst.msk [vmem:[#allocation5 + $0xb0] sm:$0xff] %vm2895_vm10, %v5225_v28 }
 0x609   : > { %v5475_v57 = vpop.permute.xlu1 %5474 }
 0x60a   : > { %5511 = vst.msk [vmem:[#allocation5 + $0xb0] sm:$0xff] %vm3146_vm12, %v5475_v57 }
 0x60b   : > { %v6235_v0 = vpop.permute.xlu0 %6234 }
 0x60c   : > { %6272 = vst.msk [vmem:[#allocation5 + $0xa0] sm:$0xff] %vm3912_vm9, %v6235_v0 }
 0x60d   : > { %v5856_v16 = vpop.permute.xlu1 %5855 }
 0x60f   : > { %v5606_v2 = vpop.permute.xlu0 %5605 }
 0x610   : > { %5642 = vst.msk [vmem:[#allocation5 + $0xb0] sm:$0xff] %vm3278_vm13, %v5606_v2 }
 0x611   : > { %v5227_v42 = vpop.permute.xlu1 %5226  ;;  %5892 = vst.msk [vmem:[#allocation5 + $0xb0] sm:$0xff] %vm3529_vm15, %v5856_v16 }
 0x613   : > { %v4977_v38 = vpop.permute.xlu0 %4976  ;;  %v6516_v39 = vld [vmem:[#allocation5 + $0xa0] sm:$0xff] }
 0x614   : > { %5012 = vst.msk [vmem:[#allocation5 + $0xc0] sm:$0xff] %vm2484_vm4, %v4977_v38  ;;  %6761 = vmatmul.mubr.bf16.gmra.mrb[52].mxu0 %v6516_v39 }
 0x615   : > { %v6237_v58 = vpop.permute.xlu1 %6236  ;;  %5262 = vst.msk [vmem:[#allocation5 + $0xc0] sm:$0xff] %vm2895_vm10, %v5227_v42  ;;  %7188 = vmatprep.mubr.msk.bf16.mxu0 %vm379_vm0, %v6519_v59 }
 0x617   : > { %v6106_v7 = vpop.permute.xlu0 %6105 }
 0x618   : > { %6142 = vst.msk [vmem:[#allocation5 + $0xb0] sm:$0xff] %vm3780_vm8, %v6106_v7 }
 0x619   : > { %v5608_v1 = vpop.permute.xlu1 %5607  ;;  %6273 = vst.msk [vmem:[#allocation5 + $0xb0] sm:$0xff] %vm3912_vm9, %v6237_v58 }
 0x61b   : > { %v5477_v11 = vpop.permute.xlu0 %5476 }
 0x61c   : > { %5512 = vst.msk [vmem:[#allocation5 + $0xc0] sm:$0xff] %vm3146_vm12, %v5477_v11 }
 0x61d   : > { %v4979_v41 = vpop.permute.xlu1 %4978  ;;  %5643 = vst.msk [vmem:[#allocation5 + $0xc0] sm:$0xff] %vm3278_vm13, %v5608_v1 }
 0x61e   : > { %5013 = vst.msk [vmem:[#allocation5 + $0xd0] sm:$0xff] %vm2484_vm4, %v4979_v41 }
 0x61f   : > { %v5858_v52 = vpop.permute.xlu0 %5857 }
 0x620   : > { %5893 = vst.msk [vmem:[#allocation5 + $0xc0] sm:$0xff] %vm3529_vm15, %v5858_v52  ;;  %v6518_v61 = vld [vmem:[#allocation5 + $0xb0] sm:$0xff] }
 0x621   : > { %v6108_v48 = vpop.permute.xlu1 %6107  ;;  %6769 = vmatmul.mubr.bf16.gmra.mrb[56].mxu0 %v6518_v61 }
 0x622   : > { %6143 = vst.msk [vmem:[#allocation5 + $0xc0] sm:$0xff] %vm3780_vm8, %v6108_v48  ;;  %7189 = vmatprep.mubr.msk.bf16.mxu0 %vm379_vm0, %v6521_v40 }
 0x623   : > { %v5229_v31 = vpop.permute.xlu0 %5228 }
 0x624   : > { %5263 = vst.msk [vmem:[#allocation5 + $0xd0] sm:$0xff] %vm2895_vm10, %v5229_v31 }
 0x625   : > { %v5479_v18 = vpop.permute.xlu1 %5478 }
 0x626   : > { %5513 = vst.msk [vmem:[#allocation5 + $0xd0] sm:$0xff] %vm3146_vm12, %v5479_v18 }
 0x627   : > { %v6239_v55 = vpop.permute.xlu0 %6238 }
 0x628   : > { %6274 = vst.msk [vmem:[#allocation5 + $0xc0] sm:$0xff] %vm3912_vm9, %v6239_v55 }
 0x629   : > { %v5860_v6 = vpop.permute.xlu1 %5859 }
 0x62b   : > { %v5610_v8 = vpop.permute.xlu0 %5609 }
 0x62c   : > { %5644 = vst.msk [vmem:[#allocation5 + $0xd0] sm:$0xff] %vm3278_vm13, %v5610_v8 }
 0x62d   : > { %v5231_v62 = vpop.permute.xlu1 %5230  ;;  %5894 = vst.msk [vmem:[#allocation5 + $0xd0] sm:$0xff] %vm3529_vm15, %v5860_v6 }
 0x62f   : > { %v4981_v26 = vpop.permute.xlu0 %4980  ;;  %v6520_v4 = vld [vmem:[#allocation5 + $0xc0] sm:$0xff] }
 0x630   : > { %5014 = vst.msk [vmem:[#allocation5 + $0xe0] sm:$0xff] %vm2484_vm4, %v4981_v26  ;;  %6777 = vmatmul.mubr.bf16.gmra.mrb[60].mxu0 %v6520_v4 }
 0x631   : > { %v6241_v20 = vpop.permute.xlu1 %6240  ;;  %5264 = vst.msk [vmem:[#allocation5 + $0xe0] sm:$0xff] %vm2895_vm10, %v5231_v62  ;;  %7190 = vmatprep.mubr.msk.bf16.mxu0 %vm379_vm0, %v6523_v47 }
 0x633   : > { %v6243_v51 = vpop.permute.xlu0 %6242 }
 0x635   : > { %v5612_v22 = vpop.permute.xlu1 %5611 }
 0x637   : > { %v6110_v24 = vpop.permute.xlu0 %6109 }
 0x638   : > { %6144 = vst.msk [vmem:[#allocation5 + $0xd0] sm:$0xff] %vm3780_vm8, %v6110_v24 }
 0x639   : > { %v4983_v34 = vpop.permute.xlu1 %4982  ;;  %6275 = vst.msk [vmem:[#allocation5 + $0xd0] sm:$0xff] %vm3912_vm9, %v6241_v20 }
 0x63a   : > { %5015 = vst.msk [vmem:[#allocation5 + $0xf0] sm:$0xff] %vm2484_vm4, %v4983_v34 }
 0x63b   : > { %v5481_v29 = vpop.permute.xlu0 %5480 }
 0x63c   : > { %5514 = vst.msk [vmem:[#allocation5 + $0xe0] sm:$0xff] %vm3146_vm12, %v5481_v29 }
 0x63d   : > { %v6112_v25 = vpop.permute.xlu1 %6111  ;;  %5645 = vst.msk [vmem:[#allocation5 + $0xe0] sm:$0xff] %vm3278_vm13, %v5612_v22 }
 0x63f   : > { %v5862_v17 = vpop.permute.xlu0 %5861 }
 0x640   : > { %5895 = vst.msk [vmem:[#allocation5 + $0xe0] sm:$0xff] %vm3529_vm15, %v5862_v17  ;;  %v6522_v54 = vld [vmem:[#allocation5 + $0xd0] sm:$0xff] }
 0x641   : > { %v5483_v32 = vpop.permute.xlu1 %5482  ;;  %6145 = vst.msk [vmem:[#allocation5 + $0xe0] sm:$0xff] %vm3780_vm8, %v6112_v25  ;;  %6785 = vmatmul.mubr.bf16.gmra.mrb[64].mxu0 %v6522_v54 }
 0x642   : > { %6276 = vst.msk [vmem:[#allocation5 + $0xe0] sm:$0xff] %vm3912_vm9, %v6243_v51  ;;  %7191 = vmatprep.mubr.msk.bf16.mxu0 %vm379_vm0, %v6525_v35 }
 0x643   : > { %v5614_v30 = vpop.permute.xlu0 %5613 }
 0x645   : > { %v5864_v33 = vpop.permute.xlu1 %5863 }
 0x647   : > { %v5233_v50 = vpop.permute.xlu0 %5232 }
 0x648   : > { %5265 = vst.msk [vmem:[#allocation5 + $0xf0] sm:$0xff] %vm2895_vm10, %v5233_v50 }
 0x649   : > { %5515 = vst.msk [vmem:[#allocation5 + $0xf0] sm:$0xff] %vm3146_vm12, %v5483_v32  ;;  %v6524_v60 = vld [vmem:[#allocation5 + $0xe0] sm:$0xff]  ;;  %v6245_v15 = vpop.permute.xlu1 %6244 }
 0x64a   : > { %5646 = vst.msk [vmem:[#allocation5 + $0xf0] sm:$0xff] %vm3278_vm13, %v5614_v30  ;;  %6793 = vmatmul.mubr.bf16.gmra.mrb[68].mxu0 %v6524_v60 }
 0x64b   : > { %5896 = vst.msk [vmem:[#allocation5 + $0xf0] sm:$0xff] %vm3529_vm15, %v5864_v33  ;;  %v6114_v23 = vpop.permute.xlu0 %6113  ;;  %7192 = vmatprep.mubr.msk.bf16.mxu0 %vm379_vm0, %v6527_v46 }
 0x64c   : > { %6146 = vst.msk [vmem:[#allocation5 + $0xf0] sm:$0xff] %vm3780_vm8, %v6114_v23 }
 0x64d   : > { %v6682_v45 = vpop.f32.mrb[12].mxu0  ;;  %6277 = vst.msk [vmem:[#allocation5 + $0xf0] sm:$0xff] %vm3912_vm9, %v6245_v15 }
 0x64e   : > { %v6816_v12 = vmul.f32 %v10848_v37, %v6682_v45  ;;  %v6684_v53 = vpop.f32.mrb[13].mxu0 }
 0x64f   : > { %v6685_v56 = vpop.f32.mrb[14].mxu0 }
 0x650   : > { %v6855_v63 = vadd.f32 %v10856_v36, %v6816_v12  ;;  %v6817_v13 = vmul.f32 %v10848_v37, %v6685_v56  ;;  %v6687_v5 = vpop.f32.mrb[15].mxu0 }
 0x652   : > { %v6887_v49 = vmax.f32 %v6855_v63, 0.0  ;;  %v6856_v44 = vadd.f32 %v10856_v36, %v6817_v13 }
 0x654   : > { %6919 = vxpose.xlu0.b32.start [1/16] (narrow) %v6887_v49, 16  ;;  %v6526_v19 = vld [vmem:[#allocation5 + $0xf0] sm:$0xff]  ;;  %v6888_v14 = vmax.f32 %v6856_v44, 0.0 }
 0x655   : > { %6801 = vmatmul.mubr.bf16.gmra.mrb[72].mxu0 %v6526_v19 }
 0x658   : > { %6920 = vxpose.xlu0.b32.cont [2/16] (narrow) %v6888_v14, 16 }
 0x65d   : > { %v6690_v10 = vpop.f32.mrb[16].mxu0 }
 0x65e   : > { %v6818_v9 = vmul.f32 %v10848_v37, %v6690_v10  ;;  %v6692_v43 = vpop.f32.mrb[17].mxu0 }
 0x65f   : > { %v6693_v3 = vpop.f32.mrb[18].mxu0 }
 0x660   : > { %v6857_v27 = vadd.f32 %v10856_v36, %v6818_v9  ;;  %v6819_v21 = vmul.f32 %v10848_v37, %v6693_v3  ;;  %v6695_v28 = vpop.f32.mrb[19].mxu0 }
 0x662   : > { %v6889_v57 = vmax.f32 %v6857_v27, 0.0  ;;  %v6858_v0 = vadd.f32 %v10856_v36, %v6819_v21 }
 0x664   : > { %6921 = vxpose.xlu0.b32.cont [3/16] (narrow) %v6889_v57, 16  ;;  %v6890_v16 = vmax.f32 %v6858_v0, 0.0 }
 0x668   : > { %6922 = vxpose.xlu0.b32.cont [4/16] (narrow) %v6890_v16, 16 }
 0x672   : > { %v6698_v2 = vpop.f32.mrb[20].mxu0 }
 0x673   : > { %v6820_v42 = vmul.f32 %v10848_v37, %v6698_v2  ;;  %v6700_v38 = vpop.f32.mrb[21].mxu0 }
 0x674   : > { %v6701_v39 = vpop.f32.mrb[22].mxu0 }
 0x675   : > { %v6859_v58 = vadd.f32 %v10856_v36, %v6820_v42  ;;  %v6821_v59 = vmul.f32 %v10848_v37, %v6701_v39  ;;  %v6703_v7 = vpop.f32.mrb[23].mxu0 }
 0x677   : > { %v6891_v1 = vmax.f32 %v6859_v58, 0.0  ;;  %v6860_v11 = vadd.f32 %v10856_v36, %v6821_v59 }
 0x679   : > { %6923 = vxpose.xlu0.b32.cont [5/16] (narrow) %v6891_v1, 16  ;;  %v6892_v41 = vmax.f32 %v6860_v11, 0.0 }
 0x67d   : > { %6924 = vxpose.xlu0.b32.cont [6/16] (narrow) %v6892_v41, 16 }
 0x684   : > { %v6706_v52 = vpop.f32.mrb[24].mxu0 }
 0x685   : > { %v6822_v48 = vmul.f32 %v10848_v37, %v6706_v52  ;;  %v6708_v61 = vpop.f32.mrb[25].mxu0 }
 0x686   : > { %v6709_v40 = vpop.f32.mrb[26].mxu0 }
 0x687   : > { %v6861_v31 = vadd.f32 %v10856_v36, %v6822_v48  ;;  %v6823_v18 = vmul.f32 %v10848_v37, %v6709_v40  ;;  %v6711_v55 = vpop.f32.mrb[27].mxu0 }
 0x689   : > { %v6893_v6 = vmax.f32 %v6861_v31, 0.0  ;;  %v6862_v8 = vadd.f32 %v10856_v36, %v6823_v18 }
 0x68b   : > { %6925 = vxpose.xlu0.b32.cont [7/16] (narrow) %v6893_v6, 16  ;;  %v6894_v62 = vmax.f32 %v6862_v8, 0.0 }
 0x68f   : > { %6926 = vxpose.xlu0.b32.cont [8/16] (narrow) %v6894_v62, 16 }
 0x693   : > { %v6714_v26 = vpop.f32.mrb[28].mxu0 }
 0x694   : > { %v6824_v4 = vmul.f32 %v10848_v37, %v6714_v26  ;;  %v6716_v20 = vpop.f32.mrb[29].mxu0 }
 0x695   : > { %v6717_v47 = vpop.f32.mrb[30].mxu0 }
 0x696   : > { %v6863_v51 = vadd.f32 %v10856_v36, %v6824_v4  ;;  %v6825_v22 = vmul.f32 %v10848_v37, %v6717_v47  ;;  %v6719_v24 = vpop.f32.mrb[31].mxu0 }
 0x698   : > { %v6895_v34 = vmax.f32 %v6863_v51, 0.0  ;;  %v6864_v29 = vadd.f32 %v10856_v36, %v6825_v22 }
 0x69a   : > { %6927 = vxpose.xlu0.b32.cont [9/16] (narrow) %v6895_v34, 16  ;;  %v6896_v25 = vmax.f32 %v6864_v29, 0.0 }
 0x69e   : > { %6928 = vxpose.xlu0.b32.cont [10/16] (narrow) %v6896_v25, 16 }
 0x6a1   : > { %v6722_v17 = vpop.f32.mrb[32].mxu0 }
 0x6a2   : > { %v6826_v32 = vmul.f32 %v10848_v37, %v6722_v17  ;;  %v6724_v54 = vpop.f32.mrb[33].mxu0 }
 0x6a3   : > { %v6725_v35 = vpop.f32.mrb[34].mxu0 }
 0x6a4   : > { %v6865_v30 = vadd.f32 %v10856_v36, %v6826_v32  ;;  %v6827_v33 = vmul.f32 %v10848_v37, %v6725_v35  ;;  %v6727_v50 = vpop.f32.mrb[35].mxu0 }
 0x6a6   : > { %v6897_v60 = vmax.f32 %v6865_v30, 0.0  ;;  %v6866_v46 = vadd.f32 %v10856_v36, %v6827_v33 }
 0x6a8   : > { %6929 = vxpose.xlu0.b32.cont [11/16] (narrow) %v6897_v60, 16  ;;  %v6898_v23 = vmax.f32 %v6866_v46, 0.0 }
 0x6ac   : > { %6930 = vxpose.xlu0.b32.cont [12/16] (narrow) %v6898_v23, 16 }
 0x6af   : > { %v6730_v15 = vpop.f32.mrb[36].mxu0 }
 0x6b0   : > { %v6828_v45 = vmul.f32 %v10848_v37, %v6730_v15  ;;  %v6732_v12 = vpop.f32.mrb[37].mxu0 }
 0x6b1   : > { %v6733_v53 = vpop.f32.mrb[38].mxu0 }
 0x6b2   : > { %v6867_v56 = vadd.f32 %v10856_v36, %v6828_v45  ;;  %v6829_v63 = vmul.f32 %v10848_v37, %v6733_v53  ;;  %v6735_v13 = vpop.f32.mrb[39].mxu0 }
 0x6b4   : > { %v6899_v5 = vmax.f32 %v6867_v56, 0.0  ;;  %v6868_v49 = vadd.f32 %v10856_v36, %v6829_v63 }
 0x6b6   : > { %6931 = vxpose.xlu0.b32.cont [13/16] (narrow) %v6899_v5, 16  ;;  %v6900_v44 = vmax.f32 %v6868_v49, 0.0 }
 0x6ba   : > { %6932 = vxpose.xlu0.b32.cont [14/16] (narrow) %v6900_v44, 16 }
 0x6bc   : > { %v6738_v19 = vpop.f32.mrb[40].mxu0 }
 0x6bd   : > { %v6830_v14 = vmul.f32 %v10848_v37, %v6738_v19  ;;  %v6740_v10 = vpop.f32.mrb[41].mxu0 }
 0x6be   : > { %v6741_v9 = vpop.f32.mrb[42].mxu0 }
 0x6bf   : > { %v6869_v43 = vadd.f32 %v10856_v36, %v6830_v14  ;;  %v6831_v3 = vmul.f32 %v10848_v37, %v6741_v9  ;;  %v6743_v27 = vpop.f32.mrb[43].mxu0 }
 0x6c1   : > { %v6901_v21 = vmax.f32 %v6869_v43, 0.0  ;;  %v6870_v28 = vadd.f32 %v10856_v36, %v6831_v3 }
 0x6c3   : > { %6933 = vxpose.xlu0.b32.cont [15/16] (narrow) %v6901_v21, 16  ;;  %v6902_v57 = vmax.f32 %v6870_v28, 0.0 }
 0x6c7   : > { %6934 = vxpose.xlu0.b32.end [16/16] (narrow) %v6902_v57, 16 }
 0x6cb   : > { %v6746_v0 = vpop.f32.mrb[44].mxu0 }
 0x6cc   : > { %v6832_v16 = vmul.f32 %v10848_v37, %v6746_v0  ;;  %v6748_v2 = vpop.f32.mrb[45].mxu0 }
 0x6cd   : > { %v6749_v42 = vpop.f32.mrb[46].mxu0 }
 0x6ce   : > { %v6871_v38 = vadd.f32 %v10856_v36, %v6832_v16  ;;  %v6833_v39 = vmul.f32 %v10848_v37, %v6749_v42  ;;  %v6751_v58 = vpop.f32.mrb[47].mxu0 }
 0x6d0   : > { %v6903_v59 = vmax.f32 %v6871_v38, 0.0  ;;  %v6872_v7 = vadd.f32 %v10856_v36, %v6833_v39 }
 0x6d2   : > { %6951 = vxpose.xlu1.b32.start [1/16] (narrow) %v6903_v59, 16  ;;  %v6904_v1 = vmax.f32 %v6872_v7, 0.0 }
 0x6d6   : > { %6952 = vxpose.xlu1.b32.cont [2/16] (narrow) %v6904_v1, 16 }
 0x6d8   : > { %v6754_v11 = vpop.f32.mrb[48].mxu0 }
 0x6d9   : > { %v6834_v41 = vmul.f32 %v10848_v37, %v6754_v11  ;;  %v6756_v52 = vpop.f32.mrb[49].mxu0 }
 0x6da   : > { %v6757_v48 = vpop.f32.mrb[50].mxu0 }
 0x6db   : > { %v6873_v61 = vadd.f32 %v10856_v36, %v6834_v41  ;;  %v6835_v40 = vmul.f32 %v10848_v37, %v6757_v48  ;;  %v6759_v31 = vpop.f32.mrb[51].mxu0 }
 0x6dd   : > { %v6905_v18 = vmax.f32 %v6873_v61, 0.0  ;;  %v6874_v55 = vadd.f32 %v10856_v36, %v6835_v40 }
 0x6df   : > { %6953 = vxpose.xlu1.b32.cont [3/16] (narrow) %v6905_v18, 16  ;;  %v6906_v6 = vmax.f32 %v6874_v55, 0.0 }
 0x6e3   : > { %6954 = vxpose.xlu1.b32.cont [4/16] (narrow) %v6906_v6, 16 }
 0x6e7   : > { %v6762_v8 = vpop.f32.mrb[52].mxu0 }
 0x6e8   : > { %v6836_v62 = vmul.f32 %v10848_v37, %v6762_v8  ;;  %v6764_v26 = vpop.f32.mrb[53].mxu0 }
 0x6e9   : > { %v6765_v4 = vpop.f32.mrb[54].mxu0 }
 0x6ea   : > { %v6875_v20 = vadd.f32 %v10856_v36, %v6836_v62  ;;  %v6837_v47 = vmul.f32 %v10848_v37, %v6765_v4  ;;  %v6767_v51 = vpop.f32.mrb[55].mxu0 }
 0x6ec   : > { %v6907_v22 = vmax.f32 %v6875_v20, 0.0  ;;  %v6876_v24 = vadd.f32 %v10856_v36, %v6837_v47 }
 0x6ee   : > { %6955 = vxpose.xlu1.b32.cont [5/16] (narrow) %v6907_v22, 16  ;;  %v6908_v34 = vmax.f32 %v6876_v24, 0.0 }
 0x6f2   : > { %6956 = vxpose.xlu1.b32.cont [6/16] (narrow) %v6908_v34, 16 }
 0x6f4   : > { %v6770_v29 = vpop.f32.mrb[56].mxu0 }
 0x6f5   : > { %v6838_v25 = vmul.f32 %v10848_v37, %v6770_v29  ;;  %v6772_v17 = vpop.f32.mrb[57].mxu0 }
 0x6f6   : > { %v6773_v32 = vpop.f32.mrb[58].mxu0 }
 0x6f7   : > { %v6877_v54 = vadd.f32 %v10856_v36, %v6838_v25  ;;  %v6839_v35 = vmul.f32 %v10848_v37, %v6773_v32  ;;  %v6775_v30 = vpop.f32.mrb[59].mxu0 }
 0x6f9   : > { %v6909_v33 = vmax.f32 %v6877_v54, 0.0  ;;  %v6878_v50 = vadd.f32 %v10856_v36, %v6839_v35 }
 0x6fb   : > { %6957 = vxpose.xlu1.b32.cont [7/16] (narrow) %v6909_v33, 16  ;;  %v6910_v60 = vmax.f32 %v6878_v50, 0.0 }
 0x6ff   : > { %6958 = vxpose.xlu1.b32.cont [8/16] (narrow) %v6910_v60, 16 }
 0x703   : > { %v6778_v46 = vpop.f32.mrb[60].mxu0 }
 0x704   : > { %v6840_v23 = vmul.f32 %v10848_v37, %v6778_v46  ;;  %v6780_v15 = vpop.f32.mrb[61].mxu0 }
 0x705   : > { %v6781_v45 = vpop.f32.mrb[62].mxu0 }
 0x706   : > { %v6879_v12 = vadd.f32 %v10856_v36, %v6840_v23  ;;  %v6841_v53 = vmul.f32 %v10848_v37, %v6781_v45  ;;  %v6783_v56 = vpop.f32.mrb[63].mxu0 }
 0x708   : > { %v6911_v63 = vmax.f32 %v6879_v12, 0.0  ;;  %v6880_v13 = vadd.f32 %v10856_v36, %v6841_v53 }
 0x70a   : > { %6959 = vxpose.xlu1.b32.cont [9/16] (narrow) %v6911_v63, 16  ;;  %v6912_v49 = vmax.f32 %v6880_v13, 0.0 }
 0x70b   : > { %v6935_v5 = vpop.trf.xlu0 }
 0x70c   : > { %6983 = vst [vmem:[%s10914_s28] sm:$0xff] %v6935_v5 }
 0x70e   : > { %6960 = vxpose.xlu1.b32.cont [10/16] (narrow) %v6912_v49, 16 }
 0x70f   : > { %v6936_v44 = vpop.trf.xlu0 }
 0x710   : > { %6985 = vst [vmem:[%s10914_s28 + $0x10] sm:$0xff] %v6936_v44 }
 0x714   : > { %v6786_v19 = vpop.f32.mrb[64].mxu0 }
 0x715   : > { %v6842_v14 = vmul.f32 %v10848_v37, %v6786_v19  ;;  %v6788_v10 = vpop.f32.mrb[65].mxu0 }
 0x716   : > { %v6789_v9 = vpop.f32.mrb[66].mxu0 }
 0x717   : > { %v6881_v43 = vadd.f32 %v10856_v36, %v6842_v14  ;;  %v6843_v3 = vmul.f32 %v10848_v37, %v6789_v9  ;;  %v6791_v27 = vpop.f32.mrb[67].mxu0 }
 0x719   : > { %v6913_v21 = vmax.f32 %v6881_v43, 0.0  ;;  %v6882_v28 = vadd.f32 %v10856_v36, %v6843_v3 }
 0x71b   : > { %6961 = vxpose.xlu1.b32.cont [11/16] (narrow) %v6913_v21, 16  ;;  %v6914_v57 = vmax.f32 %v6882_v28, 0.0 }
 0x71d   : > { %v6794_v0 = vpop.f32.mrb[68].mxu0 }
 0x71e   : > { %v6844_v16 = vmul.f32 %v10848_v37, %v6794_v0  ;;  %v6796_v2 = vpop.f32.mrb[69].mxu0 }
 0x71f   : > { %6962 = vxpose.xlu1.b32.cont [12/16] (narrow) %v6914_v57, 16  ;;  %v6797_v42 = vpop.f32.mrb[70].mxu0 }
 0x720   : > { %v6883_v38 = vadd.f32 %v10856_v36, %v6844_v16  ;;  %v6845_v39 = vmul.f32 %v10848_v37, %v6797_v42  ;;  %v6799_v58 = vpop.f32.mrb[71].mxu0 }
 0x722   : > { %v6915_v59 = vmax.f32 %v6883_v38, 0.0  ;;  %v6884_v7 = vadd.f32 %v10856_v36, %v6845_v39 }
 0x724   : > { %6963 = vxpose.xlu1.b32.cont [13/16] (narrow) %v6915_v59, 16  ;;  %v6916_v1 = vmax.f32 %v6884_v7, 0.0 }
 0x728   : > { %6964 = vxpose.xlu1.b32.cont [14/16] (narrow) %v6916_v1, 16  ;;  %v6802_v11 = vpop.f32.mrb[72].mxu0 }
 0x729   : > { %v6846_v41 = vmul.f32 %v10848_v37, %v6802_v11  ;;  %v6804_v52 = vpop.f32.mrb[73].mxu0 }
 0x72a   : > { %v6805_v48 = vpop.f32.mrb[74].mxu0 }
 0x72b   : > { %v6885_v61 = vadd.f32 %v10856_v36, %v6846_v41  ;;  %v6847_v40 = vmul.f32 %v10848_v37, %v6805_v48  ;;  %v6807_v31 = vpop.f32.mrb[75].mxu0 }
 0x72d   : > { %v6917_v18 = vmax.f32 %v6885_v61, 0.0  ;;  %v6886_v55 = vadd.f32 %v10856_v36, %v6847_v40 }
 0x72f   : > { %6965 = vxpose.xlu1.b32.cont [15/16] (narrow) %v6917_v18, 16  ;;  %v6918_v6 = vmax.f32 %v6886_v55, 0.0 }
 0x733   : > { %6966 = vxpose.xlu1.b32.end [16/16] (narrow) %v6918_v6, 16 }
 0x777   : > { %v6967_v8 = vpop.trf.xlu1 }
 0x778   : > { %6984 = vst [vmem:[%s10914_s28 + $0x8] sm:$0xff] %v6967_v8 }
 0x77b   : > { %v6968_v37 = vpop.trf.xlu1 }
 0x77c   : > { %6986 = vst [vmem:[%s10914_s28 + $0x18] sm:$0xff] %v6968_v37 }
 0x77d   : > { %7505 = shalt.err (!%p7502_p3)
}
 0x77e   : > { %s7506_s29 = scalar_lea.hbm %s10938_s21, 512  ;;  %s7510_s27 = scalar_lea.hbm %s10995_s10, 1024 }
 0x77f   : > { %p7507_p4 = scmp.ne.s32.totalorder %s10938_s21, %s7506_s29  ;;  %p7511_p9 = scmp.lt.u32.totalorder %s10938_s21, %s10995_s10 }
 0x780   : > { %p7512_p10 = scmp.lt.u32.totalorder %s7510_s27, %s7506_s29  ;;  %p7514_p12 = scmp.lt.u32.totalorder %s7506_s29, %s10938_s21 }
 0x781   : > { %p7508_p7 = pnand %p7507_p4, %p7664_p5 }
 0x782   : > { %p7513_p11 = por %p7512_p10, %p7511_p9 }
 0x783   : > { %p7509_p8 = pneg %p7508_p7 }
 0x784   : > { %p7515_p13 = por %p7514_p12, %p7513_p11 }
 0x786   : > { %p7516_p0 = pnand %p7515_p13, %p7509_p8 }
 0x788   : > { %7519 = shalt.err (!%p7516_p0)
}
 0x789   : > { %s7570_s11 = smov 256   ;;  %s11213_s26 = smov 16  }
 0x78a   : > { %7297 = dma.vmem_to_hbm [thread:$0]  (%p7664_p5), %s10933_s30, 512, %s10938_s21, %s10943_s12, %s7570_s11, %s7570_s11, %s11213_s26  }
 0x78b PF: > { %p7303_p1 = scmp.ge.s32.totalorder %s7554_s16, 2  ;;  %s7016_s18 = sand.u32 1, %s7542_s13  }
 0x78c   : > { %s7017_s29 = scalar_lea.sflag [#allocation7], %s7016_s18 }
 0x78d   : > { %p7300_p2 = pnand %p7303_p1, %p7668_p6 }
 0x78f   : > { %7537 = dma.done.wait (!%p7300_p2), %s7017_s29, 512  }
 0x790   : > { %7539 = vsyncadd (!%p7300_p2), %s7017_s29, 4294966784  ;;  %p20_p3 = scmp.ge.s32.totalorder %s7651_s19, 4   ;;  %s11214_s13 = smov %s7546_s14 }
 0x791   : > { %s11215_s14 = smov %s7550_s15  ;;  %s11216_s15 = smov %s7662_s22 }
 0x792   : > { %s11217_s16 = smov %s7651_s19  ;;  %22 = sbr.rel (!%p20_p3) target bundleno = 3 (0x3), region = 98 }
 0x799   :  { %7022 = vsyncpa [#allocation7], 1 }
 0x79a   :  { %7024 = vsyncpa [#allocation7 + $0x1], 1 }

</bundles_post_ra>
